<compile_context>
chip_gen: v7x
topology: tpu7x:2x2x1
jax: 0.10.0
libtpu: 0.0.40
codegen_flags: <defaults>
</compile_context>

<pallas_src>
import functools

import jax
import jax.numpy as jnp
from jax.experimental import pallas as pl
from jax.experimental.pallas import tpu as pltpu

LANE = 128
EPS = 1e-5


def _round_up(x, m):
    return (x + m - 1) // m * m


def _vmem_limit_bytes():
    """Generation-aware VMEM limit: ~48 MiB on 64 MiB parts (v7x), ~100+ MiB on
    128 MiB parts (v5e / v6e)."""
    default = 48 * 1024 * 1024
    try:
        cap = int(pltpu.get_tpu_info().vmem_capacity_bytes)
    except Exception:
        return default
    if cap <= 0:
        return default
    return max(32 * 1024 * 1024, min(int(cap * 0.85), cap - 16 * 1024 * 1024))


def _taps_concat(s0, s1, s2, Wp, Mw):
    """Lane-concatenate the 9 conv taps into one (Mw, 9*C) MXU operand.

    s0/s1/s2 are the kw = 0/1/2 row-shifted views of the flattened padded image
    (length >= 2*Wp + Mw).  kh offsets are multiples of Wp (itself a multiple of
    16), so every slice below is (16,128) bf16-tile aligned; only s1/s2 needed a
    misaligned relayout, and each is reused for all three kh.
    """
    parts = []
    for kh in range(3):
        off = kh * Wp
        for s in (s0, s1, s2):          # kw = 0, 1, 2  ->  tap index kh*3 + kw
            parts.append(s[off:off + Mw])
    return jnp.concatenate(parts, axis=-1)


# ----------------------------------------------------------------------------
# Fused Resblock kernel: one sample per grid step.
# refs: x_pad (flattened, bf16), w1 (9C,C) bf16, b1 (1,C) f32,
#       w2 (9C,C) bf16, b2 (1,C) f32, out (1, Mw, C) f32, hpad scratch (bf16).
# ----------------------------------------------------------------------------
def _resblock_fused_kernel(x_ref, w1_ref, b1_ref, w2_ref, b2_ref, o_ref,
                           hpad_ref, *, H, W, Wp, eps):
    C = o_ref.shape[-1]            # lane-padded channel count
    Mw = H * Wp                    # "wide" output rows (W valid cols per group)
    Ms = 2 * Wp + Mw               # rows covered by the shifted tap views
    Mtot = hpad_ref.shape[0]
    inv_cnt = 1.0 / float(H * W)

    # In-kernel column-validity mask (review item: no (Mw,1) mask input).
    col = jax.lax.broadcasted_iota(jnp.int32, (Mw, C), 0) % Wp
    valid = col < W

    def instance_norm(y):          # InstanceNorm2d(affine=False), biased var
        ym = jnp.where(valid, y, 0.0)
        mean = jnp.sum(ym, axis=0, keepdims=True) * inv_cnt
        var = jnp.sum(ym * ym, axis=0, keepdims=True) * inv_cnt - mean * mean
        return (y - mean) * jax.lax.rsqrt(jnp.maximum(var, 0.0) + eps)

    # ---- layer 1: (reflect pad done in wrapper) -> conv3x3 -> IN -> ReLU ----
    s0 = x_ref[0, 0:Ms, :]                    # aligned view
    s1 = x_ref[0, 1:1 + Ms, :]                # kw=1 shift (one relayout)
    s2 = x_ref[0, 2:2 + Ms, :]                # kw=2 shift (one relayout)
    xk1 = _taps_concat(s0, s1, s2, Wp, Mw)    # (Mw, 9C) bf16
    y1 = jnp.dot(xk1, w1_ref[...], preferred_element_type=jnp.float32)
    h1 = jnp.maximum(instance_norm(y1 + b1_ref[...]), 0.0)

    # TODO(synk): nn.Dropout(0.5) is treated as identity (eval-mode forward);
    # training-mode dropout would use pltpu.prng_seed / prng_random_bits here.

    # ---- in-VMEM ReflectionPad2d(1) of h1 (never leaves the chip) -----------
    # Column reflection: pad[h,0]=h1[h,1]; pad[h,1:W+1]=h1[h,0:W];
    # pad[h,W+1]=h1[h,W-2]  ==  per-column select of three sublane rolls.
    dn1 = pltpu.roll(h1, 1, axis=0)           # dn1[r] = h1[r-1]
    up1 = pltpu.roll(h1, Mw - 1, axis=0)      # up1[r] = h1[r+1]
    dn3 = pltpu.roll(h1, 3, axis=0)           # dn3[r] = h1[r-3]
    colpad = jnp.where(col == 0, up1,
                       jnp.where(col == W + 1, dn3, dn1)).astype(jnp.bfloat16)
    # Row reflection via three aligned scratch stores (Wp % 16 == 0).
    hpad_ref[0:Wp, :] = colpad[Wp:2 * Wp, :]                          # top = row 1
    hpad_ref[Wp:Wp + Mw, :] = colpad                                  # interior
    hpad_ref[(H + 1) * Wp:(H + 2) * Wp, :] = colpad[(H - 2) * Wp:(H - 1) * Wp, :]
    hpad_ref[(H + 2) * Wp:Mtot, :] = jnp.zeros(
        (Mtot - (H + 2) * Wp, C), jnp.bfloat16)                       # finite slack

    # ---- layer 2: conv3x3 -> IN, fused residual add -------------------------
    t0 = hpad_ref[0:Ms, :]
    t1 = hpad_ref[1:1 + Ms, :]
    t2 = hpad_ref[2:2 + Ms, :]
    xk2 = _taps_concat(t0, t1, t2, Wp, Mw)
    y2 = jnp.dot(xk2, w2_ref[...], preferred_element_type=jnp.float32)
    y2 = instance_norm(y2 + b2_ref[...])

    # Residual = interior of the padded input = centre tap (bf16, upcast here).
    resid = x_ref[0, Wp + 1:Wp + 1 + Mw, :].astype(jnp.float32)
    o_ref[0] = (y2 + resid).astype(o_ref.dtype)


# ----------------------------------------------------------------------------
# Wrapper: NCHW f32 -> NCHW f32, x + res(x)
# ----------------------------------------------------------------------------
def resblock_forward(x_nchw, params):
    N, C, H, W = x_nchw.shape
    Cp = _round_up(max(C, LANE), LANE)       # lane-align channels (zero pad)
    # TODO(synk): for genuinely small C (e.g. the C=4 test) a spatial-on-lanes
    # layout would avoid the Cp/C padding overhead; not implemented here.
    Wp = _round_up(W + 2, 16)                # padded row stride, bf16-tile aligned
    Hp = H + 2
    Mw = H * Wp                              # wide output rows
    Mtot = _round_up(Hp * Wp + 2, 16)        # padded-input rows (+ shift slack)
    # TODO(synk): very large H*W*Cp (per-sample working set > VMEM) would need
    # spatial tiling or the two-call path with an output-channel grid axis.

    (w1, b1), (w2, b2) = params["conv1"], params["conv2"]
    w1 = w1.reshape(9 * Cp, Cp)              # (9C, C): K-concatenated taps
    w2 = w2.reshape(9 * Cp, Cp)

    # NCHW -> NHWC, zero-pad channels, cast bf16, ReflectionPad2d(1), zero-pad
    # width to Wp and rows to Mtot, flatten rows of the padded image.
    x = jnp.transpose(x_nchw, (0, 2, 3, 1))
    x = jnp.pad(x, ((0, 0), (0, 0), (0, 0), (0, Cp - C))).astype(jnp.bfloat16)
    xp = jnp.pad(x, ((0, 0), (1, 1), (1, 1), (0, 0)), mode="reflect")
    xp = jnp.pad(xp, ((0, 0), (0, 0), (0, Wp - (W + 2)), (0, 0)))
    xf = xp.reshape(N, Hp * Wp, Cp)
    xf = jnp.pad(xf, ((0, 0), (0, Mtot - Hp * Wp), (0, 0)))

    kernel = functools.partial(_resblock_fused_kernel, H=H, W=W, Wp=Wp, eps=EPS)
    y_wide = pl.pallas_call(
        kernel,
        out_shape=jax.ShapeDtypeStruct((N, Mw, Cp), jnp.float32),
        grid_spec=pltpu.PrefetchScalarGridSpec(
            num_scalar_prefetch=0,
            grid=(N,),
            in_specs=[
                pl.BlockSpec((1, Mtot, Cp), lambda n: (n, 0, 0)),
                pl.BlockSpec((9 * Cp, Cp), lambda n: (0, 0)),
                pl.BlockSpec((1, Cp), lambda n: (0, 0)),
                pl.BlockSpec((9 * Cp, Cp), lambda n: (0, 0)),
                pl.BlockSpec((1, Cp), lambda n: (0, 0)),
            ],
            out_specs=pl.BlockSpec((1, Mw, Cp), lambda n: (n, 0, 0)),
            scratch_shapes=[pltpu.VMEM((Mtot, Cp), jnp.bfloat16)],
        ),
        compiler_params=pltpu.CompilerParams(
            dimension_semantics=("parallel",),
            vmem_limit_bytes=_vmem_limit_bytes(),
        ),
    )(xf, w1, b1, w2, b2)

    # Drop junk wide columns / channel padding, restore NCHW.
    out = y_wide.reshape(N, H, Wp, Cp)[:, :, :W, :C]
    return jnp.transpose(out, (0, 3, 1, 2))


# ----------------------------------------------------------------------------
# Parameter init (PyTorch Conv2d default-style uniform bounds), channel-padded
# to a multiple of 128 lanes; taps stored as (9, Cp, Cp) bf16, w[kh*3+kw,ci,co].
# ----------------------------------------------------------------------------
def init_resblock_params(key, in_channels, channels_padded):
    def init_conv(k, cin, cout, cp):
        w_key, b_key = jax.random.split(k)
        bound = float(cin * 9) ** -0.5
        w = jax.random.uniform(w_key, (3, 3, cin, cout), jnp.float32, -bound, bound)
        b = jax.random.uniform(b_key, (cout,), jnp.float32, -bound, bound)
        wp = jnp.zeros((3, 3, cp, cp), jnp.float32).at[:, :, :cin, :cout].set(w)
        bp = jnp.zeros((1, cp), jnp.float32).at[0, :cout].set(b)
        return wp.reshape(9, cp, cp).astype(jnp.bfloat16), bp

    k1, k2 = jax.random.split(key)
    return {"conv1": init_conv(k1, in_channels, in_channels, channels_padded),
            "conv2": init_conv(k2, in_channels, in_channels, channels_padded)}


# ----------------------------------------------------------------------------
# Pure-XLA f32 reference (eval-mode, dropout = identity) for correctness check.
# ----------------------------------------------------------------------------
def resblock_reference(x_nchw, params, C):
    def layer(x, w9, bias, relu):
        cp = w9.shape[-1]
        w = w9.reshape(3, 3, cp, cp)[:, :, :C, :C].astype(jnp.float32)
        xp = jnp.pad(x, ((0, 0), (1, 1), (1, 1), (0, 0)), mode="reflect")
        y = jax.lax.conv_general_dilated(
            xp, w, window_strides=(1, 1), padding="VALID",
            dimension_numbers=("NHWC", "HWIO", "NHWC"),
            precision=jax.lax.Precision.HIGHEST)
        y = y + bias[0, :C].astype(jnp.float32)
        mean = jnp.mean(y, axis=(1, 2), keepdims=True)
        var = jnp.var(y, axis=(1, 2), keepdims=True)
        y = (y - mean) * jax.lax.rsqrt(var + EPS)
        return jnp.maximum(y, 0.0) if relu else y

    x = jnp.transpose(x_nchw, (0, 2, 3, 1)).astype(jnp.float32)
    h = layer(x, *params["conv1"], relu=True)
    y = layer(h, *params["conv2"], relu=False) + x
    return jnp.transpose(y, (0, 3, 1, 2))


if __name__ == "__main__":
    key = jax.random.PRNGKey(0)
    p_key, x_key = jax.random.split(key)

    in_channels, batch, spatial = 4, 2, 16
    Cp = _round_up(max(in_channels, LANE), LANE)
    params = init_resblock_params(p_key, in_channels, Cp)
    x = jax.random.normal(x_key, (batch, in_channels, spatial, spatial), jnp.float32)

    fwd = jax.jit(resblock_forward)
    out = jax.block_until_ready(fwd(x, params))

    assert out.shape == (batch, in_channels, spatial, spatial), out.shape
    assert bool(jnp.all(jnp.isfinite(out)))

    # bf16 conv operands / bf16 inter-layer activation -> loose tolerance.
    ref = resblock_reference(x, params, in_channels)
    max_err = float(jnp.max(jnp.abs(out - ref)))
    assert max_err < 0.1, f"max abs err vs reference = {max_err}"

    print("KERNEL_OK")
</pallas_src>

<mosaic_0001>
module attributes {stable_mosaic.version = 11 : i64} {
  func.func @_resblock_fused_kernel(%arg0: i32, %arg1: memref<1x592x128xbf16, #tpu.memory_space<vmem>>, %arg2: memref<1152x128xbf16, #tpu.memory_space<vmem>>, %arg3: memref<1x128xf32, #tpu.memory_space<vmem>>, %arg4: memref<1152x128xbf16, #tpu.memory_space<vmem>>, %arg5: memref<1x128xf32, #tpu.memory_space<vmem>>, %arg6: memref<1x512x128xf32, #tpu.memory_space<vmem>>, %arg7: memref<592x128xbf16, #tpu.memory_space<vmem>>) attributes {dimension_semantics = [#tpu.dimension_semantics<parallel>], iteration_bounds = array<i64: 2>, scalar_prefetch = 0 : i64, scratch_operands = 1 : i64, tpu.core_type = #tpu.core_type<tc>, window_params = [{transform_indices = @transform_0, window_bounds = array<i64: 1, 592, 128>}, {pipeline_mode = #tpu.pipeline_mode<synchronous>, transform_indices = @transform_1, window_bounds = array<i64: 1152, 128>}, {pipeline_mode = #tpu.pipeline_mode<synchronous>, transform_indices = @transform_2, window_bounds = array<i64: 1, 128>}, {pipeline_mode = #tpu.pipeline_mode<synchronous>, transform_indices = @transform_3, window_bounds = array<i64: 1152, 128>}, {pipeline_mode = #tpu.pipeline_mode<synchronous>, transform_indices = @transform_4, window_bounds = array<i64: 1, 128>}, {transform_indices = @transform_5, window_bounds = array<i64: 1, 512, 128>}]} {
    %0 = tpu.iota {dimensions = array<i32: 0>} : vector<512x128xi32>
    %c32_i32 = arith.constant 32 : i32
    %c0_i32 = arith.constant 0 : i32
    %1 = arith.cmpi eq, %c32_i32, %c0_i32 : i32
    %c1_i32 = arith.constant 1 : i32
    %2 = arith.select %1, %c1_i32, %c32_i32 : i32
    %3 = vector.broadcast %2 : i32 to vector<512x128xi32>
    %4 = arith.remsi %0, %3 : vector<512x128xi32>
    %c0_i32_0 = arith.constant 0 : i32
    %5 = vector.broadcast %c0_i32_0 : i32 to vector<512x128xi32>
    %6 = arith.cmpi ne, %4, %5 : vector<512x128xi32>
    %c0_i32_1 = arith.constant 0 : i32
    %7 = vector.broadcast %c0_i32_1 : i32 to vector<512x128xi32>
    %8 = arith.cmpi slt, %4, %7 : vector<512x128xi32>
    %c0_i32_2 = arith.constant 0 : i32
    %9 = arith.cmpi slt, %2, %c0_i32_2 : i32
    %10 = vector.broadcast %9 : i1 to vector<512x128xi1>
    %11 = vector.broadcast %10 : vector<512x128xi1> to vector<512x128xi1>
    %12 = arith.xori %8, %11 : vector<512x128xi1>
    %13 = arith.andi %12, %6 : vector<512x128xi1>
    %14 = vector.broadcast %2 : i32 to vector<512x128xi32>
    %15 = arith.addi %4, %14 : vector<512x128xi32>
    %16 = arith.select %13, %15, %4 : vector<512x128xi1>, vector<512x128xi32>
    %c16_i32 = arith.constant 16 : i32
    %17 = vector.broadcast %c16_i32 : i32 to vector<512x128xi32>
    %18 = arith.cmpi slt, %16, %17 : vector<512x128xi32>
    %c0 = arith.constant 0 : index
    %c0_3 = arith.constant 0 : index
    %c0_4 = arith.constant 0 : index
    %19 = vector.load %arg1[%c0, %c0_3, %c0_4] : memref<1x592x128xbf16, #tpu.memory_space<vmem>>, vector<1x576x128xbf16>
    %20 = vector.shape_cast %19 : vector<1x576x128xbf16> to vector<576x128xbf16>
    %c0_5 = arith.constant 0 : index
    %c1 = arith.constant 1 : index
    %c0_6 = arith.constant 0 : index
    %21 = vector.load %arg1[%c0_5, %c1, %c0_6] : memref<1x592x128xbf16, #tpu.memory_space<vmem>>, vector<1x576x128xbf16>
    %22 = vector.shape_cast %21 : vector<1x576x128xbf16> to vector<576x128xbf16>
    %c0_7 = arith.constant 0 : index
    %c2 = arith.constant 2 : index
    %c0_8 = arith.constant 0 : index
    %23 = vector.load %arg1[%c0_7, %c2, %c0_8] : memref<1x592x128xbf16, #tpu.memory_space<vmem>>, vector<1x576x128xbf16>
    %24 = vector.shape_cast %23 : vector<1x576x128xbf16> to vector<576x128xbf16>
    %25 = vector.extract_strided_slice %20 {offsets = [0, 0], sizes = [512, 128], strides = [1, 1]} : vector<576x128xbf16> to vector<512x128xbf16>
    %26 = vector.extract_strided_slice %22 {offsets = [0, 0], sizes = [512, 128], strides = [1, 1]} : vector<576x128xbf16> to vector<512x128xbf16>
    %27 = vector.extract_strided_slice %24 {offsets = [0, 0], sizes = [512, 128], strides = [1, 1]} : vector<576x128xbf16> to vector<512x128xbf16>
    %28 = vector.extract_strided_slice %20 {offsets = [32, 0], sizes = [512, 128], strides = [1, 1]} : vector<576x128xbf16> to vector<512x128xbf16>
    %29 = vector.extract_strided_slice %22 {offsets = [32, 0], sizes = [512, 128], strides = [1, 1]} : vector<576x128xbf16> to vector<512x128xbf16>
    %30 = vector.extract_strided_slice %24 {offsets = [32, 0], sizes = [512, 128], strides = [1, 1]} : vector<576x128xbf16> to vector<512x128xbf16>
    %31 = vector.extract_strided_slice %20 {offsets = [64, 0], sizes = [512, 128], strides = [1, 1]} : vector<576x128xbf16> to vector<512x128xbf16>
    %32 = vector.extract_strided_slice %22 {offsets = [64, 0], sizes = [512, 128], strides = [1, 1]} : vector<576x128xbf16> to vector<512x128xbf16>
    %33 = vector.extract_strided_slice %24 {offsets = [64, 0], sizes = [512, 128], strides = [1, 1]} : vector<576x128xbf16> to vector<512x128xbf16>
    %34 = tpu.concatenate %25, %26, %27, %28, %29, %30, %31, %32, %33 in 1 : vector<512x128xbf16>, vector<512x128xbf16>, vector<512x128xbf16>, vector<512x128xbf16>, vector<512x128xbf16>, vector<512x128xbf16>, vector<512x128xbf16>, vector<512x128xbf16>, vector<512x128xbf16> -> vector<512x1152xbf16>
    %c0_9 = arith.constant 0 : index
    %c0_10 = arith.constant 0 : index
    %35 = vector.load %arg2[%c0_9, %c0_10] : memref<1152x128xbf16, #tpu.memory_space<vmem>>, vector<1152x128xbf16>
    %cst = arith.constant dense<0.000000e+00> : vector<512x128xf32>
    %36 = tpu.matmul %34, %35, %cst {dimension_numbers = #tpu.dot_dimension_numbers<[1], [0], [0], [1], [0, 0, 1, 1], [], []>} : vector<512x1152xbf16>, vector<1152x128xbf16>, vector<512x128xf32> -> vector<512x128xf32>
    %c0_11 = arith.constant 0 : index
    %c0_12 = arith.constant 0 : index
    %37 = vector.load %arg3[%c0_11, %c0_12] : memref<1x128xf32, #tpu.memory_space<vmem>>, vector<1x128xf32>
    %38 = vector.broadcast %37 : vector<1x128xf32> to vector<512x128xf32>
    %39 = arith.addf %36, %38 : vector<512x128xf32>
    %cst_13 = arith.constant 0.000000e+00 : f32
    %40 = vector.broadcast %cst_13 : f32 to vector<512x128xf32>
    %41 = arith.select %18, %39, %40 : vector<512x128xi1>, vector<512x128xf32>
    %cst_14 = arith.constant dense<0.000000e+00> : vector<128xf32>
    %42 = vector.multi_reduction <add>, %41, %cst_14 [0] : vector<512x128xf32> to vector<128xf32>
    %43 = vector.shape_cast %42 : vector<128xf32> to vector<1x128xf32>
    %cst_15 = arith.constant 3.906250e-03 : f32
    %44 = vector.broadcast %cst_15 : f32 to vector<1x128xf32>
    %45 = arith.mulf %43, %44 : vector<1x128xf32>
    %46 = arith.mulf %41, %41 : vector<512x128xf32>
    %cst_16 = arith.constant dense<0.000000e+00> : vector<128xf32>
    %47 = vector.multi_reduction <add>, %46, %cst_16 [0] : vector<512x128xf32> to vector<128xf32>
    %48 = vector.shape_cast %47 : vector<128xf32> to vector<1x128xf32>
    %cst_17 = arith.constant 3.906250e-03 : f32
    %49 = vector.broadcast %cst_17 : f32 to vector<1x128xf32>
    %50 = arith.mulf %48, %49 : vector<1x128xf32>
    %51 = arith.mulf %45, %45 : vector<1x128xf32>
    %52 = arith.subf %50, %51 : vector<1x128xf32>
    %53 = vector.broadcast %45 : vector<1x128xf32> to vector<512x128xf32>
    %54 = arith.subf %39, %53 : vector<512x128xf32>
    %cst_18 = arith.constant 0.000000e+00 : f32
    %55 = vector.broadcast %cst_18 : f32 to vector<1x128xf32>
    %56 = arith.maximumf %52, %55 : vector<1x128xf32>
    %cst_19 = arith.constant 9.99999974E-6 : f32
    %57 = vector.broadcast %cst_19 : f32 to vector<1x128xf32>
    %58 = arith.addf %56, %57 : vector<1x128xf32>
    %59 = math.rsqrt %58 : vector<1x128xf32>
    %60 = vector.broadcast %59 : vector<1x128xf32> to vector<512x128xf32>
    %61 = arith.mulf %54, %60 : vector<512x128xf32>
    %cst_20 = arith.constant 0.000000e+00 : f32
    %62 = vector.broadcast %cst_20 : f32 to vector<512x128xf32>
    %63 = arith.maximumf %61, %62 : vector<512x128xf32>
    %c1_i32_21 = arith.constant 1 : i32
    %64 = tpu.dynamic_rotate %63 by %c1_i32_21 dim 0 : vector<512x128xf32>, i32 -> vector<512x128xf32>
    %c511_i32 = arith.constant 511 : i32
    %65 = tpu.dynamic_rotate %63 by %c511_i32 dim 0 : vector<512x128xf32>, i32 -> vector<512x128xf32>
    %c3_i32 = arith.constant 3 : i32
    %66 = tpu.dynamic_rotate %63 by %c3_i32 dim 0 : vector<512x128xf32>, i32 -> vector<512x128xf32>
    %c0_i32_22 = arith.constant 0 : i32
    %67 = vector.broadcast %c0_i32_22 : i32 to vector<512x128xi32>
    %68 = arith.cmpi eq, %16, %67 : vector<512x128xi32>
    %c17_i32 = arith.constant 17 : i32
    %69 = vector.broadcast %c17_i32 : i32 to vector<512x128xi32>
    %70 = arith.cmpi eq, %16, %69 : vector<512x128xi32>
    %71 = arith.select %70, %66, %64 : vector<512x128xi1>, vector<512x128xf32>
    %72 = arith.select %68, %65, %71 : vector<512x128xi1>, vector<512x128xf32>
    %73 = arith.truncf %72 : vector<512x128xf32> to vector<512x128xbf16>
    %74 = vector.extract_strided_slice %73 {offsets = [32, 0], sizes = [32, 128], strides = [1, 1]} : vector<512x128xbf16> to vector<32x128xbf16>
    %c0_23 = arith.constant 0 : index
    %c0_24 = arith.constant 0 : index
    %75 = vector.load %arg7[%c0_23, %c0_24] : memref<592x128xbf16, #tpu.memory_space<vmem>>, vector<32x128xbf16>
    tpu.vector_store %arg7[%c0_23, %c0_24], %74 {strides = array<i32>} : memref<592x128xbf16, #tpu.memory_space<vmem>>, vector<32x128xbf16>,
    %c32 = arith.constant 32 : index
    %c0_25 = arith.constant 0 : index
    %76 = vector.load %arg7[%c32, %c0_25] : memref<592x128xbf16, #tpu.memory_space<vmem>>, vector<512x128xbf16>
    tpu.vector_store %arg7[%c32, %c0_25], %73 {strides = array<i32>} : memref<592x128xbf16, #tpu.memory_space<vmem>>, vector<512x128xbf16>,
    %77 = vector.extract_strided_slice %73 {offsets = [448, 0], sizes = [32, 128], strides = [1, 1]} : vector<512x128xbf16> to vector<32x128xbf16>
    %c544 = arith.constant 544 : index
    %c0_26 = arith.constant 0 : index
    %78 = vector.load %arg7[%c544, %c0_26] : memref<592x128xbf16, #tpu.memory_space<vmem>>, vector<32x128xbf16>
    tpu.vector_store %arg7[%c544, %c0_26], %77 {strides = array<i32>} : memref<592x128xbf16, #tpu.memory_space<vmem>>, vector<32x128xbf16>,
    %cst_27 = arith.constant 0.000000e+00 : bf16
    %79 = vector.broadcast %cst_27 : bf16 to vector<16x128xbf16>
    %c576 = arith.constant 576 : index
    %c0_28 = arith.constant 0 : index
    %80 = vector.load %arg7[%c576, %c0_28] : memref<592x128xbf16, #tpu.memory_space<vmem>>, vector<16x128xbf16>
    tpu.vector_store %arg7[%c576, %c0_28], %79 {strides = array<i32>} : memref<592x128xbf16, #tpu.memory_space<vmem>>, vector<16x128xbf16>,
    %c0_29 = arith.constant 0 : index
    %c0_30 = arith.constant 0 : index
    %81 = vector.load %arg7[%c0_29, %c0_30] : memref<592x128xbf16, #tpu.memory_space<vmem>>, vector<576x128xbf16>
    %c1_31 = arith.constant 1 : index
    %c0_32 = arith.constant 0 : index
    %82 = vector.load %arg7[%c1_31, %c0_32] : memref<592x128xbf16, #tpu.memory_space<vmem>>, vector<576x128xbf16>
    %c2_33 = arith.constant 2 : index
    %c0_34 = arith.constant 0 : index
    %83 = vector.load %arg7[%c2_33, %c0_34] : memref<592x128xbf16, #tpu.memory_space<vmem>>, vector<576x128xbf16>
    %84 = vector.extract_strided_slice %81 {offsets = [0, 0], sizes = [512, 128], strides = [1, 1]} : vector<576x128xbf16> to vector<512x128xbf16>
    %85 = vector.extract_strided_slice %82 {offsets = [0, 0], sizes = [512, 128], strides = [1, 1]} : vector<576x128xbf16> to vector<512x128xbf16>
    %86 = vector.extract_strided_slice %83 {offsets = [0, 0], sizes = [512, 128], strides = [1, 1]} : vector<576x128xbf16> to vector<512x128xbf16>
    %87 = vector.extract_strided_slice %81 {offsets = [32, 0], sizes = [512, 128], strides = [1, 1]} : vector<576x128xbf16> to vector<512x128xbf16>
    %88 = vector.extract_strided_slice %82 {offsets = [32, 0], sizes = [512, 128], strides = [1, 1]} : vector<576x128xbf16> to vector<512x128xbf16>
    %89 = vector.extract_strided_slice %83 {offsets = [32, 0], sizes = [512, 128], strides = [1, 1]} : vector<576x128xbf16> to vector<512x128xbf16>
    %90 = vector.extract_strided_slice %81 {offsets = [64, 0], sizes = [512, 128], strides = [1, 1]} : vector<576x128xbf16> to vector<512x128xbf16>
    %91 = vector.extract_strided_slice %82 {offsets = [64, 0], sizes = [512, 128], strides = [1, 1]} : vector<576x128xbf16> to vector<512x128xbf16>
    %92 = vector.extract_strided_slice %83 {offsets = [64, 0], sizes = [512, 128], strides = [1, 1]} : vector<576x128xbf16> to vector<512x128xbf16>
    %93 = tpu.concatenate %84, %85, %86, %87, %88, %89, %90, %91, %92 in 1 : vector<512x128xbf16>, vector<512x128xbf16>, vector<512x128xbf16>, vector<512x128xbf16>, vector<512x128xbf16>, vector<512x128xbf16>, vector<512x128xbf16>, vector<512x128xbf16>, vector<512x128xbf16> -> vector<512x1152xbf16>
    %c0_35 = arith.constant 0 : index
    %c0_36 = arith.constant 0 : index
    %94 = vector.load %arg4[%c0_35, %c0_36] : memref<1152x128xbf16, #tpu.memory_space<vmem>>, vector<1152x128xbf16>
    %cst_37 = arith.constant dense<0.000000e+00> : vector<512x128xf32>
    %95 = tpu.matmul %93, %94, %cst_37 {dimension_numbers = #tpu.dot_dimension_numbers<[1], [0], [0], [1], [0, 0, 1, 1], [], []>} : vector<512x1152xbf16>, vector<1152x128xbf16>, vector<512x128xf32> -> vector<512x128xf32>
    %c0_38 = arith.constant 0 : index
    %c0_39 = arith.constant 0 : index
    %96 = vector.load %arg5[%c0_38, %c0_39] : memref<1x128xf32, #tpu.memory_space<vmem>>, vector<1x128xf32>
    %97 = vector.broadcast %96 : vector<1x128xf32> to vector<512x128xf32>
    %98 = arith.addf %95, %97 : vector<512x128xf32>
    %cst_40 = arith.constant 0.000000e+00 : f32
    %99 = vector.broadcast %cst_40 : f32 to vector<512x128xf32>
    %100 = arith.select %18, %98, %99 : vector<512x128xi1>, vector<512x128xf32>
    %cst_41 = arith.constant dense<0.000000e+00> : vector<128xf32>
    %101 = vector.multi_reduction <add>, %100, %cst_41 [0] : vector<512x128xf32> to vector<128xf32>
    %102 = vector.shape_cast %101 : vector<128xf32> to vector<1x128xf32>
    %cst_42 = arith.constant 3.906250e-03 : f32
    %103 = vector.broadcast %cst_42 : f32 to vector<1x128xf32>
    %104 = arith.mulf %102, %103 : vector<1x128xf32>
    %105 = arith.mulf %100, %100 : vector<512x128xf32>
    %cst_43 = arith.constant dense<0.000000e+00> : vector<128xf32>
    %106 = vector.multi_reduction <add>, %105, %cst_43 [0] : vector<512x128xf32> to vector<128xf32>
    %107 = vector.shape_cast %106 : vector<128xf32> to vector<1x128xf32>
    %cst_44 = arith.constant 3.906250e-03 : f32
    %108 = vector.broadcast %cst_44 : f32 to vector<1x128xf32>
    %109 = arith.mulf %107, %108 : vector<1x128xf32>
    %110 = arith.mulf %104, %104 : vector<1x128xf32>
    %111 = arith.subf %109, %110 : vector<1x128xf32>
    %112 = vector.broadcast %104 : vector<1x128xf32> to vector<512x128xf32>
    %113 = arith.subf %98, %112 : vector<512x128xf32>
    %cst_45 = arith.constant 0.000000e+00 : f32
    %114 = vector.broadcast %cst_45 : f32 to vector<1x128xf32>
    %115 = arith.maximumf %111, %114 : vector<1x128xf32>
    %cst_46 = arith.constant 9.99999974E-6 : f32
    %116 = vector.broadcast %cst_46 : f32 to vector<1x128xf32>
    %117 = arith.addf %115, %116 : vector<1x128xf32>
    %118 = math.rsqrt %117 : vector<1x128xf32>
    %119 = vector.broadcast %118 : vector<1x128xf32> to vector<512x128xf32>
    %120 = arith.mulf %113, %119 : vector<512x128xf32>
    %c0_47 = arith.constant 0 : index
    %c33 = arith.constant 33 : index
    %c0_48 = arith.constant 0 : index
    %121 = vector.load %arg1[%c0_47, %c33, %c0_48] : memref<1x592x128xbf16, #tpu.memory_space<vmem>>, vector<1x512x128xbf16>
    %122 = vector.shape_cast %121 : vector<1x512x128xbf16> to vector<512x128xbf16>
    %123 = arith.extf %122 : vector<512x128xbf16> to vector<512x128xf32>
    %124 = arith.addf %120, %123 : vector<512x128xf32>
    %c0_49 = arith.constant 0 : index
    %c0_50 = arith.constant 0 : index
    %c0_51 = arith.constant 0 : index
    %125 = vector.load %arg6[%c0_49, %c0_50, %c0_51] : memref<1x512x128xf32, #tpu.memory_space<vmem>>, vector<1x512x128xf32>
    %126 = vector.shape_cast %125 : vector<1x512x128xf32> to vector<512x128xf32>
    %127 = vector.shape_cast %124 : vector<512x128xf32> to vector<1x512x128xf32>
    tpu.vector_store %arg6[%c0_49, %c0_50, %c0_51], %127 {strides = array<i32>} : memref<1x512x128xf32, #tpu.memory_space<vmem>>, vector<1x512x128xf32>,
    return
  }
  func.func @transform_0(%arg0: i32) -> (i32, i32, i32) {
    %c0_i32 = arith.constant 0 : i32
    %c0_i32_0 = arith.constant 0 : i32
    %c0_i32_1 = arith.constant 0 : i32
    return %arg0, %c0_i32, %c0_i32_0 : i32, i32, i32
  }
  func.func @transform_1(%arg0: i32) -> (i32, i32) {
    %c0_i32 = arith.constant 0 : i32
    %c0_i32_0 = arith.constant 0 : i32
    %c0_i32_1 = arith.constant 0 : i32
    return %c0_i32, %c0_i32_0 : i32, i32
  }
  func.func @transform_2(%arg0: i32) -> (i32, i32) {
    %c0_i32 = arith.constant 0 : i32
    %c0_i32_0 = arith.constant 0 : i32
    %c0_i32_1 = arith.constant 0 : i32
    return %c0_i32, %c0_i32_0 : i32, i32
  }
  func.func @transform_3(%arg0: i32) -> (i32, i32) {
    %c0_i32 = arith.constant 0 : i32
    %c0_i32_0 = arith.constant 0 : i32
    %c0_i32_1 = arith.constant 0 : i32
    return %c0_i32, %c0_i32_0 : i32, i32
  }
  func.func @transform_4(%arg0: i32) -> (i32, i32) {
    %c0_i32 = arith.constant 0 : i32
    %c0_i32_0 = arith.constant 0 : i32
    %c0_i32_1 = arith.constant 0 : i32
    return %c0_i32, %c0_i32_0 : i32, i32
  }
  func.func @transform_5(%arg0: i32) -> (i32, i32, i32) {
    %c0_i32 = arith.constant 0 : i32
    %c0_i32_0 = arith.constant 0 : i32
    %c0_i32_1 = arith.constant 0 : i32
    return %arg0, %c0_i32, %c0_i32_0 : i32, i32, i32
  }
}

</mosaic_0001>

<bundles_post_ra>
// kernel: resblock_forward.1
= control target key start
LH: loop header
LB: loop body
LE: loop exit
PB: predicated region body
PF: predicated region fallthrough
CT: control target
= control target key end

     0   :  { %s10438_s18 = smov 0   ;;  %s16341_s0 = inlined_call_operand.vmem [shape: bf16[2,592,128], index: 0, kind: input, shape index: {}]   ;;  %s16342_s1 = inlined_call_operand.vmem [shape: bf16[1152,128], index: 1, kind: input, shape index: {}]   ;;  %s16343_s2 = inlined_call_operand.vmem [shape: f32[1,128], index: 2, kind: input, shape index: {}]   ;;  %s16344_s3 = inlined_call_operand.vmem [shape: bf16[1152,128], index: 3, kind: input, shape index: {}]   ;;  %s16345_s4 = inlined_call_operand.vmem [shape: f32[1,128], index: 4, kind: input, shape index: {}]   ;;  %s16346_s5 = inlined_call_operand.vmem [shape: f32[2,512,128], index: 5, kind: output, shape index: {}]  }
   0x1 LB: > { %s8632_s19 = sadd.s32 4294967295, %s10405_s18   ;;  %p8636_p0 = scmp.ge.s32.totalorder %s10405_s18, 1  ;;  %s10405_s18 = sphi %s10438_s18, %s15_s18  }
   0x2   : > { %p187_p1 = scmp.lt.s32.totalorder %s10405_s18, 3 }
   0x4   : > { %p188_p2 = pnand %p8636_p0, %p187_p1 }
   0x6   : > { %191 = sbr.rel (%p188_p2) target bundleno = 2895 (0xb4f), region = 40 }
   0xd   : > { %v10151_v0 = vld [vmem:[%s16342_s1] sm:$0xff]   ;;  %v10407_v1 = vmov 0   ;;  %p215_p3 = scmp.lt.s32.totalorder %s8632_s19, 1  ;;  %v10152_v2 = vld [vmem:[%s16342_s1 + $0x8] sm:$0xff]   ;;  %v10153_v3 = vld [vmem:[%s16342_s1 + $0x10] sm:$0xff]   ;;  %vm16504_vm1 = vcmask 1046528  }
   0xe   : > { %2461 = vmatprep.subr.bf16.mxu0 %v10407_v1  ;;  %5082 = vst [vmem:[#allocation2 + $0x120] sm:$0xff] %v10407_v1  ;;  %v10154_v4 = vld [vmem:[%s16342_s1 + $0x18] sm:$0xff]   ;;  %v10155_v5 = vld [vmem:[%s16342_s1 + $0x20] sm:$0xff]   ;;  %v10156_v8 = vld [vmem:[%s16342_s1 + $0x28] sm:$0xff]   ;;  %vm16502_vm0 = vsmask.f32 7424 }
   0xf   : > { %2462 = vmatpush1.bf16.msra.mxu0 %v10151_v0  ;;  %s18051_s19 = smov (!%p215_p3, %s8632_s19), 1  ;;  %v10157_v14 = vld [vmem:[%s16342_s1 + $0x30] sm:$0xff]   ;;  %v10158_v19 = vld [vmem:[%s16342_s1 + $0x38] sm:$0xff]   ;;  %v10159_v20 = vld [vmem:[%s16342_s1 + $0x40] sm:$0xff]  }
  0x10   : > { %2463 = vmatprep.subr.bf16.mxu0 %v10407_v1  ;;  %s10141_s26 = smul.u32 296, %s18051_s19  ;;  %v10160_v21 = vld [vmem:[%s16342_s1 + $0x48] sm:$0xff]   ;;  %v10161_v22 = vld [vmem:[%s16342_s1 + $0x50] sm:$0xff]   ;;  %v10162_v23 = vld [vmem:[%s16342_s1 + $0x58] sm:$0xff]  }
  0x11   : > { %v10163_v24 = vld [vmem:[%s16342_s1 + $0x60] sm:$0xff]   ;;  %v10164_v25 = vld [vmem:[%s16342_s1 + $0x68] sm:$0xff]   ;;  %v10165_v27 = vld [vmem:[%s16342_s1 + $0x70] sm:$0xff]  }
  0x12   : > { %s10469_s6 = scalar_lea.vmem %s16341_s0, %s10141_s26  ;;  %v10166_v30 = vld [vmem:[%s16342_s1 + $0x78] sm:$0xff]   ;;  %v10169_v34 = vld [vmem:[%s16342_s1 + $0x80] sm:$0xff]   ;;  %v10172_v38 = vld [vmem:[%s16342_s1 + $0x88] sm:$0xff]  }
  0x13   : > { %2464 = vmatpush1.bf16.msra.mxu0 %v10152_v2  ;;  %v1123_v6 = vld [vmem:[%s10469_s6] sm:$0xf]  ;;  %v1124_v7 = vld [vmem:[%s10469_s6 + $0x4] sm:$0xf]  ;;  %v10481_v10 = vld [vmem:[%s10469_s6 + $0x8] sm:$0xff]  }
  0x14   : > { %2465 = vmatprep.subr.bf16.mxu0 %v10407_v1  ;;  %v8640_v9 = vcombine.low %v1123_v6, %v1124_v7  ;;  %v1401_v13 = vshll.u32 %v10481_v10, 16  ;;  %v10170_v26 = vld [vmem:[%s10469_s6 + $0x10] sm:$0xff]   ;;  %v1405_v28 = vshrl.u32 %v10481_v10, 16  ;;  %v10171_v31 = vld [vmem:[%s10469_s6 + $0x18] sm:$0xff]   ;;  %v10538_v39 = vld [vmem:[%s10469_s6 + $0x20] sm:$0xff]  }
  0x15   : > { %v1409_v29 = vshll.u32 %v10170_v26, 16  ;;  %v1413_v35 = vshrl.u32 %v10170_v26, 16  ;;  %v1417_v36 = vshll.u32 %v10171_v31, 16  ;;  %v1421_v42 = vshrl.u32 %v10171_v31, 16  ;;  %v10175_v44 = vld [vmem:[%s16342_s1 + $0x90] sm:$0xff]   ;;  %v10549_v46 = vld [vmem:[%s10469_s6 + $0x28] sm:$0xff]  }
  0x16   : > { %v1394_v11 = vshrl.u32 %v8640_v9, 16  ;;  %v1396_v12 = vshll.u32 %v8640_v9, 16  ;;  %v1403_v16 = vrot.slane %v1401_v13, 1  ;;  %v1425_v43 = vshll.u32 %v10538_v39, 16  ;;  %v10178_v47 = vld [vmem:[%s16342_s1 + $0x98] sm:$0xff]   ;;  %v10181_v52 = vld [vmem:[%s16342_s1 + $0xa0] sm:$0xff]  }
  0x17   : > { %2466 = vmatpush1.bf16.msra.mxu0 %v10153_v3  ;;  %v1411_v33 = vrot.slane %v1409_v29, 1  ;;  %v1419_v41 = vrot.slane %v1417_v36, 1  ;;  %v1429_v50 = vshrl.u32 %v10538_v39, 16  ;;  %v1433_v51 = vshll.u32 %v10549_v46, 16  ;;  %v10568_v54 = vld [vmem:[%s10469_s6 + $0x30] sm:$0xff]   ;;  %v10184_v55 = vld [vmem:[%s16342_s1 + $0xa8] sm:$0xff]  }
  0x18   : > { %2467 = vmatprep.subr.bf16.mxu0 %v10407_v1  ;;  %v1398_v15 = vrot.slane %v1396_v12, 1  ;;  %v1407_v32 = vor.u32 %v1405_v28, %v1403_v16  ;;  %v1427_v49 = vrot.slane %v1425_v43, 1  ;;  %v1437_v58 = vshrl.u32 %v10549_v46, 16  ;;  %v10187_v60 = vld [vmem:[%s16342_s1 + $0xb0] sm:$0xff]   ;;  %v10584_v62 = vld [vmem:[%s10469_s6 + $0x38] sm:$0xff]   ;;  %v10603_v7 = vld [vmem:[%s10469_s6 + $0x40] sm:$0xff]  }
  0x19   : > { %v1415_v40 = vor.u32 %v1413_v35, %v1411_v33  ;;  %v1423_v48 = vor.u32 %v1421_v42, %v1419_v41  ;;  %v1435_v57 = vrot.slane %v1433_v51, 1  ;;  %v1441_v59 = vshll.u32 %v10568_v54, 16  ;;  %v10190_v63 = vld [vmem:[%s16342_s1 + $0xb8] sm:$0xff]   ;;  %v10199_v13 = vld [vmem:[%s16342_s1 + $0xd0] sm:$0xff]   ;;  %v10205_v35 = vld [vmem:[%s16342_s1 + $0xe0] sm:$0xff]  }
  0x1a   : > { %v1399_v17 = vor.u32 %v1398_v15, %v1394_v11  ;;  %v1412_v37 = vsel %vm16502_vm0, %v1407_v32, %v1411_v33  ;;  %v1431_v56 = vor.u32 %v1429_v50, %v1427_v49  ;;  %v1445_v3 = vshrl.u32 %v10568_v54, 16  ;;  %v10621_v15 = vld [vmem:[%s10469_s6 + $0x48] sm:$0xff]   ;;  %v10646_v28 = vld [vmem:[%s10469_s6 + $0x58] sm:$0xff]  }
  0x1b   : > { %2468 = vmatpush1.bf16.msra.mxu0 %v10154_v4  ;;  %v10546_v45 = vsel %vm16502_vm0, %v1415_v40, %v1419_v41  ;;  %v10564_v53 = vsel %vm16502_vm0, %v1423_v48, %v1427_v49  ;;  %v1439_v0 = vor.u32 %v1437_v58, %v1435_v57  ;;  %v1443_v2 = vrot.slane %v1441_v59, 1  ;;  %v10670_v42 = vld [vmem:[%s10469_s6 + $0x68] sm:$0xff]  }
  0x1c   : > { %2469 = vmatprep.subr.bf16.mxu0 %v10407_v1  ;;  %v1404_v18 = vsel %vm16502_vm0, %v1399_v17, %v1403_v16  ;;  %v10581_v61 = vsel %vm16502_vm0, %v1431_v56, %v1435_v57  ;;  %v1449_v4 = vshll.u32 %v10584_v62, 16  ;;  %v1453_v11 = vshrl.u32 %v10584_v62, 16  ;;  %v10208_v49 = vld [vmem:[%s16342_s1 + $0xe8] sm:$0xff]  }
  0x1d   : > { %2493 = vmatprep.mubr.bf16.mxu0 %v1404_v18  ;;  %v10598_v6 = vsel %vm16502_vm0, %v1439_v0, %v1443_v2  ;;  %v1457_v12 = vshll.u32 %v10603_v7, 16  ;;  %v1461_v18 = vshrl.u32 %v10603_v7, 16  ;;  %v1481_v32 = vshll.u32 %v10646_v28, 16 }
  0x1e   : > { %v1501_v57 = vshrl.u32 %v10670_v42, 16 }
  0x1f   : > { %2470 = vmatpush1.bf16.msra.mxu0 %v10155_v5  ;;  %v10193_v5 = vld [vmem:[%s16342_s1 + $0xc0] sm:$0xff]   ;;  %v1459_v17 = vrot.slane %v1457_v12, 1 }
  0x20   : > { %2471 = vmatprep.subr.bf16.mxu0 %v10407_v1 }
  0x23   : > { %2472 = vmatpush1.bf16.msra.mxu0 %v10156_v8  ;;  %v10196_v8 = vld [vmem:[%s16342_s1 + $0xc8] sm:$0xff]  }
  0x24   : > { %2473 = vmatprep.subr.bf16.mxu0 %v10407_v1 }
  0x27   : > { %2474 = vmatpush1.bf16.msra.mxu0 %v10157_v14 }
  0x28   : > { %2475 = vmatprep.subr.bf16.mxu0 %v10407_v1 }
  0x2b   : > { %2476 = vmatpush1.bf16.msra.mxu0 %v10158_v19  ;;  %v1465_v19 = vshll.u32 %v10621_v15, 16 }
  0x2c   : > { %2477 = vmatprep.subr.bf16.mxu0 %v10407_v1 }
  0x2f   : > { %2478 = vmatpush1.bf16.msra.mxu0 %v10159_v20 }
  0x30   : > { %2479 = vmatprep.subr.bf16.mxu0 %v10407_v1 }
  0x33   : > { %2480 = vmatpush1.bf16.msra.mxu0 %v10160_v21  ;;  %v10632_v21 = vld [vmem:[%s10469_s6 + $0x50] sm:$0xff]  }
  0x34   : > { %2481 = vmatprep.subr.bf16.mxu0 %v10407_v1 }
  0x37   : > { %2482 = vmatpush1.bf16.msra.mxu0 %v10161_v22  ;;  %v10202_v22 = vld [vmem:[%s16342_s1 + $0xd8] sm:$0xff]  }
  0x38   : > { %2483 = vmatprep.subr.bf16.mxu0 %v10407_v1 }
  0x3b   : > { %2484 = vmatpush1.bf16.msra.mxu0 %v10162_v23  ;;  %v1463_v23 = vor.u32 %v1461_v18, %v1459_v17 }
  0x3c   : > { %2485 = vmatprep.subr.bf16.mxu0 %v10407_v1 }
  0x3f   : > { %2486 = vmatpush1.bf16.msra.mxu0 %v10163_v24  ;;  %v1467_v24 = vrot.slane %v1465_v19, 1 }
  0x40   : > { %2487 = vmatprep.subr.bf16.mxu0 %v10407_v1 }
  0x43   : > { %2488 = vmatpush1.bf16.msra.mxu0 %v10164_v25  ;;  %v1469_v25 = vshrl.u32 %v10621_v15, 16 }
  0x44   : > { %2489 = vmatprep.subr.bf16.mxu0 %v10407_v1 }
  0x45   : > { %v1471_v29 = vor.u32 %v1469_v25, %v1467_v24 }
  0x47   : > { %2490 = vmatpush1.bf16.msra.mxu0 %v10165_v27  ;;  %v10642_v27 = vsel %vm16502_vm0, %v1463_v23, %v1467_v24  ;;  %v10214_v23 = vld [vmem:[%s16342_s1 + $0xf8] sm:$0xff]  }
  0x48   : > { %2491 = vmatprep.subr.bf16.mxu0 %v10407_v1 }
  0x4b   : > { %2492 = vmatpush1.bf16.msra.mxu0 %v10166_v30 }
  0x4c   : > { %2750 = vmatprep.subr.bf16.mxu0 %v10407_v1 }
  0x4e   : > { %2494 = vmatmul.mubr.bf16.vlgmr.msra.gmra.mrb[0].mxu0 %v8640_v9  ;;  %v1447_v9 = vor.u32 %v1445_v3, %v1443_v2 }
  0x4f   : > { %2751 = vmatpush1.bf16.msra.mxu0 %v10169_v34  ;;  %2501 = vmatprep.mubr.bf16.mxu0 %v1412_v37  ;;  %v10656_v34 = vld [vmem:[%s10469_s6 + $0x60] sm:$0xff]   ;;  %v1483_v37 = vrot.slane %v1481_v32, 1 }
  0x50   : > { %2752 = vmatprep.subr.bf16.mxu0 %v10407_v1  ;;  %v1489_v40 = vshll.u32 %v10656_v34, 16 }
  0x53   : > { %2753 = vmatpush1.bf16.msra.mxu0 %v10172_v38  ;;  %v1485_v38 = vshrl.u32 %v10646_v28, 16 }
  0x54   : > { %2754 = vmatprep.subr.bf16.mxu0 %v10407_v1 }
  0x55   : > { %v1487_v43 = vor.u32 %v1485_v38, %v1483_v37 }
  0x56   : > { %2502 = vmatmul.mubr.bf16.gmra.mrb[4].mxu0 %v10481_v10  ;;  %v1451_v10 = vrot.slane %v1449_v4, 1  ;;  %v10211_v4 = vld [vmem:[%s16342_s1 + $0xf0] sm:$0xff]  }
  0x57   : > { %2509 = vmatprep.mubr.bf16.mxu0 %v10546_v45  ;;  %2755 = vmatpush1.bf16.msra.mxu0 %v10175_v44  ;;  %v1491_v44 = vrot.slane %v1489_v40, 1 }
  0x58   : > { %2756 = vmatprep.subr.bf16.mxu0 %v10407_v1  ;;  %v10616_v14 = vsel %vm16502_vm0, %v1447_v9, %v1451_v10  ;;  %v1455_v16 = vor.u32 %v1453_v11, %v1451_v10  ;;  %v10710_v9 = vld [vmem:[%s10469_s6 + $0x80] sm:$0xff]  }
  0x59   : > { %v10676_v48 = vsel %vm16502_vm0, %v1487_v43, %v1491_v44  ;;  %v1521_v12 = vshll.u32 %v10710_v9, 16  ;;  %v1525_v19 = vshrl.u32 %v10710_v9, 16 }
  0x5a   : > { %v10628_v20 = vsel %vm16502_vm0, %v1455_v16, %v1459_v17  ;;  %v10721_v17 = vld [vmem:[%s10469_s6 + $0x88] sm:$0xff]  }
  0x5b   : > { %2757 = vmatpush1.bf16.msra.mxu0 %v10178_v47  ;;  %v1493_v47 = vshrl.u32 %v10656_v34, 16  ;;  %v1523_v16 = vrot.slane %v1521_v12, 1 }
  0x5c   : > { %2758 = vmatprep.subr.bf16.mxu0 %v10407_v1 }
  0x5d   : > { %v1495_v50 = vor.u32 %v1493_v47, %v1491_v44  ;;  %v1527_v24 = vor.u32 %v1525_v19, %v1523_v16  ;;  %v10755_v47 = vld [vmem:[%s10469_s6 + $0xa0] sm:$0xff]  }
  0x5e   : > { %2510 = vmatmul.mubr.bf16.gmra.mrb[8].mxu0 %v10170_v26  ;;  %v1473_v26 = vshll.u32 %v10632_v21, 16 }
  0x5f   : > { %2517 = vmatprep.mubr.bf16.mxu0 %v10564_v53  ;;  %2759 = vmatpush1.bf16.msra.mxu0 %v10181_v52  ;;  %v10684_v52 = vld [vmem:[%s10469_s6 + $0x70] sm:$0xff]  }
  0x60   : > { %2760 = vmatprep.subr.bf16.mxu0 %v10407_v1  ;;  %v1475_v30 = vrot.slane %v1473_v26, 1  ;;  %v1505_v58 = vshll.u32 %v10684_v52, 16  ;;  %v1509_v2 = vshrl.u32 %v10684_v52, 16  ;;  %v10734_v26 = vld [vmem:[%s10469_s6 + $0x90] sm:$0xff]  }
  0x61   : > { %v1541_v38 = vshrl.u32 %v10734_v26, 16 }
  0x62   : > { %v10652_v33 = vsel %vm16502_vm0, %v1471_v29, %v1475_v30 }
  0x63   : > { %2761 = vmatpush1.bf16.msra.mxu0 %v10184_v55  ;;  %v10686_v55 = vld [vmem:[#allocation2 + $0x120] sm:$0xff] }
  0x64   : > { %2762 = vmatprep.subr.bf16.mxu0 %v10407_v1 }
  0x66   : > { %2518 = vmatmul.mubr.bf16.gmra.mrb[12].mxu0 %v10171_v31  ;;  %v1477_v31 = vshrl.u32 %v10632_v21, 16 }
  0x67   : > { %2525 = vmatprep.mubr.bf16.mxu0 %v10581_v61  ;;  %2763 = vmatpush1.bf16.msra.mxu0 %v10187_v60  ;;  %v1507_v60 = vrot.slane %v1505_v58, 1  ;;  %v10765_v58 = vld [vmem:[%s10469_s6 + $0xa8] sm:$0xff]  }
  0x68   : > { %2764 = vmatprep.subr.bf16.mxu0 %v10407_v1  ;;  %v1479_v36 = vor.u32 %v1477_v31, %v1475_v30  ;;  %v1533_v30 = vshrl.u32 %v10721_v17, 16  ;;  %v1537_v31 = vshll.u32 %v10734_v26, 16 }
  0x6a   : > { %v10666_v41 = vsel %vm16502_vm0, %v1479_v36, %v1483_v37  ;;  %v10745_v36 = vld [vmem:[%s10469_s6 + $0x98] sm:$0xff]  }
  0x6b   : > { %2765 = vmatpush1.bf16.msra.mxu0 %v10190_v63  ;;  %v10697_v63 = vld [vmem:[%s10469_s6 + $0x78] sm:$0xff]   ;;  %v1545_v40 = vshll.u32 %v10745_v36, 16 }
  0x6c   : > { %2766 = vmatprep.subr.bf16.mxu0 %v10407_v1  ;;  %v1513_v3 = vshll.u32 %v10697_v63, 16  ;;  %v1517_v11 = vshrl.u32 %v10697_v63, 16 }
  0x6d   : > { %v1547_v44 = vrot.slane %v1545_v40, 1 }
  0x6e   : > { %2526 = vmatmul.mubr.bf16.gmra.mrb[16].mxu0 %v10538_v39 }
  0x6f   : > { %2533 = vmatprep.mubr.bf16.mxu0 %v10598_v6  ;;  %2767 = vmatpush1.bf16.msra.mxu0 %v10193_v5  ;;  %v1511_v5 = vor.u32 %v1509_v2, %v1507_v60  ;;  %v1561_v2 = vshll.u32 %v10765_v58, 16 }
  0x70   : > { %2768 = vmatprep.subr.bf16.mxu0 %v10407_v1 }
  0x73   : > { %2769 = vmatpush1.bf16.msra.mxu0 %v10196_v8  ;;  %v1515_v8 = vrot.slane %v1513_v3, 1 }
  0x74   : > { %2770 = vmatprep.subr.bf16.mxu0 %v10407_v1 }
  0x75   : > { %v10714_v10 = vsel %vm16502_vm0, %v1511_v5, %v1515_v8  ;;  %v10775_v5 = vld [vmem:[%s10469_s6 + $0xb0] sm:$0xff]  }
  0x76   : > { %2534 = vmatmul.mubr.bf16.gmra.mrb[20].mxu0 %v10549_v46  ;;  %v1569_v12 = vshll.u32 %v10775_v5, 16 }
  0x77   : > { %2541 = vmatprep.mubr.bf16.mxu0 %v10616_v14  ;;  %2771 = vmatpush1.bf16.msra.mxu0 %v10199_v13  ;;  %v1519_v13 = vor.u32 %v1517_v11, %v1515_v8  ;;  %v1565_v11 = vshrl.u32 %v10765_v58, 16 }
  0x78   : > { %2772 = vmatprep.subr.bf16.mxu0 %v10407_v1 }
  0x79   : > { %v10724_v18 = vsel %vm16502_vm0, %v1519_v13, %v1523_v16  ;;  %v16348_v13 = vrot.slane %v10538_v39, 1  ;;  %v16347_v16 = vrot.slane %v10549_v46, 1 }
  0x7b   : > { %2773 = vmatpush1.bf16.msra.mxu0 %v10202_v22  ;;  %v1529_v22 = vshll.u32 %v10721_v17, 16 }
  0x7c   : > { %2774 = vmatprep.subr.bf16.mxu0 %v10407_v1 }
  0x7d   : > { %v1531_v25 = vrot.slane %v1529_v22, 1  ;;  %v1571_v22 = vrot.slane %v1569_v12, 1 }
  0x7e   : > { %2542 = vmatmul.mubr.bf16.gmra.mrb[24].mxu0 %v10568_v54 }
  0x7f   : > { %2549 = vmatprep.mubr.bf16.mxu0 %v10628_v20  ;;  %2775 = vmatpush1.bf16.msra.mxu0 %v10205_v35  ;;  %v10738_v29 = vsel %vm16502_vm0, %v1527_v24, %v1531_v25  ;;  %v1535_v32 = vor.u32 %v1533_v30, %v1531_v25  ;;  %v1539_v35 = vrot.slane %v1537_v31, 1  ;;  %v10794_v24 = vsel %vm16504_vm1, %v16348_v13, %v16347_v16  ;;  %v10865_v13 = vld [vmem:[%s10469_s6 + $0xf0] sm:$0xff]  }
  0x80   : > { %2776 = vmatprep.subr.bf16.mxu0 %v10407_v1  ;;  %v1497_v1 = vshll.u32 %v10670_v42, 16  ;;  %9085 = vmatprep.mubr.bf16.mxu1 %v10794_v24  ;;  %v1573_v30 = vshrl.u32 %v10775_v5, 16 }
  0x81   : > { %v10748_v37 = vsel %vm16502_vm0, %v1535_v32, %v1539_v35  ;;  %v1543_v43 = vor.u32 %v1541_v38, %v1539_v35  ;;  %v10805_v38 = vld [vmem:[%s10469_s6 + $0xc0] sm:$0xff]  }
  0x82   : > { %v1499_v51 = vrot.slane %v1497_v1, 1  ;;  %v1575_v32 = vor.u32 %v1573_v30, %v1571_v22 }
  0x83   : > { %2777 = vmatpush1.bf16.msra.mxu0 %v10208_v49  ;;  %v10758_v1 = vsel %vm16502_vm0, %v1543_v43, %v1547_v44  ;;  %v1549_v49 = vshrl.u32 %v10745_v36, 16 }
  0x84   : > { %2778 = vmatprep.subr.bf16.mxu0 %v10686_v55  ;;  %v10690_v56 = vsel %vm16502_vm0, %v1495_v50, %v1499_v51  ;;  %v1503_v59 = vor.u32 %v1501_v57, %v1499_v51  ;;  %v1553_v50 = vshll.u32 %v10755_v47, 16 }
  0x85   : > { %v1551_v51 = vor.u32 %v1549_v49, %v1547_v44  ;;  %v1585_v44 = vshll.u32 %v10805_v38, 16 }
  0x86   : > { %2550 = vmatmul.mubr.bf16.gmra.mrb[28].mxu0 %v10584_v62  ;;  %v10700_v0 = vsel %vm16502_vm0, %v1503_v59, %v1507_v60  ;;  %v1555_v57 = vrot.slane %v1553_v50, 1  ;;  %v1557_v60 = vshrl.u32 %v10755_v47, 16 }
  0x87   : > { %2557 = vmatprep.mubr.bf16.mxu0 %v10642_v27  ;;  %2779 = vmatpush1.bf16.msra.mxu0 %v10211_v4  ;;  %v1563_v4 = vrot.slane %v1561_v2, 1  ;;  %v1587_v50 = vrot.slane %v1585_v44, 1 }
  0x88   : > { %2780 = vmatprep.subr.bf16.mxu0 %v10686_v55  ;;  %v10768_v59 = vsel %vm16502_vm0, %v1551_v51, %v1555_v57  ;;  %v1559_v3 = vor.u32 %v1557_v60, %v1555_v57  ;;  %v10815_v51 = vld [vmem:[%s10469_s6 + $0xc8] sm:$0xff]   ;;  %v1589_v60 = vshrl.u32 %v10805_v38, 16 }
  0x89   : > { %v1567_v19 = vor.u32 %v1565_v11, %v1563_v4  ;;  %v1593_v2 = vshll.u32 %v10815_v51, 16  ;;  %v10825_v11 = vld [vmem:[%s10469_s6 + $0xd0] sm:$0xff]  }
  0x8a   : > { %v10778_v8 = vsel %vm16502_vm0, %v1559_v3, %v1563_v4  ;;  %v1591_v3 = vor.u32 %v1589_v60, %v1587_v50  ;;  %v10845_v60 = vld [vmem:[%s10469_s6 + $0xe0] sm:$0xff]  }
  0x8b   : > { %2781 = vmatpush1.bf16.msra.mxu0 %v10214_v23  ;;  %v10787_v23 = vld [vmem:[%s10469_s6 + $0xb8] sm:$0xff]   ;;  %v10798_v25 = vsel %vm16502_vm0, %v1567_v19, %v1571_v22  ;;  %v1595_v4 = vrot.slane %v1593_v2, 1  ;;  %v1597_v19 = vshrl.u32 %v10815_v51, 16  ;;  %v1601_v22 = vshll.u32 %v10825_v11, 16  ;;  %16661 = vst [vmem:[#allocation9_spill] sm:$0xff] %v10845_v60 }
  0x8c   : > { %3039 = vmatprep.subr.bf16.mxu0 %v10686_v55  ;;  %16655 = vst [vmem:[#allocation3_spill] sm:$0xff] %v10798_v25  ;;  %v1577_v31 = vshll.u32 %v10787_v23, 16  ;;  %v1581_v43 = vshrl.u32 %v10787_v23, 16 }
  0x8d   : > { %v10828_v12 = vsel %vm16502_vm0, %v1591_v3, %v1595_v4  ;;  %v1599_v30 = vor.u32 %v1597_v19, %v1595_v4  ;;  %v1617_v4 = vshll.u32 %v10845_v60, 16 }
  0x8e   : > { %2558 = vmatmul.mubr.bf16.gmra.mrb[32].mxu0 %v10603_v7  ;;  %v1579_v35 = vrot.slane %v1577_v31, 1  ;;  %16658 = vst [vmem:[#allocation6_spill] sm:$0xff] %v10828_v12  ;;  %v1603_v31 = vrot.slane %v1601_v22, 1 }
  0x8f   : > { %2565 = vmatprep.mubr.bf16.mxu0 %v10652_v33  ;;  %v1619_v22 = vrot.slane %v1617_v4, 1  ;;  %v1633_v4 = vshll.u32 %v10865_v13, 16 }
  0x90   : > { %v10808_v40 = vsel %vm16502_vm0, %v1575_v32, %v1579_v35  ;;  %v1583_v49 = vor.u32 %v1581_v43, %v1579_v35  ;;  %v10835_v32 = vld [vmem:[%s10469_s6 + $0xd8] sm:$0xff]   ;;  %v10838_v35 = vsel %vm16502_vm0, %v1599_v30, %v1603_v31  ;;  %v1605_v43 = vshrl.u32 %v10825_v11, 16  ;;  %v10855_v30 = vld [vmem:[%s10469_s6 + $0xe8] sm:$0xff]  }
  0x91   : > { %16656 = vst [vmem:[#allocation4_spill] sm:$0xff] %v10808_v40  ;;  %16659 = vst [vmem:[#allocation7_spill] sm:$0xff] %v10835_v32  ;;  %v1609_v44 = vshll.u32 %v10835_v32, 16  ;;  %v1613_v3 = vshrl.u32 %v10835_v32, 16 }
  0x92   : > { %v10818_v57 = vsel %vm16502_vm0, %v1583_v49, %v1587_v50  ;;  %16660 = vst [vmem:[#allocation8_spill] sm:$0xff] %v10838_v35  ;;  %v1607_v49 = vor.u32 %v1605_v43, %v1603_v31  ;;  %16663 = vst [vmem:[#allocation11_spill] sm:$0xff] %v10855_v30  ;;  %v1621_v43 = vshrl.u32 %v10845_v60, 16 }
  0x93   : > { %16657 = vst [vmem:[#allocation5_spill] sm:$0xff] %v10818_v57  ;;  %v1611_v50 = vrot.slane %v1609_v44, 1  ;;  %v1625_v44 = vshll.u32 %v10855_v30, 16 }
  0x95   : > { %v10848_v2 = vsel %vm16502_vm0, %v1607_v49, %v1611_v50  ;;  %v1615_v19 = vor.u32 %v1613_v3, %v1611_v50  ;;  %v1623_v49 = vor.u32 %v1621_v43, %v1619_v22  ;;  %v1627_v16 = vrot.slane %v1625_v44, 1 }
  0x96   : > { %2566 = vmatmul.mubr.bf16.gmra.mrb[36].mxu0 %v10621_v15  ;;  %16662 = vst [vmem:[#allocation10_spill] sm:$0xff] %v10848_v2  ;;  %v1629_v3 = vshrl.u32 %v10855_v30, 16  ;;  %v1637_v43 = vshrl.u32 %v10865_v13, 16 }
  0x97   : > { %2573 = vmatprep.mubr.bf16.mxu0 %v10666_v41  ;;  %v10858_v31 = vsel %vm16502_vm0, %v1615_v19, %v1619_v22  ;;  %v10868_v50 = vsel %vm16502_vm0, %v1623_v49, %v1627_v16  ;;  %v10883_v49 = vld [vmem:[%s10469_s6 + $0x100] sm:$0xf] }
  0x98   : > { %16664 = vst [vmem:[#allocation12_spill] sm:$0xff] %v10858_v31  ;;  %16665 = vst [vmem:[#allocation13_spill] sm:$0xff] %v10868_v50  ;;  %v1631_v19 = vor.u32 %v1629_v3, %v1627_v16  ;;  %v10889_v3 = vcombine.low %v10883_v49, %v10883_v49 }
  0x9e   : > { %2574 = vmatmul.mubr.bf16.gmra.mrb[40].mxu0 %v10632_v21 }
  0x9f   : > { %2581 = vmatprep.mubr.bf16.mxu0 %v10676_v48 }
  0xa6   : > { %2582 = vmatmul.mubr.bf16.gmra.mrb[44].mxu0 %v10646_v28 }
  0xa7   : > { %2589 = vmatprep.mubr.bf16.mxu0 %v10690_v56 }
  0xae   : > { %2590 = vmatmul.mubr.bf16.gmra.mrb[48].mxu0 %v10656_v34 }
  0xaf   : > { %2597 = vmatprep.mubr.bf16.mxu0 %v10700_v0 }
  0xb6   : > { %2598 = vmatmul.mubr.bf16.gmra.mrb[52].mxu0 %v10670_v42 }
  0xb7   : > { %2605 = vmatprep.mubr.bf16.mxu0 %v10714_v10 }
  0xbe   : > { %2606 = vmatmul.mubr.bf16.gmra.mrb[56].mxu0 %v10684_v52 }
  0xbf   : > { %2613 = vmatprep.mubr.bf16.mxu0 %v10724_v18 }
  0xc6   : > { %2614 = vmatmul.mubr.bf16.gmra.mrb[60].mxu0 %v10697_v63 }
  0xc7   : > { %2621 = vmatprep.mubr.bf16.mxu0 %v10738_v29 }
  0xce   : > { %2622 = vmatmul.mubr.bf16.gmra.mrb[64].mxu0 %v10710_v9 }
  0xcf   : > { %2629 = vmatprep.mubr.bf16.mxu0 %v10748_v37 }
  0xd6   : > { %2630 = vmatmul.mubr.bf16.gmra.mrb[68].mxu0 %v10721_v17 }
  0xd7   : > { %2637 = vmatprep.mubr.bf16.mxu0 %v10758_v1 }
  0xde   : > { %2638 = vmatmul.mubr.bf16.gmra.mrb[72].mxu0 %v10734_v26 }
  0xdf   : > { %2645 = vmatprep.mubr.bf16.mxu0 %v10768_v59 }
  0xe6   : > { %2646 = vmatmul.mubr.bf16.gmra.mrb[76].mxu0 %v10745_v36 }
  0xe7   : > { %2653 = vmatprep.mubr.bf16.mxu0 %v10778_v8 }
  0xee   : > { %2654 = vmatmul.mubr.bf16.gmra.mrb[80].mxu0 %v10755_v47 }
  0xef   : > { %2661 = vmatprep.mubr.bf16.mxu0 %v10798_v25  ;;  %v10342_v25 = vld [vmem:[%s10469_s6 + $0x8] sm:$0xff]  }
  0xf6   : > { %2662 = vmatmul.mubr.bf16.gmra.mrb[84].mxu0 %v10765_v58 }
  0xf7   : > { %2669 = vmatprep.mubr.bf16.mxu0 %v10808_v40 }
  0xfe   : > { %2670 = vmatmul.mubr.bf16.gmra.mrb[88].mxu0 %v10775_v5 }
  0xff   : > { %2677 = vmatprep.mubr.bf16.mxu0 %v10818_v57  ;;  %v10341_v57 = vld [vmem:[%s10469_s6 + $0x10] sm:$0xff]  }
 0x106   : > { %2678 = vmatmul.mubr.bf16.gmra.mrb[92].mxu0 %v10787_v23 }
 0x107   : > { %2685 = vmatprep.mubr.bf16.mxu0 %v10828_v12 }
 0x10e   : > { %2686 = vmatmul.mubr.bf16.gmra.mrb[96].mxu0 %v10805_v38 }
 0x10f   : > { %2693 = vmatprep.mubr.bf16.mxu0 %v10838_v35  ;;  %v10875_v35 = vld [vmem:[%s10469_s6 + $0xf8] sm:$0xff]  }
 0x110   : > { %v1641_v44 = vshll.u32 %v10875_v35, 16 }
 0x112   : > { %v1643_v16 = vrot.slane %v1641_v44, 1  ;;  %v10340_v44 = vld [vmem:[%s10469_s6 + $0x4] sm:$0xf] }
 0x116   : > { %2694 = vmatmul.mubr.bf16.gmra.mrb[100].mxu0 %v10815_v51 }
 0x117   : > { %2701 = vmatprep.mubr.bf16.mxu0 %v10848_v2  ;;  %v1635_v2 = vrot.slane %v1633_v4, 1 }
 0x119   : > { %v10878_v22 = vsel %vm16502_vm0, %v1631_v19, %v1635_v2  ;;  %v1645_v19 = vshrl.u32 %v10875_v35, 16 }
 0x11a   : > { %16666 = vst [vmem:[#allocation14_spill] sm:$0xff] %v10878_v22 }
 0x11e   : > { %2702 = vmatmul.mubr.bf16.gmra.mrb[104].mxu0 %v10825_v11 }
 0x11f   : > { %2709 = vmatprep.mubr.bf16.mxu0 %v10858_v31  ;;  %v1649_v31 = vshll.u32 %v10889_v3, 16 }
 0x126   : > { %2710 = vmatmul.mubr.bf16.gmra.mrb[108].mxu0 %v10835_v32 }
 0x127   : > { %2717 = vmatprep.mubr.bf16.mxu0 %v10868_v50  ;;  %v1639_v50 = vor.u32 %v1637_v43, %v1635_v2  ;;  %v1651_v2 = vrot.slane %v1649_v31, 1 }
 0x129   : > { %v10892_v4 = vsel %vm16502_vm0, %v1639_v50, %v1643_v16  ;;  %v1196_v50 = vld [vmem:[%s10469_s6] sm:$0xe] }
 0x12a   : > { %v8673_v12 = vcombine.low %v1196_v50, %v10340_v44  ;;  %v10219_v50 = vld [vmem:[%s16342_s1 + $0x108] sm:$0xff]   ;;  %v10221_v44 = vld [vmem:[%s16342_s1 + $0x118] sm:$0xff]  }
 0x12c   : > { %v1689_v40 = vrot.slane %v8673_v12, 1 }
 0x12e   : > { %2718 = vmatmul.mubr.bf16.gmra.mrb[112].mxu0 %v10845_v60 }
 0x12f   : > { %2725 = vmatprep.mubr.bf16.mxu0 %v10878_v22  ;;  %v10898_v22 = vor.u32 %v1645_v19, %v1643_v16  ;;  %v1690_v16 = vrot.slane %v10342_v25, 1  ;;  %v10218_v19 = vld [vmem:[%s16342_s1 + $0x100] sm:$0xff]   ;;  %v10220_v25 = vld [vmem:[%s16342_s1 + $0x110] sm:$0xff]  }
 0x131   : > { %v1652_v43 = vsel %vm16502_vm0, %v10898_v22, %v1651_v2  ;;  %v1691_v31 = vsel %vm16504_vm1, %v1689_v40, %v1690_v16  ;;  %v10343_v2 = vld [vmem:[%s10469_s6 + $0x18] sm:$0xff]   ;;  %v10923_v40 = vld [vmem:[%s10469_s6 + $0x20] sm:$0xff]  }
 0x136   : > { %2726 = vmatmul.mubr.bf16.gmra.mrb[116].mxu0 %v10855_v30 }
 0x137   : > { %2733 = vmatprep.mubr.bf16.mxu0 %v10892_v4 }
 0x13e   : > { %2734 = vmatmul.mubr.bf16.gmra.mrb[120].mxu0 %v10865_v13 }
 0x13f   : > { %2741 = vmatprep.mubr.bf16.mxu0 %v1652_v43  ;;  %v1692_v43 = vrot.slane %v10341_v57, 1 }
 0x141   : > { %v1693_v12 = vsel %vm16504_vm1, %v1690_v16, %v1692_v43 }
 0x146   : > { %2742 = vmatmul.mubr.bf16.gmra.mrb[124].mxu0 %v10875_v35 }
 0x147   : > { %2782 = vmatprep.mubr.bf16.mxu0 %v10341_v57  ;;  %v1694_v57 = vrot.slane %v10343_v2, 1 }
 0x149   : > { %v10931_v16 = vsel %vm16504_vm1, %v1692_v43, %v1694_v57  ;;  %v16667_v43 = vrot.slane %v10538_v39, 1  ;;  %v10226_v39 = vld [vmem:[%s16342_s1 + $0x140] sm:$0xff]  }
 0x14e   : > { %2783 = vmatmul.mubr.bf16.vlgmr.msra.gmra.mrb[0].mxu0 %v1691_v31  ;;  %v10222_v31 = vld [vmem:[%s16342_s1 + $0x120] sm:$0xff]  }
 0x14f   : > { %3040 = vmatpush1.bf16.msra.mxu0 %v10218_v19  ;;  %2790 = vmatprep.mubr.bf16.mxu0 %v10343_v2  ;;  %v10939_v19 = vld [vmem:[%s10469_s6 + $0x28] sm:$0xff]  }
 0x150   : > { %3041 = vmatprep.subr.bf16.mxu0 %v10686_v55  ;;  %v10223_v2 = vld [vmem:[%s16342_s1 + $0x128] sm:$0xff]  }
 0x153   : > { %3042 = vmatpush1.bf16.msra.mxu0 %v10219_v50  ;;  %v10949_v50 = vsel %vm16504_vm1, %v1694_v57, %v16667_v43  ;;  %v1700_v57 = vrot.slane %v10568_v54, 1  ;;  %v10228_v43 = vld [vmem:[%s16342_s1 + $0x150] sm:$0xff]  }
 0x154   : > { %3043 = vmatprep.subr.bf16.mxu0 %v10686_v55 }
 0x156   : > { %2791 = vmatmul.mubr.bf16.gmra.mrb[4].mxu0 %v1693_v12  ;;  %v10224_v12 = vld [vmem:[%s16342_s1 + $0x130] sm:$0xff]  }
 0x157   : > { %2798 = vmatprep.mubr.bf16.mxu0 %v10923_v40  ;;  %3044 = vmatpush1.bf16.msra.mxu0 %v10220_v25  ;;  %v10225_v25 = vld [vmem:[%s16342_s1 + $0x138] sm:$0xff]  }
 0x158   : > { %3045 = vmatprep.subr.bf16.mxu0 %v10686_v55 }
 0x15b   : > { %3046 = vmatpush1.bf16.msra.mxu0 %v10221_v44  ;;  %v10227_v44 = vld [vmem:[%s16342_s1 + $0x148] sm:$0xff]  }
 0x15c   : > { %3047 = vmatprep.subr.bf16.mxu0 %v10686_v55 }
 0x15e   : > { %2799 = vmatmul.mubr.bf16.gmra.mrb[8].mxu0 %v10931_v16 }
 0x15f   : > { %2806 = vmatprep.mubr.bf16.mxu0 %v10939_v19  ;;  %3048 = vmatpush1.bf16.msra.mxu0 %v10222_v31  ;;  %v16668_v31 = vrot.slane %v10549_v46, 1 }
 0x160   : > { %3049 = vmatprep.subr.bf16.mxu0 %v10686_v55 }
 0x163   : > { %3050 = vmatpush1.bf16.msra.mxu0 %v10223_v2  ;;  %v10975_v2 = vsel %vm16504_vm1, %v16668_v31, %v1700_v57 }
 0x164   : > { %3051 = vmatprep.subr.bf16.mxu0 %v10686_v55 }
 0x166   : > { %2807 = vmatmul.mubr.bf16.gmra.mrb[12].mxu0 %v10949_v50 }
 0x167   : > { %2814 = vmatprep.mubr.bf16.mxu0 %v10568_v54  ;;  %3052 = vmatpush1.bf16.msra.mxu0 %v10224_v12  ;;  %v1702_v54 = vrot.slane %v10584_v62, 1  ;;  %v10229_v12 = vld [vmem:[%s16342_s1 + $0x158] sm:$0xff]  }
 0x168   : > { %3053 = vmatprep.subr.bf16.mxu0 %v10686_v55 }
 0x169   : > { %v10986_v46 = vsel %vm16504_vm1, %v1700_v57, %v1702_v54 }
 0x16b   : > { %3054 = vmatpush1.bf16.msra.mxu0 %v10225_v25  ;;  %v1704_v25 = vrot.slane %v10603_v7, 1 }
 0x16c   : > { %3055 = vmatprep.subr.bf16.mxu0 %v10686_v55 }
 0x16e   : > { %2815 = vmatmul.mubr.bf16.gmra.mrb[16].mxu0 %v10794_v24 }
 0x16f   : > { %2822 = vmatprep.mubr.bf16.mxu0 %v10584_v62  ;;  %3056 = vmatpush1.bf16.msra.mxu0 %v10226_v39  ;;  %v10996_v62 = vsel %vm16504_vm1, %v1702_v54, %v1704_v25  ;;  %v1706_v39 = vrot.slane %v10621_v15, 1  ;;  %v1712_v54 = vrot.slane %v10656_v34, 1 }
 0x170   : > { %3057 = vmatprep.subr.bf16.mxu0 %v10686_v55 }
 0x171   : > { %v11002_v57 = vsel %vm16504_vm1, %v1704_v25, %v1706_v39 }
 0x173   : > { %3058 = vmatpush1.bf16.msra.mxu0 %v10227_v44  ;;  %v1708_v44 = vrot.slane %v10632_v21, 1 }
 0x174   : > { %3059 = vmatprep.subr.bf16.mxu0 %v10686_v55 }
 0x175   : > { %v11012_v31 = vsel %vm16504_vm1, %v1706_v39, %v1708_v44  ;;  %v1716_v39 = vrot.slane %v10684_v52, 1 }
 0x176   : > { %2823 = vmatmul.mubr.bf16.gmra.mrb[20].mxu0 %v10975_v2 }
 0x177   : > { %2830 = vmatprep.mubr.bf16.mxu0 %v10603_v7  ;;  %3060 = vmatpush1.bf16.msra.mxu0 %v10228_v43  ;;  %v10230_v7 = vld [vmem:[%s16342_s1 + $0x160] sm:$0xff]  }
 0x178   : > { %3061 = vmatprep.subr.bf16.mxu0 %v10686_v55 }
 0x17b   : > { %3062 = vmatpush1.bf16.msra.mxu0 %v10229_v12 }
 0x17c   : > { %3063 = vmatprep.subr.bf16.mxu0 %v10686_v55 }
 0x17e   : > { %2831 = vmatmul.mubr.bf16.gmra.mrb[24].mxu0 %v10986_v46 }
 0x17f   : > { %2838 = vmatprep.mubr.bf16.mxu0 %v10621_v15  ;;  %3064 = vmatpush1.bf16.msra.mxu0 %v10230_v7  ;;  %v1710_v15 = vrot.slane %v10646_v28, 1 }
 0x180   : > { %3065 = vmatprep.subr.bf16.mxu0 %v10686_v55 }
 0x181   : > { %v11018_v43 = vsel %vm16504_vm1, %v1708_v44, %v1710_v15  ;;  %v11028_v12 = vsel %vm16504_vm1, %v1710_v15, %v1712_v54  ;;  %v1720_v15 = vrot.slane %v10710_v9, 1 }
 0x186   : > { %2839 = vmatmul.mubr.bf16.gmra.mrb[28].mxu0 %v10996_v62 }
 0x187   : > { %2846 = vmatprep.mubr.bf16.mxu0 %v10632_v21  ;;  %v10231_v21 = vld [vmem:[%s16342_s1 + $0x168] sm:$0xff]  }
 0x188   : > { %3066 = vmatpush1.bf16.msra.mxu0 %v10231_v21 }
 0x189   : > { %3067 = vmatprep.subr.bf16.mxu0 %v10686_v55 }
 0x18e   : > { %2847 = vmatmul.mubr.bf16.gmra.mrb[32].mxu0 %v11002_v57 }
 0x18f   : > { %2854 = vmatprep.mubr.bf16.mxu0 %v10646_v28  ;;  %v1714_v28 = vrot.slane %v10670_v42, 1 }
 0x191   : > { %v11034_v25 = vsel %vm16504_vm1, %v1712_v54, %v1714_v28  ;;  %v11044_v7 = vsel %vm16504_vm1, %v1714_v28, %v1716_v39 }
 0x196   : > { %2855 = vmatmul.mubr.bf16.gmra.mrb[36].mxu0 %v11012_v31 }
 0x197   : > { %2862 = vmatprep.mubr.bf16.mxu0 %v10656_v34  ;;  %v10232_v34 = vld [vmem:[%s16342_s1 + $0x170] sm:$0xff]  }
 0x198   : > { %3068 = vmatpush1.bf16.msra.mxu0 %v10232_v34  ;;  %v1726_v34 = vrot.slane %v10745_v36, 1 }
 0x199   : > { %3069 = vmatprep.subr.bf16.mxu0 %v10686_v55 }
 0x19e   : > { %2863 = vmatmul.mubr.bf16.gmra.mrb[40].mxu0 %v11018_v43 }
 0x19f   : > { %2870 = vmatprep.mubr.bf16.mxu0 %v10670_v42  ;;  %v1718_v42 = vrot.slane %v10697_v63, 1 }
 0x1a1   : > { %v11050_v44 = vsel %vm16504_vm1, %v1716_v39, %v1718_v42  ;;  %v11060_v21 = vsel %vm16504_vm1, %v1718_v42, %v1720_v15  ;;  %v1728_v39 = vrot.slane %v10755_v47, 1  ;;  %v1730_v42 = vrot.slane %v10765_v58, 1 }
 0x1a6   : > { %2871 = vmatmul.mubr.bf16.gmra.mrb[44].mxu0 %v11028_v12 }
 0x1a7   : > { %2878 = vmatprep.mubr.bf16.mxu0 %v10684_v52  ;;  %v10233_v52 = vld [vmem:[%s16342_s1 + $0x178] sm:$0xff]  }
 0x1a8   : > { %3070 = vmatpush1.bf16.msra.mxu0 %v10233_v52  ;;  %v1732_v52 = vrot.slane %v10775_v5, 1 }
 0x1a9   : > { %3328 = vmatprep.subr.bf16.mxu0 %v10686_v55 }
 0x1ae   : > { %2879 = vmatmul.mubr.bf16.gmra.mrb[48].mxu0 %v11034_v25 }
 0x1af   : > { %2886 = vmatprep.mubr.bf16.mxu0 %v10697_v63  ;;  %v1722_v63 = vrot.slane %v10721_v17, 1 }
 0x1b1   : > { %v11066_v54 = vsel %vm16504_vm1, %v1720_v15, %v1722_v63  ;;  %v1734_v15 = vrot.slane %v10787_v23, 1 }
 0x1b6   : > { %2887 = vmatmul.mubr.bf16.gmra.mrb[52].mxu0 %v11044_v7 }
 0x1b7   : > { %2894 = vmatprep.mubr.bf16.mxu0 %v10710_v9  ;;  %v1724_v9 = vrot.slane %v10734_v26, 1 }
 0x1b9   : > { %v11072_v28 = vsel %vm16504_vm1, %v1722_v63, %v1724_v9  ;;  %v1736_v63 = vrot.slane %v10805_v38, 1 }
 0x1be   : > { %2895 = vmatmul.mubr.bf16.gmra.mrb[56].mxu0 %v11050_v44 }
 0x1bf   : > { %2902 = vmatprep.mubr.bf16.mxu0 %v10721_v17  ;;  %v11078_v17 = vsel %vm16504_vm1, %v1724_v9, %v1726_v34  ;;  %v1738_v9 = vrot.slane %v10815_v51, 1 }
 0x1c6   : > { %2903 = vmatmul.mubr.bf16.gmra.mrb[60].mxu0 %v11060_v21 }
 0x1c7   : > { %2910 = vmatprep.mubr.bf16.mxu0 %v10734_v26  ;;  %v11084_v26 = vsel %vm16504_vm1, %v1726_v34, %v1728_v39  ;;  %v1740_v34 = vrot.slane %v10825_v11, 1 }
 0x1ce   : > { %2911 = vmatmul.mubr.bf16.gmra.mrb[64].mxu0 %v11066_v54 }
 0x1cf   : > { %2918 = vmatprep.mubr.bf16.mxu0 %v10745_v36  ;;  %v11090_v36 = vsel %vm16504_vm1, %v1728_v39, %v1730_v42  ;;  %v1742_v39 = vrot.slane %v10835_v32, 1 }
 0x1d6   : > { %2919 = vmatmul.mubr.bf16.gmra.mrb[68].mxu0 %v11072_v28 }
 0x1d7   : > { %2926 = vmatprep.mubr.bf16.mxu0 %v10755_v47  ;;  %v11096_v47 = vsel %vm16504_vm1, %v1730_v42, %v1732_v52  ;;  %v1744_v42 = vrot.slane %v10845_v60, 1 }
 0x1de   : > { %2927 = vmatmul.mubr.bf16.gmra.mrb[72].mxu0 %v11078_v17 }
 0x1df   : > { %2934 = vmatprep.mubr.bf16.mxu0 %v10765_v58  ;;  %v11102_v58 = vsel %vm16504_vm1, %v1732_v52, %v1734_v15  ;;  %v11132_v52 = vsel %vm16504_vm1, %v1742_v39, %v1744_v42 }
 0x1e6   : > { %2935 = vmatmul.mubr.bf16.gmra.mrb[76].mxu0 %v11084_v26 }
 0x1e7   : > { %2942 = vmatprep.mubr.bf16.mxu0 %v10775_v5  ;;  %v11108_v5 = vsel %vm16504_vm1, %v1734_v15, %v1736_v63  ;;  %v1746_v15 = vrot.slane %v10855_v30, 1 }
 0x1ee   : > { %2943 = vmatmul.mubr.bf16.gmra.mrb[80].mxu0 %v11090_v36 }
 0x1ef   : > { %2950 = vmatprep.mubr.bf16.mxu0 %v10787_v23  ;;  %v11114_v23 = vsel %vm16504_vm1, %v1736_v63, %v1738_v9  ;;  %v11138_v63 = vsel %vm16504_vm1, %v1744_v42, %v1746_v15  ;;  %v11153_v42 = vrot.slane %v10875_v35, 1 }
 0x1f6   : > { %2951 = vmatmul.mubr.bf16.gmra.mrb[84].mxu0 %v11096_v47 }
 0x1f7   : > { %2958 = vmatprep.mubr.bf16.mxu0 %v10805_v38  ;;  %v11120_v38 = vsel %vm16504_vm1, %v1738_v9, %v1740_v34  ;;  %v1748_v9 = vrot.slane %v10865_v13, 1 }
 0x1fe   : > { %2959 = vmatmul.mubr.bf16.gmra.mrb[88].mxu0 %v11102_v58 }
 0x1ff   : > { %2966 = vmatprep.mubr.bf16.mxu0 %v10815_v51  ;;  %v11126_v51 = vsel %vm16504_vm1, %v1740_v34, %v1742_v39  ;;  %v1188_v34 = vld [vmem:[%s10469_s6 + $0x104] sm:$0xf]  ;;  %v11148_v39 = vsel %vm16504_vm1, %v1746_v15, %v1748_v9 }
 0x206   : > { %2967 = vmatmul.mubr.bf16.gmra.mrb[92].mxu0 %v11108_v5 }
 0x207   : > { %2974 = vmatprep.mubr.bf16.mxu0 %v10825_v11 }
 0x20e   : > { %2975 = vmatmul.mubr.bf16.gmra.mrb[96].mxu0 %v11114_v23 }
 0x20f   : > { %2982 = vmatprep.mubr.bf16.mxu0 %v10835_v32  ;;  %v11160_v32 = vld [vmem:[%s10469_s6 + $0x108] sm:$0xff]  }
 0x216   : > { %2983 = vmatmul.mubr.bf16.gmra.mrb[100].mxu0 %v11120_v38 }
 0x217   : > { %2990 = vmatprep.mubr.bf16.mxu0 %v10845_v60  ;;  %v11145_v60 = vcombine.low %v10883_v49, %v1188_v34  ;;  %v1752_v49 = vrot.slane %v10889_v3, 1  ;;  %v10235_v34 = vld [vmem:[%s16342_s1 + $0x180] sm:$0xff]   ;;  %v10237_v3 = vld [vmem:[%s16342_s1 + $0x190] sm:$0xff]  }
 0x219   : > { %v1753_v15 = vsel %vm16504_vm1, %v11153_v42, %v1752_v49  ;;  %v10243_v49 = vld [vmem:[%s16342_s1 + $0x1c0] sm:$0xff]  }
 0x21e   : > { %2991 = vmatmul.mubr.bf16.gmra.mrb[104].mxu0 %v11126_v51 }
 0x21f   : > { %2998 = vmatprep.mubr.bf16.mxu0 %v10855_v30  ;;  %v11157_v30 = vsel %vm16504_vm1, %v1748_v9, %v11153_v42  ;;  %v10236_v9 = vld [vmem:[%s16342_s1 + $0x188] sm:$0xff]  }
 0x226   : > { %2999 = vmatmul.mubr.bf16.gmra.mrb[108].mxu0 %v11132_v52 }
 0x227   : > { %3006 = vmatprep.mubr.bf16.mxu0 %v10865_v13 }
 0x22e   : > { %3007 = vmatmul.mubr.bf16.gmra.mrb[112].mxu0 %v11138_v63 }
 0x22f   : > { %3014 = vmatprep.mubr.bf16.mxu0 %v10875_v35 }
 0x236   : > { %3015 = vmatmul.mubr.bf16.gmra.mrb[116].mxu0 %v11148_v39 }
 0x237   : > { %3022 = vmatprep.mubr.bf16.mxu0 %v11145_v60 }
 0x23e   : > { %3023 = vmatmul.mubr.bf16.gmra.mrb[120].mxu0 %v11157_v30 }
 0x23f   : > { %3030 = vmatprep.mubr.bf16.mxu0 %v11160_v32 }
 0x246   : > { %3031 = vmatmul.mubr.bf16.gmra.mrb[124].mxu0 %v1753_v15  ;;  %v10244_v15 = vld [vmem:[%s16342_s1 + $0x1c8] sm:$0xff]  }
 0x247   : > { %3071 = vmatprep.mubr.bf16.mxu0 %v10931_v16  ;;  %v10239_v16 = vld [vmem:[%s16342_s1 + $0x1a0] sm:$0xff]  }
 0x24e   : > { %3072 = vmatmul.mubr.bf16.vlgmr.msra.gmra.mrb[0].mxu0 %v10546_v45  ;;  %v10238_v45 = vld [vmem:[%s16342_s1 + $0x198] sm:$0xff]  }
 0x24f   : > { %3329 = vmatpush1.bf16.msra.mxu0 %v10235_v34  ;;  %3079 = vmatprep.mubr.bf16.mxu0 %v10949_v50  ;;  %v10242_v50 = vld [vmem:[%s16342_s1 + $0x1b8] sm:$0xff]   ;;  %v10245_v34 = vld [vmem:[%s16342_s1 + $0x1d0] sm:$0xff]  }
 0x250   : > { %3330 = vmatprep.subr.bf16.mxu0 %v10686_v55 }
 0x253   : > { %3331 = vmatpush1.bf16.msra.mxu0 %v10236_v9  ;;  %v10246_v9 = vld [vmem:[%s16342_s1 + $0x1d8] sm:$0xff]  }
 0x254   : > { %3332 = vmatprep.subr.bf16.mxu0 %v10686_v55 }
 0x256   : > { %3080 = vmatmul.mubr.bf16.gmra.mrb[4].mxu0 %v10564_v53  ;;  %v10240_v53 = vld [vmem:[%s16342_s1 + $0x1a8] sm:$0xff]  }
 0x257   : > { %3087 = vmatprep.mubr.bf16.mxu0 %v10794_v24  ;;  %3333 = vmatpush1.bf16.msra.mxu0 %v10237_v3  ;;  %v10241_v24 = vld [vmem:[%s16342_s1 + $0x1b0] sm:$0xff]   ;;  %v10247_v3 = vld [vmem:[%s16342_s1 + $0x1e0] sm:$0xff]  }
 0x258   : > { %3334 = vmatprep.subr.bf16.mxu0 %v10686_v55 }
 0x25b   : > { %3335 = vmatpush1.bf16.msra.mxu0 %v10238_v45  ;;  %v10248_v45 = vld [vmem:[%s16342_s1 + $0x1e8] sm:$0xff]  }
 0x25c   : > { %3336 = vmatprep.subr.bf16.mxu0 %v10686_v55 }
 0x25e   : > { %3088 = vmatmul.mubr.bf16.gmra.mrb[8].mxu0 %v10581_v61 }
 0x25f   : > { %3095 = vmatprep.mubr.bf16.mxu0 %v10975_v2  ;;  %3337 = vmatpush1.bf16.msra.mxu0 %v10239_v16  ;;  %v10250_v16 = vld [vmem:[%s16342_s1 + $0x200] sm:$0xff]  }
 0x260   : > { %3338 = vmatprep.subr.bf16.mxu0 %v10686_v55  ;;  %9069 = vmatprep.subr.bf16.mxu1 %v10250_v16 }
 0x261   : > { %9070 = vmatpush3.bf16.msra.mxu1 %v10250_v16 }
 0x263   : > { %3339 = vmatpush1.bf16.msra.mxu0 %v10240_v53  ;;  %v10249_v53 = vld [vmem:[%s16342_s1 + $0x1f0] sm:$0xff]  }
 0x264   : > { %3340 = vmatprep.subr.bf16.mxu0 %v10686_v55 }
 0x266   : > { %3096 = vmatmul.mubr.bf16.gmra.mrb[12].mxu0 %v10598_v6 }
 0x267   : > { %3103 = vmatprep.mubr.bf16.mxu0 %v10986_v46  ;;  %3341 = vmatpush1.bf16.msra.mxu0 %v10241_v24  ;;  %v10251_v24 = vld [vmem:[%s16342_s1 + $0x208] sm:$0xff]  }
 0x268   : > { %3342 = vmatprep.subr.bf16.mxu0 %v10686_v55  ;;  %9071 = vmatprep.subr.bf16.mxu1 %v10251_v24 }
 0x269   : > { %9072 = vmatpush3.bf16.msra.mxu1 %v10251_v24  ;;  %v10347_v24 = vld [vmem:[%s10469_s6 + $0x38] sm:$0xff]  }
 0x26b   : > { %3343 = vmatpush1.bf16.msra.mxu0 %v10242_v50  ;;  %v10252_v50 = vld [vmem:[%s16342_s1 + $0x210] sm:$0xff]  }
 0x26c   : > { %3344 = vmatprep.subr.bf16.mxu0 %v10686_v55  ;;  %9073 = vmatprep.subr.bf16.mxu1 %v10252_v50 }
 0x26d   : > { %9074 = vmatpush3.bf16.msra.mxu1 %v10252_v50 }
 0x26e   : > { %3104 = vmatmul.mubr.bf16.gmra.mrb[16].mxu0 %v10616_v14 }
 0x26f   : > { %3111 = vmatprep.mubr.bf16.mxu0 %v10996_v62  ;;  %3345 = vmatpush1.bf16.msra.mxu0 %v10243_v49  ;;  %v10253_v49 = vld [vmem:[%s16342_s1 + $0x218] sm:$0xff]  }
 0x270   : > { %3346 = vmatprep.subr.bf16.mxu0 %v10686_v55  ;;  %9075 = vmatprep.subr.bf16.mxu1 %v10253_v49 }
 0x271   : > { %9076 = vmatpush3.bf16.msra.mxu1 %v10253_v49  ;;  %v10356_v49 = vld [vmem:[%s10469_s6 + $0x80] sm:$0xff]  }
 0x273   : > { %3347 = vmatpush1.bf16.msra.mxu0 %v10244_v15  ;;  %v10255_v15 = vld [vmem:[%s16342_s1 + $0x220] sm:$0xff]  }
 0x274   : > { %3348 = vmatprep.subr.bf16.mxu0 %v10686_v55  ;;  %9077 = vmatprep.subr.bf16.mxu1 %v10255_v15 }
 0x275   : > { %9078 = vmatpush3.bf16.msra.mxu1 %v10255_v15 }
 0x276   : > { %3112 = vmatmul.mubr.bf16.gmra.mrb[20].mxu0 %v10628_v20 }
 0x277   : > { %3119 = vmatprep.mubr.bf16.mxu0 %v11002_v57  ;;  %3349 = vmatpush1.bf16.msra.mxu0 %v10245_v34  ;;  %v10254_v34 = vld [vmem:[%s16342_s1 + $0x1f8] sm:$0xff]  }
 0x278   : > { %3350 = vmatprep.subr.bf16.mxu0 %v10686_v55 }
 0x27b   : > { %3351 = vmatpush1.bf16.msra.mxu0 %v10246_v9  ;;  %v10256_v9 = vld [vmem:[%s16342_s1 + $0x228] sm:$0xff]  }
 0x27c   : > { %3352 = vmatprep.subr.bf16.mxu0 %v10686_v55  ;;  %9079 = vmatprep.subr.bf16.mxu1 %v10256_v9 }
 0x27d   : > { %9080 = vmatpush3.bf16.msra.mxu1 %v10256_v9 }
 0x27e   : > { %3120 = vmatmul.mubr.bf16.gmra.mrb[24].mxu0 %v10642_v27 }
 0x27f   : > { %3127 = vmatprep.mubr.bf16.mxu0 %v11012_v31  ;;  %3353 = vmatpush1.bf16.msra.mxu0 %v10247_v3  ;;  %v10259_v3 = vld [vmem:[%s16342_s1 + $0x230] sm:$0xff]  }
 0x280   : > { %3354 = vmatprep.subr.bf16.mxu0 %v10686_v55  ;;  %9081 = vmatprep.subr.bf16.mxu1 %v10259_v3 }
 0x281   : > { %9082 = vmatpush3.bf16.msra.mxu1 %v10259_v3 }
 0x283   : > { %3355 = vmatpush1.bf16.msra.mxu0 %v10248_v45  ;;  %v10260_v45 = vld [vmem:[%s16342_s1 + $0x238] sm:$0xff]  }
 0x284   : > { %3356 = vmatprep.subr.bf16.mxu0 %v10686_v55  ;;  %9083 = vmatprep.subr.bf16.mxu1 %v10260_v45 }
 0x285   : > { %9084 = vmatpush3.bf16.msra.mxu1 %v10260_v45  ;;  %v10357_v45 = vld [vmem:[%s10469_s6 + $0x88] sm:$0xff]  }
 0x286   : > { %3128 = vmatmul.mubr.bf16.gmra.mrb[28].mxu0 %v10652_v33  ;;  %6214 = vmatprep.subr.bf16.mxu1 %v10686_v55 }
 0x287   : > { %3135 = vmatprep.mubr.bf16.mxu0 %v11018_v43  ;;  %3357 = vmatpush1.bf16.msra.mxu0 %v10249_v53  ;;  %v10346_v53 = vld [vmem:[%s10469_s6 + $0x30] sm:$0xff]  }
 0x288   : > { %3358 = vmatprep.subr.bf16.mxu0 %v10686_v55  ;;  %9086 = vmatmul.mubr.bf16.vlgmr.msra.gmra.mrb[0].mxu1 %v10975_v2  ;;  %v16669_v55 = vld [vmem:[#allocation3_spill] sm:$0xff]  ;;  %v16670_v2 = vld [vmem:[#allocation4_spill] sm:$0xff] }
 0x289   : > { %9089 = vmatprep.mubr.bf16.mxu1 %v10986_v46  ;;  %v16671_v46 = vld [vmem:[#allocation5_spill] sm:$0xff] }
 0x28b   : > { %3359 = vmatpush1.bf16.msra.mxu0 %v10254_v34 }
 0x28e   : > { %3136 = vmatmul.mubr.bf16.gmra.mrb[32].mxu0 %v10666_v41 }
 0x28f   : > { %3143 = vmatprep.mubr.bf16.mxu0 %v11028_v12 }
 0x290   : > { %9090 = vmatmul.mubr.bf16.gmra.mrb[4].mxu1 %v10996_v62  ;;  %v16672_v62 = vld [vmem:[#allocation6_spill] sm:$0xff] }
 0x291   : > { %9093 = vmatprep.mubr.bf16.mxu1 %v11002_v57  ;;  %v16673_v57 = vld [vmem:[#allocation8_spill] sm:$0xff] }
 0x296   : > { %3144 = vmatmul.mubr.bf16.gmra.mrb[36].mxu0 %v10676_v48 }
 0x297   : > { %3151 = vmatprep.mubr.bf16.mxu0 %v11034_v25 }
 0x298   : > { %9094 = vmatmul.mubr.bf16.gmra.mrb[8].mxu1 %v11012_v31  ;;  %v16674_v31 = vld [vmem:[#allocation10_spill] sm:$0xff] }
 0x299   : > { %9097 = vmatprep.mubr.bf16.mxu1 %v11018_v43  ;;  %v16675_v43 = vld [vmem:[#allocation12_spill] sm:$0xff] }
 0x29e   : > { %3152 = vmatmul.mubr.bf16.gmra.mrb[40].mxu0 %v10690_v56 }
 0x29f   : > { %3159 = vmatprep.mubr.bf16.mxu0 %v11044_v7 }
 0x2a0   : > { %9098 = vmatmul.mubr.bf16.gmra.mrb[12].mxu1 %v11028_v12  ;;  %v16676_v12 = vld [vmem:[#allocation13_spill] sm:$0xff] }
 0x2a1   : > { %9101 = vmatprep.mubr.bf16.mxu1 %v11034_v25  ;;  %v16677_v25 = vld [vmem:[#allocation14_spill] sm:$0xff] }
 0x2a6   : > { %3160 = vmatmul.mubr.bf16.gmra.mrb[44].mxu0 %v10700_v0 }
 0x2a7   : > { %3167 = vmatprep.mubr.bf16.mxu0 %v11050_v44 }
 0x2a8   : > { %9102 = vmatmul.mubr.bf16.gmra.mrb[16].mxu1 %v11044_v7  ;;  %v1823_v7 = vrot.slane %v11145_v60, 1 }
 0x2a9   : > { %9105 = vmatprep.mubr.bf16.mxu1 %v11050_v44  ;;  %v1800_v44 = vshll.u32 %v11145_v60, 16 }
 0x2ae   : > { %3168 = vmatmul.mubr.bf16.gmra.mrb[48].mxu0 %v10714_v10 }
 0x2af   : > { %3175 = vmatprep.mubr.bf16.mxu0 %v11060_v21 }
 0x2b0   : > { %9106 = vmatmul.mubr.bf16.gmra.mrb[20].mxu1 %v11060_v21  ;;  %v1824_v21 = vsel %vm16504_vm1, %v11153_v42, %v1823_v7 }
 0x2b1   : > { %9109 = vmatprep.mubr.bf16.mxu1 %v11066_v54 }
 0x2b6   : > { %3176 = vmatmul.mubr.bf16.gmra.mrb[52].mxu0 %v10724_v18 }
 0x2b7   : > { %3183 = vmatprep.mubr.bf16.mxu0 %v11066_v54  ;;  %v1802_v54 = vrot.slane %v1800_v44, 1  ;;  %v11427_v44 = vld [vmem:[%s10469_s6 + $0x120] ss:$0 sps:$4 sm:$0x11]  }
 0x2b8   : > { %9110 = vmatmul.mubr.bf16.gmra.mrb[24].mxu1 %v11072_v28 }
 0x2b9   : > { %9113 = vmatprep.mubr.bf16.mxu1 %v11078_v17 }
 0x2be   : > { %3184 = vmatmul.mubr.bf16.gmra.mrb[56].mxu0 %v10738_v29 }
 0x2bf   : > { %3191 = vmatprep.mubr.bf16.mxu0 %v11072_v28  ;;  %v11343_v28 = vrot.slane %v11160_v32, 1 }
 0x2c0   : > { %9114 = vmatmul.mubr.bf16.gmra.mrb[28].mxu1 %v11084_v26 }
 0x2c1   : > { %9117 = vmatprep.mubr.bf16.mxu1 %v11090_v36 }
 0x2c6   : > { %3192 = vmatmul.mubr.bf16.gmra.mrb[60].mxu0 %v10748_v37 }
 0x2c7   : > { %3199 = vmatprep.mubr.bf16.mxu0 %v11078_v17  ;;  %v11347_v17 = vld [vmem:[%s10469_s6 + $0x110] sm:$0xf] }
 0x2c8   : > { %9118 = vmatmul.mubr.bf16.gmra.mrb[32].mxu1 %v11096_v47 }
 0x2c9   : > { %9121 = vmatprep.mubr.bf16.mxu1 %v11102_v58 }
 0x2ce   : > { %3200 = vmatmul.mubr.bf16.gmra.mrb[64].mxu0 %v10758_v1 }
 0x2cf   : > { %3207 = vmatprep.mubr.bf16.mxu0 %v11084_v26  ;;  %v11351_v26 = vsel %vm16502_vm0, %v10898_v22, %v1802_v54 }
 0x2d0   : > { %9122 = vmatmul.mubr.bf16.gmra.mrb[36].mxu1 %v11108_v5 }
 0x2d1   : > { %9125 = vmatprep.mubr.bf16.mxu1 %v11114_v23 }
 0x2d6   : > { %3208 = vmatmul.mubr.bf16.gmra.mrb[68].mxu0 %v10768_v59 }
 0x2d7   : > { %3215 = vmatprep.mubr.bf16.mxu0 %v11090_v36  ;;  %v1804_v36 = vshrl.u32 %v11145_v60, 16 }
 0x2d8   : > { %9126 = vmatmul.mubr.bf16.gmra.mrb[40].mxu1 %v11120_v38 }
 0x2d9   : > { %9129 = vmatprep.mubr.bf16.mxu1 %v11126_v51 }
 0x2de   : > { %3216 = vmatmul.mubr.bf16.gmra.mrb[72].mxu0 %v10778_v8 }
 0x2df   : > { %3223 = vmatprep.mubr.bf16.mxu0 %v11096_v47  ;;  %v1808_v47 = vshll.u32 %v11160_v32, 16 }
 0x2e0   : > { %9130 = vmatmul.mubr.bf16.gmra.mrb[44].mxu1 %v11132_v52 }
 0x2e1   : > { %9133 = vmatprep.mubr.bf16.mxu1 %v11138_v63 }
 0x2e6   : > { %3224 = vmatmul.mubr.bf16.gmra.mrb[76].mxu0 %v16669_v55 }
 0x2e7   : > { %3231 = vmatprep.mubr.bf16.mxu0 %v11102_v58  ;;  %v1826_v58 = vsel %vm16504_vm1, %v1823_v7, %v11343_v28  ;;  %v11423_v7 = vld [vmem:[%s10469_s6 + $0x118] sm:$0xff]  }
 0x2e8   : > { %9134 = vmatmul.mubr.bf16.gmra.mrb[48].mxu1 %v11148_v39 }
 0x2e9   : > { %9137 = vmatprep.mubr.bf16.mxu1 %v11157_v30 }
 0x2ee   : > { %3232 = vmatmul.mubr.bf16.gmra.mrb[80].mxu0 %v16670_v2 }
 0x2ef   : > { %3239 = vmatprep.mubr.bf16.mxu0 %v11108_v5  ;;  %v8676_v5 = vcombine.low %v11347_v17, %v11347_v17 }
 0x2f0   : > { %9138 = vmatmul.mubr.bf16.gmra.mrb[52].mxu1 %v1824_v21 }
 0x2f1   : > { %9141 = vmatprep.mubr.bf16.mxu1 %v1826_v58 }
 0x2f6   : > { %3240 = vmatmul.mubr.bf16.gmra.mrb[84].mxu0 %v16671_v46 }
 0x2f7   : > { %3247 = vmatprep.mubr.bf16.mxu0 %v11114_v23  ;;  %v1810_v23 = vrot.slane %v1808_v47, 1 }
 0x2fe   : > { %3248 = vmatmul.mubr.bf16.gmra.mrb[88].mxu0 %v16672_v62 }
 0x2ff   : > { %3255 = vmatprep.mubr.bf16.mxu0 %v11120_v38  ;;  %v1827_v38 = vrot.slane %v8676_v5, 1 }
 0x306   : > { %3256 = vmatmul.mubr.bf16.gmra.mrb[92].mxu0 %v16673_v57 }
 0x307   : > { %3263 = vmatprep.mubr.bf16.mxu0 %v11126_v51  ;;  %v1812_v51 = vshrl.u32 %v11160_v32, 16 }
 0x30e   : > { %3264 = vmatmul.mubr.bf16.gmra.mrb[96].mxu0 %v16674_v31 }
 0x30f   : > { %3271 = vmatprep.mubr.bf16.mxu0 %v11132_v52  ;;  %v1816_v52 = vshll.u32 %v8676_v5, 16  ;;  %v10359_v5 = vld [vmem:[%s10469_s6 + $0x98] sm:$0xff]  }
 0x311   : > { %v1818_v42 = vrot.slane %v1816_v52, 1  ;;  %v10361_v52 = vld [vmem:[%s10469_s6 + $0xa8] sm:$0xff]  }
 0x316   : > { %3272 = vmatmul.mubr.bf16.gmra.mrb[100].mxu0 %v16675_v43 }
 0x317   : > { %3279 = vmatprep.mubr.bf16.mxu0 %v11138_v63  ;;  %v1828_v63 = vsel %vm16504_vm1, %v11343_v28, %v1827_v38 }
 0x31e   : > { %3280 = vmatmul.mubr.bf16.gmra.mrb[104].mxu0 %v16676_v12 }
 0x31f   : > { %3287 = vmatprep.mubr.bf16.mxu0 %v11148_v39  ;;  %v11367_v39 = vor.u32 %v1812_v51, %v1810_v23 }
 0x321   : > { %v1819_v16 = vsel %vm16502_vm0, %v11367_v39, %v1818_v42 }
 0x326   : > { %3288 = vmatmul.mubr.bf16.gmra.mrb[108].mxu0 %v16677_v25 }
 0x327   : > { %3295 = vmatprep.mubr.bf16.mxu0 %v11157_v30  ;;  %v1806_v30 = vor.u32 %v1804_v36, %v1802_v54 }
 0x329   : > { %v11361_v22 = vsel %vm16502_vm0, %v1806_v30, %v1810_v23  ;;  %v10360_v30 = vld [vmem:[%s10469_s6 + $0xa0] sm:$0xff]  }
 0x32e   : > { %3296 = vmatmul.mubr.bf16.gmra.mrb[112].mxu0 %v10892_v4 }
 0x32f   : > { %3303 = vmatprep.mubr.bf16.mxu0 %v1824_v21  ;;  %v1873_v21 = vrot.slane %v11427_v44, 1 }
 0x336   : > { %3304 = vmatmul.mubr.bf16.gmra.mrb[116].mxu0 %v11351_v26 }
 0x337   : > { %3311 = vmatprep.mubr.bf16.mxu0 %v1826_v58 }
 0x33e   : > { %3312 = vmatmul.mubr.bf16.gmra.mrb[120].mxu0 %v11361_v22 }
 0x33f   : > { %3319 = vmatprep.mubr.bf16.mxu0 %v1828_v63  ;;  %v10362_v63 = vld [vmem:[%s10469_s6 + $0xb0] sm:$0xff]  }
 0x346   : > { %3320 = vmatmul.mubr.bf16.gmra.mrb[124].mxu0 %v1819_v16 }
 0x347   : > { %3360 = vmatprep.mubr.bf16.mxu0 %v10581_v61  ;;  %v10348_v61 = vld [vmem:[%s10469_s6 + $0x40] sm:$0xff]  }
 0x34e   : > { %3361 = vmatmul.mubr.bf16.vlgmr.msra.gmra.mrb[0].mxu0 %v10923_v40 }
 0x34f   : > { %3368 = vmatprep.mubr.bf16.mxu0 %v10598_v6  ;;  %v10349_v6 = vld [vmem:[%s10469_s6 + $0x48] sm:$0xff]  }
 0x356   : > { %3369 = vmatmul.mubr.bf16.gmra.mrb[4].mxu0 %v10939_v19 }
 0x357   : > { %3376 = vmatprep.mubr.bf16.mxu0 %v10616_v14  ;;  %v10350_v14 = vld [vmem:[%s10469_s6 + $0x50] sm:$0xff]  }
 0x35e   : > { %3377 = vmatmul.mubr.bf16.gmra.mrb[8].mxu0 %v10346_v53  ;;  %v10363_v53 = vld [vmem:[%s10469_s6 + $0xb8] sm:$0xff]  }
 0x35f   : > { %3384 = vmatprep.mubr.bf16.mxu0 %v10628_v20  ;;  %v10351_v20 = vld [vmem:[%s10469_s6 + $0x58] sm:$0xff]  }
 0x366   : > { %3385 = vmatmul.mubr.bf16.gmra.mrb[12].mxu0 %v10347_v24  ;;  %v10364_v24 = vld [vmem:[%s10469_s6 + $0xc0] sm:$0xff]  }
 0x367   : > { %3392 = vmatprep.mubr.bf16.mxu0 %v10642_v27  ;;  %v10352_v27 = vld [vmem:[%s10469_s6 + $0x60] sm:$0xff]  }
 0x36e   : > { %3393 = vmatmul.mubr.bf16.gmra.mrb[16].mxu0 %v10348_v61 }
 0x36f   : > { %3400 = vmatprep.mubr.bf16.mxu0 %v10652_v33  ;;  %v10353_v33 = vld [vmem:[%s10469_s6 + $0x68] sm:$0xff]  }
 0x376   : > { %3401 = vmatmul.mubr.bf16.gmra.mrb[20].mxu0 %v10349_v6 }
 0x377   : > { %3408 = vmatprep.mubr.bf16.mxu0 %v10666_v41  ;;  %v10354_v41 = vld [vmem:[%s10469_s6 + $0x70] sm:$0xff]  }
 0x37e   : > { %3409 = vmatmul.mubr.bf16.gmra.mrb[24].mxu0 %v10350_v14  ;;  %v10365_v14 = vld [vmem:[%s10469_s6 + $0xc8] sm:$0xff]  }
 0x37f   : > { %3416 = vmatprep.mubr.bf16.mxu0 %v10676_v48  ;;  %v11394_v48 = vpop.f32.mrb[0].mxu1 }
 0x380   : > { %v11396_v40 = vpop.f32.mrb[1].mxu1 }
 0x381   : > { %v11398_v19 = vpop.f32.mrb[2].mxu1 }
 0x382   : > { %v11401_v50 = vpop.f32.mrb[3].mxu1 }
 0x383   : > { %v11413_v34 = vpop.f32.mrb[4].mxu1 }
 0x384   : > { %v11415_v9 = vpop.f32.mrb[5].mxu1 }
 0x386   : > { %3417 = vmatmul.mubr.bf16.gmra.mrb[28].mxu0 %v10351_v20 }
 0x387   : > { %3424 = vmatprep.mubr.bf16.mxu0 %v10690_v56  ;;  %v1192_v56 = vld [vmem:[%s10469_s6 + $0x114] sm:$0xf] }
 0x38e   : > { %3425 = vmatmul.mubr.bf16.gmra.mrb[32].mxu0 %v10352_v27 }
 0x38f   : > { %3432 = vmatprep.mubr.bf16.mxu0 %v10700_v0  ;;  %v10355_v0 = vld [vmem:[%s10469_s6 + $0x78] sm:$0xff]  }
 0x396   : > { %3433 = vmatmul.mubr.bf16.gmra.mrb[36].mxu0 %v10353_v33  ;;  %v16678_v33 = vld [vmem:[#allocation7_spill] sm:$0xff] }
 0x397   : > { %3440 = vmatprep.mubr.bf16.mxu0 %v10714_v10  ;;  %v11406_v10 = vcombine.low %v11347_v17, %v1192_v56  ;;  %v10358_v17 = vld [vmem:[%s10469_s6 + $0x90] sm:$0xff]  }
 0x39e   : > { %3441 = vmatmul.mubr.bf16.gmra.mrb[40].mxu0 %v10354_v41  ;;  %v16679_v41 = vld [vmem:[#allocation9_spill] sm:$0xff] }
 0x39f   : > { %3448 = vmatprep.mubr.bf16.mxu0 %v10724_v18  ;;  %v1869_v18 = vrot.slane %v11406_v10, 1 }
 0x3a1   : > { %v1870_v15 = vsel %vm16504_vm1, %v11343_v28, %v1869_v18 }
 0x3a2   : > { %9142 = vmatmul.mubr.bf16.gmra.mrb[56].mxu1 %v1870_v15 }
 0x3a6   : > { %3449 = vmatmul.mubr.bf16.gmra.mrb[44].mxu0 %v10355_v0  ;;  %v16680_v0 = vld [vmem:[#allocation11_spill] sm:$0xff] }
 0x3a7   : > { %3456 = vmatprep.mubr.bf16.mxu0 %v10738_v29  ;;  %v11417_v29 = vpop.f32.mrb[6].mxu1 }
 0x3a8   : > { %v11419_v3 = vpop.f32.mrb[7].mxu1 }
 0x3a9   : > { %v11435_v36 = vpop.f32.mrb[8].mxu1 }
 0x3ae   : > { %3457 = vmatmul.mubr.bf16.gmra.mrb[48].mxu0 %v10356_v49 }
 0x3af   : > { %3464 = vmatprep.mubr.bf16.mxu0 %v10748_v37  ;;  %v1871_v37 = vrot.slane %v11423_v7, 1 }
 0x3b1   : > { %v1872_v54 = vsel %vm16504_vm1, %v1869_v18, %v1871_v37  ;;  %v1874_v28 = vsel %vm16504_vm1, %v1871_v37, %v1873_v21 }
 0x3b2   : > { %9145 = vmatprep.mubr.bf16.mxu1 %v1872_v54  ;;  %v1846_v54 = vshll.u32 %v11406_v10, 16 }
 0x3b3   : > { %9146 = vmatmul.mubr.bf16.gmra.mrb[60].mxu1 %v1874_v28 }
 0x3b6   : > { %3465 = vmatmul.mubr.bf16.gmra.mrb[52].mxu0 %v10357_v45 }
 0x3b7   : > { %3472 = vmatprep.mubr.bf16.mxu0 %v10758_v1  ;;  %v11437_v1 = vpop.f32.mrb[9].mxu1 }
 0x3b8   : > { %v11439_v47 = vpop.f32.mrb[10].mxu1 }
 0x3b9   : > { %v11441_v58 = vpop.f32.mrb[11].mxu1 }
 0x3ba   : > { %v11447_v23 = vpop.f32.mrb[12].mxu1 }
 0x3be   : > { %3473 = vmatmul.mubr.bf16.gmra.mrb[56].mxu0 %v10358_v17 }
 0x3bf   : > { %3480 = vmatprep.mubr.bf16.mxu0 %v10768_v59  ;;  %v11449_v59 = vpop.f32.mrb[13].mxu1 }
 0x3c0   : > { %v11451_v38 = vpop.f32.mrb[14].mxu1 }
 0x3c1   : > { %v11453_v51 = vpop.f32.mrb[15].mxu1 }
 0x3c6   : > { %3481 = vmatmul.mubr.bf16.gmra.mrb[60].mxu0 %v10359_v5  ;;  %v1848_v5 = vrot.slane %v1846_v54, 1  ;;  %v1858_v54 = vshrl.u32 %v11423_v7, 16 }
 0x3c7   : > { %3488 = vmatprep.mubr.bf16.mxu0 %v10778_v8  ;;  %v11459_v8 = vpop.f32.mrb[16].mxu1 }
 0x3ce   : > { %3489 = vmatmul.mubr.bf16.gmra.mrb[64].mxu0 %v10360_v30 }
 0x3cf   : > { %3496 = vmatprep.mubr.bf16.mxu0 %v16669_v55  ;;  %v11461_v55 = vpop.f32.mrb[17].mxu1 }
 0x3d0   : > { %v11463_v42 = vpop.f32.mrb[18].mxu1 }
 0x3d1   : > { %v11465_v16 = vpop.f32.mrb[19].mxu1 }
 0x3d6   : > { %3497 = vmatmul.mubr.bf16.gmra.mrb[68].mxu0 %v10361_v52 }
 0x3d7   : > { %3504 = vmatprep.mubr.bf16.mxu0 %v16670_v2  ;;  %v11471_v2 = vpop.f32.mrb[20].mxu1 }
 0x3d8   : > { %v11473_v61 = vpop.f32.mrb[21].mxu1 }
 0x3de   : > { %3505 = vmatmul.mubr.bf16.gmra.mrb[72].mxu0 %v10362_v63 }
 0x3df   : > { %3512 = vmatprep.mubr.bf16.mxu0 %v16671_v46  ;;  %v11475_v46 = vpop.f32.mrb[22].mxu1 }
 0x3e0   : > { %v11477_v6 = vpop.f32.mrb[23].mxu1 }
 0x3e6   : > { %3513 = vmatmul.mubr.bf16.gmra.mrb[76].mxu0 %v10363_v53  ;;  %v1850_v53 = vshrl.u32 %v11406_v10, 16 }
 0x3e7   : > { %3520 = vmatprep.mubr.bf16.mxu0 %v16672_v62  ;;  %v11483_v62 = vpop.f32.mrb[24].mxu1 }
 0x3e8   : > { %v11485_v20 = vpop.f32.mrb[25].mxu1 }
 0x3ee   : > { %3521 = vmatmul.mubr.bf16.gmra.mrb[80].mxu0 %v10364_v24  ;;  %v1854_v24 = vshll.u32 %v11423_v7, 16 }
 0x3ef   : > { %3528 = vmatprep.mubr.bf16.mxu0 %v16673_v57  ;;  %v11487_v57 = vpop.f32.mrb[26].mxu1 }
 0x3f0   : > { %v11489_v27 = vpop.f32.mrb[27].mxu1 }
 0x3f6   : > { %3529 = vmatmul.mubr.bf16.gmra.mrb[84].mxu0 %v10365_v14 }
 0x3f7   : > { %3536 = vmatprep.mubr.bf16.mxu0 %v16674_v31  ;;  %v11495_v31 = vpop.f32.mrb[28].mxu1 }
 0x3fe   : > { %3537 = vmatmul.mubr.bf16.gmra.mrb[88].mxu0 %v10825_v11  ;;  %v11497_v11 = vpop.f32.mrb[29].mxu1 }
 0x3ff   : > { %3544 = vmatprep.mubr.bf16.mxu0 %v16675_v43  ;;  %v11499_v43 = vpop.f32.mrb[30].mxu1 }
 0x400   : > { %v11501_v56 = vpop.f32.mrb[31].mxu1 }
 0x401   : > { %v11513_v15 = vpop.f32.mrb[32].mxu1 }
 0x402   : > { %v11515_v37 = vpop.f32.mrb[33].mxu1 }
 0x403   : > { %v11522_v28 = vpop.f32.mrb[34].mxu1 }
 0x406   : > { %3545 = vmatmul.mubr.bf16.gmra.mrb[92].mxu0 %v16678_v33 }
 0x407   : > { %3552 = vmatprep.mubr.bf16.mxu0 %v16676_v12  ;;  %v11509_v12 = vld [vmem:[%s16343_s2] ss:$0 sm:$0xff] }
 0x40e   : > { %3553 = vmatmul.mubr.bf16.gmra.mrb[96].mxu0 %v16679_v41  ;;  %v1852_v41 = vor.u32 %v1850_v53, %v1848_v5 }
 0x40f   : > { %3560 = vmatprep.mubr.bf16.mxu0 %v16677_v25 }
 0x416   : > { %3561 = vmatmul.mubr.bf16.gmra.mrb[100].mxu0 %v16680_v0  ;;  %v1856_v0 = vrot.slane %v1854_v24, 1 }
 0x417   : > { %3568 = vmatprep.mubr.bf16.mxu0 %v10892_v4 }
 0x41e   : > { %3569 = vmatmul.mubr.bf16.gmra.mrb[104].mxu0 %v10865_v13 }
 0x41f   : > { %3576 = vmatprep.mubr.bf16.mxu0 %v11351_v26  ;;  %v11524_v26 = vpop.f32.mrb[35].mxu1 }
 0x421   : > { %v3362_v25 = vpop.f32.mrb[0].mxu0 }
 0x422   : > { %v9245_v18 = vadd.f32 %v11509_v12, %v3362_v25  ;;  %v3364_v49 = vpop.f32.mrb[1].mxu0 }
 0x423   : > { %v3365_v45 = vpop.f32.mrb[2].mxu0 }
 0x424   : > { %v9246_v4 = vadd.f32 %v11509_v12, %v3365_v45  ;;  %v11519_v13 = vadd.f32 %v9245_v18, %v11396_v40  ;;  %v3367_v21 = vpop.f32.mrb[3].mxu0 }
 0x426   : > { %v11527_v17 = vadd.f32 %v9246_v4, %v11401_v50  ;;  %3577 = vmatmul.mubr.bf16.gmra.mrb[108].mxu0 %v10875_v35  ;;  %v1849_v35 = vsel %vm16502_vm0, %v11367_v39, %v1848_v5  ;;  %v1857_v4 = vsel %vm16502_vm0, %v1852_v41, %v1856_v0  ;;  %v1862_v5 = vshll.u32 %v11427_v44, 16 }
 0x427   : > { %3584 = vmatprep.mubr.bf16.mxu0 %v11361_v22 }
 0x428   : > { %v1864_v53 = vrot.slane %v1862_v5, 1 }
 0x429   : > { %v3370_v30 = vpop.f32.mrb[4].mxu0 }
 0x42a   : > { %v9247_v52 = vadd.f32 %v11509_v12, %v3370_v30  ;;  %v3372_v40 = vpop.f32.mrb[5].mxu0 }
 0x42b   : > { %v3373_v63 = vpop.f32.mrb[6].mxu0 }
 0x42c   : > { %v11535_v14 = vadd.f32 %v9247_v52, %v11394_v48  ;;  %v9248_v50 = vadd.f32 %v11509_v12, %v3373_v63  ;;  %v3375_v33 = vpop.f32.mrb[7].mxu0  ;;  %v11545_v48 = vpop.f32.mrb[36].mxu1  ;;  %v1860_v63 = vor.u32 %v1858_v54, %v1856_v0 }
 0x42d   : > { %v11548_v21 = vpop.f32.mrb[37].mxu1 }
 0x42e   : > { %16681 = vst [vmem:[#allocation3_spill] sm:$0xff] %v11535_v14  ;;  %v11541_v22 = vadd.f32 %v9248_v50, %v11398_v19  ;;  %3585 = vmatmul.mubr.bf16.gmra.mrb[112].mxu0 %v11145_v60  ;;  %v11556_v30 = vpop.f32.mrb[38].mxu1 }
 0x42f   : > { %3592 = vmatprep.mubr.bf16.mxu0 %v1849_v35  ;;  %v11558_v52 = vpop.f32.mrb[39].mxu1 }
 0x430   : > { %16682 = vst [vmem:[#allocation4_spill] sm:$0xff] %v11541_v22 }
 0x431   : > { %v3378_v25 = vpop.f32.mrb[8].mxu0 }
 0x432   : > { %v9249_v18 = vadd.f32 %v11509_v12, %v3378_v25  ;;  %v3380_v49 = vpop.f32.mrb[9].mxu0  ;;  %v1865_v25 = vsel %vm16502_vm0, %v1860_v63, %v1864_v53 }
 0x433   : > { %v3381_v45 = vpop.f32.mrb[10].mxu0  ;;  %v11575_v49 = vpop.f32.mrb[40].mxu1 }
 0x434   : > { %v9250_v39 = vadd.f32 %v11509_v12, %v3381_v45  ;;  %v11552_v19 = vadd.f32 %v9249_v18, %v11415_v9  ;;  %v3383_v60 = vpop.f32.mrb[11].mxu0 }
 0x436   : > { %v11561_v40 = vadd.f32 %v9250_v39, %v11419_v3  ;;  %3593 = vmatmul.mubr.bf16.gmra.mrb[116].mxu0 %v11160_v32 }
 0x437   : > { %3600 = vmatprep.mubr.bf16.mxu0 %v1857_v4 }
 0x439   : > { %v3386_v24 = vpop.f32.mrb[12].mxu0 }
 0x43a   : > { %v9251_v9 = vadd.f32 %v11509_v12, %v3386_v24  ;;  %v3388_v50 = vpop.f32.mrb[13].mxu0 }
 0x43b   : > { %v3389_v33 = vpop.f32.mrb[14].mxu0 }
 0x43c   : > { %v11566_v35 = vadd.f32 %v9251_v9, %v11413_v34  ;;  %v9252_v44 = vadd.f32 %v11509_v12, %v3389_v33  ;;  %v3391_v41 = vpop.f32.mrb[15].mxu0  ;;  %v11577_v34 = vpop.f32.mrb[41].mxu1 }
 0x43e   : > { %16683 = vst [vmem:[#allocation5_spill] sm:$0xff] %v11566_v35  ;;  %v11571_v3 = vadd.f32 %v9252_v44, %v11417_v29  ;;  %3601 = vmatmul.mubr.bf16.gmra.mrb[120].mxu0 %v11406_v10  ;;  %v11583_v29 = vpop.f32.mrb[42].mxu1 }
 0x43f   : > { %3608 = vmatprep.mubr.bf16.mxu0 %v1865_v25  ;;  %v11585_v54 = vpop.f32.mrb[43].mxu1 }
 0x440   : > { %16684 = vst [vmem:[#allocation6_spill] sm:$0xff] %v11571_v3  ;;  %v11600_v25 = vpop.f32.mrb[44].mxu1 }
 0x441   : > { %v3394_v32 = vpop.f32.mrb[16].mxu0 }
 0x442   : > { %v9253_v0 = vadd.f32 %v11509_v12, %v3394_v32  ;;  %v3396_v18 = vpop.f32.mrb[17].mxu0  ;;  %v11602_v32 = vpop.f32.mrb[45].mxu1 }
 0x443   : > { %v3397_v45 = vpop.f32.mrb[18].mxu0 }
 0x444   : > { %v9254_v4 = vadd.f32 %v11509_v12, %v3397_v45  ;;  %v11581_v39 = vadd.f32 %v9253_v0, %v11437_v1  ;;  %v3399_v60 = vpop.f32.mrb[19].mxu0  ;;  %v11608_v45 = vpop.f32.mrb[46].mxu1 }
 0x446   : > { %v11588_v10 = vadd.f32 %v9254_v4, %v11441_v58  ;;  %3609 = vmatmul.mubr.bf16.gmra.mrb[124].mxu0 %v11423_v7  ;;  %v11610_v4 = vpop.f32.mrb[47].mxu1 }
 0x449   : > { %v3402_v5 = vpop.f32.mrb[20].mxu0 }
 0x44a   : > { %v9255_v63 = vadd.f32 %v11509_v12, %v3402_v5  ;;  %v3404_v53 = vpop.f32.mrb[21].mxu0 }
 0x44b   : > { %v3405_v24 = vpop.f32.mrb[22].mxu0  ;;  %v10263_v53 = vld [vmem:[%s16344_s3] sm:$0xff]  }
 0x44c   : > { %v11593_v9 = vadd.f32 %v9255_v63, %v11435_v36  ;;  %v9256_v1 = vadd.f32 %v11509_v12, %v3405_v24  ;;  %v3407_v50 = vpop.f32.mrb[23].mxu0  ;;  %6215 = vmatpush1.bf16.msra.mxu1 %v10263_v53 }
 0x44e   : > { %16685 = vst [vmem:[#allocation8_spill] sm:$0xff] %v11593_v9  ;;  %v11597_v33 = vadd.f32 %v9256_v1, %v11439_v47  ;;  %v10269_v9 = vld [vmem:[%s16344_s3 + $0x30] sm:$0xff]  }
 0x450   : > { %16686 = vst [vmem:[#allocation10_spill] sm:$0xff] %v11597_v33 }
 0x451   : > { %v3410_v44 = vpop.f32.mrb[24].mxu0 }
 0x452   : > { %v9257_v58 = vadd.f32 %v11509_v12, %v3410_v44  ;;  %v3412_v41 = vpop.f32.mrb[25].mxu0  ;;  %v11623_v44 = vld [vmem:[#allocation2 + $0x120] sm:$0xff] }
 0x453   : > { %v3413_v7 = vpop.f32.mrb[26].mxu0  ;;  %6216 = vmatprep.subr.bf16.mxu1 %v11623_v44 }
 0x454   : > { %v9258_v0 = vadd.f32 %v11509_v12, %v3413_v7  ;;  %v11606_v36 = vadd.f32 %v9257_v58, %v11449_v59  ;;  %v3415_v18 = vpop.f32.mrb[27].mxu0  ;;  %v10264_v58 = vld [vmem:[%s16344_s3 + $0x8] sm:$0xff]  }
 0x455   : > { %6217 = vmatpush1.bf16.msra.mxu1 %v10264_v58 }
 0x456   : > { %v11613_v47 = vadd.f32 %v9258_v0, %v11453_v51  ;;  %6218 = vmatprep.subr.bf16.mxu1 %v11623_v44  ;;  %v11634_v0 = vpop.f32.mrb[48].mxu1 }
 0x459   : > { %v3418_v60 = vpop.f32.mrb[28].mxu0 }
 0x45a   : > { %v9259_v5 = vadd.f32 %v11509_v12, %v3418_v60  ;;  %v3420_v63 = vpop.f32.mrb[29].mxu0  ;;  %v11636_v60 = vpop.f32.mrb[49].mxu1 }
 0x45b   : > { %v3421_v24 = vpop.f32.mrb[30].mxu0  ;;  %v11642_v53 = vpop.f32.mrb[50].mxu1 }
 0x45c   : > { %v11620_v59 = vadd.f32 %v9259_v5, %v11447_v23  ;;  %v9260_v1 = vadd.f32 %v11509_v12, %v3421_v24  ;;  %v3423_v50 = vpop.f32.mrb[31].mxu0  ;;  %v11644_v24 = vpop.f32.mrb[51].mxu1 }
 0x45e   : > { %16687 = vst [vmem:[#allocation12_spill] sm:$0xff] %v11620_v59  ;;  %v11627_v51 = vadd.f32 %v9260_v1, %v11451_v38  ;;  %v10267_v59 = vld [vmem:[%s16344_s3 + $0x20] sm:$0xff]  }
 0x460   : > { %16688 = vst [vmem:[#allocation13_spill] sm:$0xff] %v11627_v51 }
 0x461   : > { %v3426_v41 = vpop.f32.mrb[32].mxu0 }
 0x462   : > { %v9261_v23 = vadd.f32 %v11509_v12, %v3426_v41  ;;  %v3428_v7 = vpop.f32.mrb[33].mxu0 }
 0x463   : > { %v3429_v18 = vpop.f32.mrb[34].mxu0  ;;  %v10265_v7 = vld [vmem:[%s16344_s3 + $0x10] sm:$0xff]  }
 0x464   : > { %v9262_v5 = vadd.f32 %v11509_v12, %v3429_v18  ;;  %v11640_v38 = vadd.f32 %v9261_v23, %v11461_v55  ;;  %v3431_v63 = vpop.f32.mrb[35].mxu0  ;;  %6219 = vmatpush1.bf16.msra.mxu1 %v10265_v7 }
 0x465   : > { %6220 = vmatprep.subr.bf16.mxu1 %v11623_v44 }
 0x466   : > { %v11647_v1 = vadd.f32 %v9262_v5, %v11465_v16  ;;  %v10266_v5 = vld [vmem:[%s16344_s3 + $0x18] sm:$0xff]  }
 0x468   : > { %6221 = vmatpush1.bf16.msra.mxu1 %v10266_v5 }
 0x469   : > { %v3434_v50 = vpop.f32.mrb[36].mxu0  ;;  %6222 = vmatprep.subr.bf16.mxu1 %v11623_v44 }
 0x46a   : > { %v9263_v58 = vadd.f32 %v11509_v12, %v3434_v50  ;;  %v3436_v41 = vpop.f32.mrb[37].mxu0 }
 0x46b   : > { %v3437_v18 = vpop.f32.mrb[38].mxu0  ;;  %v11666_v41 = vpop.f32.mrb[52].mxu1 }
 0x46c   : > { %v11654_v55 = vadd.f32 %v9263_v58, %v11459_v8  ;;  %v9264_v23 = vadd.f32 %v11509_v12, %v3437_v18  ;;  %v3439_v63 = vpop.f32.mrb[39].mxu0  ;;  %v11668_v7 = vpop.f32.mrb[53].mxu1  ;;  %6223 = vmatpush1.bf16.msra.mxu1 %v10267_v59 }
 0x46d   : > { %6224 = vmatprep.subr.bf16.mxu1 %v11623_v44 }
 0x46e   : > { %16689 = vst [vmem:[#allocation14_spill] sm:$0xff] %v11654_v55  ;;  %v11659_v16 = vadd.f32 %v9264_v23, %v11463_v42 }
 0x470   : > { %16690 = vst [vmem:[#allocation7_spill] sm:$0xff] %v11659_v16  ;;  %v11674_v16 = vpop.f32.mrb[54].mxu1 }
 0x471   : > { %v3442_v50 = vpop.f32.mrb[40].mxu0  ;;  %v11676_v5 = vpop.f32.mrb[55].mxu1 }
 0x472   : > { %v9265_v8 = vadd.f32 %v11509_v12, %v3442_v50  ;;  %v3444_v58 = vpop.f32.mrb[41].mxu0 }
 0x473   : > { %v3445_v18 = vpop.f32.mrb[42].mxu0 }
 0x474   : > { %v9266_v63 = vadd.f32 %v11509_v12, %v3445_v18  ;;  %v11672_v42 = vadd.f32 %v9265_v8, %v11473_v61  ;;  %v3447_v23 = vpop.f32.mrb[43].mxu0 }
 0x476   : > { %v11679_v55 = vadd.f32 %v9266_v63, %v11477_v6 }
 0x479   : > { %v3450_v50 = vpop.f32.mrb[44].mxu0 }
 0x47a   : > { %v9267_v58 = vadd.f32 %v11509_v12, %v3450_v50  ;;  %v3452_v51 = vpop.f32.mrb[45].mxu0 }
 0x47b   : > { %v3453_v18 = vpop.f32.mrb[46].mxu0  ;;  %v10268_v51 = vld [vmem:[%s16344_s3 + $0x28] sm:$0xff]  }
 0x47c   : > { %v11686_v61 = vadd.f32 %v9267_v58, %v11471_v2  ;;  %v9268_v8 = vadd.f32 %v11509_v12, %v3453_v18  ;;  %v3455_v23 = vpop.f32.mrb[47].mxu0  ;;  %6225 = vmatpush1.bf16.msra.mxu1 %v10268_v51  ;;  %v11698_v58 = vpop.f32.mrb[56].mxu1 }
 0x47d   : > { %6226 = vmatprep.subr.bf16.mxu1 %v11623_v44  ;;  %v11700_v59 = vpop.f32.mrb[57].mxu1 }
 0x47e   : > { %16691 = vst [vmem:[#allocation9_spill] sm:$0xff] %v11686_v61  ;;  %v11691_v6 = vadd.f32 %v9268_v8, %v11475_v46 }
 0x480   : > { %16692 = vst [vmem:[#allocation11_spill] sm:$0xff] %v11691_v6  ;;  %v11706_v6 = vpop.f32.mrb[58].mxu1  ;;  %6227 = vmatpush1.bf16.msra.mxu1 %v10269_v9 }
 0x481   : > { %v3458_v63 = vpop.f32.mrb[48].mxu0  ;;  %v11708_v51 = vpop.f32.mrb[59].mxu1  ;;  %6228 = vmatprep.subr.bf16.mxu1 %v11623_v44 }
 0x482   : > { %v9269_v2 = vadd.f32 %v11509_v12, %v3458_v63  ;;  %v3460_v50 = vpop.f32.mrb[49].mxu0 }
 0x483   : > { %v3461_v18 = vpop.f32.mrb[50].mxu0 }
 0x484   : > { %v9270_v23 = vadd.f32 %v11509_v12, %v3461_v18  ;;  %v11704_v46 = vadd.f32 %v9269_v2, %v11485_v20  ;;  %v3463_v8 = vpop.f32.mrb[51].mxu0 }
 0x486   : > { %v11711_v61 = vadd.f32 %v9270_v23, %v11489_v27  ;;  %v11728_v23 = vpop.f32.mrb[60].mxu1 }
 0x489   : > { %v3466_v63 = vpop.f32.mrb[52].mxu0 }
 0x48a   : > { %v9271_v50 = vadd.f32 %v11509_v12, %v3466_v63  ;;  %v3468_v33 = vpop.f32.mrb[53].mxu0  ;;  %v11730_v63 = vpop.f32.mrb[61].mxu1 }
 0x48b   : > { %v3469_v18 = vpop.f32.mrb[54].mxu0  ;;  %v10270_v33 = vld [vmem:[%s16344_s3 + $0x38] sm:$0xff]  }
 0x48c   : > { %v11718_v20 = vadd.f32 %v9271_v50, %v11483_v62  ;;  %v9272_v2 = vadd.f32 %v11509_v12, %v3469_v18  ;;  %v3471_v8 = vpop.f32.mrb[55].mxu0  ;;  %6229 = vmatpush1.bf16.msra.mxu1 %v10270_v33  ;;  %v11732_v50 = vpop.f32.mrb[62].mxu1 }
 0x48d   : > { %16695 = vst [vmem:[#allocation17_spill] sm:$0xff] %v11732_v50  ;;  %6230 = vmatprep.subr.bf16.mxu1 %v11623_v44  ;;  %v11736_v8 = vpop.f32.mrb[63].mxu1 }
 0x48e   : > { %16693 = vst [vmem:[#allocation15_spill] sm:$0xff] %v11718_v20  ;;  %v11723_v27 = vadd.f32 %v9272_v2, %v11487_v57 }
 0x490   : > { %16694 = vst [vmem:[#allocation16_spill] sm:$0xff] %v11723_v27 }
 0x491   : > { %v3474_v62 = vpop.f32.mrb[56].mxu0 }
 0x492   : > { %v9273_v9 = vadd.f32 %v11509_v12, %v3474_v62  ;;  %v3476_v18 = vpop.f32.mrb[57].mxu0 }
 0x493   : > { %v3477_v57 = vpop.f32.mrb[58].mxu0 }
 0x494   : > { %v9274_v2 = vadd.f32 %v11509_v12, %v3477_v57  ;;  %v11740_v27 = vadd.f32 %v9273_v9, %v11497_v11  ;;  %v3479_v20 = vpop.f32.mrb[59].mxu0 }
 0x496   : > { %v11743_v33 = vadd.f32 %v9274_v2, %v11501_v56 }
 0x499   : > { %v3482_v3 = vpop.f32.mrb[60].mxu0 }
 0x49a   : > { %v9275_v35 = vadd.f32 %v11509_v12, %v3482_v3  ;;  %v3484_v22 = vpop.f32.mrb[61].mxu0 }
 0x49b   : > { %v3485_v14 = vpop.f32.mrb[62].mxu0 }
 0x49c   : > { %v11747_v62 = vadd.f32 %v9275_v35, %v11495_v31  ;;  %v9276_v18 = vadd.f32 %v11509_v12, %v3485_v14  ;;  %v3487_v50 = vpop.f32.mrb[63].mxu0 }
 0x49e   : > { %16696 = vst [vmem:[#allocation18_spill] sm:$0xff] %v11747_v62  ;;  %v11751_v57 = vadd.f32 %v9276_v18, %v11499_v43 }
 0x4a0   : > { %16697 = vst [vmem:[#allocation19_spill] sm:$0xff] %v11751_v57  ;;  %v4048_v57 = vmul.f32 %v11581_v39, %v11581_v39 }
 0x4a1   : > { %v3490_v11 = vpop.f32.mrb[64].mxu0 }
 0x4a2   : > { %v9277_v20 = vadd.f32 %v11509_v12, %v3490_v11  ;;  %v3492_v9 = vpop.f32.mrb[65].mxu0 }
 0x4a3   : > { %v3493_v56 = vpop.f32.mrb[66].mxu0 }
 0x4a4   : > { %v9278_v2 = vadd.f32 %v11509_v12, %v3493_v56  ;;  %v11756_v3 = vadd.f32 %v9277_v20, %v11515_v37  ;;  %v3495_v22 = vpop.f32.mrb[67].mxu0 }
 0x4a6   : > { %v11759_v31 = vadd.f32 %v9278_v2, %v11524_v26  ;;  %v4041_v2 = vmul.f32 %v11527_v17, %v11527_v17 }
 0x4a9   : > { %v3498_v35 = vpop.f32.mrb[68].mxu0 }
 0x4aa   : > { %v9279_v14 = vadd.f32 %v11509_v12, %v3498_v35  ;;  %v3500_v50 = vpop.f32.mrb[69].mxu0 }
 0x4ab   : > { %v3501_v43 = vpop.f32.mrb[70].mxu0 }
 0x4ac   : > { %v11763_v18 = vadd.f32 %v9279_v14, %v11513_v15  ;;  %v9280_v11 = vadd.f32 %v11509_v12, %v3501_v43  ;;  %v3503_v9 = vpop.f32.mrb[71].mxu0  ;;  %v4040_v14 = vmul.f32 %v11519_v13, %v11519_v13  ;;  %v4044_v43 = vmul.f32 %v11552_v19, %v11552_v19 }
 0x4ae   : > { %16698 = vst [vmem:[#allocation20_spill] sm:$0xff] %v11763_v18  ;;  %v11767_v56 = vadd.f32 %v9280_v11, %v11522_v28  ;;  %v3970_v28 = vadd.f32 %v11527_v17, %v11519_v13  ;;  %v4104_v9 = vadd.f32 %v4041_v2, %v4040_v14 }
 0x4b0   : > { %16699 = vst [vmem:[#allocation21_spill] sm:$0xff] %v11767_v56 }
 0x4b1   : > { %v3506_v37 = vpop.f32.mrb[72].mxu0 }
 0x4b2   : > { %v9281_v20 = vadd.f32 %v11509_v12, %v3506_v37  ;;  %v3508_v22 = vpop.f32.mrb[73].mxu0  ;;  %v3973_v37 = vadd.f32 %v3970_v28, %v11552_v19 }
 0x4b3   : > { %v3509_v26 = vpop.f32.mrb[74].mxu0 }
 0x4b4   : > { %v9282_v35 = vadd.f32 %v11509_v12, %v3509_v26  ;;  %v11774_v50 = vadd.f32 %v9281_v20, %v11548_v21  ;;  %v3511_v15 = vpop.f32.mrb[75].mxu0  ;;  %v4107_v26 = vadd.f32 %v4104_v9, %v4044_v43  ;;  %v4045_v21 = vmul.f32 %v11561_v40, %v11561_v40 }
 0x4b5   : > { %v3974_v18 = vadd.f32 %v3973_v37, %v11561_v40 }
 0x4b6   : > { %v11783_v11 = vadd.f32 %v9282_v35, %v11558_v52  ;;  %v4108_v14 = vadd.f32 %v4107_v26, %v4045_v21 }
 0x4b7   : > { %v3977_v28 = vadd.f32 %v3974_v18, %v11581_v39 }
 0x4b8   : > { %v4111_v9 = vadd.f32 %v4108_v14, %v4048_v57  ;;  %v4053_v14 = vmul.f32 %v11613_v47, %v11613_v47 }
 0x4b9   : > { %v3514_v22 = vpop.f32.mrb[76].mxu0 }
 0x4ba   : > { %v9283_v20 = vadd.f32 %v11509_v12, %v3514_v22  ;;  %v3516_v15 = vpop.f32.mrb[77].mxu0  ;;  %v4049_v22 = vmul.f32 %v11588_v10, %v11588_v10 }
 0x4bb   : > { %v3517_v56 = vpop.f32.mrb[78].mxu0  ;;  %v3978_v15 = vadd.f32 %v3977_v28, %v11588_v10 }
 0x4bc   : > { %v11793_v52 = vadd.f32 %v9283_v20, %v11545_v48  ;;  %v9284_v2 = vadd.f32 %v11509_v12, %v3517_v56  ;;  %v3519_v35 = vpop.f32.mrb[79].mxu0  ;;  %v4052_v48 = vmul.f32 %v11606_v36, %v11606_v36  ;;  %v4112_v26 = vadd.f32 %v4111_v9, %v4049_v22 }
 0x4bd   : > { %v3981_v18 = vadd.f32 %v3978_v15, %v11606_v36  ;;  %v4056_v9 = vmul.f32 %v11640_v38, %v11640_v38 }
 0x4be   : > { %v11798_v43 = vadd.f32 %v9284_v2, %v11556_v30  ;;  %v4115_v2 = vadd.f32 %v4112_v26, %v4052_v48  ;;  %v4057_v26 = vmul.f32 %v11647_v1, %v11647_v1 }
 0x4c0   : > { %v4116_v15 = vadd.f32 %v4115_v2, %v4053_v14  ;;  %v4060_v2 = vmul.f32 %v11672_v42, %v11672_v42 }
 0x4c1   : > { %v3522_v37 = vpop.f32.mrb[80].mxu0 }
 0x4c2   : > { %v9285_v20 = vadd.f32 %v11509_v12, %v3522_v37  ;;  %v3524_v56 = vpop.f32.mrb[81].mxu0  ;;  %v3982_v37 = vadd.f32 %v3981_v18, %v11613_v47  ;;  %v4119_v48 = vadd.f32 %v4116_v15, %v4056_v9 }
 0x4c3   : > { %v3525_v35 = vpop.f32.mrb[82].mxu0 }
 0x4c4   : > { %v9286_v30 = vadd.f32 %v11509_v12, %v3525_v35  ;;  %v11809_v57 = vadd.f32 %v9285_v20, %v11577_v34  ;;  %v3527_v21 = vpop.f32.mrb[83].mxu0  ;;  %v3985_v56 = vadd.f32 %v3982_v37, %v11640_v38  ;;  %v4120_v37 = vadd.f32 %v4119_v48, %v4057_v26 }
 0x4c6   : > { %v11814_v28 = vadd.f32 %v9286_v30, %v11585_v54  ;;  %v3986_v21 = vadd.f32 %v3985_v56, %v11647_v1  ;;  %v4123_v15 = vadd.f32 %v4120_v37, %v4060_v2 }
 0x4c8   : > { %16700 = vst [vmem:[#allocation22_spill] sm:$0xff] %v11814_v28  ;;  %v3989_v9 = vadd.f32 %v3986_v21, %v11672_v42 }
 0x4c9   : > { %v3530_v22 = vpop.f32.mrb[84].mxu0 }
 0x4ca   : > { %v9287_v34 = vadd.f32 %v11509_v12, %v3530_v22  ;;  %v3532_v20 = vpop.f32.mrb[85].mxu0  ;;  %v3990_v56 = vadd.f32 %v3989_v9, %v11679_v55 }
 0x4cb   : > { %v3533_v35 = vpop.f32.mrb[86].mxu0 }
 0x4cc   : > { %v11824_v54 = vadd.f32 %v9287_v34, %v11575_v49  ;;  %v9288_v18 = vadd.f32 %v11509_v12, %v3533_v35  ;;  %v3535_v30 = vpop.f32.mrb[87].mxu0  ;;  %v4061_v49 = vmul.f32 %v11679_v55, %v11679_v55  ;;  %v3993_v21 = vadd.f32 %v3990_v56, %v11704_v46 }
 0x4cd   : > { %v4064_v30 = vmul.f32 %v11704_v46, %v11704_v46 }
 0x4ce   : > { %v11831_v14 = vadd.f32 %v9288_v18, %v11583_v29  ;;  %v4124_v18 = vadd.f32 %v4123_v15, %v4061_v49 }
 0x4d0   : > { %v4127_v37 = vadd.f32 %v4124_v18, %v4064_v30  ;;  %v4069_v18 = vmul.f32 %v11743_v33, %v11743_v33 }
 0x4d1   : > { %v3538_v22 = vpop.f32.mrb[88].mxu0 }
 0x4d2   : > { %v9289_v34 = vadd.f32 %v11509_v12, %v3538_v22  ;;  %v3540_v20 = vpop.f32.mrb[89].mxu0  ;;  %v4065_v22 = vmul.f32 %v11711_v61, %v11711_v61 }
 0x4d3   : > { %v3541_v35 = vpop.f32.mrb[90].mxu0  ;;  %v3994_v20 = vadd.f32 %v3993_v21, %v11711_v61 }
 0x4d4   : > { %v9290_v29 = vadd.f32 %v11509_v12, %v3541_v35  ;;  %v11842_v48 = vadd.f32 %v9289_v34, %v11602_v32  ;;  %v3543_v26 = vpop.f32.mrb[91].mxu0  ;;  %v4068_v35 = vmul.f32 %v11740_v27, %v11740_v27  ;;  %v4128_v15 = vadd.f32 %v4127_v37, %v4065_v22 }
 0x4d5   : > { %v3997_v49 = vadd.f32 %v3994_v20, %v11740_v27  ;;  %v4072_v37 = vmul.f32 %v11756_v3, %v11756_v3 }
 0x4d6   : > { %16701 = vst [vmem:[#allocation23_spill] sm:$0xff] %v11842_v48  ;;  %v11846_v2 = vadd.f32 %v9290_v29, %v11610_v4  ;;  %v4131_v29 = vadd.f32 %v4128_v15, %v4068_v35  ;;  %v4073_v15 = vmul.f32 %v11759_v31, %v11759_v31 }
 0x4d8   : > { %16702 = vst [vmem:[#allocation24_spill] sm:$0xff] %v11846_v2  ;;  %v4132_v20 = vadd.f32 %v4131_v29, %v4069_v18  ;;  %v4076_v29 = vmul.f32 %v11774_v50, %v11774_v50 }
 0x4d9   : > { %v3546_v9 = vpop.f32.mrb[92].mxu0 }
 0x4da   : > { %v9291_v32 = vadd.f32 %v11509_v12, %v3546_v9  ;;  %v3548_v34 = vpop.f32.mrb[93].mxu0  ;;  %v3998_v9 = vadd.f32 %v3997_v49, %v11743_v33  ;;  %v4135_v35 = vadd.f32 %v4132_v20, %v4072_v37 }
 0x4db   : > { %v3549_v26 = vpop.f32.mrb[94].mxu0 }
 0x4dc   : > { %v11856_v4 = vadd.f32 %v9291_v32, %v11600_v25  ;;  %v9292_v56 = vadd.f32 %v11509_v12, %v3549_v26  ;;  %v3551_v30 = vpop.f32.mrb[95].mxu0  ;;  %v4001_v25 = vadd.f32 %v3998_v9, %v11756_v3  ;;  %v4136_v9 = vadd.f32 %v4135_v35, %v4073_v15 }
 0x4de   : > { %v11862_v21 = vadd.f32 %v9292_v56, %v11608_v45  ;;  %v4002_v30 = vadd.f32 %v4001_v25, %v11759_v31  ;;  %v4139_v20 = vadd.f32 %v4136_v9, %v4076_v29 }
 0x4e0   : > { %v4005_v37 = vadd.f32 %v4002_v30, %v11774_v50 }
 0x4e1   : > { %v3554_v22 = vpop.f32.mrb[96].mxu0 }
 0x4e2   : > { %v9293_v32 = vadd.f32 %v11509_v12, %v3554_v22  ;;  %v3556_v34 = vpop.f32.mrb[97].mxu0  ;;  %v4006_v25 = vadd.f32 %v4005_v37, %v11783_v11 }
 0x4e3   : > { %v3557_v26 = vpop.f32.mrb[98].mxu0  ;;  %v4077_v34 = vmul.f32 %v11783_v11, %v11783_v11 }
 0x4e4   : > { %v9294_v45 = vadd.f32 %v11509_v12, %v3557_v26  ;;  %v11873_v56 = vadd.f32 %v9293_v32, %v11636_v60  ;;  %v3559_v49 = vpop.f32.mrb[99].mxu0  ;;  %v4009_v30 = vadd.f32 %v4006_v25, %v11809_v57 }
 0x4e5   : > { %v4080_v49 = vmul.f32 %v11809_v57, %v11809_v57 }
 0x4e6   : > { %16703 = vst [vmem:[#allocation25_spill] sm:$0xff] %v11873_v56  ;;  %v11879_v18 = vadd.f32 %v9294_v45, %v11644_v24  ;;  %v4140_v45 = vadd.f32 %v4139_v20, %v4077_v34 }
 0x4e8   : > { %16704 = vst [vmem:[#allocation26_spill] sm:$0xff] %v11879_v18  ;;  %v4143_v9 = vadd.f32 %v4140_v45, %v4080_v49  ;;  %v4085_v45 = vmul.f32 %v11846_v2, %v11846_v2 }
 0x4e9   : > { %v3562_v22 = vpop.f32.mrb[100].mxu0 }
 0x4ea   : > { %v9295_v60 = vadd.f32 %v11509_v12, %v3562_v22  ;;  %v3564_v32 = vpop.f32.mrb[101].mxu0  ;;  %v4081_v22 = vmul.f32 %v11814_v28, %v11814_v28 }
 0x4eb   : > { %v3565_v26 = vpop.f32.mrb[102].mxu0  ;;  %v4010_v32 = vadd.f32 %v4009_v30, %v11814_v28 }
 0x4ec   : > { %v11889_v24 = vadd.f32 %v9295_v60, %v11634_v0  ;;  %v9296_v35 = vadd.f32 %v11509_v12, %v3565_v26  ;;  %v3567_v15 = vpop.f32.mrb[103].mxu0  ;;  %v4084_v0 = vmul.f32 %v11842_v48, %v11842_v48  ;;  %v4144_v20 = vadd.f32 %v4143_v9, %v4081_v22 }
 0x4ed   : > { %v4013_v34 = vadd.f32 %v4010_v32, %v11842_v48  ;;  %v4088_v9 = vmul.f32 %v11873_v56, %v11873_v56 }
 0x4ee   : > { %v11894_v29 = vadd.f32 %v9296_v35, %v11642_v53  ;;  %v4147_v35 = vadd.f32 %v4144_v20, %v4084_v0  ;;  %v4089_v20 = vmul.f32 %v11879_v18, %v11879_v18 }
 0x4f0   : > { %16705 = vst [vmem:[#allocation27_spill] sm:$0xff] %v11894_v29  ;;  %v4148_v32 = vadd.f32 %v4147_v35, %v4085_v45 }
 0x4f1   : > { %v3570_v37 = vpop.f32.mrb[104].mxu0 }
 0x4f2   : > { %v9297_v60 = vadd.f32 %v11509_v12, %v3570_v37  ;;  %v3572_v26 = vpop.f32.mrb[105].mxu0  ;;  %v4014_v37 = vadd.f32 %v4013_v34, %v11846_v2  ;;  %v4151_v0 = vadd.f32 %v4148_v32, %v4088_v9 }
 0x4f3   : > { %v3573_v15 = vpop.f32.mrb[106].mxu0 }
 0x4f4   : > { %v9298_v53 = vadd.f32 %v11509_v12, %v3573_v15  ;;  %v11905_v25 = vadd.f32 %v9297_v60, %v11668_v7  ;;  %v3575_v49 = vpop.f32.mrb[107].mxu0  ;;  %v4017_v26 = vadd.f32 %v4014_v37, %v11873_v56  ;;  %v4152_v37 = vadd.f32 %v4151_v0, %v4089_v20 }
 0x4f6   : > { %16706 = vst [vmem:[#allocation28_spill] sm:$0xff] %v11905_v25  ;;  %v11910_v30 = vadd.f32 %v9298_v53, %v11676_v5  ;;  %v4018_v49 = vadd.f32 %v4017_v26, %v11879_v18  ;;  %v4092_v35 = vmul.f32 %v11905_v25, %v11905_v25 }
 0x4f8   : > { %16707 = vst [vmem:[#allocation29_spill] sm:$0xff] %v11910_v30  ;;  %v4021_v9 = vadd.f32 %v4018_v49, %v11905_v25  ;;  %v4155_v32 = vadd.f32 %v4152_v37, %v4092_v35  ;;  %v10271_v35 = vld [vmem:[%s16344_s3 + $0x40] sm:$0xff]  }
 0x4f9   : > { %v3578_v22 = vpop.f32.mrb[108].mxu0  ;;  %6231 = vmatpush1.bf16.msra.mxu1 %v10271_v35 }
 0x4fa   : > { %v9299_v7 = vadd.f32 %v11509_v12, %v3578_v22  ;;  %v3580_v60 = vpop.f32.mrb[109].mxu0  ;;  %v4022_v26 = vadd.f32 %v4021_v9, %v11910_v30  ;;  %6232 = vmatprep.subr.bf16.mxu1 %v11623_v44 }
 0x4fb   : > { %v3581_v15 = vpop.f32.mrb[110].mxu0 }
 0x4fc   : > { %v11920_v5 = vadd.f32 %v9299_v7, %v11666_v41  ;;  %v9300_v34 = vadd.f32 %v11509_v12, %v3581_v15  ;;  %v3583_v53 = vpop.f32.mrb[111].mxu0  ;;  %v4093_v41 = vmul.f32 %v11910_v30, %v11910_v30 }
 0x4fe   : > { %16708 = vst [vmem:[#allocation30_spill] sm:$0xff] %v11920_v5  ;;  %v11927_v45 = vadd.f32 %v9300_v34, %v11674_v16  ;;  %v4156_v0 = vadd.f32 %v4155_v32, %v4093_v41 }
 0x500   : > { %16709 = vst [vmem:[#allocation31_spill] sm:$0xff] %v11927_v45 }
 0x501   : > { %v3586_v22 = vpop.f32.mrb[112].mxu0 }
 0x502   : > { %v9301_v7 = vadd.f32 %v11509_v12, %v3586_v22  ;;  %v3588_v60 = vpop.f32.mrb[113].mxu0  ;;  %v226_v22 = vlaneseq }
 0x503   : > { %v3589_v15 = vpop.f32.mrb[114].mxu0 }
 0x504   : > { %v9302_v53 = vadd.f32 %v11509_v12, %v3589_v15  ;;  %v11936_v18 = vadd.f32 %v9301_v7, %v11700_v59  ;;  %v3591_v16 = vpop.f32.mrb[115].mxu0  ;;  %v10275_v15 = vld [vmem:[%s16344_s3 + $0x200] sm:$0xff]  }
 0x505   : > { %9149 = vmatprep.subr.bf16.mxu0 %v10275_v15 }
 0x506   : > { %16710 = vst [vmem:[#allocation32_spill] sm:$0xff] %v11936_v18  ;;  %v4025_v20 = vadd.f32 %v4022_v26, %v11936_v18  ;;  %v4096_v34 = vmul.f32 %v11936_v18, %v11936_v18  ;;  %v11942_v49 = vadd.f32 %v9302_v53, %v11708_v51  ;;  %9150 = vmatpush3.bf16.msra.mxu0 %v10275_v15  ;;  %v16772_v18 = vld [vmem:[#allocation25_spill] sm:$0xff] }
 0x508   : > { %16711 = vst [vmem:[#allocation33_spill] sm:$0xff] %v11942_v49  ;;  %v4159_v37 = vadd.f32 %v4156_v0, %v4096_v34  ;;  %v4026_v9 = vadd.f32 %v4025_v20, %v11942_v49  ;;  %v4097_v59 = vmul.f32 %v11942_v49, %v11942_v49  ;;  %v11959_v0 = vshrl.u32 %v226_v22, 7  ;;  %v10276_v34 = vld [vmem:[%s16344_s3 + $0x208] sm:$0xff]  }
 0x509   : > { %v3594_v32 = vpop.f32.mrb[116].mxu0  ;;  %9151 = vmatprep.subr.bf16.mxu0 %v10276_v34  ;;  %v16770_v49 = vld [vmem:[#allocation23_spill] sm:$0xff] }
 0x50a   : > { %v4160_v41 = vadd.f32 %v4159_v37, %v4097_v59  ;;  %v9303_v7 = vadd.f32 %v11509_v12, %v3594_v32  ;;  %v3596_v60 = vpop.f32.mrb[117].mxu0  ;;  %16713 = vst [vmem:[#allocation35_spill] sm:$0xff] %v11959_v0  ;;  %v11968_v35 = vadd.s32 16, %v11959_v0  ;;  %9152 = vmatpush3.bf16.msra.mxu0 %v10276_v34  ;;  %v11972_v22 = vadd.s32 32, %v11959_v0  ;;  %v10274_v34 = vld [vmem:[%s16344_s3 + $0x58] sm:$0xff]  }
 0x50b   : > { %v3597_v51 = vpop.f32.mrb[118].mxu0  ;;  %v11981_v60 = vadd.s32 64, %v11959_v0  ;;  %v11998_v25 = vadd.s32 112, %v11959_v0  ;;  %v12012_v56 = vadd.s32 144, %v11959_v0  ;;  %v12031_v2 = vadd.s32 176, %v11959_v0 }
 0x50c   : > { %v11956_v26 = vadd.f32 %v9303_v7, %v11698_v58  ;;  %v9304_v53 = vadd.f32 %v11509_v12, %v3597_v51  ;;  %v3599_v16 = vpop.f32.mrb[119].mxu0  ;;  %16714 = vst [vmem:[#allocation36_spill] sm:$0xff] %v11968_v35  ;;  %16715 = vst [vmem:[#allocation37_spill] sm:$0xff] %v11972_v22  ;;  %v10278_v7 = vld [vmem:[%s16344_s3 + $0x210] sm:$0xff]   ;;  %v12009_v35 = vadd.s32 128, %v11959_v0  ;;  %v12091_v22 = vadd.s32 336, %v11959_v0 }
 0x50d   : > { %16717 = vst [vmem:[#allocation39_spill] sm:$0xff] %v11981_v60  ;;  %v10272_v16 = vld [vmem:[%s16344_s3 + $0x48] sm:$0xff]   ;;  %9153 = vmatprep.subr.bf16.mxu0 %v10278_v7  ;;  %16720 = vst [vmem:[#allocation42_spill] sm:$0xff] %v11998_v25  ;;  %v12104_v25 = vadd.s32 384, %v11959_v0  ;;  %vm16505_vm2 = vcmp.lt.s32.totalorder %v11959_v0, 1  ;;  %vm16503_vm3 = vcmp.lt.s32.totalorder %v11959_v0, 7 }
 0x50e   : > { %16712 = vst [vmem:[#allocation34_spill] sm:$0xff] %v11956_v26  ;;  %v11962_v20 = vadd.f32 %v9304_v53, %v11706_v6  ;;  %v11975_v6 = vadd.s32 48, %v11959_v0  ;;  %6233 = vmatpush1.bf16.msra.mxu1 %v10272_v16  ;;  %9154 = vmatpush3.bf16.msra.mxu0 %v10278_v7  ;;  %16721 = vst [vmem:[#allocation43_spill] sm:$0xff] %v12009_v35  ;;  %v12057_v35 = vadd.s32 224, %v11959_v0  ;;  %v16771_v26 = vld [vmem:[#allocation24_spill] sm:$0xff] }
 0x50f   : > { %16722 = vst [vmem:[#allocation44_spill] sm:$0xff] %v12012_v56  ;;  %6234 = vmatprep.subr.bf16.mxu1 %v11623_v44  ;;  %16724 = vst [vmem:[#allocation46_spill] sm:$0xff] %v12031_v2  ;;  %v16754_v2 = vld [vmem:[#allocation12_spill] sm:$0xff] }
 0x510   : > { %16716 = vst [vmem:[#allocation38_spill] sm:$0xff] %v11975_v6  ;;  %v12028_v6 = vadd.s32 160, %v11959_v0  ;;  %16728 = vst [vmem:[#allocation50_spill] sm:$0xff] %v12057_v35  ;;  %v10280_v35 = vld [vmem:[%s16344_s3 + $0x68] sm:$0xff]  }
 0x511   : > { %v3602_v37 = vpop.f32.mrb[120].mxu0  ;;  %16737 = vst [vmem:[#allocation57_spill] sm:$0xff] %v12091_v22  ;;  %16740 = vst [vmem:[#allocation60_spill] sm:$0xff] %v12104_v25  ;;  %v16749_v22 = vld [vmem:[#allocation4_spill] sm:$0xff] }
 0x512   : > { %v9305_v58 = vadd.f32 %v11509_v12, %v3602_v37  ;;  %v3604_v59 = vpop.f32.mrb[121].mxu0  ;;  %v11992_v37 = vadd.s32 80, %v11959_v0  ;;  %16723 = vst [vmem:[#allocation45_spill] sm:$0xff] %v12028_v6  ;;  %v12074_v6 = vadd.s32 288, %v11959_v0 }
 0x513   : > { %v3605_v32 = vpop.f32.mrb[122].mxu0  ;;  %v11995_v59 = vadd.s32 96, %v11959_v0 }
 0x514   : > { %v11984_v51 = vadd.f32 %v9305_v58, %v11730_v63  ;;  %v9306_v15 = vadd.f32 %v11509_v12, %v3605_v32  ;;  %v3607_v53 = vpop.f32.mrb[123].mxu0  ;;  %16718 = vst [vmem:[#allocation40_spill] sm:$0xff] %v11992_v37  ;;  %v12041_v37 = vadd.s32 208, %v11959_v0  ;;  %16734 = vst [vmem:[#allocation54_spill] sm:$0xff] %v12074_v6  ;;  %v12135_v6 = vadd.s32 464, %v11959_v0 }
 0x515   : > { %16719 = vst [vmem:[#allocation41_spill] sm:$0xff] %v11995_v59  ;;  %v10273_v53 = vld [vmem:[%s16344_s3 + $0x50] sm:$0xff]   ;;  %v12038_v59 = vadd.s32 192, %v11959_v0 }
 0x516   : > { %v4029_v63 = vadd.f32 %v4026_v9, %v11984_v51  ;;  %v4100_v58 = vmul.f32 %v11984_v51, %v11984_v51  ;;  %v12004_v32 = vadd.f32 %v9306_v15, %v11736_v8  ;;  %v10279_v9 = vld [vmem:[%s16344_s3 + $0x218] sm:$0xff]   ;;  %6235 = vmatpush1.bf16.msra.mxu1 %v10273_v53  ;;  %16726 = vst [vmem:[#allocation48_spill] sm:$0xff] %v12041_v37  ;;  %v12097_v37 = vadd.s32 368, %v11959_v0 }
 0x517   : > { %9155 = vmatprep.subr.bf16.mxu0 %v10279_v9  ;;  %16725 = vst [vmem:[#allocation47_spill] sm:$0xff] %v12038_v59  ;;  %6236 = vmatprep.subr.bf16.mxu1 %v11623_v44  ;;  %v12094_v59 = vadd.s32 352, %v11959_v0  ;;  %16746 = vst [vmem:[#allocation66_spill] sm:$0xff] %v12135_v6  ;;  %v16758_v6 = vld [vmem:[#allocation9_spill] sm:$0xff] }
 0x518   : > { %v4163_v15 = vadd.f32 %v4160_v41, %v4100_v58  ;;  %v4030_v7 = vadd.f32 %v4029_v63, %v12004_v32  ;;  %v4101_v16 = vmul.f32 %v12004_v32, %v12004_v32  ;;  %9156 = vmatpush3.bf16.msra.mxu0 %v10279_v9  ;;  %v12071_v63 = vadd.s32 272, %v11959_v0  ;;  %16739 = vst [vmem:[#allocation59_spill] sm:$0xff] %v12097_v37 }
 0x519   : > { %v3610_v41 = vpop.f32.mrb[124].mxu0  ;;  %16738 = vst [vmem:[#allocation58_spill] sm:$0xff] %v12094_v59  ;;  %v12138_v59 = vadd.s32 480, %v11959_v0 }
 0x51a   : > { %v4033_v58 = vrot.slane %v4030_v7, 4  ;;  %v4164_v8 = vadd.f32 %v4163_v15, %v4101_v16  ;;  %v9307_v60 = vadd.f32 %v11509_v12, %v3610_v41  ;;  %v3612_v48 = vpop.f32.mrb[125].mxu0  ;;  %v10281_v15 = vld [vmem:[%s16344_s3 + $0x220] sm:$0xff]   ;;  %6237 = vmatpush1.bf16.msra.mxu1 %v10274_v34  ;;  %16733 = vst [vmem:[#allocation53_spill] sm:$0xff] %v12071_v63  ;;  %v12084_v34 = vadd.s32 320, %v11959_v0  ;;  %v16763_v63 = vld [vmem:[#allocation20_spill] sm:$0xff] }
 0x51b   : > { %v3613_v28 = vpop.f32.mrb[126].mxu0  ;;  %9157 = vmatprep.subr.bf16.mxu0 %v10281_v15  ;;  %6238 = vmatprep.subr.bf16.mxu1 %v11623_v44  ;;  %v715_v25 = vand.u32 31, %v12138_v59  ;;  %v16762_v59 = vld [vmem:[#allocation19_spill] sm:$0xff] }
 0x51c   : > { %v4034_v48 = vadd.f32 %v4033_v58, %v4030_v7  ;;  %v4167_v53 = vrot.slane %v4164_v8, 4  ;;  %v12048_v9 = vadd.f32 %v9307_v60, %v11728_v23  ;;  %v9308_v16 = vadd.f32 %v11509_v12, %v3613_v28  ;;  %v3615_v41 = vpop.f32.mrb[127].mxu0  ;;  %v16731_v60 = vld [vmem:[#allocation17_spill] sm:$0xff]  ;;  %9158 = vmatpush3.bf16.msra.mxu0 %v10281_v15  ;;  %16736 = vst [vmem:[#allocation56_spill] sm:$0xff] %v12084_v34 }
 0x51d   : > { %v12060_v7 = vadd.s32 240, %v11959_v0  ;;  %v12063_v23 = vadd.s32 256, %v11959_v0  ;;  %v10286_v41 = vld [vmem:[%s16344_s3 + $0x78] sm:$0xff]   ;;  %vm12266_vm4 = vcmp.eq.s32.totalorder %v715_v25, 0 }
 0x51e   : > { %16727 = vst [vmem:[#allocation49_spill] sm:$0xff] %v12048_v9  ;;  %v4035_v12 = vrot.slane %v4034_v48, 2  ;;  %v4168_v28 = vadd.f32 %v4167_v53, %v4164_v8  ;;  %v12066_v58 = vadd.f32 %v9308_v16, %v16731_v60  ;;  %v10282_v8 = vld [vmem:[%s16344_s3 + $0x228] sm:$0xff]   ;;  %v12081_v53 = vadd.s32 304, %v11959_v0  ;;  %v10277_v60 = vld [vmem:[%s16344_s3 + $0x60] sm:$0xff]  }
 0x51f   : > { %16729 = vst [vmem:[#allocation51_spill] sm:$0xff] %v12060_v7  ;;  %16730 = vst [vmem:[#allocation52_spill] sm:$0xff] %v12063_v23  ;;  %9159 = vmatprep.subr.bf16.mxu0 %v10282_v8  ;;  %6239 = vmatpush1.bf16.msra.mxu1 %v10277_v60  ;;  %v12122_v23 = vadd.s32 416, %v11959_v0 }
 0x520   : > { %16732 = vst [vmem:[#allocation17_spill] sm:$0xff] %v12066_v58  ;;  %16735 = vst [vmem:[#allocation55_spill] sm:$0xff] %v12081_v53  ;;  %v4036_v15 = vadd.f32 %v4035_v12, %v4034_v48  ;;  %v4169_v16 = vrot.slane %v4168_v28, 2  ;;  %9160 = vmatpush3.bf16.msra.mxu0 %v10282_v8  ;;  %v12107_v58 = vadd.s32 400, %v11959_v0  ;;  %6240 = vmatprep.subr.bf16.mxu1 %v11623_v44  ;;  %v10284_v48 = vld [vmem:[%s16344_s3 + $0x230] sm:$0xff]   ;;  %v16756_v53 = vld [vmem:[#allocation14_spill] sm:$0xff] }
 0x521   : > { %16742 = vst [vmem:[#allocation62_spill] sm:$0xff] %v12122_v23  ;;  %9161 = vmatprep.subr.bf16.mxu0 %v10284_v48  ;;  %v16750_v23 = vld [vmem:[#allocation5_spill] sm:$0xff] }
 0x522   : > { %v4037_v12 = vrot.slane %v4036_v15, 1  ;;  %v4170_v56 = vadd.f32 %v4169_v16, %v4168_v28  ;;  %16741 = vst [vmem:[#allocation61_spill] sm:$0xff] %v12107_v58  ;;  %v12125_v28 = vadd.s32 432, %v11959_v0  ;;  %v12159_v58 = vadd.s32 496, %v11959_v0 }
 0x523   : > { %6241 = vmatpush1.bf16.msra.mxu1 %v10280_v35  ;;  %v16751_v35 = vld [vmem:[#allocation6_spill] sm:$0xff] }
 0x524   : > { %v4038_v16 = vadd.f32 %v4037_v12, %v4036_v15  ;;  %v4171_v60 = vrot.slane %v4170_v56, 1  ;;  %16743 = vst [vmem:[#allocation63_spill] sm:$0xff] %v12125_v28  ;;  %v12128_v15 = vadd.s32 448, %v11959_v0  ;;  %9162 = vmatpush3.bf16.msra.mxu0 %v10284_v48  ;;  %6242 = vmatprep.subr.bf16.mxu1 %v11623_v44  ;;  %v16755_v28 = vld [vmem:[#allocation13_spill] sm:$0xff] }
 0x526   : > { %16744 = vst [vmem:[#allocation64_spill] sm:$0xff] %v12128_v15  ;;  %v12130_v12 = vmul.f32 0.00390625, %v4038_v16  ;;  %v4172_v8 = vadd.f32 %v4171_v60, %v4170_v56  ;;  %v10285_v16 = vld [vmem:[%s16344_s3 + $0x238] sm:$0xff]   ;;  %v10283_v60 = vld [vmem:[%s16344_s3 + $0x70] sm:$0xff]   ;;  %v16776_v15 = vld [vmem:[#allocation26_spill] sm:$0xff] }
 0x527   : > { %9163 = vmatprep.subr.bf16.mxu0 %v10285_v16  ;;  %6243 = vmatpush1.bf16.msra.mxu1 %v10283_v60  ;;  %v16769_v60 = vld [vmem:[#allocation22_spill] sm:$0xff] }
 0x528   : > { %16745 = vst [vmem:[#allocation65_spill] sm:$0xff] %v12130_v12  ;;  %v4173_v34 = vmul.f32 0.00390625, %v4172_v8  ;;  %v4174_v56 = vmul.f32 %v12130_v12, %v12130_v12  ;;  %v16747_v8 = vld [vmem:[#allocation3_spill] sm:$0xff]  ;;  %6244 = vmatprep.subr.bf16.mxu1 %v11623_v44  ;;  %9164 = vmatpush3.bf16.msra.mxu0 %v10285_v16  ;;  %v16774_v45 = vsub.f32 %v11984_v51, %v12130_v12 }
 0x529   : > { %16748 = vst [vmem:[#allocation3_spill] sm:$0xff] %v12159_v58  ;;  %v16757_v16 = vld [vmem:[#allocation7_spill] sm:$0xff]  ;;  %v16761_v58 = vld [vmem:[#allocation16_spill] sm:$0xff]  ;;  %v16809_v48 = vsub.f32 %v16756_v53, %v12130_v12 }
 0x52a   : > { %v4175_v37 = vsub.f32 %v4173_v34, %v4174_v56  ;;  %v16752_v56 = vld [vmem:[#allocation8_spill] sm:$0xff] }
 0x52b   : > { %6245 = vmatpush1.bf16.msra.mxu1 %v10286_v41 }
 0x52c   : > { %v4240_v34 = vmax.f32 %v4175_v37, 0.0  ;;  %6503 = vmatprep.subr.bf16.mxu1 %v11623_v44  ;;  %v16764_v44 = vld [vmem:[#allocation21_spill] sm:$0xff]  ;;  %v16773_v37 = vsub.f32 %v11962_v20, %v12130_v12  ;;  %v16778_v20 = vsub.f32 %v11519_v13, %v12130_v12  ;;  %v16784_v13 = vsub.f32 %v16749_v22, %v12130_v12 }
 0x52e   : > { %v4241_v7 = vadd.f32 1e-05, %v4240_v34  ;;  %v16759_v34 = vld [vmem:[#allocation11_spill] sm:$0xff] }
 0x530   : > { %10335 = vrsqrt.f32 %v4241_v7  ;;  %v16775_v7 = vsub.f32 %v12004_v32, %v12130_v12  ;;  %v16781_v32 = vsub.f32 %v16747_v8, %v12130_v12  ;;  %v16787_v8 = vsub.f32 %v11561_v40, %v12130_v12 }
 0x53a   : > { %v12286_v5 = vpop.eup %10335 }
 0x53b   : > { %16768 = vst [vmem:[#allocation4_spill] sm:$0xff] %v12286_v5  ;;  %v4302_v9 = vmul.f32 %v12286_v5, %v16773_v37  ;;  %v4303_v62 = vmul.f32 %v12286_v5, %v16774_v45  ;;  %v4304_v41 = vmul.f32 %v12286_v5, %v16775_v7  ;;  %v12316_v37 = vmul.f32 %v12286_v5, %v16778_v20 }
 0x53c   : > { %v16780_v45 = vsub.f32 %v11527_v17, %v12130_v12  ;;  %v12328_v7 = vmul.f32 %v12286_v5, %v16781_v32  ;;  %v12336_v20 = vmul.f32 %v12286_v5, %v16784_v13  ;;  %v16785_v17 = vsub.f32 %v11552_v19, %v12130_v12 }
 0x53d   : > { %16779 = vst [vmem:[#allocation5_spill] sm:$0xff] %v12316_v37  ;;  %v4366_v30 = vmax.f32 %v4302_v9, 0.0  ;;  %v4367_v29 = vmax.f32 %v4303_v62, 0.0  ;;  %v12330_v25 = vmax.f32 %v4304_v41, 0.0  ;;  %v12348_v9 = vmul.f32 %v12286_v5, %v16787_v8 }
 0x53e   : > { %v12322_v51 = vmul.f32 %v12286_v5, %v16780_v45  ;;  %16782 = vst [vmem:[#allocation6_spill] sm:$0xff] %v12328_v7  ;;  %v12342_v45 = vmul.f32 %v12286_v5, %v16785_v17  ;;  %v16789_v62 = vsub.f32 %v16750_v23, %v12130_v12  ;;  %v16791_v41 = vsub.f32 %v16751_v35, %v12130_v12 }
 0x53f   : > { %16783 = vst [vmem:[#allocation8_spill] sm:$0xff] %v12330_v25  ;;  %16788 = vst [vmem:[#allocation13_spill] sm:$0xff] %v12348_v9  ;;  %v12362_v32 = vrot.slane %v4366_v30, 7  ;;  %v4431_v13 = vrot.slane %v4367_v29, 7  ;;  %v16441_v40 = vrot.slane %v12330_v25, 7  ;;  %v4560_v17 = vrot.slane %v4367_v29, 1 }
 0x540   : > { %16786 = vst [vmem:[#allocation12_spill] sm:$0xff] %v12342_v45  ;;  %v12354_v22 = vmul.f32 %v12286_v5, %v16789_v62  ;;  %v12360_v19 = vmul.f32 %v12286_v5, %v16791_v41  ;;  %v4561_v8 = vrot.slane %v12330_v25, 1  ;;  %v16793_v23 = vsub.f32 %v11581_v39, %v12130_v12  ;;  %v16798_v9 = vld [vmem:[#allocation10_spill] sm:$0xff] }
 0x541   : > { %16792 = vst [vmem:[#allocation7_spill] sm:$0xff] %v12362_v32  ;;  %v16795_v35 = vsub.f32 %v11588_v10, %v12130_v12  ;;  %v4438_v29 = vsel %vm16505_vm2, %v4431_v13, %v16441_v40  ;;  %v4439_v41 = vsel %vm16505_vm2, %v12362_v32, %v4431_v13  ;;  %v16796_v39 = vsub.f32 %v16752_v56, %v12130_v12  ;;  %v16869_v32 = vld [vmem:[#allocation30_spill] sm:$0xff] }
 0x542   : > { %16790 = vst [vmem:[#allocation14_spill] sm:$0xff] %v12354_v22  ;;  %v12371_v62 = vmul.f32 %v12286_v5, %v16793_v23  ;;  %v16799_v10 = vsub.f32 %v16798_v9, %v12130_v12  ;;  %v4567_v25 = vsel %vm16503_vm3, %v4560_v17, %v4561_v8  ;;  %v16800_v40 = vsub.f32 %v11606_v36, %v12130_v12 }
 0x543   : > { %v12377_v30 = vmul.f32 %v12286_v5, %v16795_v35  ;;  %v12390_v23 = vmul.f32 %v12286_v5, %v16796_v39  ;;  %v16802_v56 = vsub.f32 %v11613_v47, %v12130_v12  ;;  %v16803_v9 = vsub.f32 %v16754_v2, %v12130_v12 }
 0x544   : > { %16794 = vst [vmem:[#allocation9_spill] sm:$0xff] %v12371_v62  ;;  %v12396_v35 = vmul.f32 %v12286_v5, %v16799_v10  ;;  %v12404_v13 = vmul.f32 %v12286_v5, %v16800_v40  ;;  %v5010_v17 = vsel %vm12266_vm4, %v4567_v25, %v4439_v41  ;;  %v16805_v36 = vsub.f32 %v16755_v28, %v12130_v12 }
 0x545   : > { %16797 = vst [vmem:[#allocation11_spill] sm:$0xff] %v12390_v23  ;;  %v4256_v39 = vmul.f32 %v12286_v5, %v16802_v56  ;;  %v12414_v10 = vmul.f32 %v12286_v5, %v16803_v9  ;;  %v16806_v47 = vsub.f32 %v11640_v38, %v12130_v12  ;;  %v16808_v2 = vsub.f32 %v11647_v1, %v12130_v12 }
 0x546   : > { %16801 = vst [vmem:[#allocation16_spill] sm:$0xff] %v12404_v13  ;;  %v12422_v40 = vmul.f32 %v12286_v5, %v16805_v36  ;;  %v5044_v9 = vpack.c.bf16 %v4438_v29, %v5010_v17  ;;  %v12438_v28 = vmul.f32 %v12286_v5, %v16809_v48  ;;  %v16811_v25 = vsub.f32 %v16757_v16, %v12130_v12  ;;  %v16821_v48 = vld [vmem:[#allocation15_spill] sm:$0xff] }
 0x547   : > { %16804 = vst [vmem:[#allocation19_spill] sm:$0xff] %v12414_v10  ;;  %v12428_v8 = vmul.f32 %v12286_v5, %v16806_v47  ;;  %v4260_v56 = vmul.f32 %v12286_v5, %v16808_v2  ;;  %v16812_v41 = vsub.f32 %v11672_v42, %v12130_v12  ;;  %v16814_v29 = vsub.f32 %v11679_v55, %v12130_v12 }
 0x548   : > { %16810 = vst [vmem:[#allocation21_spill] sm:$0xff] %v12438_v28  ;;  %v12444_v38 = vmul.f32 %v12286_v5, %v16811_v25  ;;  %v16815_v17 = vsub.f32 %v16758_v6, %v12130_v12  ;;  %v16817_v16 = vsub.f32 %v16759_v34, %v12130_v12  ;;  %v16818_v42 = vsub.f32 %v11704_v46, %v12130_v12 }
 0x549   : > { %16807 = vst [vmem:[#allocation20_spill] sm:$0xff] %v12428_v8  ;;  %v12450_v1 = vmul.f32 %v12286_v5, %v16812_v41  ;;  %v4264_v53 = vmul.f32 %v12286_v5, %v16814_v29  ;;  %5078 = vst [vmem:[#allocation2 + $0x100] sm:$0xff] %v5044_v9  ;;  %v16820_v55 = vsub.f32 %v11711_v61, %v12130_v12 }
 0x54a   : > { %v12460_v36 = vmul.f32 %v12286_v5, %v16815_v17  ;;  %v12466_v47 = vmul.f32 %v12286_v5, %v16817_v16  ;;  %v12472_v2 = vmul.f32 %v12286_v5, %v16818_v42  ;;  %v16822_v25 = vsub.f32 %v16821_v48, %v12130_v12  ;;  %v16828_v16 = vld [vmem:[#allocation18_spill] sm:$0xff] }
 0x54b   : > { %16813 = vst [vmem:[#allocation22_spill] sm:$0xff] %v12450_v1  ;;  %v4268_v6 = vmul.f32 %v12286_v5, %v16820_v55  ;;  %v16824_v41 = vsub.f32 %v16761_v58, %v12130_v12  ;;  %v16825_v9 = vsub.f32 %v11740_v27, %v12130_v12  ;;  %v16827_v61 = vsub.f32 %v11743_v33, %v12130_v12 }
 0x54c   : > { %16816 = vst [vmem:[#allocation23_spill] sm:$0xff] %v12460_v36  ;;  %16819 = vst [vmem:[#allocation24_spill] sm:$0xff] %v12472_v2  ;;  %v12482_v34 = vmul.f32 %v12286_v5, %v16822_v25  ;;  %v16829_v42 = vsub.f32 %v16828_v16, %v12130_v12  ;;  %v16831_v58 = vsub.f32 %v16762_v59, %v12130_v12 }
 0x54d   : > { %v12488_v46 = vmul.f32 %v12286_v5, %v16824_v41  ;;  %v12494_v29 = vmul.f32 %v12286_v5, %v16825_v9  ;;  %v4272_v17 = vmul.f32 %v12286_v5, %v16827_v61  ;;  %v16832_v27 = vsub.f32 %v11756_v3, %v12130_v12 }
 0x54e   : > { %16823 = vst [vmem:[#allocation25_spill] sm:$0xff] %v12482_v34  ;;  %v12504_v55 = vmul.f32 %v12286_v5, %v16829_v42  ;;  %v12510_v48 = vmul.f32 %v12286_v5, %v16831_v58  ;;  %v16834_v33 = vsub.f32 %v11759_v31, %v12130_v12  ;;  %v16835_v9 = vsub.f32 %v16763_v63, %v12130_v12 }
 0x54f   : > { %16826 = vst [vmem:[#allocation26_spill] sm:$0xff] %v12494_v29  ;;  %v12516_v25 = vmul.f32 %v12286_v5, %v16832_v27  ;;  %v16837_v59 = vsub.f32 %v16764_v44, %v12130_v12  ;;  %v16838_v3 = vsub.f32 %v11774_v50, %v12130_v12  ;;  %v16840_v31 = vsub.f32 %v11783_v11, %v12130_v12 }
 0x550   : > { %16830 = vst [vmem:[#allocation10_spill] sm:$0xff] %v12504_v55  ;;  %v4276_v41 = vmul.f32 %v12286_v5, %v16834_v33  ;;  %v12526_v61 = vmul.f32 %v12286_v5, %v16835_v9  ;;  %v16841_v58 = vsub.f32 %v11793_v52, %v12130_v12  ;;  %v16843_v44 = vsub.f32 %v11798_v43, %v12130_v12 }
 0x551   : > { %16833 = vst [vmem:[#allocation15_spill] sm:$0xff] %v12516_v25  ;;  %v12532_v16 = vmul.f32 %v12286_v5, %v16837_v59  ;;  %v12538_v42 = vmul.f32 %v12286_v5, %v16838_v3  ;;  %v4280_v63 = vmul.f32 %v12286_v5, %v16840_v31  ;;  %v16844_v50 = vsub.f32 %v11809_v57, %v12130_v12 }
 0x552   : > { %16836 = vst [vmem:[#allocation18_spill] sm:$0xff] %v12526_v61  ;;  %v12548_v27 = vmul.f32 %v12286_v5, %v16841_v58  ;;  %v12554_v33 = vmul.f32 %v12286_v5, %v16843_v44  ;;  %v16846_v11 = vsub.f32 %v16769_v60, %v12130_v12  ;;  %v16847_v59 = vsub.f32 %v11824_v54, %v12130_v12 }
 0x553   : > { %16839 = vst [vmem:[#allocation67_spill] sm:$0xff] %v12538_v42  ;;  %v12560_v9 = vmul.f32 %v12286_v5, %v16844_v50  ;;  %v16849_v43 = vsub.f32 %v11831_v14, %v12130_v12  ;;  %v16850_v57 = vsub.f32 %v16770_v49, %v12130_v12  ;;  %v16852_v60 = vsub.f32 %v16771_v26, %v12130_v12 }
 0x554   : > { %16842 = vst [vmem:[#allocation68_spill] sm:$0xff] %v12548_v27  ;;  %v4284_v52 = vmul.f32 %v12286_v5, %v16846_v11  ;;  %v12570_v3 = vmul.f32 %v12286_v5, %v16847_v59  ;;  %v16853_v44 = vsub.f32 %v11856_v4, %v12130_v12  ;;  %v16855_v14 = vsub.f32 %v11862_v21, %v12130_v12  ;;  %v16861_v21 = vld [vmem:[#allocation27_spill] sm:$0xff] }
 0x555   : > { %16845 = vst [vmem:[#allocation69_spill] sm:$0xff] %v12560_v9  ;;  %v12576_v31 = vmul.f32 %v12286_v5, %v16849_v43  ;;  %v12582_v58 = vmul.f32 %v12286_v5, %v16850_v57  ;;  %v4288_v54 = vmul.f32 %v12286_v5, %v16852_v60  ;;  %v16856_v49 = vsub.f32 %v16772_v18, %v12130_v12  ;;  %v16864_v18 = vld [vmem:[#allocation28_spill] sm:$0xff] }
 0x556   : > { %16848 = vst [vmem:[#allocation70_spill] sm:$0xff] %v12570_v3  ;;  %v12592_v50 = vmul.f32 %v12286_v5, %v16853_v44  ;;  %v12598_v11 = vmul.f32 %v12286_v5, %v16855_v14  ;;  %v16858_v26 = vsub.f32 %v16776_v15, %v12130_v12  ;;  %v16859_v43 = vsub.f32 %v11889_v24, %v12130_v12  ;;  %v16867_v15 = vld [vmem:[#allocation29_spill] sm:$0xff] }
 0x557   : > { %16851 = vst [vmem:[#allocation71_spill] sm:$0xff] %v12582_v58  ;;  %v12604_v59 = vmul.f32 %v12286_v5, %v16856_v49  ;;  %v16862_v60 = vsub.f32 %v16861_v21, %v12130_v12  ;;  %v16865_v14 = vsub.f32 %v16864_v18, %v12130_v12  ;;  %v16872_v21 = vld [vmem:[#allocation31_spill] sm:$0xff]  ;;  %v16875_v18 = vld [vmem:[#allocation32_spill] sm:$0xff] }
 0x558   : > { %16854 = vst [vmem:[#allocation72_spill] sm:$0xff] %v12592_v50  ;;  %v4292_v4 = vmul.f32 %v12286_v5, %v16858_v26  ;;  %v12614_v57 = vmul.f32 %v12286_v5, %v16859_v43  ;;  %v16868_v26 = vsub.f32 %v16867_v15, %v12130_v12  ;;  %v16870_v43 = vsub.f32 %v16869_v32, %v12130_v12  ;;  %v16878_v15 = vld [vmem:[#allocation33_spill] sm:$0xff] }
 0x559   : > { %16857 = vst [vmem:[#allocation73_spill] sm:$0xff] %v12604_v59  ;;  %v12620_v44 = vmul.f32 %v12286_v5, %v16862_v60  ;;  %v12626_v49 = vmul.f32 %v12286_v5, %v16865_v14  ;;  %v16873_v60 = vsub.f32 %v16872_v21, %v12130_v12  ;;  %v16876_v14 = vsub.f32 %v16875_v18, %v12130_v12 }
 0x55a   : > { %16860 = vst [vmem:[#allocation74_spill] sm:$0xff] %v12614_v57  ;;  %v4296_v24 = vmul.f32 %v12286_v5, %v16868_v26  ;;  %v12636_v0 = vmul.f32 %v12286_v5, %v16870_v43  ;;  %v16879_v26 = vsub.f32 %v16878_v15, %v12130_v12  ;;  %v16880_v57 = vld [vmem:[#allocation34_spill] sm:$0xff]  ;;  %v16883_v15 = vld [vmem:[#allocation13_spill] sm:$0xff]  ;;  %v12674_v21 = vmax.f32 %v12377_v30, 0.0 }
 0x55b   : > { %16863 = vst [vmem:[#allocation27_spill] sm:$0xff] %v12620_v44  ;;  %16866 = vst [vmem:[#allocation28_spill] sm:$0xff] %v12626_v49  ;;  %v12642_v44 = vmul.f32 %v12286_v5, %v16873_v60  ;;  %v12648_v49 = vmul.f32 %v12286_v5, %v16876_v14  ;;  %v16881_v43 = vsub.f32 %v16880_v57, %v12130_v12  ;;  %v12662_v60 = vmax.f32 %v12322_v51, 0.0 }
 0x55c   : > { %16871 = vst [vmem:[#allocation29_spill] sm:$0xff] %v12636_v0  ;;  %v4300_v32 = vmul.f32 %v12286_v5, %v16879_v26  ;;  %v4310_v14 = vmax.f32 %v12336_v20, 0.0  ;;  %v4314_v57 = vmax.f32 %v12360_v19, 0.0  ;;  %v4318_v18 = vmax.f32 %v12396_v35, 0.0 }
 0x55d   : > { %16874 = vst [vmem:[#allocation30_spill] sm:$0xff] %v12642_v44  ;;  %16877 = vst [vmem:[#allocation31_spill] sm:$0xff] %v12648_v49  ;;  %v12658_v0 = vmul.f32 %v12286_v5, %v16881_v43  ;;  %v12668_v44 = vmax.f32 %v16883_v15, 0.0  ;;  %v12679_v5 = vmax.f32 %v4256_v39, 0.0  ;;  %v4322_v49 = vmax.f32 %v12422_v40, 0.0 }
 0x55e   : > { %16882 = vst [vmem:[#allocation32_spill] sm:$0xff] %v12662_v60  ;;  %v12684_v19 = vmax.f32 %v4260_v56, 0.0  ;;  %v4326_v30 = vmax.f32 %v12444_v38, 0.0  ;;  %v12689_v12 = vmax.f32 %v4264_v53, 0.0  ;;  %v4330_v39 = vmax.f32 %v12466_v47, 0.0 }
 0x55f   : > { %16884 = vst [vmem:[#allocation33_spill] sm:$0xff] %v12668_v44  ;;  %v12694_v20 = vmax.f32 %v4268_v6, 0.0  ;;  %v4334_v56 = vmax.f32 %v12488_v46, 0.0  ;;  %v12699_v26 = vmax.f32 %v4272_v17, 0.0  ;;  %v4338_v53 = vmax.f32 %v12510_v48, 0.0  ;;  %v16925_v44 = vld [vmem:[#allocation72_spill] sm:$0xff] }
 0x560   : > { %v12704_v51 = vmax.f32 %v4276_v41, 0.0  ;;  %v4342_v6 = vmax.f32 %v12532_v16, 0.0  ;;  %v12709_v15 = vmax.f32 %v4280_v63, 0.0  ;;  %v4346_v17 = vmax.f32 %v12554_v33, 0.0 }
 0x561   : > { %v12714_v38 = vmax.f32 %v4284_v52, 0.0  ;;  %v4350_v41 = vmax.f32 %v12576_v31, 0.0  ;;  %v12719_v47 = vmax.f32 %v4288_v54, 0.0  ;;  %v4354_v63 = vmax.f32 %v12598_v11, 0.0  ;;  %v16890_v33 = vld [vmem:[#allocation74_spill] sm:$0xff] }
 0x562   : > { %16885 = vst [vmem:[#allocation34_spill] sm:$0xff] %v12704_v51  ;;  %16886 = vst [vmem:[#allocation13_spill] sm:$0xff] %v12709_v15  ;;  %v12724_v40 = vmax.f32 %v4292_v4, 0.0  ;;  %v16891_v52 = vld [vmem:[#allocation27_spill] sm:$0xff]  ;;  %v16892_v25 = vld [vmem:[#allocation28_spill] sm:$0xff]  ;;  %v12729_v3 = vmax.f32 %v4296_v24, 0.0 }
 0x563   : > { %16887 = vst [vmem:[#allocation75_spill] sm:$0xff] %v12714_v38  ;;  %16888 = vst [vmem:[#allocation76_spill] sm:$0xff] %v12719_v47  ;;  %v4358_v29 = vmax.f32 %v16891_v52, 0.0  ;;  %v16893_v31 = vld [vmem:[#allocation29_spill] sm:$0xff]  ;;  %v12734_v50 = vmax.f32 %v4300_v32, 0.0  ;;  %v16896_v4 = vmax.f32 %v12316_v37, 0.0 }
 0x564   : > { %16889 = vst [vmem:[#allocation77_spill] sm:$0xff] %v12724_v40  ;;  %v16894_v54 = vld [vmem:[#allocation30_spill] sm:$0xff]  ;;  %v16895_v58 = vld [vmem:[#allocation31_spill] sm:$0xff]  ;;  %v16898_v48 = vmax.f32 %v12328_v7, 0.0  ;;  %v12746_v43 = vrot.slane %v4310_v14, 7  ;;  %v16903_v11 = vmax.f32 %v12354_v22, 0.0 }
 0x565   : > { %v4362_v47 = vmax.f32 %v16894_v54, 0.0  ;;  %v12739_v46 = vrot.slane %v16896_v4, 7  ;;  %v16901_v54 = vmax.f32 %v12342_v45, 0.0  ;;  %v12757_v4 = vrot.slane %v4314_v57, 7 }
 0x566   : > { %v12744_v24 = vrot.slane %v16898_v48, 7  ;;  %16900 = vst [vmem:[#allocation29_spill] sm:$0xff] %v12746_v43  ;;  %v12755_v16 = vrot.slane %v16903_v11, 7  ;;  %v16905_v52 = vmax.f32 %v12371_v62, 0.0  ;;  %v16906_v14 = vmax.f32 %v12390_v23, 0.0 }
 0x567   : > { %16897 = vst [vmem:[#allocation27_spill] sm:$0xff] %v12739_v46  ;;  %v12750_v35 = vrot.slane %v16901_v54, 7  ;;  %v12768_v54 = vrot.slane %v4318_v18, 7  ;;  %v16907_v32 = vmax.f32 %v12404_v13, 0.0  ;;  %v16908_v57 = vmax.f32 %v12414_v10, 0.0 }
 0x568   : > { %16899 = vst [vmem:[#allocation28_spill] sm:$0xff] %v12744_v24  ;;  %16904 = vst [vmem:[#allocation31_spill] sm:$0xff] %v12755_v16  ;;  %v12761_v46 = vrot.slane %v16905_v52, 7  ;;  %v12766_v37 = vrot.slane %v16906_v14, 7  ;;  %v12779_v52 = vrot.slane %v4322_v49, 7  ;;  %v16909_v48 = vmax.f32 %v12428_v8, 0.0 }
 0x569   : > { %16902 = vst [vmem:[#allocation30_spill] sm:$0xff] %v12750_v35  ;;  %v12772_v7 = vrot.slane %v16907_v32, 7  ;;  %v12777_v22 = vrot.slane %v16908_v57, 7  ;;  %v16910_v18 = vmax.f32 %v12438_v28, 0.0  ;;  %v12790_v32 = vrot.slane %v4326_v30, 7 }
 0x56a   : > { %v12783_v62 = vrot.slane %v16909_v48, 7  ;;  %v16911_v11 = vmax.f32 %v12450_v1, 0.0  ;;  %v16912_v49 = vmax.f32 %v12460_v36, 0.0  ;;  %v12801_v48 = vrot.slane %v4330_v39, 7 }
 0x56b   : > { %v12788_v23 = vrot.slane %v16910_v18, 7  ;;  %v16913_v14 = vmax.f32 %v12472_v2, 0.0  ;;  %v16914_v30 = vmax.f32 %v12482_v34, 0.0  ;;  %v16915_v36 = vmax.f32 %v12504_v55, 0.0 }
 0x56c   : > { %v12794_v13 = vrot.slane %v16911_v11, 7  ;;  %v12799_v10 = vrot.slane %v16912_v49, 7  ;;  %v12812_v11 = vrot.slane %v4334_v56, 7  ;;  %v4402_v1 = vrot.slane %v4338_v53, 7  ;;  %v16920_v53 = vld [vmem:[#allocation70_spill] sm:$0xff] }
 0x56d   : > { %v12805_v8 = vrot.slane %v16913_v14, 7  ;;  %v12810_v28 = vrot.slane %v16914_v30, 7  ;;  %v4401_v49 = vrot.slane %v16915_v36, 7  ;;  %v4404_v39 = vrot.slane %v12704_v51, 7 }
 0x56e   : > { %v16916_v2 = vmax.f32 %v12526_v61, 0.0  ;;  %v4406_v45 = vrot.slane %v4342_v6, 7  ;;  %v16917_v18 = vmax.f32 %v12538_v42, 0.0  ;;  %v4408_v30 = vrot.slane %v12709_v15, 7  ;;  %v16924_v42 = vld [vmem:[#allocation76_spill] sm:$0xff] }
 0x56f   : > { %v16918_v56 = vmax.f32 %v12548_v27, 0.0  ;;  %v4410_v24 = vrot.slane %v4346_v17, 7  ;;  %v16919_v57 = vmax.f32 %v12560_v9, 0.0  ;;  %v4412_v36 = vrot.slane %v12714_v38, 7 }
 0x570   : > { %v4405_v14 = vrot.slane %v16916_v2, 7  ;;  %v4407_v60 = vrot.slane %v16917_v18, 7  ;;  %v16921_v51 = vmax.f32 %v16920_v53, 0.0  ;;  %v4414_v61 = vrot.slane %v4350_v41, 7  ;;  %v16922_v2 = vld [vmem:[#allocation71_spill] sm:$0xff] }
 0x571   : > { %v4409_v34 = vrot.slane %v16918_v56, 7  ;;  %v4411_v55 = vrot.slane %v16919_v57, 7  ;;  %v16923_v6 = vmax.f32 %v16922_v2, 0.0  ;;  %v4416_v18 = vrot.slane %v16924_v42, 7 }
 0x572   : > { %v4413_v43 = vrot.slane %v16921_v51, 7  ;;  %v16926_v15 = vmax.f32 %v16925_v44, 0.0  ;;  %v4418_v27 = vrot.slane %v4354_v63, 7  ;;  %v16927_v17 = vmax.f32 %v12604_v59, 0.0 }
 0x573   : > { %v4415_v35 = vrot.slane %v16923_v6, 7  ;;  %v4420_v57 = vrot.slane %v12724_v40, 7  ;;  %v16928_v38 = vmax.f32 %v16890_v33, 0.0  ;;  %v4422_v53 = vrot.slane %v4358_v29, 7  ;;  %v16933_v33 = vld [vmem:[#allocation35_spill] sm:$0xff] }
 0x574   : > { %v4417_v16 = vrot.slane %v16926_v15, 7  ;;  %v4419_v56 = vrot.slane %v16927_v17, 7  ;;  %v16929_v51 = vmax.f32 %v16892_v25, 0.0  ;;  %v4424_v6 = vrot.slane %v12729_v3, 7 }
 0x575   : > { %v4421_v9 = vrot.slane %v16928_v38, 7  ;;  %v16930_v42 = vmax.f32 %v16893_v31, 0.0  ;;  %v4426_v44 = vrot.slane %v4362_v47, 7  ;;  %v16931_v15 = vmax.f32 %v16895_v58, 0.0 }
 0x576   : > { %v4423_v41 = vrot.slane %v16929_v51, 7  ;;  %v4428_v17 = vrot.slane %v12734_v50, 7  ;;  %v16932_v40 = vmax.f32 %v12658_v0, 0.0 }
 0x577   : > { %v4425_v2 = vrot.slane %v16930_v42, 7  ;;  %v4427_v63 = vrot.slane %v16931_v15, 7  ;;  %v12856_v38 = vsel %vm16505_vm2, %v4421_v9, %v4422_v53  ;;  %v16940_v15 = vld [vmem:[#allocation7_spill] sm:$0xff] }
 0x578   : > { %v4429_v59 = vrot.slane %v16932_v40, 7  ;;  %v12852_v29 = vsel %vm16505_vm2, %v4422_v53, %v4423_v41  ;;  %16935 = vst [vmem:[#allocation78_spill] sm:$0xff] %v12856_v38  ;;  %v12872_v40 = vsel %vm16505_vm2, %v4423_v41, %v4424_v6 }
 0x579   : > { %16934 = vst [vmem:[#allocation35_spill] sm:$0xff] %v12852_v29  ;;  %v12860_v42 = vsel %vm16505_vm2, %v4426_v44, %v4427_v63  ;;  %v12864_v47 = vsel %vm16505_vm2, %v4425_v2, %v4426_v44  ;;  %v12868_v51 = vsel %vm16505_vm2, %v4424_v6, %v4425_v2  ;;  %16939 = vst [vmem:[#allocation82_spill] sm:$0xff] %v12872_v40  ;;  %v4525_v29 = vrot.slane %v12694_v20, 1 }
 0x57a   : > { %16936 = vst [vmem:[#allocation79_spill] sm:$0xff] %v12860_v42  ;;  %16937 = vst [vmem:[#allocation80_spill] sm:$0xff] %v12864_v47  ;;  %v12877_v53 = vsel %vm16505_vm2, %v4429_v59, %v16940_v15  ;;  %v12881_v38 = vsel %vm16505_vm2, %v4428_v17, %v4429_v59  ;;  %v12885_v44 = vsel %vm16505_vm2, %v4427_v63, %v4428_v17  ;;  %v16945_v47 = vld [vmem:[#allocation15_spill] sm:$0xff]  ;;  %v16950_v63 = vld [vmem:[#allocation26_spill] sm:$0xff] }
 0x57b   : > { %16938 = vst [vmem:[#allocation81_spill] sm:$0xff] %v12868_v51  ;;  %16941 = vst [vmem:[#allocation7_spill] sm:$0xff] %v12877_v53  ;;  %v12889_v2 = vsel %vm16505_vm2, %v4420_v57, %v4421_v9  ;;  %v16946_v41 = vmax.f32 %v16945_v47, 0.0  ;;  %v12895_v40 = vsel %vm16505_vm2, %v4418_v27, %v4419_v56  ;;  %v12899_v15 = vsel %vm16505_vm2, %v4417_v16, %v4418_v27  ;;  %v17017_v42 = vld [vmem:[#allocation24_spill] sm:$0xff]  ;;  %v17033_v51 = vld [vmem:[#allocation77_spill] sm:$0xff] }
 0x57c   : > { %16942 = vst [vmem:[#allocation83_spill] sm:$0xff] %v12881_v38  ;;  %16943 = vst [vmem:[#allocation84_spill] sm:$0xff] %v12885_v44  ;;  %v12903_v59 = vsel %vm16505_vm2, %v4416_v18, %v4417_v16  ;;  %v16951_v17 = vmax.f32 %v16950_v63, 0.0  ;;  %v12909_v9 = vsel %vm16505_vm2, %v4414_v61, %v4415_v35  ;;  %v12917_v44 = vsel %vm16505_vm2, %v4412_v36, %v4413_v43  ;;  %v17031_v38 = vld [vmem:[#allocation73_spill] sm:$0xff] }
 0x57d   : > { %16944 = vst [vmem:[#allocation85_spill] sm:$0xff] %v12889_v2  ;;  %v4403_v6 = vrot.slane %v16946_v41, 7  ;;  %16947 = vst [vmem:[#allocation15_spill] sm:$0xff] %v12895_v40  ;;  %v12913_v41 = vsel %vm16505_vm2, %v4413_v43, %v4414_v61  ;;  %v12921_v27 = vsel %vm16505_vm2, %v4419_v56, %v4420_v57  ;;  %v12925_v16 = vsel %vm16505_vm2, %v4410_v24, %v4411_v55 }
 0x57e   : > { %16948 = vst [vmem:[#allocation86_spill] sm:$0xff] %v12899_v15  ;;  %16949 = vst [vmem:[#allocation87_spill] sm:$0xff] %v12903_v59  ;;  %v4399_v53 = vrot.slane %v16951_v17, 7  ;;  %v12929_v17 = vsel %vm16505_vm2, %v4409_v34, %v4410_v24  ;;  %v12933_v61 = vsel %vm16505_vm2, %v4408_v30, %v4409_v34  ;;  %v12937_v43 = vsel %vm16505_vm2, %v4415_v35, %v4416_v18 }
 0x57f   : > { %16952 = vst [vmem:[#allocation26_spill] sm:$0xff] %v12909_v9  ;;  %16953 = vst [vmem:[#allocation88_spill] sm:$0xff] %v12913_v41  ;;  %v12941_v56 = vsel %vm16505_vm2, %v4406_v45, %v4407_v60  ;;  %v12945_v57 = vsel %vm16505_vm2, %v4405_v14, %v4406_v45  ;;  %v12949_v24 = vsel %vm16505_vm2, %v4404_v39, %v4405_v14  ;;  %v16990_v41 = vld [vmem:[#allocation31_spill] sm:$0xff]  ;;  %v4529_v40 = vrot.slane %v12699_v26, 1  ;;  %v17021_v9 = vld [vmem:[#allocation34_spill] sm:$0xff] }
 0x580   : > { %16954 = vst [vmem:[#allocation89_spill] sm:$0xff] %v12921_v27  ;;  %16955 = vst [vmem:[#allocation90_spill] sm:$0xff] %v12925_v16  ;;  %v12953_v34 = vsel %vm16505_vm2, %v4411_v55, %v4412_v36  ;;  %v12957_v35 = vsel %vm16505_vm2, %v4402_v1, %v4403_v6  ;;  %v12961_v18 = vsel %vm16505_vm2, %v4401_v49, %v4402_v1  ;;  %v16963_v27 = vrot.slane %v12699_v26, 7 }
 0x581   : > { %16956 = vst [vmem:[#allocation91_spill] sm:$0xff] %v12929_v17  ;;  %16957 = vst [vmem:[#allocation92_spill] sm:$0xff] %v12937_v43  ;;  %v12971_v14 = vsel %vm16505_vm2, %v4407_v60, %v4408_v30  ;;  %v12976_v55 = vsel %vm16505_vm2, %v12812_v11, %v4399_v53  ;;  %v12982_v1 = vsel %vm16505_vm2, %v12810_v28, %v12812_v11  ;;  %v16967_v36 = vrot.slane %v12694_v20, 7 }
 0x582   : > { %16958 = vst [vmem:[#allocation93_spill] sm:$0xff] %v12941_v56  ;;  %16959 = vst [vmem:[#allocation94_spill] sm:$0xff] %v12945_v57  ;;  %v12967_v45 = vsel %vm16505_vm2, %v16963_v27, %v4401_v49  ;;  %v12993_v60 = vsel %vm16505_vm2, %v4403_v6, %v4404_v39  ;;  %v12999_v30 = vsel %vm16505_vm2, %v12801_v48, %v12805_v8  ;;  %v16972_v39 = vrot.slane %v12699_v26, 7  ;;  %v16997_v57 = vld [vmem:[#allocation29_spill] sm:$0xff]  ;;  %v17022_v56 = vld [vmem:[#allocation67_spill] sm:$0xff] }
 0x583   : > { %16960 = vst [vmem:[#allocation95_spill] sm:$0xff] %v12953_v34  ;;  %16961 = vst [vmem:[#allocation96_spill] sm:$0xff] %v12957_v35  ;;  %v12989_v49 = vsel %vm16505_vm2, %v16967_v36, %v12810_v28  ;;  %v13005_v11 = vsel %vm16505_vm2, %v12799_v10, %v12801_v48  ;;  %v16971_v28 = vrot.slane %v12689_v12, 7  ;;  %v13024_v36 = vsel %vm16505_vm2, %v12790_v32, %v12794_v13  ;;  %v17024_v35 = vld [vmem:[#allocation13_spill] sm:$0xff] }
 0x584   : > { %16962 = vst [vmem:[#allocation97_spill] sm:$0xff] %v12961_v18  ;;  %16964 = vst [vmem:[#allocation98_spill] sm:$0xff] %v12971_v14  ;;  %v13018_v6 = vsel %vm16505_vm2, %v4399_v53, %v16972_v39  ;;  %v13030_v48 = vsel %vm16505_vm2, %v12788_v23, %v12790_v32  ;;  %v16977_v53 = vrot.slane %v12694_v20, 7  ;;  %v13050_v32 = vsel %vm16505_vm2, %v12779_v52, %v12783_v62  ;;  %v16996_v14 = vld [vmem:[#allocation30_spill] sm:$0xff] }
 0x585   : > { %16965 = vst [vmem:[#allocation99_spill] sm:$0xff] %v12976_v55  ;;  %16966 = vst [vmem:[#allocation100_spill] sm:$0xff] %v12982_v1  ;;  %v13012_v27 = vsel %vm16505_vm2, %v16971_v28, %v12799_v10  ;;  %v16976_v10 = vrot.slane %v12684_v19, 7  ;;  %v13056_v15 = vsel %vm16505_vm2, %v12777_v22, %v12779_v52  ;;  %v13076_v52 = vsel %vm16505_vm2, %v12768_v54, %v12772_v7 }
 0x586   : > { %16968 = vst [vmem:[#allocation101_spill] sm:$0xff] %v12993_v60  ;;  %16969 = vst [vmem:[#allocation102_spill] sm:$0xff] %v12999_v30  ;;  %v13044_v39 = vsel %vm16505_vm2, %v12805_v8, %v16977_v53  ;;  %v16982_v8 = vrot.slane %v12689_v12, 7  ;;  %v13082_v43 = vsel %vm16505_vm2, %v12766_v37, %v12768_v54  ;;  %v13102_v54 = vsel %vm16505_vm2, %v12757_v4, %v12761_v46  ;;  %v16999_v60 = vld [vmem:[#allocation28_spill] sm:$0xff]  ;;  %v17025_v30 = vld [vmem:[#allocation69_spill] sm:$0xff] }
 0x587   : > { %16970 = vst [vmem:[#allocation103_spill] sm:$0xff] %v13005_v11  ;;  %16973 = vst [vmem:[#allocation104_spill] sm:$0xff] %v13018_v6  ;;  %v13037_v28 = vsel %vm16505_vm2, %v16976_v10, %v12788_v23  ;;  %v16981_v23 = vrot.slane %v12679_v5, 7  ;;  %v13108_v34 = vsel %vm16505_vm2, %v16990_v41, %v12757_v4  ;;  %v13128_v4 = vsel %vm16505_vm2, %v16997_v57, %v16996_v14 }
 0x588   : > { %16974 = vst [vmem:[#allocation105_spill] sm:$0xff] %v13024_v36  ;;  %16975 = vst [vmem:[#allocation106_spill] sm:$0xff] %v13030_v48  ;;  %v13070_v53 = vsel %vm16505_vm2, %v12794_v13, %v16982_v8  ;;  %v16987_v13 = vrot.slane %v12684_v19, 7  ;;  %v13134_v18 = vsel %vm16505_vm2, %v16999_v60, %v16997_v57  ;;  %v4533_v16 = vrot.slane %v17021_v9, 1  ;;  %v17027_v36 = vld [vmem:[#allocation75_spill] sm:$0xff] }
 0x589   : > { %16978 = vst [vmem:[#allocation107_spill] sm:$0xff] %v13044_v39  ;;  %16979 = vst [vmem:[#allocation108_spill] sm:$0xff] %v13050_v32  ;;  %v13063_v10 = vsel %vm16505_vm2, %v16981_v23, %v12777_v22  ;;  %v16986_v22 = vrot.slane %v12674_v21, 7  ;;  %v17007_v39 = vld [vmem:[#allocation12_spill] sm:$0xff]  ;;  %v4537_v55 = vrot.slane %v17024_v35, 1  ;;  %v4541_v32 = vrot.slane %v17027_v36, 1 }
 0x58a   : > { %16980 = vst [vmem:[#allocation109_spill] sm:$0xff] %v13056_v15  ;;  %16983 = vst [vmem:[#allocation110_spill] sm:$0xff] %v13070_v53  ;;  %v13096_v8 = vsel %vm16505_vm2, %v12783_v62, %v16987_v13  ;;  %v16994_v62 = vrot.slane %v12679_v5, 7  ;;  %v17008_v11 = vmax.f32 %v17007_v39, 0.0  ;;  %v4509_v15 = vrot.slane %v12674_v21, 1 }
 0x58b   : > { %16984 = vst [vmem:[#allocation111_spill] sm:$0xff] %v13076_v52  ;;  %16985 = vst [vmem:[#allocation112_spill] sm:$0xff] %v13082_v43  ;;  %v13089_v23 = vsel %vm16505_vm2, %v16986_v22, %v12766_v37  ;;  %v16992_v37 = vld [vmem:[#allocation33_spill] sm:$0xff]  ;;  %v4513_v43 = vrot.slane %v12679_v5, 1  ;;  %v17028_v52 = vld [vmem:[#allocation71_spill] sm:$0xff]  ;;  %v4549_v2 = vrot.slane %v17033_v51, 1 }
 0x58c   : > { %16988 = vst [vmem:[#allocation113_spill] sm:$0xff] %v13096_v8  ;;  %16989 = vst [vmem:[#allocation114_spill] sm:$0xff] %v13102_v54  ;;  %v16993_v22 = vrot.slane %v16992_v37, 7  ;;  %v13122_v13 = vsel %vm16505_vm2, %v12772_v7, %v16994_v62  ;;  %v17003_v7 = vrot.slane %v12674_v21, 7  ;;  %v17005_v1 = vrot.slane %v16992_v37, 7  ;;  %v17030_v54 = vld [vmem:[#allocation76_spill] sm:$0xff] }
 0x58d   : > { %16991 = vst [vmem:[#allocation31_spill] sm:$0xff] %v13108_v34  ;;  %16995 = vst [vmem:[#allocation33_spill] sm:$0xff] %v13122_v13  ;;  %v4504_v53 = vrot.slane %v17008_v11, 1  ;;  %v17011_v13 = vld [vmem:[#allocation16_spill] sm:$0xff]  ;;  %v4553_v59 = vrot.slane %v12729_v3, 1 }
 0x58e   : > { %v13115_v17 = vsel %vm16505_vm2, %v16993_v22, %v16990_v41  ;;  %16998 = vst [vmem:[#allocation30_spill] sm:$0xff] %v13128_v4  ;;  %17000 = vst [vmem:[#allocation29_spill] sm:$0xff] %v13134_v18  ;;  %v17001_v41 = vld [vmem:[#allocation32_spill] sm:$0xff]  ;;  %v13148_v62 = vsel %vm16505_vm2, %v12761_v46, %v17003_v7  ;;  %v13155_v57 = vsel %vm16505_vm2, %v16996_v14, %v17005_v1  ;;  %v17012_v46 = vmax.f32 %v17011_v13, 0.0  ;;  %v17015_v1 = vld [vmem:[#allocation22_spill] sm:$0xff] }
 0x58f   : > { %v17002_v22 = vrot.slane %v17001_v41, 7  ;;  %17004 = vst [vmem:[#allocation28_spill] sm:$0xff] %v13148_v62  ;;  %17006 = vst [vmem:[#allocation32_spill] sm:$0xff] %v13155_v57  ;;  %v17013_v62 = vld [vmem:[#allocation20_spill] sm:$0xff]  ;;  %v4517_v14 = vrot.slane %v12684_v19, 1  ;;  %v17016_v39 = vmax.f32 %v17015_v1, 0.0 }
 0x590   : > { %v4512_v7 = vrot.slane %v17012_v46, 1  ;;  %v17014_v34 = vmax.f32 %v17013_v62, 0.0  ;;  %v4521_v57 = vrot.slane %v12689_v12, 1  ;;  %v17019_v13 = vmax.f32 %v16950_v63, 0.0 }
 0x591   : > { %v13141_v6 = vsel %vm16505_vm2, %v17002_v22, %v16999_v60  ;;  %v4505_v60 = vrot.slane %v16992_v37, 1  ;;  %v17009_v22 = vld [vmem:[#allocation9_spill] sm:$0xff]  ;;  %v4520_v11 = vrot.slane %v17016_v39, 1  ;;  %v17020_v62 = vmax.f32 %v16945_v47, 0.0 }
 0x592   : > { %v17010_v48 = vmax.f32 %v17009_v22, 0.0  ;;  %v4516_v18 = vrot.slane %v17014_v34, 1  ;;  %v17018_v22 = vmax.f32 %v17017_v42, 0.0  ;;  %v4528_v46 = vrot.slane %v17019_v13, 1 }
 0x593   : > { %v4532_v34 = vrot.slane %v17020_v62, 1  ;;  %v17023_v1 = vmax.f32 %v17022_v56, 0.0  ;;  %v17026_v42 = vmax.f32 %v17025_v30, 0.0  ;;  %v17029_v63 = vmax.f32 %v17028_v52, 0.0 }
 0x594   : > { %v4508_v8 = vrot.slane %v17010_v48, 1  ;;  %v4524_v48 = vrot.slane %v17018_v22, 1  ;;  %v4545_v4 = vrot.slane %v17030_v54, 1  ;;  %v17032_v47 = vmax.f32 %v17031_v38, 0.0 }
 0x595   : > { %v4536_v39 = vrot.slane %v17023_v1, 1  ;;  %v4540_v22 = vrot.slane %v17026_v42, 1  ;;  %v4544_v13 = vrot.slane %v17029_v63, 1  ;;  %v17034_v56 = vmax.f32 %v16892_v25, 0.0 }
 0x596   : > { %v4548_v62 = vrot.slane %v17032_v47, 1  ;;  %v17035_v30 = vmax.f32 %v16895_v58, 0.0  ;;  %v4557_v52 = vrot.slane %v12734_v50, 1 }
 0x597   : > { %v4552_v1 = vrot.slane %v17034_v56, 1  ;;  %v13202_v63 = vsel %vm16503_vm3, %v4544_v13, %v4545_v4  ;;  %v13206_v38 = vsel %vm16503_vm3, %v4540_v22, %v4541_v32  ;;  %v13218_v58 = vsel %vm16503_vm3, %v4536_v39, %v4537_v55  ;;  %v17064_v13 = vld [vmem:[#allocation14_spill] sm:$0xff] }
 0x598   : > { %v4556_v42 = vrot.slane %v17035_v30, 1  ;;  %17036 = vst [vmem:[#allocation12_spill] sm:$0xff] %v13202_v63  ;;  %17037 = vst [vmem:[#allocation9_spill] sm:$0xff] %v13206_v38  ;;  %v13214_v47 = vsel %vm16503_vm3, %v4548_v62, %v4549_v2  ;;  %v13222_v4 = vsel %vm16503_vm3, %v4532_v34, %v4533_v16  ;;  %v13234_v2 = vsel %vm16503_vm3, %v4524_v48, %v4525_v29  ;;  %v17050_v48 = vld [vmem:[#allocation38_spill] sm:$0xff]  ;;  %v17105_v63 = vld [vmem:[#allocation23_spill] sm:$0xff] }
 0x599   : > { %v13210_v25 = vsel %vm16503_vm3, %v4552_v1, %v4553_v59  ;;  %17039 = vst [vmem:[#allocation20_spill] sm:$0xff] %v13214_v47  ;;  %17040 = vst [vmem:[#allocation22_spill] sm:$0xff] %v13218_v58  ;;  %v13230_v59 = vsel %vm16503_vm3, %v4528_v46, %v4529_v40  ;;  %v13238_v55 = vsel %vm16503_vm3, %v4520_v11, %v4521_v57  ;;  %v17051_v46 = vand.u32 31, %v17050_v48  ;;  %v17066_v1 = vld [vmem:[#allocation36_spill] sm:$0xff]  ;;  %v17230_v11 = vld [vmem:[#allocation87_spill] sm:$0xff] }
 0x59a   : > { %17038 = vst [vmem:[#allocation16_spill] sm:$0xff] %v13210_v25  ;;  %17041 = vst [vmem:[#allocation24_spill] sm:$0xff] %v13222_v4  ;;  %v13226_v32 = vsel %vm16503_vm3, %v4556_v42, %v4557_v52  ;;  %v13242_v16 = vsel %vm16503_vm3, %v4516_v18, %v4517_v14  ;;  %v13246_v34 = vsel %vm16503_vm3, %v4512_v7, %v4513_v43  ;;  %v17054_v18 = vld [vmem:[#allocation40_spill] sm:$0xff]  ;;  %v17058_v43 = vld [vmem:[#allocation42_spill] sm:$0xff]  ;;  %v17065_v62 = vmax.f32 %v17064_v13, 0.0 }
 0x59b   : > { %17042 = vst [vmem:[#allocation34_spill] sm:$0xff] %v13226_v32  ;;  %17043 = vst [vmem:[#allocation67_spill] sm:$0xff] %v13230_v59  ;;  %v13250_v40 = vsel %vm16503_vm3, %v4508_v8, %v4509_v15  ;;  %v13254_v29 = vsel %vm16503_vm3, %v4504_v53, %v4505_v60  ;;  %vm13258_vm6 = vcmp.eq.s32.totalorder %v17051_v46, 17  ;;  %v17055_v14 = vand.u32 31, %v17054_v18  ;;  %v17062_v8 = vld [vmem:[#allocation6_spill] sm:$0xff]  ;;  %v17070_v52 = vld [vmem:[#allocation44_spill] sm:$0xff] }
 0x59c   : > { %17044 = vst [vmem:[#allocation13_spill] sm:$0xff] %v13234_v2  ;;  %17045 = vst [vmem:[#allocation69_spill] sm:$0xff] %v13238_v55  ;;  %v17059_v7 = vand.u32 31, %v17058_v43  ;;  %v17063_v60 = vmax.f32 %v17062_v8, 0.0  ;;  %v13282_v56 = vrot.slane %v17065_v62, 5  ;;  %v17067_v30 = vand.u32 31, %v17066_v1 }
 0x59d   : > { %17046 = vst [vmem:[#allocation75_spill] sm:$0xff] %v13242_v16  ;;  %17047 = vst [vmem:[#allocation71_spill] sm:$0xff] %v13246_v34  ;;  %vm13264_vm7 = vcmp.eq.s32.totalorder %v17055_v14, 17  ;;  %v17071_v48 = vand.u32 31, %v17070_v52  ;;  %v17074_v18 = vld [vmem:[#allocation46_spill] sm:$0xff]  ;;  %v4638_v13 = vrot.slane %v12674_v21, 5 }
 0x59e   : > { %17048 = vst [vmem:[#allocation76_spill] sm:$0xff] %v13250_v40  ;;  %17049 = vst [vmem:[#allocation73_spill] sm:$0xff] %v13254_v29  ;;  %vm13270_vm8 = vcmp.eq.s32.totalorder %v17059_v7, 17  ;;  %v13277_v39 = vrot.slane %v17063_v60, 5  ;;  %vm13286_vm9 = vcmp.eq.s32.totalorder %v17067_v30, 17  ;;  %v17075_v14 = vand.u32 31, %v17074_v18 }
 0x59f   : > { %vm13292_vm10 = vcmp.eq.s32.totalorder %v17071_v48, 17  ;;  %v17078_v7 = vld [vmem:[#allocation48_spill] sm:$0xff]  ;;  %v17082_v62 = vld [vmem:[#allocation11_spill] sm:$0xff]  ;;  %v4642_v52 = vrot.slane %v12679_v5, 5  ;;  %v17098_v5 = vld [vmem:[#allocation57_spill] sm:$0xff]  ;;  %v4650_v47 = vrot.slane %v12689_v12, 5 }
 0x5a0   : > { %vm13298_vm11 = vcmp.eq.s32.totalorder %v17075_v14, 17  ;;  %v17079_v8 = vand.u32 31, %v17078_v7  ;;  %v17083_v1 = vmax.f32 %v17082_v62, 0.0  ;;  %v17084_v48 = vld [vmem:[#allocation19_spill] sm:$0xff]  ;;  %v17090_v7 = vld [vmem:[#allocation53_spill] sm:$0xff]  ;;  %v17106_v38 = vmax.f32 %v17105_v63, 0.0 }
 0x5a1   : > { %v17085_v53 = vmax.f32 %v17084_v48, 0.0  ;;  %v17086_v14 = vld [vmem:[#allocation51_spill] sm:$0xff]  ;;  %v17100_v48 = vmov 0  ;;  %v17109_v4 = vmov 0  ;;  %v17114_v59 = vmov 0  ;;  %v17122_v12 = vld [vmem:[#allocation66_spill] sm:$0xff] }
 0x5a2   : > { %vm13304_vm12 = vcmp.eq.s32.totalorder %v17079_v8, 17  ;;  %v4639_v30 = vrot.slane %v17083_v1, 5  ;;  %v17087_v22 = vand.u32 31, %v17086_v14  ;;  %v17091_v8 = vand.u32 31, %v17090_v7  ;;  %v17094_v21 = vld [vmem:[#allocation55_spill] sm:$0xff]  ;;  %v17103_v14 = vld [vmem:[#allocation21_spill] sm:$0xff] }
 0x5a3   : > { %v4643_v18 = vrot.slane %v17085_v53, 5  ;;  %v17095_v62 = vand.u32 31, %v17094_v21  ;;  %v17096_v1 = vmov 0  ;;  %v17099_v53 = vand.u32 31, %v17098_v5  ;;  %v17112_v5 = vld [vmem:[#allocation61_spill] sm:$0xff]  ;;  %v17129_v55 = vld [vmem:[#allocation10_spill] sm:$0xff] }
 0x5a4   : > { %vm13316_vm13 = vcmp.eq.s32.totalorder %v17087_v22, 17  ;;  %vm13322_vm14 = vcmp.eq.s32.totalorder %v17091_v8, 17  ;;  %v4646_v22 = vrot.slane %v12684_v19, 5  ;;  %v17104_v7 = vmax.f32 %v17103_v14, 0.0  ;;  %v17117_v19 = vld [vmem:[#allocation63_spill] sm:$0xff]  ;;  %v17236_v25 = vld [vmem:[#allocation81_spill] sm:$0xff] }
 0x5a5   : > { %vm13328_vm15 = vcmp.eq.s32.totalorder %v17095_v62, 17  ;;  %vm13334_vm4 = vcmp.eq.s32.totalorder %v17099_v53, 17  ;;  %v4651_v21 = vrot.slane %v17106_v38, 5  ;;  %v17107_v62 = vld [vmem:[#allocation59_spill] sm:$0xff]  ;;  %v17113_v53 = vand.u32 31, %v17112_v5  ;;  %v17242_v60 = vld [vmem:[#allocation30_spill] sm:$0xff] }
 0x5a6   : > { %v17097_v1 = vsel %vm13328_vm15, 4294967295, %v17096_v1  ;;  %v17101_v48 = vsel %vm13334_vm4, 4294967295, %v17100_v48  ;;  %v4647_v8 = vrot.slane %v17104_v7, 5  ;;  %v17108_v58 = vand.u32 31, %v17107_v62  ;;  %v17127_v62 = vld [vmem:[#allocation25_spill] sm:$0xff]  ;;  %v17239_v46 = vld [vmem:[#allocation83_spill] sm:$0xff] }
 0x5a7   : > { %17102 = vst [vmem:[#allocation77_spill] sm:$0xff] %v17101_v48  ;;  %vm13352_vm3 = vcmp.eq.s32.totalorder %v17113_v53, 17  ;;  %v17118_v14 = vand.u32 31, %v17117_v19  ;;  %v17119_v7 = vmov 0  ;;  %v17123_v63 = vand.u32 31, %v17122_v12  ;;  %v17136_v12 = vld [vmem:[#allocation39_spill] sm:$0xff] }
 0x5a8   : > { %vm13346_vm0 = vcmp.eq.s32.totalorder %v17108_v58, 17  ;;  %v17115_v59 = vsel %vm13352_vm3, 4294967295, %v17114_v59  ;;  %v17124_v38 = vmov 0  ;;  %v4654_v58 = vrot.slane %v12694_v20, 5  ;;  %v17141_v20 = vld [vmem:[#allocation41_spill] sm:$0xff] }
 0x5a9   : > { %v17110_v4 = vsel %vm13346_vm0, 4294967295, %v17109_v4  ;;  %17116 = vst [vmem:[#allocation40_spill] sm:$0xff] %v17115_v59  ;;  %vm13358_vm1 = vcmp.eq.s32.totalorder %v17118_v14, 17  ;;  %vm13364_vm2 = vcmp.eq.s32.totalorder %v17123_v63, 17  ;;  %v17128_v5 = vmax.f32 %v17127_v62, 0.0  ;;  %v17131_v14 = vld [vmem:[#allocation37_spill] sm:$0xff] }
 0x5aa   : > { %17111 = vst [vmem:[#allocation38_spill] sm:$0xff] %v17110_v4  ;;  %v17120_v7 = vsel %vm13358_vm1, 4294967295, %v17119_v7  ;;  %v17125_v38 = vsel %vm13364_vm2, 4294967295, %v17124_v38  ;;  %v4658_v2 = vrot.slane %v12699_v26, 5  ;;  %v17130_v16 = vmax.f32 %v17129_v55, 0.0  ;;  %v17146_v26 = vld [vmem:[#allocation43_spill] sm:$0xff] }
 0x5ab   : > { %17121 = vst [vmem:[#allocation42_spill] sm:$0xff] %v17120_v7  ;;  %17126 = vst [vmem:[#allocation6_spill] sm:$0xff] %v17125_v38  ;;  %v4655_v53 = vrot.slane %v17128_v5, 5  ;;  %v17132_v34 = vand.u32 31, %v17131_v14  ;;  %v17133_v40 = vmov 0  ;;  %v17137_v63 = vand.u32 31, %v17136_v12 }
 0x5ac   : > { %v4659_v19 = vrot.slane %v17130_v16, 5  ;;  %v17138_v29 = vmov 0  ;;  %v17142_v62 = vand.u32 31, %v17141_v20  ;;  %v17143_v5 = vmov 0  ;;  %v17151_v14 = vld [vmem:[#allocation18_spill] sm:$0xff] }
 0x5ad   : > { %vm13376_vm5 = vcmp.eq.s32.totalorder %v17132_v34, 0  ;;  %vm13382_vm1 = vcmp.eq.s32.totalorder %v17137_v63, 0  ;;  %v17147_v55 = vand.u32 31, %v17146_v26  ;;  %v17148_v16 = vmov 0  ;;  %v17160_v26 = vld [vmem:[#allocation47_spill] sm:$0xff] }
 0x5ae   : > { %v17134_v40 = vsel %vm13376_vm5, 4294967295, %v17133_v40  ;;  %v17139_v29 = vsel %vm13382_vm1, 4294967295, %v17138_v29  ;;  %vm13388_vm2 = vcmp.eq.s32.totalorder %v17142_v62, 0  ;;  %v4662_v34 = vrot.slane %v17021_v9, 5  ;;  %v17155_v62 = vld [vmem:[#allocation45_spill] sm:$0xff]  ;;  %v17165_v9 = vld [vmem:[#allocation50_spill] sm:$0xff] }
 0x5af   : > { %17135 = vst [vmem:[#allocation14_spill] sm:$0xff] %v17134_v40  ;;  %17140 = vst [vmem:[#allocation36_spill] sm:$0xff] %v17139_v29  ;;  %v17144_v5 = vsel %vm13388_vm2, 4294967295, %v17143_v5  ;;  %vm13394_vm3 = vcmp.eq.s32.totalorder %v17147_v55, 0  ;;  %v17152_v12 = vmax.f32 %v17151_v14, 0.0  ;;  %v4666_v40 = vrot.slane %v17024_v35, 5 }
 0x5b0   : > { %17145 = vst [vmem:[#allocation44_spill] sm:$0xff] %v17144_v5  ;;  %v17149_v16 = vsel %vm13394_vm3, 4294967295, %v17148_v16  ;;  %v17153_v29 = vld [vmem:[#allocation68_spill] sm:$0xff]  ;;  %v17156_v7 = vand.u32 31, %v17155_v62  ;;  %v17157_v5 = vmov 0  ;;  %v17161_v55 = vand.u32 31, %v17160_v26 }
 0x5b1   : > { %17150 = vst [vmem:[#allocation46_spill] sm:$0xff] %v17149_v16  ;;  %v4663_v63 = vrot.slane %v17152_v12, 5  ;;  %v17154_v38 = vmax.f32 %v17153_v29, 0.0  ;;  %v17162_v16 = vmov 0  ;;  %v17166_v14 = vand.u32 31, %v17165_v9  ;;  %v17170_v35 = vld [vmem:[#allocation52_spill] sm:$0xff] }
 0x5b2   : > { %vm13406_vm1 = vcmp.eq.s32.totalorder %v17156_v7, 0  ;;  %vm13412_vm2 = vcmp.eq.s32.totalorder %v17161_v55, 0  ;;  %v17167_v12 = vmov 0  ;;  %v17171_v29 = vand.u32 31, %v17170_v35  ;;  %v17175_v62 = vld [vmem:[#allocation70_spill] sm:$0xff]  ;;  %v17184_v35 = vld [vmem:[#allocation56_spill] sm:$0xff] }
 0x5b3   : > { %v4667_v20 = vrot.slane %v17154_v38, 5  ;;  %v17158_v5 = vsel %vm13406_vm1, 4294967295, %v17157_v5  ;;  %v17163_v16 = vsel %vm13412_vm2, 4294967295, %v17162_v16  ;;  %vm13418_vm3 = vcmp.eq.s32.totalorder %v17166_v14, 0  ;;  %v17179_v14 = vld [vmem:[#allocation54_spill] sm:$0xff]  ;;  %v17234_v15 = vld [vmem:[#allocation40_spill] sm:$0xff] }
 0x5b4   : > { %17159 = vst [vmem:[#allocation48_spill] sm:$0xff] %v17158_v5  ;;  %17164 = vst [vmem:[#allocation11_spill] sm:$0xff] %v17163_v16  ;;  %v17168_v12 = vsel %vm13418_vm3, 4294967295, %v17167_v12  ;;  %vm13424_vm5 = vcmp.eq.s32.totalorder %v17171_v29, 0  ;;  %v17172_v38 = vmov 0  ;;  %v4670_v7 = vrot.slane %v17027_v36, 5 }
 0x5b5   : > { %17169 = vst [vmem:[#allocation19_spill] sm:$0xff] %v17168_v12  ;;  %v17173_v38 = vsel %vm13424_vm5, 4294967295, %v17172_v38  ;;  %v17176_v26 = vmax.f32 %v17175_v62, 0.0  ;;  %v4674_v5 = vrot.slane %v17030_v54, 5  ;;  %v17177_v16 = vld [vmem:[#allocation72_spill] sm:$0xff]  ;;  %v17180_v4 = vand.u32 31, %v17179_v14 }
 0x5b6   : > { %17174 = vst [vmem:[#allocation51_spill] sm:$0xff] %v17173_v38  ;;  %v17178_v59 = vmax.f32 %v17177_v16, 0.0  ;;  %v17181_v12 = vmov 0  ;;  %v17185_v29 = vand.u32 31, %v17184_v35  ;;  %v17186_v38 = vmov 0  ;;  %v17189_v36 = vld [vmem:[#allocation58_spill] sm:$0xff] }
 0x5b7   : > { %v4671_v55 = vrot.slane %v17176_v26, 5  ;;  %vm13436_vm2 = vcmp.eq.s32.totalorder %v17180_v4, 0  ;;  %v17190_v62 = vand.u32 31, %v17189_v36  ;;  %v17191_v26 = vmov 0  ;;  %v17194_v54 = vld [vmem:[#allocation60_spill] sm:$0xff]  ;;  %v17199_v14 = vld [vmem:[#allocation74_spill] sm:$0xff] }
 0x5b8   : > { %v4675_v9 = vrot.slane %v17178_v59, 5  ;;  %v17182_v12 = vsel %vm13436_vm2, 4294967295, %v17181_v12  ;;  %vm13442_vm3 = vcmp.eq.s32.totalorder %v17185_v29, 0  ;;  %v17195_v59 = vand.u32 31, %v17194_v54  ;;  %v17206_v54 = vld [vmem:[#allocation64_spill] sm:$0xff]  ;;  %v17237_v42 = vld [vmem:[#allocation42_spill] sm:$0xff] }
 0x5b9   : > { %17183 = vst [vmem:[#allocation53_spill] sm:$0xff] %v17182_v12  ;;  %v17187_v38 = vsel %vm13442_vm3, 4294967295, %v17186_v38  ;;  %vm13448_vm5 = vcmp.eq.s32.totalorder %v17190_v62, 0  ;;  %v17196_v16 = vmov 0  ;;  %v4678_v4 = vrot.slane %v17033_v51, 5  ;;  %v17202_v62 = vld [vmem:[#allocation62_spill] sm:$0xff] }
 0x5ba   : > { %17188 = vst [vmem:[#allocation55_spill] sm:$0xff] %v17187_v38  ;;  %v17192_v26 = vsel %vm13448_vm5, 4294967295, %v17191_v26  ;;  %vm13454_vm1 = vcmp.eq.s32.totalorder %v17195_v59, 0  ;;  %v17200_v35 = vmax.f32 %v17199_v14, 0.0  ;;  %v4682_v12 = vrot.slane %v12729_v3, 5  ;;  %v17240_v43 = vld [vmem:[#allocation6_spill] sm:$0xff] }
 0x5bb   : > { %17193 = vst [vmem:[#allocation57_spill] sm:$0xff] %v17192_v26  ;;  %v17197_v16 = vsel %vm13454_vm1, 4294967295, %v17196_v16  ;;  %v17201_v38 = vmax.f32 %v16893_v31, 0.0  ;;  %v17203_v48 = vand.u32 31, %v17202_v62  ;;  %v17204_v26 = vmov 0  ;;  %v17255_v62 = vld [vmem:[#allocation75_spill] sm:$0xff] }
 0x5bc   : > { %17198 = vst [vmem:[#allocation21_spill] sm:$0xff] %v17197_v16  ;;  %v4679_v29 = vrot.slane %v17200_v35, 5  ;;  %v17207_v59 = vand.u32 31, %v17206_v54  ;;  %v17208_v16 = vmov 0  ;;  %v4686_v51 = vrot.slane %v12734_v50, 5  ;;  %v17256_v54 = vld [vmem:[#allocation46_spill] sm:$0xff] }
 0x5bd   : > { %v4683_v36 = vrot.slane %v17201_v38, 5  ;;  %vm13466_vm3 = vcmp.eq.s32.totalorder %v17203_v48, 0  ;;  %v17210_v14 = vmax.f32 %v12658_v0, 0.0  ;;  %vm17211_vm1 = vcmp.lt.s32.totalorder %v16933_v33, 3 }
 0x5be   : > { %v17205_v26 = vsel %vm13466_vm3, 4294967295, %v17204_v26  ;;  %vm13472_vm5 = vcmp.eq.s32.totalorder %v17207_v59, 0  ;;  %v13481_v31 = vsel %vm17211_vm1, %v4674_v5, %v4675_v9  ;;  %vm17212_vm2 = vmmov %vm17211_vm1  ;;  %v17251_v9 = vld [vmem:[#allocation71_spill] sm:$0xff] }
 0x5bf   : > { %v17209_v16 = vsel %vm13472_vm5, 4294967295, %v17208_v16  ;;  %v4687_v3 = vrot.slane %v17210_v14, 5  ;;  %v13485_v48 = vsel %vm17212_vm2, %v4670_v7, %v4671_v55  ;;  %vm17213_vm3 = vmmov %vm17211_vm1  ;;  %v17259_v14 = vld [vmem:[#allocation69_spill] sm:$0xff] }
 0x5c0   : > { %v13489_v38 = vsel %vm17213_vm3, %v4682_v12, %v4683_v36  ;;  %vm17214_vm0 = vmmov %vm17211_vm1  ;;  %v17254_v36 = vld [vmem:[#allocation108_spill] sm:$0xff] }
 0x5c1   : > { %v13493_v35 = vsel %vm17214_vm0, %v4678_v4, %v4679_v29  ;;  %vm17215_vm5 = vmmov %vm17214_vm0  ;;  %v4735_v55 = vsel %vm17214_vm0, %v4650_v47, %v4651_v21  ;;  %v17248_v21 = vld [vmem:[#allocation36_spill] sm:$0xff] }
 0x5c2   : > { %v13497_v0 = vsel %vm17215_vm5, %v4666_v40, %v4667_v20  ;;  %vm17216_vm4 = vmmov %vm17214_vm0  ;;  %v17252_v4 = vld [vmem:[#allocation44_spill] sm:$0xff] }
 0x5c3   : > { %v4723_v50 = vsel %vm17216_vm4, %v4662_v34, %v4663_v63  ;;  %vm17217_vm1 = vmmov %vm17214_vm0  ;;  %v17223_v63 = vrot.slane %v16992_v37, 5 }
 0x5c4   : > { %v13503_v5 = vsel %vm17217_vm1, %v4686_v51, %v4687_v3  ;;  %vm17218_vm2 = vmmov %vm17214_vm0  ;;  %v17258_v51 = vld [vmem:[#allocation105_spill] sm:$0xff]  ;;  %v17260_v3 = vld [vmem:[#allocation48_spill] sm:$0xff] }
 0x5c5   : > { %v4727_v7 = vsel %vm17218_vm2, %v4658_v2, %v4659_v19  ;;  %vm17219_vm3 = vmmov %vm17214_vm0  ;;  %v17250_v19 = vld [vmem:[#allocation111_spill] sm:$0xff] }
 0x5c6   : > { %v4731_v12 = vsel %vm17219_vm3, %v4654_v58, %v4655_v53  ;;  %vm17220_vm15 = vmmov %vm17214_vm0  ;;  %v17225_v58 = vrot.slane %v17001_v41, 5  ;;  %vm17261_vm3 = vnez %v17260_v3 }
 0x5c7   : > { %v4739_v40 = vsel %vm17220_vm15, %v4646_v22, %v4647_v8  ;;  %vm17221_vm5 = vmmov %vm17214_vm0  ;;  %v17247_v8 = vld [vmem:[#allocation76_spill] sm:$0xff]  ;;  %vm17257_vm15 = vnez %v17256_v54 }
 0x5c8   : > { %v4743_v20 = vsel %vm17221_vm5, %v4642_v52, %v4643_v18  ;;  %vm17222_vm4 = vmmov %vm17214_vm0  ;;  %v17244_v52 = vld [vmem:[#allocation14_spill] sm:$0xff]  ;;  %v4966_v59 = vsel %vm17257_vm15, %v17255_v62, %v17254_v36  ;;  %v17296_v36 = vld [vmem:[#allocation29_spill] sm:$0xff]  ;;  %vm17345_vm15 = vcmp.lt.s32.totalorder %v16933_v33, 7 }
 0x5c9   : > { %v4747_v34 = vsel %vm17222_vm4, %v4638_v13, %v4639_v30  ;;  %vm17224_vm1 = vmmov %vm17214_vm0  ;;  %v4900_v37 = vsel %vm13270_vm8, %v4743_v20, %v13063_v10  ;;  %v4916_v10 = vsel %vm13316_vm13, %v4727_v7, %v12967_v45  ;;  %v17233_v45 = vld [vmem:[#allocation85_spill] sm:$0xff]  ;;  %vm17249_vm13 = vnez %v17248_v21  ;;  %v17268_v7 = vld [vmem:[#allocation19_spill] sm:$0xff] }
 0x5ca   : > { %v4751_v2 = vsel %vm17224_vm1, %v17223_v63, %v13282_v56  ;;  %vm17226_vm2 = vmmov %vm17214_vm0  ;;  %v4896_v13 = vsel %vm13264_vm7, %v4747_v34, %v13089_v23  ;;  %v4912_v23 = vsel %vm13304_vm12, %v4731_v12, %v12989_v49  ;;  %v17231_v49 = vld [vmem:[#allocation38_spill] sm:$0xff]  ;;  %v17243_v30 = vld [vmem:[#allocation73_spill] sm:$0xff]  ;;  %vm17245_vm12 = vnez %v17244_v52 }
 0x5cb   : > { %v4755_v47 = vsel %vm17226_vm2, %v17225_v58, %v13277_v39  ;;  %v4892_v22 = vsel %vm13258_vm6, %v4751_v2, %v13115_v17  ;;  %v4904_v39 = vsel %vm13292_vm10, %v4739_v40, %v13037_v28  ;;  %v4908_v17 = vsel %vm13298_vm11, %v4735_v55, %v13012_v27  ;;  %v17228_v27 = vld [vmem:[#allocation77_spill] sm:$0xff]  ;;  %v17270_v55 = vld [vmem:[#allocation96_spill] sm:$0xff]  ;;  %v17272_v20 = vld [vmem:[#allocation51_spill] sm:$0xff] }
 0x5cc   : > { %v4888_v56 = vsel %vm13286_vm9, %v4755_v47, %v13141_v6  ;;  %v4920_v6 = vsel %vm13322_vm14, %v4723_v50, %v12949_v24  ;;  %vm17227_vm6 = vnez %v17097_v1  ;;  %vm17229_vm7 = vnez %v17228_v27  ;;  %v17246_v1 = vld [vmem:[#allocation114_spill] sm:$0xff]  ;;  %v17266_v50 = vld [vmem:[#allocation99_spill] sm:$0xff]  ;;  %v17271_v40 = vld [vmem:[#allocation24_spill] sm:$0xff] }
 0x5cd   : > { %v4924_v28 = vsel %vm17227_vm6, %v13497_v0, %v12933_v61  ;;  %v4928_v57 = vsel %vm17229_vm7, %v13485_v48, %v12917_v44  ;;  %vm17232_vm8 = vnez %v17231_v49  ;;  %vm17235_vm9 = vnez %v17234_v15  ;;  %v17262_v48 = vld [vmem:[#allocation102_spill] sm:$0xff]  ;;  %v17274_v63 = vld [vmem:[#allocation93_spill] sm:$0xff]  ;;  %v17280_v49 = vld [vmem:[#allocation55_spill] sm:$0xff] }
 0x5ce   : > { %v4932_v32 = vsel %vm17232_vm8, %v13481_v31, %v17230_v11  ;;  %v4936_v24 = vsel %vm17235_vm9, %v13493_v35, %v17233_v45  ;;  %vm17238_vm10 = vnez %v17237_v42  ;;  %vm17241_vm11 = vnez %v17240_v43  ;;  %v17264_v35 = vld [vmem:[#allocation11_spill] sm:$0xff]  ;;  %v17275_v2 = vld [vmem:[#allocation22_spill] sm:$0xff]  ;;  %v17276_v58 = vld [vmem:[#allocation53_spill] sm:$0xff] }
 0x5cf   : > { %v4940_v61 = vsel %vm17238_vm10, %v13489_v38, %v17236_v25  ;;  %v4944_v44 = vsel %vm17241_vm11, %v13503_v5, %v17239_v46  ;;  %v4954_v18 = vsel %vm17245_vm12, %v17243_v30, %v17242_v60  ;;  %v4958_v53 = vsel %vm17249_vm13, %v17247_v8, %v17246_v1  ;;  %v17263_v38 = vld [vmem:[#allocation13_spill] sm:$0xff]  ;;  %v17267_v5 = vld [vmem:[#allocation67_spill] sm:$0xff]  ;;  %v17278_v27 = vld [vmem:[#allocation90_spill] sm:$0xff] }
 0x5d0   : > { %vm17253_vm14 = vnez %v17252_v4  ;;  %v4970_v31 = vsel %vm17261_vm3, %v17259_v14, %v17258_v51  ;;  %vm17265_vm0 = vnez %v17264_v35  ;;  %vm17269_vm5 = vnez %v17268_v7  ;;  %v17279_v11 = vld [vmem:[#allocation9_spill] sm:$0xff]  ;;  %v17282_v15 = vld [vmem:[#allocation26_spill] sm:$0xff]  ;;  %v17283_v25 = vld [vmem:[#allocation12_spill] sm:$0xff] }
 0x5d1   : > { %v4962_v29 = vsel %vm17253_vm14, %v17251_v9, %v17250_v19  ;;  %v4974_v0 = vsel %vm17265_vm0, %v17263_v38, %v17262_v48  ;;  %v4978_v12 = vsel %vm17269_vm5, %v17267_v5, %v17266_v50  ;;  %vm17273_vm4 = vnez %v17272_v20  ;;  %v17284_v42 = vld [vmem:[#allocation57_spill] sm:$0xff]  ;;  %v17286_v43 = vld [vmem:[#allocation15_spill] sm:$0xff]  ;;  %v17287_v60 = vld [vmem:[#allocation20_spill] sm:$0xff] }
 0x5d2   : > { %v4982_v34 = vsel %vm17273_vm4, %v17271_v40, %v17270_v55  ;;  %vm17277_vm1 = vnez %v17276_v58  ;;  %vm17281_vm2 = vnez %v17280_v49  ;;  %vm17285_vm6 = vnez %v17284_v42  ;;  %v17288_v30 = vld [vmem:[#allocation21_spill] sm:$0xff]  ;;  %v17290_v1 = vld [vmem:[#allocation35_spill] sm:$0xff]  ;;  %v17291_v8 = vld [vmem:[#allocation16_spill] sm:$0xff] }
 0x5d3   : > { %v4986_v47 = vsel %vm17277_vm1, %v17275_v2, %v17274_v63  ;;  %v4990_v45 = vsel %vm17281_vm2, %v17279_v11, %v17278_v27  ;;  %v4994_v46 = vsel %vm17285_vm6, %v17283_v25, %v17282_v15  ;;  %vm17289_vm7 = vnez %v17288_v30  ;;  %v17293_v19 = vld [vmem:[#allocation79_spill] sm:$0xff]  ;;  %v17294_v9 = vld [vmem:[#allocation34_spill] sm:$0xff]  ;;  %v17297_v54 = vld [vmem:[#allocation32_spill] sm:$0xff] }
 0x5d4   : > { %v4998_v52 = vsel %vm17289_vm7, %v17287_v60, %v17286_v43  ;;  %vm17292_vm8 = vnez %v17205_v26  ;;  %vm17295_vm9 = vnez %v17209_v16  ;;  %v13635_v62 = vpack.c.bf16 %v17296_v36, %v4888_v56  ;;  %v17298_v14 = vld [vmem:[#allocation31_spill] sm:$0xff]  ;;  %v17299_v48 = vld [vmem:[#allocation28_spill] sm:$0xff]  ;;  %v17301_v50 = vld [vmem:[#allocation33_spill] sm:$0xff] }
 0x5d5   : > { %v5002_v21 = vsel %vm17292_vm8, %v17291_v8, %v17290_v1  ;;  %v5006_v4 = vsel %vm17295_vm9, %v17294_v9, %v17293_v19  ;;  %v13638_v51 = vpack.c.bf16 %v17297_v54, %v4954_v18  ;;  %v13641_v3 = vpack.c.bf16 %v17298_v14, %v4892_v22  ;;  %v17300_v35 = vld [vmem:[#allocation112_spill] sm:$0xff]  ;;  %v17302_v16 = vld [vmem:[#allocation109_spill] sm:$0xff]  ;;  %v17304_v18 = vld [vmem:[#allocation106_spill] sm:$0xff] }
 0x5d6   : > { %v13644_v38 = vpack.c.bf16 %v17299_v48, %v4958_v53  ;;  %v13647_v26 = vpack.c.bf16 %v17300_v35, %v4896_v13  ;;  %v13650_v5 = vpack.c.bf16 %v17301_v50, %v4962_v29  ;;  %v13653_v7 = vpack.c.bf16 %v17302_v16, %v4900_v37  ;;  %v17303_v56 = vld [vmem:[#allocation113_spill] sm:$0xff]  ;;  %v17305_v22 = vld [vmem:[#allocation110_spill] sm:$0xff]  ;;  %v17306_v53 = vld [vmem:[#allocation103_spill] sm:$0xff] }
 0x5d7   : > { %v13656_v55 = vpack.c.bf16 %v17303_v56, %v4966_v59  ;;  %v13659_v40 = vpack.c.bf16 %v17304_v18, %v4904_v39  ;;  %v13662_v20 = vpack.c.bf16 %v17305_v22, %v4970_v31  ;;  %5046 = vst [vmem:[#allocation2] sm:$0xff] %v13638_v51  ;;  %v13666_v13 = vpack.c.bf16 %v17306_v53, %v4908_v17  ;;  %v17307_v63 = vld [vmem:[#allocation107_spill] sm:$0xff]  ;;  %v17308_v2 = vld [vmem:[#allocation100_spill] sm:$0xff]  ;;  %v17315_v27 = vld [vmem:[#allocation101_spill] sm:$0xff] }
 0x5d8   : > { %v13669_v29 = vpack.c.bf16 %v17307_v63, %v4974_v0  ;;  %v13672_v37 = vpack.c.bf16 %v17308_v2, %v4912_v23  ;;  %v17309_v58 = vld [vmem:[#allocation104_spill] sm:$0xff]  ;;  %5047 = vst [vmem:[#allocation2 + $0x8] sm:$0xff] %v13641_v3  ;;  %5052 = vst [vmem:[#allocation2 + $0x30] sm:$0xff] %v13644_v38  ;;  %v17310_v39 = vld [vmem:[#allocation3_spill] sm:$0xff]  ;;  %v4501_v53 = vrot.slane %v17001_v41, 1  ;;  %vm17342_vm12 = vcmp.lt.s32.totalorder %v16933_v33, 1 }
 0x5d9   : > { %v13675_v59 = vpack.c.bf16 %v17309_v58, %v4978_v12  ;;  %5053 = vst [vmem:[#allocation2 + $0x38] sm:$0xff] %v13647_v26  ;;  %5054 = vst [vmem:[#allocation2 + $0x40] sm:$0xff] %v13650_v5  ;;  %v17311_v17 = vand.u32 31, %v17310_v39  ;;  %v17314_v0 = vld [vmem:[#allocation97_spill] sm:$0xff]  ;;  %v13691_v12 = vpack.c.bf16 %v17315_v27, %v4982_v34  ;;  %v17316_v11 = vld [vmem:[#allocation94_spill] sm:$0xff]  ;;  %v16523_v58 = vrot.slane %v13638_v51, 1 }
 0x5da   : > { %v13688_v23 = vpack.c.bf16 %v17314_v0, %v4916_v10  ;;  %v13694_v49 = vpack.c.bf16 %v17316_v11, %v4920_v6  ;;  %v17317_v15 = vld [vmem:[#allocation98_spill] sm:$0xff]  ;;  %5055 = vst [vmem:[#allocation2 + $0x48] sm:$0xff] %v13653_v7  ;;  %5056 = vst [vmem:[#allocation2 + $0x50] sm:$0xff] %v13656_v55  ;;  %v17318_v10 = vand.u32 31, %v16933_v33  ;;  %v17321_v34 = vld [vmem:[#allocation91_spill] sm:$0xff]  ;;  %v5493_v0 = vrot.slane %v13644_v38, 1 }
 0x5db   : > { %vm13683_vm10 = vcmp.eq.s32.totalorder %v17311_v17, 17  ;;  %v13697_v25 = vpack.c.bf16 %v17317_v15, %v4986_v47  ;;  %5057 = vst [vmem:[#allocation2 + $0x58] sm:$0xff] %v13659_v40  ;;  %5058 = vst [vmem:[#allocation2 + $0x60] sm:$0xff] %v13662_v20  ;;  %v13710_v6 = vpack.c.bf16 %v17321_v34, %v4924_v28  ;;  %v17322_v43 = vld [vmem:[#allocation95_spill] sm:$0xff]  ;;  %v17323_v60 = vld [vmem:[#allocation88_spill] sm:$0xff]  ;;  %v13776_v17 = vrot.slane %v13641_v3, 1 }
 0x5dc   : > { %vm13705_vm11 = vcmp.eq.s32.totalorder %v17318_v10, 0  ;;  %v13713_v47 = vpack.c.bf16 %v17322_v43, %v4990_v45  ;;  %v13716_v30 = vpack.c.bf16 %v17323_v60, %v4928_v57  ;;  %v17324_v1 = vld [vmem:[#allocation92_spill] sm:$0xff]  ;;  %5059 = vst [vmem:[#allocation2 + $0x68] sm:$0xff] %v13666_v13  ;;  %5060 = vst [vmem:[#allocation2 + $0x70] sm:$0xff] %v13669_v29  ;;  %v17325_v19 = vld [vmem:[#allocation86_spill] sm:$0xff]  ;;  %v5495_v27 = vrot.slane %v13647_v26, 1 }
 0x5dd   : > { %v13719_v8 = vpack.c.bf16 %v17324_v1, %v4994_v46  ;;  %5061 = vst [vmem:[#allocation2 + $0x78] sm:$0xff] %v13672_v37  ;;  %5062 = vst [vmem:[#allocation2 + $0x80] sm:$0xff] %v13675_v59  ;;  %v13726_v28 = vpack.c.bf16 %v17325_v19, %v4932_v32  ;;  %v17326_v9 = vld [vmem:[#allocation89_spill] sm:$0xff]  ;;  %v17327_v36 = vld [vmem:[#allocation78_spill] sm:$0xff]  ;;  %v17340_v15 = vrot.slane %v17001_v41, 7  ;;  %v5160_v43 = vshll.u32 %v13638_v51, 16 }
 0x5de   : > { %v13729_v45 = vpack.c.bf16 %v17326_v9, %v4998_v52  ;;  %v13732_v57 = vpack.c.bf16 %v17327_v36, %v4936_v24  ;;  %v17328_v54 = vld [vmem:[#allocation82_spill] sm:$0xff]  ;;  %5063 = vst [vmem:[#allocation2 + $0x88] sm:$0xff] %v13688_v23  ;;  %5064 = vst [vmem:[#allocation2 + $0x90] sm:$0xff] %v13691_v12  ;;  %v17329_v14 = vld [vmem:[#allocation80_spill] sm:$0xff]  ;;  %v5165_v60 = vshll.u32 %v13641_v3, 16  ;;  %vm17343_vm13 = vcmask 1046528  }
 0x5df   : > { %v13735_v46 = vpack.c.bf16 %v17328_v54, %v5002_v21  ;;  %5065 = vst [vmem:[#allocation2 + $0x98] sm:$0xff] %v13694_v49  ;;  %5066 = vst [vmem:[#allocation2 + $0xa0] sm:$0xff] %v13697_v25  ;;  %v13742_v32 = vpack.c.bf16 %v17329_v14, %v4940_v61  ;;  %v17330_v48 = vld [vmem:[#allocation84_spill] sm:$0xff]  ;;  %v17331_v35 = vld [vmem:[#allocation7_spill] sm:$0xff]  ;;  %v13791_v9 = vsel %vm17343_vm13, %v16523_v58, %v13776_v17  ;;  %v5158_v14 = vshrl.u32 %v13638_v51, 16 }
 0x5e0   : > { %v13745_v52 = vpack.c.bf16 %v17330_v48, %v5006_v4  ;;  %v13748_v24 = vpack.c.bf16 %v17331_v35, %v4944_v44  ;;  %5067 = vst [vmem:[#allocation2 + $0xa8] sm:$0xff] %v13710_v6  ;;  %5068 = vst [vmem:[#allocation2 + $0xb0] sm:$0xff] %v13713_v47  ;;  %v17332_v21 = vld [vmem:[#allocation49_spill] sm:$0xff]  ;;  %v17335_v56 = vld [vmem:[#allocation4_spill] sm:$0xff]  ;;  %9165 = vmatprep.mubr.bf16.mxu0 %v13791_v9  ;;  %v13801_v48 = vrot.slane %v5160_v43, 1  ;;  %vm17350_vm0 = vcmp.lt.s32.totalorder %v16933_v33, 3 }
 0x5e1   : > { %5069 = vst [vmem:[#allocation2 + $0xb8] sm:$0xff] %v13716_v30  ;;  %5070 = vst [vmem:[#allocation2 + $0xc0] sm:$0xff] %v13719_v8  ;;  %v17333_v50 = vld [vmem:[#allocation65_spill] sm:$0xff]  ;;  %v17341_v10 = vld [vmem:[#allocation27_spill] sm:$0xff]  ;;  %vm17354_vm2 = vsmask.f32 7424 }
 0x5e2   : > { %v17334_v16 = vsub.f32 %v17332_v21, %v17333_v50  ;;  %v17336_v18 = vld [vmem:[#allocation5_spill] sm:$0xff]  ;;  %5071 = vst [vmem:[#allocation2 + $0xc8] sm:$0xff] %v13726_v28  ;;  %5072 = vst [vmem:[#allocation2 + $0xd0] sm:$0xff] %v13729_v45  ;;  %v4498_v34 = vsel %vm17342_vm12, %v17341_v10, %v17340_v15  ;;  %v17346_v35 = vld [vmem:[#allocation8_spill] sm:$0xff]  ;;  %v5169_v31 = vshrl.u32 %v13641_v3, 16  ;;  %v5499_v42 = vrot.slane %v13653_v7, 1 }
 0x5e3   : > { %v17337_v22 = vmax.f32 %v17336_v18, 0.0  ;;  %5073 = vst [vmem:[#allocation2 + $0xd8] sm:$0xff] %v13732_v57  ;;  %5074 = vst [vmem:[#allocation2 + $0xe0] sm:$0xff] %v13735_v46  ;;  %v17338_v44 = vld [vmem:[#allocation17_spill] sm:$0xff]  ;;  %v17347_v21 = vrot.slane %v17346_v35, 7  ;;  %v5167_v18 = vrot.slane %v5165_v60, 1 }
 0x5e4   : > { %v4305_v61 = vmul.f32 %v17335_v56, %v17334_v16  ;;  %v17339_v63 = vsub.f32 %v17338_v44, %v17333_v50  ;;  %5075 = vst [vmem:[#allocation2 + $0xe8] sm:$0xff] %v13742_v32  ;;  %5076 = vst [vmem:[#allocation2 + $0xf0] sm:$0xff] %v13745_v52  ;;  %v17349_v16 = vrot.slane %v17346_v35, 5  ;;  %v5163_v44 = vor.u32 %v13801_v48, %v5158_v14  ;;  %v10289_v35 = vld [vmem:[%s16344_s3 + $0x90] sm:$0xff]  }
 0x5e5   : > { %v4500_v4 = vrot.slane %v17337_v22, 1  ;;  %5077 = vst [vmem:[#allocation2 + $0xf8] sm:$0xff] %v13748_v24  ;;  %5080 = vst [vmem:[#allocation2 + $0x110] sm:$0xff] %v13745_v52  ;;  %v13839_v15 = vor.u32 %v5169_v31, %v5167_v18  ;;  %v5507_v31 = vrot.slane %v13666_v13, 1 }
 0x5e6   : > { %v4306_v2 = vmul.f32 %v17335_v56, %v17339_v63  ;;  %5081 = vst [vmem:[#allocation2 + $0x118] sm:$0xff] %v13748_v24  ;;  %v4369_v39 = vmax.f32 %v4305_v61, 0.0  ;;  %vm17344_vm14 = vmmov %vm17343_vm13  ;;  %v13832_v33 = vsel %vm17354_vm2, %v5163_v44, %v5167_v18  ;;  %v10290_v18 = vld [vmem:[%s16344_s3 + $0x98] sm:$0xff]  }
 0x5e7   : > { %v13795_v36 = vsel %vm17344_vm14, %v13776_v17, %v5493_v0  ;;  %v4627_v54 = vsel %vm17345_vm15, %v4500_v4, %v4501_v53  ;;  %vm17348_vm3 = vmmov %vm17342_vm12  ;;  %17355 = vst [vmem:[#allocation23_spill] sm:$0xff] %v13832_v33  ;;  %6246 = vmatprep.mubr.bf16.mxu1 %v13832_v33 }
 0x5e8   : > { %v4370_v11 = vmax.f32 %v4306_v2, 0.0  ;;  %v4433_v1 = vrot.slane %v4369_v39, 7  ;;  %v4691_v19 = vrot.slane %v4369_v39, 5  ;;  %9166 = vmatmul.mubr.bf16.vlgmr.msra.gmra.mrb[128].mxu0 %v13795_v36  ;;  %vm17351_vm5 = vmmov %vm17343_vm13  ;;  %v10287_v39 = vld [vmem:[%s16344_s3 + $0x80] sm:$0xff]   ;;  %6247 = vmatmul.mubr.bf16.vlgmr.msra.gmra.mrb[64].mxu1 %v13638_v51 }
 0x5e9   : > { %v13813_v61 = vsel %vm17351_vm5, %v5493_v0, %v5495_v27  ;;  %vm17352_vm4 = vmmov %vm17348_vm3  ;;  %6504 = vmatpush1.bf16.msra.mxu1 %v10287_v39  ;;  %v16525_v39 = vrot.slane %v13726_v28, 1 }
 0x5ea   : > { %v4434_v41 = vrot.slane %v4370_v11, 7  ;;  %v4437_v50 = vsel %vm17348_vm3, %v17347_v21, %v4433_v1  ;;  %v4695_v56 = vsel %vm17350_vm0, %v17349_v16, %v4691_v19  ;;  %vm17353_vm1 = vmmov %vm17348_vm3  ;;  %9169 = vmatprep.mubr.bf16.mxu0 %v13813_v61  ;;  %v5497_v11 = vrot.slane %v13650_v5, 1 }
 0x5eb   : > { %v4948_v53 = vsel %vm13683_vm10, %v4695_v56, %v4437_v50  ;;  %vm17356_vm6 = vmmov %vm17351_vm5  ;;  %v5181_v19 = vshll.u32 %v13635_v62, 16  ;;  %v5501_v50 = vrot.slane %v13656_v55, 1  ;;  %v5503_v16 = vrot.slane %v13659_v40, 1 }
 0x5ec   : > { %v4436_v22 = vsel %vm17352_vm4, %v4433_v1, %v4434_v41  ;;  %v4499_v4 = vsel %vm17353_vm1, %v4434_v41, %v17341_v10  ;;  %v13846_v60 = vsel %vm17356_vm6, %v5495_v27, %v5497_v11  ;;  %v13850_v41 = vld [vmem:[#allocation2 + $0x120] sm:$0xff]  ;;  %vm17358_vm7 = vmmov %vm17351_vm5 }
 0x5ed   : > { %v4950_v63 = vsel %vm13705_vm11, %v4627_v54, %v4499_v4  ;;  %v5045_v2 = vpack.c.bf16 %v4436_v22, %v4948_v53  ;;  %17357 = vst [vmem:[#allocation59_spill] sm:$0xff] %v13846_v60  ;;  %6505 = vmatprep.subr.bf16.mxu1 %v13850_v41  ;;  %v13855_v54 = vsel %vm17358_vm7, %v5497_v11, %v5499_v42  ;;  %vm17360_vm8 = vmmov %vm17354_vm2  ;;  %v5183_v21 = vrot.slane %v5181_v19, 1 }
 0x5ee   : > { %v13829_v0 = vpack.c.bf16 %v4498_v34, %v4950_v63  ;;  %v10288_v34 = vld [vmem:[%s16344_s3 + $0x88] sm:$0xff]   ;;  %17359 = vst [vmem:[#allocation61_spill] sm:$0xff] %v13855_v54  ;;  %vm17361_vm9 = vmmov %vm17354_vm2  ;;  %v5185_v4 = vshrl.u32 %v13635_v62, 16  ;;  %v5505_v63 = vrot.slane %v13662_v20, 1  ;;  %v5537_v19 = vrot.slane %v13735_v46, 1 }
 0x5ef   : > { %5079 = vst [vmem:[#allocation2 + $0x108] sm:$0xff] %v5045_v2  ;;  %6506 = vmatpush1.bf16.msra.mxu1 %v10288_v34  ;;  %vm17363_vm10 = vmmov %vm17351_vm5  ;;  %v10291_v2 = vld [vmem:[%s16344_s3 + $0xa0] sm:$0xff]  }
 0x5f0   : > { %v5173_v10 = vshll.u32 %v13829_v0, 16  ;;  %v5177_v1 = vshrl.u32 %v13829_v0, 16  ;;  %9170 = vmatmul.mubr.bf16.gmra.mrb[132].mxu0 %v13846_v60  ;;  %6507 = vmatprep.subr.bf16.mxu1 %v13850_v41  ;;  %v13875_v22 = vsel %vm17363_vm10, %v5499_v42, %v5501_v50  ;;  %vm17365_vm11 = vmmov %vm17351_vm5  ;;  %v5187_v44 = vor.u32 %v5185_v4, %v5183_v21 }
 0x5f1   : > { %9173 = vmatprep.mubr.bf16.mxu0 %v13855_v54  ;;  %17364 = vst [vmem:[#allocation66_spill] sm:$0xff] %v13875_v22  ;;  %v13881_v53 = vsel %vm17365_vm11, %v5501_v50, %v5503_v16  ;;  %vm17367_vm12 = vmmov %vm17354_vm2  ;;  %v5533_v42 = vrot.slane %v13729_v45, 1  ;;  %v5541_v50 = vrot.slane %v13745_v52, 1  ;;  %v5509_v4 = vrot.slane %v13669_v29, 1 }
 0x5f2   : > { %v5175_v43 = vrot.slane %v5173_v10, 1  ;;  %17366 = vst [vmem:[#allocation25_spill] sm:$0xff] %v13881_v53  ;;  %v13894_v11 = vsel %vm17367_vm12, %v5187_v44, %v13801_v48  ;;  %v5535_v10 = vrot.slane %v13732_v57, 1  ;;  %vm17369_vm13 = vmmov %vm17351_vm5 }
 0x5f3   : > { %6508 = vmatpush1.bf16.msra.mxu1 %v10289_v35  ;;  %17368 = vst [vmem:[#allocation10_spill] sm:$0xff] %v13894_v11  ;;  %v13900_v34 = vsel %vm17369_vm13, %v5503_v16, %v5505_v63  ;;  %vm17371_vm14 = vmmov %vm17351_vm5  ;;  %v16524_v16 = vrot.slane %v13748_v24, 1 }
 0x5f4   : > { %v5176_v14 = vsel %vm17360_vm8, %v13839_v15, %v5175_v43  ;;  %v5179_v27 = vor.u32 %v5177_v1, %v5175_v43  ;;  %6509 = vmatprep.subr.bf16.mxu1 %v13850_v41  ;;  %17370 = vst [vmem:[#allocation37_spill] sm:$0xff] %v13900_v34  ;;  %v10292_v43 = vld [vmem:[%s16344_s3 + $0xa8] sm:$0xff]   ;;  %v13908_v1 = vsel %vm17371_vm14, %v16525_v39, %v5533_v42  ;;  %vm17372_vm15 = vmmov %vm17351_vm5  ;;  %v5517_v39 = vrot.slane %v13691_v12, 1 }
 0x5f5   : > { %6254 = vmatprep.mubr.bf16.mxu1 %v5176_v14  ;;  %v13911_v48 = vsel %vm17372_vm15, %v5533_v42, %v5535_v10  ;;  %v5539_v14 = vrot.slane %v13742_v32, 1  ;;  %vm17373_vm3 = vmmov %vm17351_vm5  ;;  %v10294_v42 = vld [vmem:[%s16344_s3 + $0xb8] sm:$0xff]  }
 0x5f6   : > { %6255 = vmatmul.mubr.bf16.gmra.mrb[68].mxu1 %v13641_v3  ;;  %v13868_v56 = vsel %vm17361_vm9, %v5179_v27, %v5183_v21  ;;  %v13918_v27 = vsel %vm17373_vm3, %v5505_v63, %v5507_v31  ;;  %vm17375_vm0 = vmmov %vm17373_vm3  ;;  %v5511_v63 = vrot.slane %v13672_v37, 1 }
 0x5f7   : > { %17362 = vst [vmem:[#allocation63_spill] sm:$0xff] %v13868_v56  ;;  %6262 = vmatprep.mubr.bf16.mxu1 %v13868_v56  ;;  %6510 = vmatpush1.bf16.msra.mxu1 %v10290_v18  ;;  %17374 = vst [vmem:[#allocation39_spill] sm:$0xff] %v13918_v27  ;;  %v13922_v35 = vsel %vm17375_vm0, %v5535_v10, %v5537_v19  ;;  %v10293_v18 = vld [vmem:[%s16344_s3 + $0xb0] sm:$0xff]  }
 0x5f8   : > { %9174 = vmatmul.mubr.bf16.gmra.mrb[136].mxu0 %v13875_v22  ;;  %6511 = vmatprep.subr.bf16.mxu1 %v13850_v41  ;;  %vm17376_vm5 = vmmov %vm17375_vm0  ;;  %v10297_v56 = vld [vmem:[%s16344_s3 + $0xd0] sm:$0xff]   ;;  %v5385_v22 = vshrl.u32 %v13735_v46, 16 }
 0x5f9   : > { %9177 = vmatprep.mubr.bf16.mxu0 %v13881_v53  ;;  %v13925_v21 = vsel %vm17376_vm5, %v5537_v19, %v5539_v14  ;;  %vm17377_vm4 = vmmov %vm17375_vm0  ;;  %v5389_v53 = vshll.u32 %v13742_v32, 16 }
 0x5fa   : > { %v13934_v44 = vsel %vm17377_vm4, %v5539_v14, %v5541_v50  ;;  %vm17378_vm1 = vmmov %vm17375_vm0  ;;  %v10295_v14 = vld [vmem:[%s16344_s3 + $0xc0] sm:$0xff]  }
 0x5fb   : > { %6512 = vmatpush1.bf16.msra.mxu1 %v10291_v2  ;;  %v13941_v2 = vsel %vm17378_vm1, %v5541_v50, %v16524_v16  ;;  %vm17379_vm2 = vmmov %vm17375_vm0  ;;  %v5209_v16 = vshrl.u32 %v13644_v38, 16 }
 0x5fc   : > { %6513 = vmatprep.subr.bf16.mxu1 %v13850_v41  ;;  %v13949_v10 = vsel %vm17379_vm2, %v5507_v31, %v5509_v4  ;;  %vm17381_vm6 = vmmov %vm17375_vm0  ;;  %v5513_v31 = vrot.slane %v13675_v59, 1 }
 0x5fd   : > { %17380 = vst [vmem:[#allocation41_spill] sm:$0xff] %v13949_v10  ;;  %v13955_v19 = vsel %vm17381_vm6, %v5509_v4, %v5511_v63  ;;  %vm17383_vm7 = vmmov %vm17360_vm8 }
 0x5fe   : > { %6263 = vmatmul.mubr.bf16.gmra.mrb[72].mxu1 %v13829_v0  ;;  %17382 = vst [vmem:[#allocation43_spill] sm:$0xff] %v13955_v19  ;;  %vm17385_vm8 = vmmov %vm17375_vm0 }
 0x5ff   : > { %6270 = vmatprep.mubr.bf16.mxu1 %v13894_v11  ;;  %6514 = vmatpush1.bf16.msra.mxu1 %v10292_v43  ;;  %v5205_v43 = vshll.u32 %v13644_v38, 16  ;;  %v13975_v58 = vsel %vm17385_vm8, %v5511_v63, %v5513_v31  ;;  %vm17387_vm9 = vmmov %vm17375_vm0  ;;  %v5217_v63 = vshrl.u32 %v13647_v26, 16 }
 0x600   : > { %9178 = vmatmul.mubr.bf16.gmra.mrb[140].mxu0 %v13900_v34  ;;  %6515 = vmatprep.subr.bf16.mxu1 %v13850_v41  ;;  %17386 = vst [vmem:[#allocation68_spill] sm:$0xff] %v13975_v58  ;;  %vm17389_vm10 = vmmov %vm17375_vm0  ;;  %v5377_v34 = vshrl.u32 %v13732_v57, 16 }
 0x601   : > { %9181 = vmatprep.mubr.bf16.mxu0 %v13918_v27  ;;  %v5207_v50 = vrot.slane %v5205_v43, 1  ;;  %v10296_v43 = vld [vmem:[%s16344_s3 + $0xc8] sm:$0xff]   ;;  %vm17390_vm11 = vmmov %vm17375_vm0  ;;  %v5381_v27 = vshll.u32 %v13735_v46, 16 }
 0x602   : > { %vm17391_vm12 = vmmov %vm17383_vm7 }
 0x603   : > { %6516 = vmatpush1.bf16.msra.mxu1 %v10293_v18  ;;  %v5515_v18 = vrot.slane %v13688_v23, 1  ;;  %v13967_v4 = vsel %vm17383_vm7, %v13839_v15, %v5207_v50  ;;  %vm17392_vm13 = vmmov %vm17383_vm7 }
 0x604   : > { %6517 = vmatprep.subr.bf16.mxu1 %v13850_v41  ;;  %17384 = vst [vmem:[#allocation18_spill] sm:$0xff] %v13967_v4  ;;  %vm17393_vm14 = vmmov %vm17383_vm7 }
 0x605   : > { %v13983_v15 = vsel %vm17387_vm9, %v5513_v31, %v5515_v18  ;;  %v5365_v31 = vshll.u32 %v13729_v45, 16  ;;  %vm17394_vm15 = vmmov %vm17383_vm7 }
 0x606   : > { %6271 = vmatmul.mubr.bf16.gmra.mrb[76].mxu1 %v13635_v62  ;;  %17388 = vst [vmem:[#allocation45_spill] sm:$0xff] %v13983_v15  ;;  %vm17395_vm3 = vmmov %vm17383_vm7 }
 0x607   : > { %6278 = vmatprep.mubr.bf16.mxu1 %v13832_v33  ;;  %6518 = vmatpush1.bf16.msra.mxu1 %v10294_v42  ;;  %v5213_v42 = vshll.u32 %v13647_v26, 16  ;;  %v5519_v33 = vrot.slane %v13694_v49, 1  ;;  %vm17396_vm0 = vmmov %vm17395_vm3 }
 0x608   : > { %9182 = vmatmul.mubr.bf16.gmra.mrb[144].mxu0 %v13949_v10  ;;  %6519 = vmatprep.subr.bf16.mxu1 %v13850_v41  ;;  %v13996_v10 = vsel %vm17389_vm10, %v5515_v18, %v5517_v39  ;;  %vm17398_vm5 = vmmov %vm17396_vm0 }
 0x609   : > { %9185 = vmatprep.mubr.bf16.mxu0 %v13955_v19  ;;  %v5215_v11 = vrot.slane %v5213_v42, 1  ;;  %vm17399_vm4 = vmmov %vm17396_vm0 }
 0x60a   : > { %vm17401_vm2 = vmmov %vm17378_vm1 }
 0x60b   : > { %6520 = vmatpush1.bf16.msra.mxu1 %v10295_v14  ;;  %v5357_v14 = vshll.u32 %v13726_v28, 16  ;;  %v5219_v60 = vor.u32 %v5217_v63, %v5215_v11  ;;  %vm17402_vm6 = vmmov %vm17396_vm0 }
 0x60c   : > { %6521 = vmatprep.subr.bf16.mxu1 %v13850_v41  ;;  %vm17403_vm7 = vmmov %vm17378_vm1 }
 0x60d   : > { %v13991_v19 = vrot.slane %v5357_v14, 1  ;;  %v5369_v14 = vshrl.u32 %v13729_v45, 16  ;;  %v5383_v45 = vrot.slane %v5381_v27, 1  ;;  %v5521_v27 = vrot.slane %v13697_v25, 1  ;;  %vm17404_vm8 = vmmov %vm17378_vm1 }
 0x60e   : > { %6279 = vmatmul.mubr.bf16.gmra.mrb[80].mxu1 %v13638_v51  ;;  %vm17405_vm9 = vmmov %vm17396_vm0 }
 0x60f   : > { %6286 = vmatprep.mubr.bf16.mxu1 %v13967_v4  ;;  %v5211_v4 = vor.u32 %v5209_v16, %v5207_v50  ;;  %6522 = vmatpush1.bf16.msra.mxu1 %v10296_v43  ;;  %v5221_v16 = vshll.u32 %v13650_v5, 16  ;;  %v5373_v50 = vshll.u32 %v13732_v57, 16  ;;  %v5367_v43 = vrot.slane %v5365_v31, 1  ;;  %vm17407_vm10 = vmmov %vm17378_vm1 }
 0x610   : > { %9186 = vmatmul.mubr.bf16.gmra.mrb[148].mxu0 %v13975_v58  ;;  %v5361_v58 = vshrl.u32 %v13726_v28, 16  ;;  %6523 = vmatprep.subr.bf16.mxu1 %v13850_v41  ;;  %v5397_v57 = vshll.u32 %v13745_v52, 16 }
 0x611   : > { %9189 = vmatprep.mubr.bf16.mxu0 %v13983_v15  ;;  %v13999_v15 = vsel %vm17390_vm11, %v5517_v39, %v5519_v33  ;;  %v14009_v18 = vsel %vm17391_vm12, %v5211_v4, %v5215_v11  ;;  %v5375_v39 = vrot.slane %v5373_v50, 1  ;;  %v5371_v31 = vor.u32 %v5369_v14, %v5367_v43  ;;  %vm17409_vm11 = vmmov %vm17378_vm1 }
 0x612   : > { %v5363_v42 = vor.u32 %v5361_v58, %v13991_v19  ;;  %v5391_v4 = vrot.slane %v5389_v53, 1  ;;  %v5393_v50 = vshrl.u32 %v13742_v32, 16  ;;  %v5399_v53 = vrot.slane %v5397_v57, 1  ;;  %vm17410_vm12 = vmmov %vm17396_vm0 }
 0x613   : > { %6524 = vmatpush1.bf16.msra.mxu1 %v10297_v56  ;;  %v5379_v54 = vor.u32 %v5377_v34, %v5375_v39  ;;  %v14023_v56 = vsel %vm17393_vm14, %v5371_v31, %v5375_v39  ;;  %v5401_v32 = vshrl.u32 %v13745_v52, 16  ;;  %v5223_v11 = vrot.slane %v5221_v16, 1  ;;  %v10298_v16 = vld [vmem:[%s16344_s3 + $0xd8] sm:$0xff]   ;;  %vm17412_vm14 = vmmov %vm17396_vm0 }
 0x614   : > { %v14015_v58 = vsel %vm17392_vm13, %v5363_v42, %v5367_v43  ;;  %6525 = vmatprep.subr.bf16.mxu1 %v13850_v41  ;;  %v5387_v42 = vor.u32 %v5385_v22, %v5383_v45  ;;  %v5405_v43 = vshll.u32 %v13748_v24, 16  ;;  %v5395_v34 = vor.u32 %v5393_v50, %v5391_v4  ;;  %vm17411_vm13 = vmmov %vm17396_vm0 }
 0x615   : > { %v14028_v46 = vsel %vm17394_vm15, %v5379_v54, %v5383_v45  ;;  %v5403_v22 = vor.u32 %v5401_v32, %v5399_v53  ;;  %v5523_v31 = vrot.slane %v13710_v6, 1  ;;  %v14043_v54 = vsel %vm17398_vm5, %v5219_v60, %v5223_v11  ;;  %vm17414_vm15 = vmmov %vm17396_vm0 }
 0x616   : > { %6287 = vmatmul.mubr.bf16.gmra.mrb[84].mxu1 %v13641_v3  ;;  %v14033_v14 = vsel %vm17395_vm3, %v5387_v42, %v5391_v4  ;;  %v14036_v63 = vsel %vm17396_vm0, %v5395_v34, %v5399_v53  ;;  %v14038_v39 = vrot.slane %v5405_v43, 1  ;;  %v14054_v45 = vsel %vm17378_vm1, %v5519_v33, %v5521_v27  ;;  %vm17417_vm3 = vmmov %vm17378_vm1 }
 0x617   : > { %6294 = vmatprep.mubr.bf16.mxu1 %v14009_v18  ;;  %17397 = vst [vmem:[#allocation47_spill] sm:$0xff] %v14036_v63  ;;  %v5225_v4 = vshrl.u32 %v13650_v5, 16  ;;  %v5229_v50 = vshll.u32 %v13653_v7, 16  ;;  %v14060_v60 = vsel %vm17401_vm2, %v5521_v27, %v5523_v31  ;;  %6526 = vmatpush1.bf16.msra.mxu1 %v10298_v16  ;;  %v5525_v43 = vrot.slane %v13713_v47, 1  ;;  %vm17418_vm5 = vmmov %vm17396_vm0 }
 0x618   : > { %9190 = vmatmul.mubr.bf16.gmra.mrb[152].mxu0 %v13996_v10  ;;  %v14047_v52 = vsel %vm17399_vm4, %v5403_v22, %v14038_v39  ;;  %6527 = vmatprep.subr.bf16.mxu1 %v13850_v41  ;;  %v5527_v33 = vrot.slane %v13716_v30, 1  ;;  %v5233_v32 = vshrl.u32 %v13653_v7, 16  ;;  %v5237_v27 = vshll.u32 %v13656_v55, 16  ;;  %vm17419_vm4 = vmmov %vm17396_vm0 }
 0x619   : > { %9193 = vmatprep.mubr.bf16.mxu0 %v13999_v15  ;;  %17400 = vst [vmem:[#allocation50_spill] sm:$0xff] %v14047_v52  ;;  %v5227_v57 = vor.u32 %v5225_v4, %v5223_v11  ;;  %v5231_v42 = vrot.slane %v5229_v50, 1  ;;  %v14072_v53 = vsel %vm17403_vm7, %v5523_v31, %v5525_v43  ;;  %v5529_v4 = vrot.slane %v13719_v8, 1  ;;  %v10299_v50 = vld [vmem:[%s16344_s3 + $0xe0] sm:$0xff]   ;;  %vm17420_vm1 = vmmov %vm17396_vm0 }
 0x61a   : > { %v14078_v11 = vsel %vm17404_vm8, %v5525_v43, %v5527_v33  ;;  %v5239_v16 = vrot.slane %v5237_v27, 1  ;;  %v5241_v43 = vshrl.u32 %v13656_v55, 16  ;;  %vm17421_vm2 = vmmov %vm17396_vm0 }
 0x61b   : > { %v14068_v34 = vsel %vm17402_vm6, %v5227_v57, %v5231_v42  ;;  %v5235_v22 = vor.u32 %v5233_v32, %v5231_v42  ;;  %v14091_v57 = vsel %vm17407_vm10, %v5527_v33, %v5529_v4  ;;  %v5245_v42 = vshll.u32 %v13659_v40, 16  ;;  %6528 = vmatpush1.bf16.msra.mxu1 %v10299_v50  ;;  %vm17422_vm6 = vmmov %vm17396_vm0 }
 0x61c   : > { %v5243_v27 = vor.u32 %v5241_v43, %v5239_v16  ;;  %6529 = vmatprep.subr.bf16.mxu1 %v13850_v41  ;;  %v5257_v43 = vshrl.u32 %v13662_v20, 16  ;;  %vm17423_vm7 = vmmov %vm17396_vm0 }
 0x61d   : > { %v14084_v31 = vsel %vm17405_vm9, %v5235_v22, %v5239_v16  ;;  %v5247_v22 = vrot.slane %v5245_v42, 1  ;;  %v5261_v42 = vshll.u32 %v13666_v13, 16  ;;  %vm17424_vm8 = vmmov %vm17396_vm0 }
 0x61e   : > { %6295 = vmatmul.mubr.bf16.gmra.mrb[88].mxu1 %v13644_v38  ;;  %17406 = vst [vmem:[#allocation52_spill] sm:$0xff] %v14084_v31  ;;  %vm17425_vm9 = vmmov %vm17396_vm0 }
 0x61f   : > { %6302 = vmatprep.mubr.bf16.mxu1 %v14043_v54  ;;  %v14105_v33 = vsel %vm17410_vm12, %v5243_v27, %v5247_v22  ;;  %v5265_v27 = vshrl.u32 %v13666_v13, 16  ;;  %vm17426_vm10 = vmmov %vm17396_vm0 }
 0x620   : > { %9194 = vmatmul.mubr.bf16.gmra.mrb[156].mxu0 %v14054_v45  ;;  %vm17452_vm12 = vmmov %vm17396_vm0 }
 0x621   : > { %9197 = vmatprep.mubr.bf16.mxu0 %v14060_v60 }
 0x626   : > { %6303 = vmatmul.mubr.bf16.gmra.mrb[92].mxu1 %v13647_v26 }
 0x627   : > { %6310 = vmatprep.mubr.bf16.mxu1 %v14068_v34 }
 0x628   : > { %9198 = vmatmul.mubr.bf16.gmra.mrb[160].mxu0 %v14072_v53 }
 0x629   : > { %9201 = vmatprep.mubr.bf16.mxu0 %v14078_v11 }
 0x62e   : > { %6311 = vmatmul.mubr.bf16.gmra.mrb[96].mxu1 %v13650_v5  ;;  %v17408_v5 = vrot.slane %v13726_v28, 1  ;;  %v5253_v28 = vshll.u32 %v13662_v20, 16 }
 0x62f   : > { %6318 = vmatprep.mubr.bf16.mxu1 %v14084_v31  ;;  %v5249_v31 = vshrl.u32 %v13659_v40, 16 }
 0x630   : > { %9202 = vmatmul.mubr.bf16.gmra.mrb[164].mxu0 %v14091_v57  ;;  %v14099_v32 = vsel %vm17409_vm11, %v5529_v4, %v17408_v5  ;;  %v5255_v16 = vrot.slane %v5253_v28, 1  ;;  %v14133_v28 = vld [vmem:[#allocation2 + $0x100] sm:$0xff]  ;;  %vm17427_vm11 = vmmov %vm17396_vm0 }
 0x631   : > { %9205 = vmatprep.mubr.bf16.mxu0 %v14099_v32  ;;  %v5251_v4 = vor.u32 %v5249_v31, %v5247_v22  ;;  %v5269_v22 = vshll.u32 %v13669_v29, 16 }
 0x632   : > { %v5259_v31 = vor.u32 %v5257_v43, %v5255_v16  ;;  %v10301_v43 = vld [vmem:[%s16344_s3 + $0xf0] sm:$0xff]  }
 0x633   : > { %v14114_v50 = vsel %vm17411_vm13, %v5251_v4, %v5255_v16  ;;  %v5271_v16 = vrot.slane %v5269_v22, 1  ;;  %vm17461_vm13 = vmmov %vm17417_vm3 }
 0x636   : > { %6319 = vmatmul.mubr.bf16.gmra.mrb[100].mxu1 %v13653_v7  ;;  %v10300_v7 = vld [vmem:[%s16344_s3 + $0xe8] sm:$0xff]  }
 0x637   : > { %6326 = vmatprep.mubr.bf16.mxu1 %v14105_v33  ;;  %6530 = vmatpush1.bf16.msra.mxu1 %v10300_v7  ;;  %v16554_v7 = vrot.slane %v14133_v28, 1 }
 0x638   : > { %9206 = vmatmul.mubr.bf16.gmra.mrb[168].mxu0 %v13908_v1  ;;  %6531 = vmatprep.subr.bf16.mxu1 %v13850_v41 }
 0x639   : > { %9209 = vmatprep.mubr.bf16.mxu0 %v13911_v48 }
 0x63b   : > { %6532 = vmatpush1.bf16.msra.mxu1 %v10301_v43  ;;  %v5289_v43 = vshrl.u32 %v13675_v59, 16 }
 0x63c   : > { %6533 = vmatprep.subr.bf16.mxu1 %v13850_v41 }
 0x63e   : > { %6327 = vmatmul.mubr.bf16.gmra.mrb[104].mxu1 %v13656_v55  ;;  %v5263_v55 = vrot.slane %v5261_v42, 1  ;;  %v17416_v42 = vrot.slane %v13748_v24, 1 }
 0x63f   : > { %6334 = vmatprep.mubr.bf16.mxu1 %v14114_v50 }
 0x640   : > { %9210 = vmatmul.mubr.bf16.gmra.mrb[172].mxu0 %v13922_v35  ;;  %v14127_v5 = vsel %vm17412_vm14, %v5259_v31, %v5263_v55  ;;  %v5267_v4 = vor.u32 %v5265_v27, %v5263_v55  ;;  %v14150_v31 = vsel %vm17417_vm3, %v17416_v42, %v16554_v7  ;;  %v5273_v55 = vshrl.u32 %v13669_v29, 16  ;;  %vm17466_vm14 = vmmov %vm17417_vm3 }
 0x641   : > { %9213 = vmatprep.mubr.bf16.mxu0 %v13925_v21  ;;  %17413 = vst [vmem:[#allocation70_spill] sm:$0xff] %v14127_v5  ;;  %v5281_v42 = vshrl.u32 %v13672_v37, 16  ;;  %v5285_v7 = vshll.u32 %v13675_v59, 16 }
 0x642   : > { %v5275_v27 = vor.u32 %v5273_v55, %v5271_v16  ;;  %v5293_v55 = vshll.u32 %v13688_v23, 16 }
 0x646   : > { %6335 = vmatmul.mubr.bf16.gmra.mrb[108].mxu1 %v13659_v40  ;;  %v14139_v40 = vsel %vm17414_vm15, %v5267_v4, %v5271_v16  ;;  %vm17471_vm15 = vmmov %vm17417_vm3 }
 0x647   : > { %6342 = vmatprep.mubr.bf16.mxu1 %v14127_v5  ;;  %17415 = vst [vmem:[#allocation72_spill] sm:$0xff] %v14139_v40  ;;  %v5287_v5 = vrot.slane %v5285_v7, 1  ;;  %v5295_v7 = vrot.slane %v5293_v55, 1 }
 0x648   : > { %9214 = vmatmul.mubr.bf16.gmra.mrb[176].mxu0 %v13934_v44 }
 0x649   : > { %9217 = vmatprep.mubr.bf16.mxu0 %v13941_v2 }
 0x64e   : > { %6343 = vmatmul.mubr.bf16.gmra.mrb[112].mxu1 %v13662_v20  ;;  %v5277_v20 = vshll.u32 %v13672_v37, 16 }
 0x64f   : > { %6350 = vmatprep.mubr.bf16.mxu1 %v14139_v40 }
 0x650   : > { %9218 = vmatmul.mubr.bf16.gmra.mrb[180].mxu0 %v14150_v31  ;;  %v5279_v22 = vrot.slane %v5277_v20, 1  ;;  %v5291_v20 = vor.u32 %v5289_v43, %v5287_v5 }
 0x652   : > { %v14158_v4 = vsel %vm17396_vm0, %v5275_v27, %v5279_v22  ;;  %v5283_v40 = vor.u32 %v5281_v42, %v5279_v22  ;;  %v5301_v27 = vshll.u32 %v13691_v12, 16  ;;  %vm17528_vm0 = vmmov %vm17417_vm3 }
 0x654   : > { %v14165_v16 = vsel %vm17418_vm5, %v5283_v40, %v5287_v5  ;;  %v5297_v40 = vshrl.u32 %v13688_v23, 16  ;;  %v5303_v42 = vrot.slane %v5301_v27, 1  ;;  %vm17530_vm5 = vmmov %vm17420_vm1 }
 0x656   : > { %6351 = vmatmul.mubr.bf16.gmra.mrb[116].mxu1 %v13666_v13  ;;  %v10302_v13 = vld [vmem:[%s16344_s3 + $0xf8] sm:$0xff]   ;;  %v5299_v22 = vor.u32 %v5297_v40, %v5295_v7 }
 0x657   : > { %6358 = vmatprep.mubr.bf16.mxu1 %v14158_v4  ;;  %6534 = vmatpush1.bf16.msra.mxu1 %v10302_v13  ;;  %v5309_v13 = vshll.u32 %v13694_v49, 16 }
 0x658   : > { %6792 = vmatprep.subr.bf16.mxu1 %v13850_v41  ;;  %v14183_v5 = vsel %vm17420_vm1, %v5299_v22, %v5303_v42 }
 0x659   : > { %v5311_v55 = vrot.slane %v5309_v13, 1 }
 0x65e   : > { %6359 = vmatmul.mubr.bf16.gmra.mrb[120].mxu1 %v13669_v29  ;;  %v14176_v29 = vsel %vm17419_vm4, %v5291_v20, %v5295_v7  ;;  %v5317_v7 = vshll.u32 %v13697_v25, 16  ;;  %vm17531_vm4 = vmmov %vm17528_vm0 }
 0x65f   : > { %6366 = vmatprep.mubr.bf16.mxu1 %v14165_v16 }
 0x660   : > { %v5319_v27 = vrot.slane %v5317_v7, 1 }
 0x666   : > { %6367 = vmatmul.mubr.bf16.gmra.mrb[124].mxu1 %v13672_v37  ;;  %v5305_v37 = vshrl.u32 %v13691_v12, 16 }
 0x667   : > { %6374 = vmatprep.mubr.bf16.mxu1 %v14176_v29 }
 0x668   : > { %v5307_v43 = vor.u32 %v5305_v37, %v5303_v42  ;;  %v5325_v42 = vshll.u32 %v13710_v6, 16 }
 0x66a   : > { %v14190_v20 = vsel %vm17421_vm2, %v5307_v43, %v5311_v55  ;;  %v5327_v13 = vrot.slane %v5325_v42, 1  ;;  %vm17560_vm2 = vmmov %vm17420_vm1 }
 0x66e   : > { %6375 = vmatmul.mubr.bf16.gmra.mrb[128].mxu1 %v13675_v59  ;;  %v5313_v59 = vshrl.u32 %v13694_v49, 16 }
 0x66f   : > { %6382 = vmatprep.mubr.bf16.mxu1 %v14183_v5 }
 0x670   : > { %v5315_v40 = vor.u32 %v5313_v59, %v5311_v55  ;;  %v5333_v55 = vshll.u32 %v13713_v47, 16 }
 0x672   : > { %v14197_v22 = vsel %vm17422_vm6, %v5315_v40, %v5319_v27  ;;  %v5335_v7 = vrot.slane %v5333_v55, 1  ;;  %vm17563_vm6 = vmmov %vm17420_vm1 }
 0x676   : > { %6383 = vmatmul.mubr.bf16.gmra.mrb[132].mxu1 %v13688_v23  ;;  %v5321_v23 = vshrl.u32 %v13697_v25, 16 }
 0x677   : > { %6390 = vmatprep.mubr.bf16.mxu1 %v14190_v20 }
 0x678   : > { %v5323_v37 = vor.u32 %v5321_v23, %v5319_v27  ;;  %v5341_v27 = vshll.u32 %v13716_v30, 16 }
 0x67a   : > { %v14204_v43 = vsel %vm17423_vm7, %v5323_v37, %v5327_v13  ;;  %v5343_v42 = vrot.slane %v5341_v27, 1  ;;  %vm17570_vm7 = vmmov %vm17528_vm0 }
 0x67e   : > { %6391 = vmatmul.mubr.bf16.gmra.mrb[136].mxu1 %v13691_v12  ;;  %v5329_v12 = vshrl.u32 %v13710_v6, 16 }
 0x67f   : > { %6398 = vmatprep.mubr.bf16.mxu1 %v14197_v22 }
 0x680   : > { %v5331_v59 = vor.u32 %v5329_v12, %v5327_v13  ;;  %v5349_v13 = vshll.u32 %v13719_v8, 16 }
 0x682   : > { %v14211_v40 = vsel %vm17424_vm8, %v5331_v59, %v5335_v7  ;;  %v5351_v55 = vrot.slane %v5349_v13, 1  ;;  %vm17573_vm8 = vmmov %vm17528_vm0 }
 0x686   : > { %6399 = vmatmul.mubr.bf16.gmra.mrb[140].mxu1 %v13694_v49  ;;  %v5337_v49 = vshrl.u32 %v13713_v47, 16 }
 0x687   : > { %6406 = vmatprep.mubr.bf16.mxu1 %v14204_v43 }
 0x688   : > { %v5339_v23 = vor.u32 %v5337_v49, %v5335_v7 }
 0x68a   : > { %v14218_v37 = vsel %vm17425_vm9, %v5339_v23, %v5343_v42  ;;  %v14243_v23 = vld [vmem:[#allocation2 + $0xd0] sm:$0xff]  ;;  %vm17671_vm9 = vmmov %vm17528_vm0 }
 0x68b   : > { %17429 = vst [vmem:[#allocation56_spill] sm:$0xff] %v14243_v23 }
 0x68e   : > { %6407 = vmatmul.mubr.bf16.gmra.mrb[144].mxu1 %v13697_v25  ;;  %v5345_v25 = vshrl.u32 %v13716_v30, 16 }
 0x68f   : > { %6414 = vmatprep.mubr.bf16.mxu1 %v14211_v40 }
 0x690   : > { %v5347_v12 = vor.u32 %v5345_v25, %v5343_v42  ;;  %v14255_v25 = vld [vmem:[#allocation2 + $0xd8] sm:$0xff] }
 0x691   : > { %17434 = vst [vmem:[#allocation64_spill] sm:$0xff] %v14255_v25 }
 0x692   : > { %v14225_v59 = vsel %vm17426_vm10, %v5347_v12, %v5351_v55  ;;  %vm17673_vm10 = vmmov %vm17528_vm0 }
 0x696   : > { %6415 = vmatmul.mubr.bf16.gmra.mrb[148].mxu1 %v13710_v6  ;;  %v5353_v6 = vshrl.u32 %v13719_v8, 16 }
 0x697   : > { %6422 = vmatprep.mubr.bf16.mxu1 %v14218_v37 }
 0x698   : > { %v5355_v7 = vor.u32 %v5353_v6, %v5351_v55 }
 0x69a   : > { %v14232_v49 = vsel %vm17427_vm11, %v5355_v7, %v13991_v19  ;;  %v14267_v7 = vld [vmem:[#allocation2 + $0xe0] sm:$0xff]  ;;  %vm17676_vm11 = vmmov %vm17528_vm0 }
 0x69b   : > { %17439 = vst [vmem:[#allocation40_spill] sm:$0xff] %v14267_v7 }
 0x69e   : > { %6423 = vmatmul.mubr.bf16.gmra.mrb[152].mxu1 %v13713_v47  ;;  %v14237_v47 = vld [vmem:[#allocation2 + $0xc8] sm:$0xff] }
 0x69f   : > { %6430 = vmatprep.mubr.bf16.mxu1 %v14225_v59 }
 0x6a6   : > { %6431 = vmatmul.mubr.bf16.gmra.mrb[156].mxu1 %v13716_v30 }
 0x6a7   : > { %6438 = vmatprep.mubr.bf16.mxu1 %v14232_v49 }
 0x6ae   : > { %6439 = vmatmul.mubr.bf16.gmra.mrb[160].mxu1 %v13719_v8 }
 0x6af   : > { %6446 = vmatprep.mubr.bf16.mxu1 %v14015_v58 }
 0x6b6   : > { %6447 = vmatmul.mubr.bf16.gmra.mrb[164].mxu1 %v14237_v47 }
 0x6b7   : > { %6454 = vmatprep.mubr.bf16.mxu1 %v14023_v56 }
 0x6bb   : > { %v14241_v27 = vpop.f32.mrb[128].mxu0 }
 0x6bc   : > { %17428 = vst [vmem:[#allocation54_spill] sm:$0xff] %v14241_v27  ;;  %v14245_v30 = vpop.f32.mrb[129].mxu0 }
 0x6bd   : > { %17430 = vst [vmem:[#allocation58_spill] sm:$0xff] %v14245_v30  ;;  %v14248_v19 = vpop.f32.mrb[130].mxu0 }
 0x6be   : > { %6455 = vmatmul.mubr.bf16.gmra.mrb[168].mxu1 %v14243_v23  ;;  %17431 = vst [vmem:[#allocation60_spill] sm:$0xff] %v14248_v19  ;;  %v14251_v8 = vpop.f32.mrb[131].mxu0 }
 0x6bf   : > { %6462 = vmatprep.mubr.bf16.mxu1 %v14028_v46  ;;  %17432 = vst [vmem:[#allocation74_spill] sm:$0xff] %v14251_v8 }
 0x6c3   : > { %v14253_v42 = vpop.f32.mrb[132].mxu0 }
 0x6c4   : > { %17433 = vst [vmem:[#allocation62_spill] sm:$0xff] %v14253_v42  ;;  %v14257_v13 = vpop.f32.mrb[133].mxu0 }
 0x6c5   : > { %17435 = vst [vmem:[#allocation77_spill] sm:$0xff] %v14257_v13  ;;  %v14260_v12 = vpop.f32.mrb[134].mxu0 }
 0x6c6   : > { %6463 = vmatmul.mubr.bf16.gmra.mrb[172].mxu1 %v14255_v25  ;;  %17436 = vst [vmem:[#allocation87_spill] sm:$0xff] %v14260_v12  ;;  %v14263_v55 = vpop.f32.mrb[135].mxu0  ;;  %v14279_v12 = vld [vmem:[#allocation2 + $0xe8] sm:$0xff] }
 0x6c7   : > { %6470 = vmatprep.mubr.bf16.mxu1 %v14033_v14  ;;  %17437 = vst [vmem:[#allocation38_spill] sm:$0xff] %v14263_v55  ;;  %17444 = vst [vmem:[#allocation30_spill] sm:$0xff] %v14279_v12 }
 0x6cb   : > { %v14265_v6 = vpop.f32.mrb[136].mxu0 }
 0x6cc   : > { %17438 = vst [vmem:[#allocation85_spill] sm:$0xff] %v14265_v6  ;;  %v14269_v19 = vpop.f32.mrb[137].mxu0 }
 0x6cd   : > { %17440 = vst [vmem:[#allocation81_spill] sm:$0xff] %v14269_v19  ;;  %v14272_v42 = vpop.f32.mrb[138].mxu0  ;;  %v5413_v19 = vshll.u32 %v14133_v28, 16 }
 0x6ce   : > { %6471 = vmatmul.mubr.bf16.gmra.mrb[176].mxu1 %v14267_v7  ;;  %17441 = vst [vmem:[#allocation42_spill] sm:$0xff] %v14272_v42  ;;  %v14275_v13 = vpop.f32.mrb[139].mxu0  ;;  %v5409_v42 = vshrl.u32 %v13748_v24, 16 }
 0x6cf   : > { %6478 = vmatprep.mubr.bf16.mxu1 %v14036_v63  ;;  %17442 = vst [vmem:[#allocation83_spill] sm:$0xff] %v14275_v13  ;;  %v14291_v30 = vrot.slane %v5413_v19, 1  ;;  %v14296_v63 = vld [vmem:[#allocation2 + $0xf0] sm:$0xff] }
 0x6d0   : > { %17450 = vst [vmem:[#allocation111_spill] sm:$0xff] %v14296_v63 }
 0x6d1   : > { %17448 = vst [vmem:[#allocation76_spill] sm:$0xff] %v14291_v30 }
 0x6d3   : > { %v14277_v27 = vpop.f32.mrb[140].mxu0 }
 0x6d4   : > { %17443 = vst [vmem:[#allocation6_spill] sm:$0xff] %v14277_v27  ;;  %v14281_v8 = vpop.f32.mrb[141].mxu0  ;;  %v5411_v27 = vor.u32 %v5409_v42, %v14038_v39 }
 0x6d5   : > { %17445 = vst [vmem:[#allocation73_spill] sm:$0xff] %v14281_v8  ;;  %v14284_v6 = vpop.f32.mrb[142].mxu0 }
 0x6d6   : > { %6479 = vmatmul.mubr.bf16.gmra.mrb[180].mxu1 %v14279_v12  ;;  %17446 = vst [vmem:[#allocation14_spill] sm:$0xff] %v14284_v6  ;;  %v14288_v55 = vpop.f32.mrb[143].mxu0  ;;  %v14303_v6 = vsel %vm17452_vm12, %v5411_v27, %v14291_v30  ;;  %vm17678_vm12 = vmmov %vm17528_vm0 }
 0x6d7   : > { %6486 = vmatprep.mubr.bf16.mxu1 %v14047_v52  ;;  %17447 = vst [vmem:[#allocation114_spill] sm:$0xff] %v14288_v55 }
 0x6db   : > { %v14293_v13 = vpop.f32.mrb[144].mxu0 }
 0x6dc   : > { %17449 = vst [vmem:[#allocation36_spill] sm:$0xff] %v14293_v13  ;;  %v14298_v8 = vpop.f32.mrb[145].mxu0  ;;  %v14312_v13 = vld [vmem:[#allocation2 + $0xf8] sm:$0xff] }
 0x6dd   : > { %17451 = vst [vmem:[#allocation71_spill] sm:$0xff] %v14298_v8  ;;  %v14305_v52 = vpop.f32.mrb[146].mxu0  ;;  %17456 = vst [vmem:[#allocation46_spill] sm:$0xff] %v14312_v13  ;;  %v5156_v8 = vld [vmem:[#allocation2] sm:$0xfe] }
 0x6de   : > { %6487 = vmatmul.mubr.bf16.gmra.mrb[184].mxu1 %v14296_v63  ;;  %17453 = vst [vmem:[#allocation44_spill] sm:$0xff] %v14305_v52  ;;  %v14308_v24 = vpop.f32.mrb[147].mxu0  ;;  %v5482_v52 = vrot.slane %v5156_v8, 1  ;;  %v10304_v8 = vld [vmem:[%s16344_s3 + $0x108] sm:$0xff]  }
 0x6df   : > { %6494 = vmatprep.mubr.bf16.mxu1 %v14303_v6  ;;  %17454 = vst [vmem:[#allocation108_spill] sm:$0xff] %v14308_v24  ;;  %v10303_v24 = vld [vmem:[%s16344_s3 + $0x100] sm:$0xff]  }
 0x6e3   : > { %v14310_v19 = vpop.f32.mrb[148].mxu0 }
 0x6e4   : > { %17455 = vst [vmem:[#allocation75_spill] sm:$0xff] %v14310_v19  ;;  %v14314_v39 = vpop.f32.mrb[149].mxu0  ;;  %v5484_v19 = vsel %vm17461_vm13, %v5482_v52, %v13776_v17  ;;  %v10305_v52 = vld [vmem:[%s16344_s3 + $0x110] sm:$0xff]   ;;  %vm17680_vm13 = vmmov %vm17528_vm0 }
 0x6e5   : > { %17457 = vst [vmem:[#allocation105_spill] sm:$0xff] %v14314_v39  ;;  %v14317_v42 = vpop.f32.mrb[150].mxu0 }
 0x6e6   : > { %6495 = vmatmul.mubr.bf16.gmra.mrb[188].mxu1 %v14312_v13  ;;  %17458 = vst [vmem:[#allocation69_spill] sm:$0xff] %v14317_v42  ;;  %v14320_v27 = vpop.f32.mrb[151].mxu0 }
 0x6e7   : > { %6535 = vmatprep.mubr.bf16.mxu1 %v13829_v0  ;;  %17459 = vst [vmem:[#allocation48_spill] sm:$0xff] %v14320_v27  ;;  %v17508_v27 = vld [vmem:[#allocation39_spill] sm:$0xff] }
 0x6eb   : > { %v14325_v55 = vpop.f32.mrb[152].mxu0 }
 0x6ec   : > { %17460 = vst [vmem:[#allocation102_spill] sm:$0xff] %v14325_v55  ;;  %v14329_v39 = vpop.f32.mrb[153].mxu0  ;;  %v5485_v55 = vrot.slane %v13829_v0, 1 }
 0x6ed   : > { %17462 = vst [vmem:[#allocation13_spill] sm:$0xff] %v14329_v39  ;;  %v14331_v30 = vpop.f32.mrb[154].mxu0  ;;  %v14489_v39 = vld [vmem:[#allocation2 + $0x70] sm:$0xff] }
 0x6ee   : > { %6536 = vmatmul.mubr.bf16.vlgmr.msra.gmra.mrb[64].mxu1 %v5484_v19  ;;  %17463 = vst [vmem:[#allocation11_spill] sm:$0xff] %v14331_v30  ;;  %v14334_v42 = vpop.f32.mrb[155].mxu0  ;;  %17507 = vst [vmem:[#allocation104_spill] sm:$0xff] %v14489_v39 }
 0x6ef   : > { %6543 = vmatprep.mubr.bf16.mxu1 %v13635_v62  ;;  %6793 = vmatpush1.bf16.msra.mxu1 %v10303_v24  ;;  %17464 = vst [vmem:[#allocation99_spill] sm:$0xff] %v14334_v42  ;;  %v5486_v24 = vsel %vm17466_vm14, %v13776_v17, %v5485_v55  ;;  %v10307_v17 = vld [vmem:[%s16344_s3 + $0x120] sm:$0xff]   ;;  %vm17683_vm14 = vmmov %vm17528_vm0 }
 0x6f0   : > { %6794 = vmatprep.subr.bf16.mxu1 %v13850_v41 }
 0x6f3   : > { %6795 = vmatpush1.bf16.msra.mxu1 %v10304_v8  ;;  %v14344_v19 = vpop.f32.mrb[156].mxu0  ;;  %v10306_v8 = vld [vmem:[%s16344_s3 + $0x118] sm:$0xff]  }
 0x6f4   : > { %17465 = vst [vmem:[#allocation67_spill] sm:$0xff] %v14344_v19  ;;  %6796 = vmatprep.subr.bf16.mxu1 %v13850_v41  ;;  %v14349_v30 = vpop.f32.mrb[157].mxu0  ;;  %v5487_v19 = vrot.slane %v13635_v62, 1 }
 0x6f5   : > { %17467 = vst [vmem:[#allocation19_spill] sm:$0xff] %v14349_v30  ;;  %v14351_v42 = vpop.f32.mrb[158].mxu0  ;;  %v10316_v30 = vld [vmem:[%s16344_s3 + $0x168] sm:$0xff]  }
 0x6f6   : > { %6544 = vmatmul.mubr.bf16.gmra.mrb[68].mxu1 %v5486_v24  ;;  %17468 = vst [vmem:[#allocation96_spill] sm:$0xff] %v14351_v42  ;;  %v14354_v0 = vpop.f32.mrb[159].mxu0  ;;  %v14368_v42 = vsel %vm17471_vm15, %v5485_v55, %v5487_v19  ;;  %v10309_v55 = vld [vmem:[%s16344_s3 + $0x130] sm:$0xff]   ;;  %vm17690_vm15 = vmmov %vm17528_vm0 }
 0x6f7   : > { %6551 = vmatprep.mubr.bf16.mxu1 %v13638_v51  ;;  %17469 = vst [vmem:[#allocation24_spill] sm:$0xff] %v14354_v0  ;;  %6797 = vmatpush1.bf16.msra.mxu1 %v10305_v52 }
 0x6f8   : > { %6798 = vmatprep.subr.bf16.mxu1 %v13850_v41 }
 0x6fb   : > { %6799 = vmatpush1.bf16.msra.mxu1 %v10306_v8  ;;  %v14364_v24 = vpop.f32.mrb[160].mxu0  ;;  %v10308_v8 = vld [vmem:[%s16344_s3 + $0x128] sm:$0xff]  }
 0x6fc   : > { %17470 = vst [vmem:[#allocation51_spill] sm:$0xff] %v14364_v24  ;;  %6800 = vmatprep.subr.bf16.mxu1 %v13850_v41  ;;  %v14370_v52 = vpop.f32.mrb[161].mxu0 }
 0x6fd   : > { %17472 = vst [vmem:[#allocation93_spill] sm:$0xff] %v14370_v52  ;;  %v14373_v0 = vpop.f32.mrb[162].mxu0  ;;  %v14469_v52 = vld [vmem:[#allocation2 + $0x58] sm:$0xff] }
 0x6fe   : > { %6552 = vmatmul.mubr.bf16.gmra.mrb[72].mxu1 %v14368_v42  ;;  %17473 = vst [vmem:[#allocation22_spill] sm:$0xff] %v14373_v0  ;;  %v14376_v62 = vpop.f32.mrb[163].mxu0  ;;  %17501 = vst [vmem:[#allocation103_spill] sm:$0xff] %v14469_v52 }
 0x6ff   : > { %6559 = vmatprep.mubr.bf16.mxu1 %v13641_v3  ;;  %17474 = vst [vmem:[#allocation53_spill] sm:$0xff] %v14376_v62  ;;  %6801 = vmatpush1.bf16.msra.mxu1 %v10307_v17  ;;  %v17476_v3 = vrot.slane %v13638_v51, 1  ;;  %v10311_v51 = vld [vmem:[%s16344_s3 + $0x140] sm:$0xff]  }
 0x700   : > { %6802 = vmatprep.subr.bf16.mxu1 %v13850_v41 }
 0x701   : > { %v14391_v0 = vsel %vm17417_vm3, %v5487_v19, %v17476_v3  ;;  %vm17694_vm3 = vmmov %vm17528_vm0 }
 0x703   : > { %6803 = vmatpush1.bf16.msra.mxu1 %v10308_v8  ;;  %v14385_v24 = vpop.f32.mrb[164].mxu0 }
 0x704   : > { %17475 = vst [vmem:[#allocation90_spill] sm:$0xff] %v14385_v24  ;;  %6804 = vmatprep.subr.bf16.mxu1 %v13850_v41  ;;  %v14393_v17 = vpop.f32.mrb[165].mxu0  ;;  %v10310_v24 = vld [vmem:[%s16344_s3 + $0x138] sm:$0xff]  }
 0x705   : > { %17477 = vst [vmem:[#allocation9_spill] sm:$0xff] %v14393_v17  ;;  %v14396_v62 = vpop.f32.mrb[166].mxu0  ;;  %v17500_v17 = vld [vmem:[#allocation61_spill] sm:$0xff] }
 0x706   : > { %6560 = vmatmul.mubr.bf16.gmra.mrb[76].mxu1 %v14391_v0  ;;  %17478 = vst [vmem:[#allocation55_spill] sm:$0xff] %v14396_v62  ;;  %v14399_v8 = vpop.f32.mrb[167].mxu0  ;;  %v14447_v62 = vld [vmem:[#allocation2 + $0x48] sm:$0xff] }
 0x707   : > { %6567 = vmatprep.mubr.bf16.mxu1 %v13644_v38  ;;  %17479 = vst [vmem:[#allocation26_spill] sm:$0xff] %v14399_v8  ;;  %6805 = vmatpush1.bf16.msra.mxu1 %v10309_v55  ;;  %17492 = vst [vmem:[#allocation28_spill] sm:$0xff] %v14447_v62  ;;  %v14463_v8 = vld [vmem:[#allocation2 + $0x50] sm:$0xff] }
 0x708   : > { %6806 = vmatprep.subr.bf16.mxu1 %v13850_v41  ;;  %17498 = vst [vmem:[#allocation106_spill] sm:$0xff] %v14463_v8 }
 0x70b   : > { %6807 = vmatpush1.bf16.msra.mxu1 %v10310_v24  ;;  %v14408_v19 = vpop.f32.mrb[168].mxu0  ;;  %v10312_v24 = vld [vmem:[%s16344_s3 + $0x148] sm:$0xff]  }
 0x70c   : > { %17480 = vst [vmem:[#allocation12_spill] sm:$0xff] %v14408_v19  ;;  %6808 = vmatprep.subr.bf16.mxu1 %v13850_v41  ;;  %v14411_v3 = vpop.f32.mrb[169].mxu0  ;;  %v10313_v19 = vld [vmem:[%s16344_s3 + $0x150] sm:$0xff]  }
 0x70d   : > { %17481 = vst [vmem:[#allocation57_spill] sm:$0xff] %v14411_v3  ;;  %v14414_v38 = vpop.f32.mrb[170].mxu0 }
 0x70e   : > { %6568 = vmatmul.mubr.bf16.gmra.mrb[80].mxu1 %v13791_v9  ;;  %17482 = vst [vmem:[#allocation15_spill] sm:$0xff] %v14414_v38  ;;  %v14417_v55 = vpop.f32.mrb[171].mxu0 }
 0x70f   : > { %6575 = vmatprep.mubr.bf16.mxu1 %v13647_v26  ;;  %17483 = vst [vmem:[#allocation20_spill] sm:$0xff] %v14417_v55  ;;  %6809 = vmatpush1.bf16.msra.mxu1 %v10311_v51  ;;  %v14434_v51 = vld [vmem:[#allocation2 + $0x40] sm:$0xff] }
 0x710   : > { %6810 = vmatprep.subr.bf16.mxu1 %v13850_v41  ;;  %17487 = vst [vmem:[#allocation79_spill] sm:$0xff] %v14434_v51 }
 0x713   : > { %6811 = vmatpush1.bf16.msra.mxu1 %v10312_v24  ;;  %v14426_v3 = vpop.f32.mrb[172].mxu0 }
 0x714   : > { %17484 = vst [vmem:[#allocation21_spill] sm:$0xff] %v14426_v3  ;;  %6812 = vmatprep.subr.bf16.mxu1 %v13850_v41  ;;  %v14429_v38 = vpop.f32.mrb[173].mxu0 }
 0x715   : > { %17485 = vst [vmem:[#allocation35_spill] sm:$0xff] %v14429_v38  ;;  %v14432_v26 = vpop.f32.mrb[174].mxu0 }
 0x716   : > { %6576 = vmatmul.mubr.bf16.gmra.mrb[84].mxu1 %v13795_v36  ;;  %17486 = vst [vmem:[#allocation16_spill] sm:$0xff] %v14432_v26  ;;  %v14437_v55 = vpop.f32.mrb[175].mxu0 }
 0x717   : > { %6583 = vmatprep.mubr.bf16.mxu1 %v14434_v51  ;;  %17488 = vst [vmem:[#allocation34_spill] sm:$0xff] %v14437_v55  ;;  %6813 = vmatpush1.bf16.msra.mxu1 %v10313_v19  ;;  %v10314_v19 = vld [vmem:[%s16344_s3 + $0x158] sm:$0xff]   ;;  %v17496_v55 = vld [vmem:[#allocation59_spill] sm:$0xff] }
 0x718   : > { %6814 = vmatprep.subr.bf16.mxu1 %v13850_v41  ;;  %v14517_v51 = vld [vmem:[#allocation2 + $0x98] sm:$0xff] }
 0x719   : > { %17516 = vst [vmem:[#allocation94_spill] sm:$0xff] %v14517_v51 }
 0x71b   : > { %v14440_v24 = vpop.f32.mrb[176].mxu0  ;;  %6815 = vmatpush1.bf16.msra.mxu1 %v10314_v19  ;;  %v10315_v19 = vld [vmem:[%s16344_s3 + $0x160] sm:$0xff]  }
 0x71c   : > { %17489 = vst [vmem:[#allocation29_spill] sm:$0xff] %v14440_v24  ;;  %v14442_v3 = vpop.f32.mrb[177].mxu0  ;;  %6816 = vmatprep.subr.bf16.mxu1 %v13850_v41 }
 0x71d   : > { %17490 = vst [vmem:[#allocation32_spill] sm:$0xff] %v14442_v3  ;;  %v14445_v38 = vpop.f32.mrb[178].mxu0 }
 0x71e   : > { %6584 = vmatmul.mubr.bf16.gmra.mrb[88].mxu1 %v13813_v61  ;;  %17491 = vst [vmem:[#allocation31_spill] sm:$0xff] %v14445_v38  ;;  %v14450_v26 = vpop.f32.mrb[179].mxu0 }
 0x71f   : > { %6591 = vmatprep.mubr.bf16.mxu1 %v14447_v62  ;;  %17493 = vst [vmem:[#allocation112_spill] sm:$0xff] %v14450_v26  ;;  %6817 = vmatpush1.bf16.msra.mxu1 %v10315_v19  ;;  %v17506_v19 = vld [vmem:[#allocation37_spill] sm:$0xff]  ;;  %v14513_v62 = vld [vmem:[#allocation2 + $0x90] sm:$0xff] }
 0x720   : > { %6818 = vmatprep.subr.bf16.mxu1 %v13850_v41 }
 0x723   : > { %v14456_v24 = vpop.f32.mrb[180].mxu0  ;;  %6819 = vmatpush1.bf16.msra.mxu1 %v10316_v30  ;;  %v17510_v30 = vld [vmem:[#allocation41_spill] sm:$0xff] }
 0x724   : > { %17494 = vst [vmem:[#allocation33_spill] sm:$0xff] %v14456_v24  ;;  %v14458_v3 = vpop.f32.mrb[181].mxu0  ;;  %v14477_v24 = vld [vmem:[#allocation2 + $0x60] sm:$0xff]  ;;  %6820 = vmatprep.subr.bf16.mxu1 %v13850_v41 }
 0x725   : > { %17495 = vst [vmem:[#allocation109_spill] sm:$0xff] %v14458_v3  ;;  %v14461_v38 = vpop.f32.mrb[182].mxu0  ;;  %17503 = vst [vmem:[#allocation107_spill] sm:$0xff] %v14477_v24  ;;  %v14481_v3 = vld [vmem:[#allocation2 + $0x68] sm:$0xff] }
 0x726   : > { %6592 = vmatmul.mubr.bf16.gmra.mrb[92].mxu1 %v17496_v55  ;;  %17497 = vst [vmem:[#allocation113_spill] sm:$0xff] %v14461_v38  ;;  %v14466_v26 = vpop.f32.mrb[183].mxu0  ;;  %v17502_v38 = vld [vmem:[#allocation66_spill] sm:$0xff]  ;;  %17505 = vst [vmem:[#allocation100_spill] sm:$0xff] %v14481_v3 }
 0x727   : > { %6599 = vmatprep.mubr.bf16.mxu1 %v14463_v8  ;;  %17499 = vst [vmem:[#allocation110_spill] sm:$0xff] %v14466_v26  ;;  %v17504_v26 = vld [vmem:[#allocation25_spill] sm:$0xff]  ;;  %v14505_v8 = vld [vmem:[#allocation2 + $0x88] sm:$0xff] }
 0x728   : > { %17513 = vst [vmem:[#allocation101_spill] sm:$0xff] %v14505_v8 }
 0x72e   : > { %6600 = vmatmul.mubr.bf16.gmra.mrb[96].mxu1 %v17500_v17 }
 0x72f   : > { %6607 = vmatprep.mubr.bf16.mxu1 %v14469_v52  ;;  %v14501_v52 = vld [vmem:[#allocation2 + $0x80] sm:$0xff] }
 0x730   : > { %17511 = vst [vmem:[#allocation97_spill] sm:$0xff] %v14501_v52 }
 0x736   : > { %6608 = vmatmul.mubr.bf16.gmra.mrb[100].mxu1 %v17502_v38 }
 0x737   : > { %6615 = vmatprep.mubr.bf16.mxu1 %v14477_v24  ;;  %v14493_v24 = vld [vmem:[#allocation2 + $0x78] sm:$0xff] }
 0x738   : > { %17509 = vst [vmem:[#allocation3_spill] sm:$0xff] %v14493_v24 }
 0x73e   : > { %6616 = vmatmul.mubr.bf16.gmra.mrb[104].mxu1 %v17504_v26 }
 0x73f   : > { %6623 = vmatprep.mubr.bf16.mxu1 %v14481_v3  ;;  %v10317_v3 = vld [vmem:[%s16344_s3 + $0x170] sm:$0xff]  }
 0x740   : > { %6821 = vmatpush1.bf16.msra.mxu1 %v10317_v3  ;;  %v17514_v3 = vld [vmem:[#allocation68_spill] sm:$0xff] }
 0x741   : > { %6822 = vmatprep.subr.bf16.mxu1 %v13850_v41 }
 0x746   : > { %6624 = vmatmul.mubr.bf16.gmra.mrb[108].mxu1 %v17506_v19 }
 0x747   : > { %6631 = vmatprep.mubr.bf16.mxu1 %v14489_v39  ;;  %v17512_v39 = vld [vmem:[#allocation43_spill] sm:$0xff] }
 0x74e   : > { %6632 = vmatmul.mubr.bf16.gmra.mrb[112].mxu1 %v17508_v27 }
 0x74f   : > { %6639 = vmatprep.mubr.bf16.mxu1 %v14493_v24  ;;  %v10318_v24 = vld [vmem:[%s16344_s3 + $0x178] sm:$0xff]  }
 0x750   : > { %6823 = vmatpush1.bf16.msra.mxu1 %v10318_v24  ;;  %v14529_v24 = vld [vmem:[#allocation2 + $0xb0] sm:$0xff] }
 0x751   : > { %7081 = vmatprep.subr.bf16.mxu1 %v13850_v41  ;;  %v14525_v41 = vld [vmem:[#allocation2 + $0xa8] sm:$0xff] }
 0x756   : > { %6640 = vmatmul.mubr.bf16.gmra.mrb[116].mxu1 %v17510_v30 }
 0x757   : > { %6647 = vmatprep.mubr.bf16.mxu1 %v14501_v52  ;;  %v17515_v52 = vld [vmem:[#allocation45_spill] sm:$0xff] }
 0x75e   : > { %6648 = vmatmul.mubr.bf16.gmra.mrb[120].mxu1 %v17512_v39 }
 0x75f   : > { %6655 = vmatprep.mubr.bf16.mxu1 %v14505_v8  ;;  %v14521_v8 = vld [vmem:[#allocation2 + $0xa0] sm:$0xff] }
 0x760   : > { %17517 = vst [vmem:[#allocation98_spill] sm:$0xff] %v14521_v8 }
 0x766   : > { %6656 = vmatmul.mubr.bf16.gmra.mrb[124].mxu1 %v17514_v3 }
 0x767   : > { %6663 = vmatprep.mubr.bf16.mxu1 %v14513_v62 }
 0x76e   : > { %6664 = vmatmul.mubr.bf16.gmra.mrb[128].mxu1 %v17515_v52 }
 0x76f   : > { %6671 = vmatprep.mubr.bf16.mxu1 %v14517_v51  ;;  %v14533_v51 = vld [vmem:[#allocation2 + $0xb8] sm:$0xff] }
 0x776   : > { %6672 = vmatmul.mubr.bf16.gmra.mrb[132].mxu1 %v13996_v10 }
 0x777   : > { %6679 = vmatprep.mubr.bf16.mxu1 %v14521_v8  ;;  %v14537_v8 = vld [vmem:[#allocation2 + $0xc0] sm:$0xff] }
 0x77e   : > { %6680 = vmatmul.mubr.bf16.gmra.mrb[136].mxu1 %v13999_v15 }
 0x77f   : > { %6687 = vmatprep.mubr.bf16.mxu1 %v14525_v41 }
 0x786   : > { %6688 = vmatmul.mubr.bf16.gmra.mrb[140].mxu1 %v14054_v45 }
 0x787   : > { %6695 = vmatprep.mubr.bf16.mxu1 %v14529_v24 }
 0x78e   : > { %6696 = vmatmul.mubr.bf16.gmra.mrb[144].mxu1 %v14060_v60 }
 0x78f   : > { %6703 = vmatprep.mubr.bf16.mxu1 %v14533_v51 }
 0x796   : > { %6704 = vmatmul.mubr.bf16.gmra.mrb[148].mxu1 %v14072_v53 }
 0x797   : > { %6711 = vmatprep.mubr.bf16.mxu1 %v14537_v8 }
 0x79e   : > { %6712 = vmatmul.mubr.bf16.gmra.mrb[152].mxu1 %v14078_v11 }
 0x79f   : > { %6719 = vmatprep.mubr.bf16.mxu1 %v14237_v47 }
 0x7a6   : > { %6720 = vmatmul.mubr.bf16.gmra.mrb[156].mxu1 %v14091_v57 }
 0x7a7   : > { %6727 = vmatprep.mubr.bf16.mxu1 %v14243_v23  ;;  %v17519_v23 = vld [vmem:[#allocation10_spill] sm:$0xff] }
 0x7ae   : > { %6728 = vmatmul.mubr.bf16.gmra.mrb[160].mxu1 %v14099_v32 }
 0x7af   : > { %6735 = vmatprep.mubr.bf16.mxu1 %v14255_v25  ;;  %v14557_v25 = vld [vmem:[#allocation2 + $0x108] sm:$0xff] }
 0x7b6   : > { %6736 = vmatmul.mubr.bf16.gmra.mrb[164].mxu1 %v13908_v1 }
 0x7b7   : > { %6743 = vmatprep.mubr.bf16.mxu1 %v14267_v7  ;;  %v14570_v7 = vld [vmem:[#allocation2 + $0x120] sm:$0xff] }
 0x7be   : > { %6744 = vmatmul.mubr.bf16.gmra.mrb[168].mxu1 %v13911_v48 }
 0x7bf   : > { %6751 = vmatprep.mubr.bf16.mxu1 %v14279_v12  ;;  %v17518_v12 = vld [vmem:[#allocation63_spill] sm:$0xff] }
 0x7c6   : > { %6752 = vmatmul.mubr.bf16.gmra.mrb[172].mxu1 %v13922_v35 }
 0x7c7   : > { %6759 = vmatprep.mubr.bf16.mxu1 %v14296_v63  ;;  %v10319_v63 = vld [vmem:[%s16344_s3 + $0x180] sm:$0xff]  }
 0x7ce   : > { %6760 = vmatmul.mubr.bf16.gmra.mrb[176].mxu1 %v13925_v21 }
 0x7cf   : > { %6767 = vmatprep.mubr.bf16.mxu1 %v14312_v13  ;;  %v10320_v13 = vld [vmem:[%s16344_s3 + $0x188] sm:$0xff]  }
 0x7d6   : > { %6768 = vmatmul.mubr.bf16.gmra.mrb[180].mxu1 %v13934_v44 }
 0x7d7   : > { %6775 = vmatprep.mubr.bf16.mxu1 %v14133_v28 }
 0x7de   : > { %6776 = vmatmul.mubr.bf16.gmra.mrb[184].mxu1 %v13941_v2 }
 0x7df   : > { %6783 = vmatprep.mubr.bf16.mxu1 %v14557_v25 }
 0x7e6   : > { %6784 = vmatmul.mubr.bf16.gmra.mrb[188].mxu1 %v14150_v31 }
 0x7e7   : > { %6824 = vmatprep.mubr.bf16.mxu1 %v14368_v42  ;;  %v10321_v42 = vld [vmem:[%s16344_s3 + $0x190] sm:$0xff]  }
 0x7ee   : > { %6825 = vmatmul.mubr.bf16.vlgmr.msra.gmra.mrb[64].mxu1 %v17518_v12  ;;  %v17520_v12 = vld [vmem:[#allocation23_spill] sm:$0xff] }
 0x7ef   : > { %6832 = vmatprep.mubr.bf16.mxu1 %v14391_v0  ;;  %7082 = vmatpush1.bf16.msra.mxu1 %v10319_v63  ;;  %v10322_v63 = vld [vmem:[%s16344_s3 + $0x198] sm:$0xff]   ;;  %v17521_v0 = vld [vmem:[#allocation18_spill] sm:$0xff] }
 0x7f0   : > { %7083 = vmatprep.subr.bf16.mxu1 %v14570_v7 }
 0x7f3   : > { %7084 = vmatpush1.bf16.msra.mxu1 %v10320_v13  ;;  %v10323_v13 = vld [vmem:[%s16344_s3 + $0x1a0] sm:$0xff]  }
 0x7f4   : > { %7085 = vmatprep.subr.bf16.mxu1 %v14570_v7 }
 0x7f6   : > { %6833 = vmatmul.mubr.bf16.gmra.mrb[68].mxu1 %v17519_v23  ;;  %v10325_v23 = vld [vmem:[%s16344_s3 + $0x1b0] sm:$0xff]  }
 0x7f7   : > { %6840 = vmatprep.mubr.bf16.mxu1 %v13791_v9  ;;  %7086 = vmatpush1.bf16.msra.mxu1 %v10321_v42  ;;  %v10324_v9 = vld [vmem:[%s16344_s3 + $0x1a8] sm:$0xff]   ;;  %v10327_v42 = vld [vmem:[%s16344_s3 + $0x1c0] sm:$0xff]  }
 0x7f8   : > { %7087 = vmatprep.subr.bf16.mxu1 %v14570_v7 }
 0x7fb   : > { %7088 = vmatpush1.bf16.msra.mxu1 %v10322_v63  ;;  %v10329_v63 = vld [vmem:[%s16344_s3 + $0x1d0] sm:$0xff]  }
 0x7fc   : > { %7089 = vmatprep.subr.bf16.mxu1 %v14570_v7 }
 0x7fe   : > { %6841 = vmatmul.mubr.bf16.gmra.mrb[72].mxu1 %v17520_v12 }
 0x7ff   : > { %6848 = vmatprep.mubr.bf16.mxu1 %v13795_v36  ;;  %7090 = vmatpush1.bf16.msra.mxu1 %v10323_v13  ;;  %v10326_v36 = vld [vmem:[%s16344_s3 + $0x1b8] sm:$0xff]   ;;  %v17522_v13 = vld [vmem:[#allocation52_spill] sm:$0xff] }
 0x800   : > { %7091 = vmatprep.subr.bf16.mxu1 %v14570_v7 }
 0x803   : > { %7092 = vmatpush1.bf16.msra.mxu1 %v10324_v9  ;;  %v10387_v9 = vld [vmem:[#allocation2] sm:$0xff] }
 0x804   : > { %7093 = vmatprep.subr.bf16.mxu1 %v14570_v7 }
 0x806   : > { %6849 = vmatmul.mubr.bf16.gmra.mrb[76].mxu1 %v17521_v0 }
 0x807   : > { %6856 = vmatprep.mubr.bf16.mxu1 %v13813_v61  ;;  %7094 = vmatpush1.bf16.msra.mxu1 %v10325_v23  ;;  %v10328_v61 = vld [vmem:[%s16344_s3 + $0x1c8] sm:$0xff]  }
 0x808   : > { %7095 = vmatprep.subr.bf16.mxu1 %v14570_v7  ;;  %v10388_v23 = vld [vmem:[%s16344_s3 + $0x208] sm:$0xff]  }
 0x80b   : > { %7096 = vmatpush1.bf16.msra.mxu1 %v10326_v36  ;;  %v10389_v36 = vld [vmem:[%s16344_s3 + $0x210] sm:$0xff]  }
 0x80c   : > { %7097 = vmatprep.subr.bf16.mxu1 %v14570_v7 }
 0x80e   : > { %6857 = vmatmul.mubr.bf16.gmra.mrb[80].mxu1 %v14009_v18 }
 0x80f   : > { %6864 = vmatprep.mubr.bf16.mxu1 %v17496_v55  ;;  %7098 = vmatpush1.bf16.msra.mxu1 %v10327_v42  ;;  %v10330_v55 = vld [vmem:[%s16344_s3 + $0x1d8] sm:$0xff]   ;;  %v10390_v42 = vld [vmem:[#allocation2 + $0x8] sm:$0xff] }
 0x810   : > { %7099 = vmatprep.subr.bf16.mxu1 %v14570_v7 }
 0x813   : > { %7100 = vmatpush1.bf16.msra.mxu1 %v10328_v61  ;;  %v10393_v61 = vld [vmem:[#allocation2 + $0x30] sm:$0xff] }
 0x814   : > { %7101 = vmatprep.subr.bf16.mxu1 %v14570_v7 }
 0x816   : > { %6865 = vmatmul.mubr.bf16.gmra.mrb[84].mxu1 %v14043_v54 }
 0x817   : > { %6872 = vmatprep.mubr.bf16.mxu1 %v17500_v17  ;;  %7102 = vmatpush1.bf16.msra.mxu1 %v10329_v63  ;;  %v10331_v17 = vld [vmem:[%s16344_s3 + $0x1e0] sm:$0xff]   ;;  %v10395_v63 = vld [vmem:[%s16344_s3 + $0x230] sm:$0xff]  }
 0x818   : > { %7103 = vmatprep.subr.bf16.mxu1 %v14570_v7 }
 0x81b   : > { %7104 = vmatpush1.bf16.msra.mxu1 %v10330_v55  ;;  %v10396_v55 = vld [vmem:[#allocation2 + $0x38] sm:$0xff] }
 0x81c   : > { %7105 = vmatprep.subr.bf16.mxu1 %v14570_v7 }
 0x81e   : > { %6873 = vmatmul.mubr.bf16.gmra.mrb[88].mxu1 %v14068_v34 }
 0x81f   : > { %6880 = vmatprep.mubr.bf16.mxu1 %v17502_v38  ;;  %7106 = vmatpush1.bf16.msra.mxu1 %v10331_v17  ;;  %v17523_v38 = vld [vmem:[#allocation70_spill] sm:$0xff]  ;;  %v17532_v17 = vld [vmem:[#allocation79_spill] sm:$0xff] }
 0x820   : > { %7107 = vmatprep.subr.bf16.mxu1 %v14570_v7 }
 0x826   : > { %6881 = vmatmul.mubr.bf16.gmra.mrb[92].mxu1 %v17522_v13 }
 0x827   : > { %6888 = vmatprep.mubr.bf16.mxu1 %v17504_v26  ;;  %v10332_v26 = vld [vmem:[%s16344_s3 + $0x1e8] sm:$0xff]  }
 0x828   : > { %7108 = vmatpush1.bf16.msra.mxu1 %v10332_v26  ;;  %v17533_v26 = vld [vmem:[#allocation28_spill] sm:$0xff] }
 0x829   : > { %7109 = vmatprep.subr.bf16.mxu1 %v14570_v7 }
 0x82e   : > { %6889 = vmatmul.mubr.bf16.gmra.mrb[96].mxu1 %v14105_v33 }
 0x82f   : > { %6896 = vmatprep.mubr.bf16.mxu1 %v17506_v19  ;;  %v17524_v19 = vld [vmem:[#allocation72_spill] sm:$0xff] }
 0x836   : > { %6897 = vmatmul.mubr.bf16.gmra.mrb[100].mxu1 %v14114_v50 }
 0x837   : > { %6904 = vmatprep.mubr.bf16.mxu1 %v17508_v27  ;;  %v10333_v27 = vld [vmem:[%s16344_s3 + $0x1f0] sm:$0xff]  }
 0x838   : > { %7110 = vmatpush1.bf16.msra.mxu1 %v10333_v27  ;;  %v17534_v27 = vld [vmem:[#allocation106_spill] sm:$0xff] }
 0x839   : > { %7111 = vmatprep.subr.bf16.mxu1 %v14570_v7 }
 0x83e   : > { %6905 = vmatmul.mubr.bf16.gmra.mrb[104].mxu1 %v17523_v38 }
 0x83f   : > { %6912 = vmatprep.mubr.bf16.mxu1 %v17510_v30  ;;  %v10386_v30 = vld [vmem:[%s16344_s3 + $0x200] sm:$0xff]  }
 0x846   : > { %6913 = vmatmul.mubr.bf16.gmra.mrb[108].mxu1 %v17524_v19 }
 0x847   : > { %6920 = vmatprep.mubr.bf16.mxu1 %v17512_v39  ;;  %v10334_v39 = vld [vmem:[%s16344_s3 + $0x1f8] sm:$0xff]  }
 0x848   : > { %7112 = vmatpush1.bf16.msra.mxu1 %v10334_v39  ;;  %v17536_v39 = vld [vmem:[#allocation107_spill] sm:$0xff] }
 0x849   : > { %9229 = vmatprep.subr.bf16.mxu1 %v10386_v30 }
 0x84e   : > { %6921 = vmatmul.mubr.bf16.gmra.mrb[112].mxu1 %v14158_v4 }
 0x84f   : > { %6928 = vmatprep.mubr.bf16.mxu1 %v17514_v3 }
 0x856   : > { %6929 = vmatmul.mubr.bf16.gmra.mrb[116].mxu1 %v14165_v16 }
 0x857   : > { %6936 = vmatprep.mubr.bf16.mxu1 %v17515_v52 }
 0x85e   : > { %6937 = vmatmul.mubr.bf16.gmra.mrb[120].mxu1 %v14176_v29 }
 0x85f   : > { %6944 = vmatprep.mubr.bf16.mxu1 %v13996_v10  ;;  %v17525_v10 = vld [vmem:[#allocation47_spill] sm:$0xff] }
 0x866   : > { %6945 = vmatmul.mubr.bf16.gmra.mrb[124].mxu1 %v14183_v5 }
 0x867   : > { %6952 = vmatprep.mubr.bf16.mxu1 %v13999_v15  ;;  %v5583_v15 = vshll.u32 %v14557_v25, 16 }
 0x86e   : > { %6953 = vmatmul.mubr.bf16.gmra.mrb[128].mxu1 %v14190_v20 }
 0x86f   : > { %6960 = vmatprep.mubr.bf16.mxu1 %v14054_v45  ;;  %v17529_v45 = vld [vmem:[#allocation76_spill] sm:$0xff] }
 0x876   : > { %6961 = vmatmul.mubr.bf16.gmra.mrb[132].mxu1 %v14197_v22 }
 0x877   : > { %6968 = vmatprep.mubr.bf16.mxu1 %v14060_v60 }
 0x87e   : > { %6969 = vmatmul.mubr.bf16.gmra.mrb[136].mxu1 %v14204_v43 }
 0x87f   : > { %6976 = vmatprep.mubr.bf16.mxu1 %v14072_v53 }
 0x886   : > { %6977 = vmatmul.mubr.bf16.gmra.mrb[140].mxu1 %v14211_v40 }
 0x887   : > { %6984 = vmatprep.mubr.bf16.mxu1 %v14078_v11  ;;  %v5585_v11 = vrot.slane %v5583_v15, 1  ;;  %v17555_v15 = vld [vmem:[#allocation60_spill] sm:$0xff] }
 0x88e   : > { %6985 = vmatmul.mubr.bf16.gmra.mrb[144].mxu1 %v14218_v37 }
 0x88f   : > { %6992 = vmatprep.mubr.bf16.mxu1 %v14091_v57 }
 0x896   : > { %6993 = vmatmul.mubr.bf16.gmra.mrb[148].mxu1 %v14225_v59 }
 0x897   : > { %7000 = vmatprep.mubr.bf16.mxu1 %v14099_v32 }
 0x89e   : > { %7001 = vmatmul.mubr.bf16.gmra.mrb[152].mxu1 %v14232_v49 }
 0x89f   : > { %7008 = vmatprep.mubr.bf16.mxu1 %v13908_v1  ;;  %v17526_v1 = vld [vmem:[#allocation50_spill] sm:$0xff] }
 0x8a6   : > { %7009 = vmatmul.mubr.bf16.gmra.mrb[156].mxu1 %v14015_v58 }
 0x8a7   : > { %7016 = vmatprep.mubr.bf16.mxu1 %v13911_v48  ;;  %v5599_v48 = vrot.slane %v14557_v25, 1 }
 0x8ae   : > { %7017 = vmatmul.mubr.bf16.gmra.mrb[160].mxu1 %v14023_v56 }
 0x8af   : > { %7024 = vmatprep.mubr.bf16.mxu1 %v13922_v35  ;;  %v17527_v35 = vrot.slane %v14133_v28, 1 }
 0x8b6   : > { %7025 = vmatmul.mubr.bf16.gmra.mrb[164].mxu1 %v14028_v46 }
 0x8b7   : > { %7032 = vmatprep.mubr.bf16.mxu1 %v13925_v21  ;;  %v14693_v21 = vsel %vm17528_vm0, %v17527_v35, %v5599_v48 }
 0x8be   : > { %7033 = vmatmul.mubr.bf16.gmra.mrb[168].mxu1 %v14033_v14 }
 0x8bf   : > { %7040 = vmatprep.mubr.bf16.mxu1 %v13934_v44  ;;  %v5579_v44 = vshrl.u32 %v14133_v28, 16  ;;  %v5587_v28 = vshrl.u32 %v14557_v25, 16 }
 0x8c1   : > { %v5581_v60 = vor.u32 %v5579_v44, %v17529_v45  ;;  %v5589_v7 = vor.u32 %v5587_v28, %v5585_v11  ;;  %v14813_v44 = vld [vmem:[#allocation2 + $0x118] sm:$0xff] }
 0x8c3   : > { %v14703_v57 = vsel %vm17530_vm5, %v5581_v60, %v5585_v11  ;;  %v10398_v60 = vld [vmem:[#allocation2 + $0x100] sm:$0xff]  ;;  %vm17700_vm5 = vmmov %vm17528_vm0 }
 0x8c6   : > { %7041 = vmatmul.mubr.bf16.gmra.mrb[172].mxu1 %v17525_v10 }
 0x8c7   : > { %7048 = vmatprep.mubr.bf16.mxu1 %v13941_v2  ;;  %v14698_v2 = vld [vmem:[#allocation2 + $0x110] sm:$0xff] }
 0x8c8   : > { %v5601_v53 = vrot.slane %v14698_v2, 1  ;;  %v5605_v11 = vshrl.u32 %v14698_v2, 16 }
 0x8ca   : > { %v14709_v32 = vsel %vm17531_vm4, %v5599_v48, %v5601_v53  ;;  %vm17702_vm4 = vmmov %vm17528_vm0 }
 0x8ce   : > { %7049 = vmatmul.mubr.bf16.gmra.mrb[176].mxu1 %v17526_v1 }
 0x8cf   : > { %7056 = vmatprep.mubr.bf16.mxu1 %v14150_v31  ;;  %v5591_v31 = vshll.u32 %v14698_v2, 16 }
 0x8d1   : > { %v14714_v52 = vrot.slane %v5591_v31, 1 }
 0x8d3   : > { %v14718_v3 = vsel %vm17420_vm1, %v5589_v7, %v14714_v52  ;;  %vm17707_vm1 = vmmov %vm17528_vm0 }
 0x8d6   : > { %7057 = vmatmul.mubr.bf16.gmra.mrb[180].mxu1 %v14303_v6 }
 0x8d7   : > { %7064 = vmatprep.mubr.bf16.mxu1 %v14693_v21 }
 0x8de   : > { %7065 = vmatmul.mubr.bf16.gmra.mrb[184].mxu1 %v14703_v57 }
 0x8df   : > { %7072 = vmatprep.mubr.bf16.mxu1 %v14709_v32 }
 0x8e6   : > { %7073 = vmatmul.mubr.bf16.gmra.mrb[188].mxu1 %v14718_v3 }
 0x8e7   : > { %7113 = vmatprep.mubr.bf16.mxu1 %v17520_v12  ;;  %v10391_v12 = vld [vmem:[%s16344_s3 + $0x218] sm:$0xff]  }
 0x8ee   : > { %7114 = vmatmul.mubr.bf16.vlgmr.msra.gmra.mrb[64].mxu1 %v10387_v9  ;;  %v5607_v9 = vor.u32 %v5605_v11, %v14714_v52  ;;  %v5613_v52 = vshrl.u32 %v14813_v44, 16 }
 0x8ef   : > { %7121 = vmatprep.mubr.bf16.mxu1 %v17521_v0  ;;  %9237 = vmatpush3.bf16.msra.mxu1 %v10386_v30  ;;  %v10392_v0 = vld [vmem:[%s16344_s3 + $0x220] sm:$0xff]   ;;  %v17537_v30 = vld [vmem:[#allocation100_spill] sm:$0xff] }
 0x8f0   : > { %9230 = vmatprep.subr.bf16.mxu1 %v10388_v23 }
 0x8f3   : > { %9238 = vmatpush3.bf16.msra.mxu1 %v10388_v23 }
 0x8f4   : > { %9231 = vmatprep.subr.bf16.mxu1 %v10389_v36 }
 0x8f6   : > { %7122 = vmatmul.mubr.bf16.gmra.mrb[68].mxu1 %v10390_v42 }
 0x8f7   : > { %7129 = vmatprep.mubr.bf16.mxu1 %v14009_v18  ;;  %9239 = vmatpush3.bf16.msra.mxu1 %v10389_v36  ;;  %v10394_v18 = vld [vmem:[%s16344_s3 + $0x228] sm:$0xff]   ;;  %v17556_v36 = vld [vmem:[#allocation77_spill] sm:$0xff] }
 0x8f8   : > { %9232 = vmatprep.subr.bf16.mxu1 %v10391_v12 }
 0x8fb   : > { %9240 = vmatpush3.bf16.msra.mxu1 %v10391_v12 }
 0x8fc   : > { %9233 = vmatprep.subr.bf16.mxu1 %v10392_v0 }
 0x8fe   : > { %7130 = vmatmul.mubr.bf16.gmra.mrb[72].mxu1 %v10393_v61 }
 0x8ff   : > { %7137 = vmatprep.mubr.bf16.mxu1 %v14043_v54  ;;  %9241 = vmatpush3.bf16.msra.mxu1 %v10392_v0  ;;  %v10397_v54 = vld [vmem:[%s16344_s3 + $0x238] sm:$0xff]  }
 0x900   : > { %9234 = vmatprep.subr.bf16.mxu1 %v10394_v18 }
 0x903   : > { %9242 = vmatpush3.bf16.msra.mxu1 %v10394_v18  ;;  %v5155_v18 = vld [vmem:[#allocation2 + $0x120] sm:$0x1] }
 0x904   : > { %9235 = vmatprep.subr.bf16.mxu1 %v10395_v63 }
 0x906   : > { %7138 = vmatmul.mubr.bf16.gmra.mrb[76].mxu1 %v10396_v55 }
 0x907   : > { %7145 = vmatprep.mubr.bf16.mxu1 %v14068_v34  ;;  %9243 = vmatpush3.bf16.msra.mxu1 %v10395_v63  ;;  %v17535_v34 = vld [vmem:[#allocation103_spill] sm:$0xff] }
 0x908   : > { %9236 = vmatprep.subr.bf16.mxu1 %v10397_v54 }
 0x90b   : > { %9244 = vmatpush3.bf16.msra.mxu1 %v10397_v54  ;;  %v5617_v54 = vshll.u32 %v5155_v18, 16 }
 0x90e   : > { %7146 = vmatmul.mubr.bf16.gmra.mrb[80].mxu1 %v17532_v17 }
 0x90f   : > { %7153 = vmatprep.mubr.bf16.mxu1 %v17522_v13  ;;  %v17538_v13 = vld [vmem:[#allocation104_spill] sm:$0xff] }
 0x916   : > { %7154 = vmatmul.mubr.bf16.gmra.mrb[84].mxu1 %v17533_v26 }
 0x917   : > { %7161 = vmatprep.mubr.bf16.mxu1 %v14105_v33  ;;  %v17539_v33 = vld [vmem:[#allocation3_spill] sm:$0xff] }
 0x91e   : > { %7162 = vmatmul.mubr.bf16.gmra.mrb[88].mxu1 %v17534_v27 }
 0x91f   : > { %7169 = vmatprep.mubr.bf16.mxu1 %v14114_v50  ;;  %v17540_v50 = vld [vmem:[#allocation97_spill] sm:$0xff] }
 0x926   : > { %7170 = vmatmul.mubr.bf16.gmra.mrb[92].mxu1 %v17535_v34 }
 0x927   : > { %7177 = vmatprep.mubr.bf16.mxu1 %v17523_v38  ;;  %v17541_v38 = vld [vmem:[#allocation101_spill] sm:$0xff] }
 0x92e   : > { %7178 = vmatmul.mubr.bf16.gmra.mrb[96].mxu1 %v17536_v39  ;;  %v5619_v39 = vrot.slane %v5617_v54, 1  ;;  %v17577_v54 = vld [vmem:[#allocation14_spill] sm:$0xff] }
 0x92f   : > { %7185 = vmatprep.mubr.bf16.mxu1 %v17524_v19 }
 0x936   : > { %7186 = vmatmul.mubr.bf16.gmra.mrb[100].mxu1 %v17537_v30 }
 0x937   : > { %7193 = vmatprep.mubr.bf16.mxu1 %v14158_v4  ;;  %v17542_v4 = vld [vmem:[#allocation94_spill] sm:$0xff] }
 0x93e   : > { %7194 = vmatmul.mubr.bf16.gmra.mrb[104].mxu1 %v17538_v13  ;;  %v17561_v13 = vld [vmem:[#allocation62_spill] sm:$0xff] }
 0x93f   : > { %7201 = vmatprep.mubr.bf16.mxu1 %v14165_v16  ;;  %v17543_v16 = vld [vmem:[#allocation98_spill] sm:$0xff] }
 0x946   : > { %7202 = vmatmul.mubr.bf16.gmra.mrb[108].mxu1 %v17539_v33 }
 0x947   : > { %7209 = vmatprep.mubr.bf16.mxu1 %v14176_v29  ;;  %v17544_v29 = vld [vmem:[#allocation56_spill] sm:$0xff] }
 0x94e   : > { %7210 = vmatmul.mubr.bf16.gmra.mrb[112].mxu1 %v17540_v50 }
 0x94f   : > { %7217 = vmatprep.mubr.bf16.mxu1 %v14183_v5  ;;  %v17545_v5 = vld [vmem:[#allocation64_spill] sm:$0xff] }
 0x956   : > { %7218 = vmatmul.mubr.bf16.gmra.mrb[116].mxu1 %v17541_v38 }
 0x957   : > { %7225 = vmatprep.mubr.bf16.mxu1 %v14190_v20  ;;  %v17546_v20 = vld [vmem:[#allocation40_spill] sm:$0xff] }
 0x95e   : > { %7226 = vmatmul.mubr.bf16.gmra.mrb[120].mxu1 %v14513_v62  ;;  %v17551_v62 = vld [vmem:[#allocation74_spill] sm:$0xff] }
 0x95f   : > { %7233 = vmatprep.mubr.bf16.mxu1 %v14197_v22  ;;  %v17547_v22 = vld [vmem:[#allocation30_spill] sm:$0xff] }
 0x966   : > { %7234 = vmatmul.mubr.bf16.gmra.mrb[124].mxu1 %v17542_v4 }
 0x967   : > { %7241 = vmatprep.mubr.bf16.mxu1 %v14204_v43 }
 0x96e   : > { %7242 = vmatmul.mubr.bf16.gmra.mrb[128].mxu1 %v17543_v16 }
 0x96f   : > { %7249 = vmatprep.mubr.bf16.mxu1 %v14211_v40 }
 0x976   : > { %7250 = vmatmul.mubr.bf16.gmra.mrb[132].mxu1 %v14525_v41 }
 0x977   : > { %7257 = vmatprep.mubr.bf16.mxu1 %v14218_v37  ;;  %v17549_v37 = vld [vmem:[#allocation58_spill] sm:$0xff] }
 0x97e   : > { %7258 = vmatmul.mubr.bf16.gmra.mrb[136].mxu1 %v14529_v24 }
 0x97f   : > { %7265 = vmatprep.mubr.bf16.mxu1 %v14225_v59 }
 0x986   : > { %7266 = vmatmul.mubr.bf16.gmra.mrb[140].mxu1 %v14533_v51 }
 0x987   : > { %7273 = vmatprep.mubr.bf16.mxu1 %v14232_v49 }
 0x98e   : > { %7274 = vmatmul.mubr.bf16.gmra.mrb[144].mxu1 %v14537_v8 }
 0x98f   : > { %7281 = vmatprep.mubr.bf16.mxu1 %v14015_v58  ;;  %v17548_v58 = vld [vmem:[#allocation111_spill] sm:$0xff] }
 0x996   : > { %7282 = vmatmul.mubr.bf16.gmra.mrb[148].mxu1 %v14237_v47 }
 0x997   : > { %7289 = vmatprep.mubr.bf16.mxu1 %v14023_v56  ;;  %v14796_v56 = vld [vmem:[%s16345_s4] ss:$0 sm:$0xff] }
 0x99e   : > { %7290 = vmatmul.mubr.bf16.gmra.mrb[152].mxu1 %v17544_v29 }
 0x99f   : > { %7297 = vmatprep.mubr.bf16.mxu1 %v14028_v46 }
 0x9a6   : > { %7298 = vmatmul.mubr.bf16.gmra.mrb[156].mxu1 %v17545_v5 }
 0x9a7   : > { %7305 = vmatprep.mubr.bf16.mxu1 %v14033_v14 }
 0x9ae   : > { %7306 = vmatmul.mubr.bf16.gmra.mrb[160].mxu1 %v17546_v20 }
 0x9af   : > { %7313 = vmatprep.mubr.bf16.mxu1 %v17525_v10  ;;  %v17554_v10 = vld [vmem:[#allocation54_spill] sm:$0xff] }
 0x9b6   : > { %7314 = vmatmul.mubr.bf16.gmra.mrb[164].mxu1 %v17547_v22 }
 0x9b7   : > { %7321 = vmatprep.mubr.bf16.mxu1 %v17526_v1 }
 0x9be   : > { %7322 = vmatmul.mubr.bf16.gmra.mrb[168].mxu1 %v17548_v58  ;;  %v17564_v58 = vld [vmem:[#allocation81_spill] sm:$0xff] }
 0x9bf   : > { %7329 = vmatprep.mubr.bf16.mxu1 %v14303_v6  ;;  %v17553_v6 = vld [vmem:[#allocation46_spill] sm:$0xff] }
 0x9c1   : > { %v7115_v46 = vpop.f32.mrb[64].mxu1 }
 0x9c2   : > { %v9309_v14 = vadd.f32 %v14796_v56, %v7115_v46  ;;  %v7117_v43 = vpop.f32.mrb[65].mxu1 }
 0x9c3   : > { %v7118_v40 = vpop.f32.mrb[66].mxu1 }
 0x9c4   : > { %v14800_v59 = vadd.f32 %v9309_v14, %v17549_v37  ;;  %v9310_v49 = vadd.f32 %v14796_v56, %v7118_v40  ;;  %v7120_v47 = vpop.f32.mrb[67].mxu1  ;;  %v17566_v40 = vld [vmem:[#allocation83_spill] sm:$0xff] }
 0x9c6   : > { %17550 = vst [vmem:[#allocation91_spill] sm:$0xff] %v14800_v59  ;;  %v14804_v8 = vadd.f32 %v9310_v49, %v17551_v62  ;;  %7330 = vmatmul.mubr.bf16.gmra.mrb[172].mxu1 %v17553_v6  ;;  %v5625_v6 = vrot.slane %v14813_v44, 1 }
 0x9c7   : > { %7337 = vmatprep.mubr.bf16.mxu1 %v14703_v57  ;;  %v5609_v57 = vshll.u32 %v14813_v44, 16 }
 0x9c8   : > { %17552 = vst [vmem:[#allocation95_spill] sm:$0xff] %v14804_v8 }
 0x9c9   : > { %v7123_v51 = vpop.f32.mrb[68].mxu1  ;;  %v5611_v61 = vrot.slane %v5609_v57, 1 }
 0x9ca   : > { %v9311_v41 = vadd.f32 %v14796_v56, %v7123_v51  ;;  %v7125_v24 = vpop.f32.mrb[69].mxu1 }
 0x9cb   : > { %v7126_v19 = vpop.f32.mrb[70].mxu1  ;;  %v5612_v55 = vsel %vm17560_vm2, %v5607_v9, %v5611_v61  ;;  %v5615_v34 = vor.u32 %v5613_v52, %v5611_v61  ;;  %v17576_v61 = vld [vmem:[#allocation6_spill] sm:$0xff]  ;;  %vm17709_vm2 = vmmov %vm17528_vm0 }
 0x9cc   : > { %v14810_v1 = vadd.f32 %v9311_v41, %v17554_v10  ;;  %v9312_v48 = vadd.f32 %v14796_v56, %v7126_v19  ;;  %v7128_v35 = vpop.f32.mrb[71].mxu1  ;;  %v17568_v41 = vld [vmem:[#allocation85_spill] sm:$0xff] }
 0x9cd   : > { %v5620_v16 = vsel %vm17563_vm6, %v5615_v34, %v5619_v39  ;;  %v17578_v39 = vld [vmem:[#allocation71_spill] sm:$0xff]  ;;  %vm17715_vm6 = vmmov %vm17528_vm0 }
 0x9ce   : > { %v14816_v45 = vadd.f32 %v9312_v48, %v17555_v15  ;;  %7338 = vmatmul.mubr.bf16.gmra.mrb[176].mxu1 %v10398_v60  ;;  %v17569_v48 = vld [vmem:[#allocation42_spill] sm:$0xff]  ;;  %v5627_v60 = vrot.slane %v5155_v18, 1 }
 0x9cf   : > { %7345 = vmatprep.mubr.bf16.mxu1 %v14718_v3  ;;  %v17558_v3 = vld [vmem:[#allocation38_spill] sm:$0xff] }
 0x9d1   : > { %v7131_v28 = vpop.f32.mrb[72].mxu1 }
 0x9d2   : > { %v9313_v31 = vadd.f32 %v14796_v56, %v7131_v28  ;;  %v7133_v7 = vpop.f32.mrb[73].mxu1  ;;  %v17571_v28 = vld [vmem:[#allocation73_spill] sm:$0xff] }
 0x9d3   : > { %v7134_v23 = vpop.f32.mrb[74].mxu1 }
 0x9d4   : > { %v14824_v42 = vadd.f32 %v9313_v31, %v17556_v36  ;;  %v9314_v12 = vadd.f32 %v14796_v56, %v7134_v23  ;;  %v7136_v0 = vpop.f32.mrb[75].mxu1  ;;  %v5628_v23 = vsel %vm17573_vm8, %v5625_v6, %v5627_v60  ;;  %vm17719_vm8 = vmmov %vm17528_vm0 }
 0x9d6   : > { %17557 = vst [vmem:[#allocation88_spill] sm:$0xff] %v14824_v42  ;;  %v14828_v63 = vadd.f32 %v9314_v12, %v17558_v3  ;;  %7346 = vmatmul.mubr.bf16.gmra.mrb[180].mxu1 %v14557_v25  ;;  %v17562_v25 = vld [vmem:[#allocation87_spill] sm:$0xff] }
 0x9d7   : > { %7353 = vmatprep.mubr.bf16.mxu1 %v5612_v55 }
 0x9d8   : > { %17559 = vst [vmem:[#allocation92_spill] sm:$0xff] %v14828_v63 }
 0x9d9   : > { %v7139_v17 = vpop.f32.mrb[76].mxu1 }
 0x9da   : > { %v9315_v26 = vadd.f32 %v14796_v56, %v7139_v17  ;;  %v7141_v27 = vpop.f32.mrb[77].mxu1 }
 0x9db   : > { %v7142_v30 = vpop.f32.mrb[78].mxu1 }
 0x9dc   : > { %v14835_v33 = vadd.f32 %v9315_v26, %v17561_v13  ;;  %v9316_v50 = vadd.f32 %v14796_v56, %v7142_v30  ;;  %v7144_v38 = vpop.f32.mrb[79].mxu1 }
 0x9dd   : > { %v17580_v38 = vld [vmem:[#allocation108_spill] sm:$0xff] }
 0x9de   : > { %v14839_v4 = vadd.f32 %v9316_v50, %v17562_v25  ;;  %7354 = vmatmul.mubr.bf16.gmra.mrb[184].mxu1 %v14698_v2 }
 0x9df   : > { %7361 = vmatprep.mubr.bf16.mxu1 %v5620_v16 }
 0x9e1   : > { %v7147_v29 = vpop.f32.mrb[80].mxu1 }
 0x9e2   : > { %v9317_v5 = vadd.f32 %v14796_v56, %v7147_v29  ;;  %v7149_v20 = vpop.f32.mrb[81].mxu1 }
 0x9e3   : > { %v7150_v22 = vpop.f32.mrb[82].mxu1 }
 0x9e4   : > { %v14845_v46 = vadd.f32 %v9317_v5, %v17564_v58  ;;  %v9318_v14 = vadd.f32 %v14796_v56, %v7150_v22  ;;  %v7152_v43 = vpop.f32.mrb[83].mxu1  ;;  %v17582_v22 = vld [vmem:[#allocation36_spill] sm:$0xff] }
 0x9e6   : > { %17565 = vst [vmem:[#allocation86_spill] sm:$0xff] %v14845_v46  ;;  %v14849_v37 = vadd.f32 %v9318_v14, %v17566_v40  ;;  %7362 = vmatmul.mubr.bf16.gmra.mrb[188].mxu1 %v14813_v44  ;;  %v17583_v40 = vld [vmem:[#allocation44_spill] sm:$0xff] }
 0x9e7   : > { %9221 = vmatprep.mubr.bf16.mxu1 %v14693_v21  ;;  %v5626_v21 = vsel %vm17570_vm7, %v5601_v53, %v5625_v6  ;;  %vm17717_vm7 = vmmov %vm17528_vm0 }
 0x9e8   : > { %17567 = vst [vmem:[#allocation89_spill] sm:$0xff] %v14849_v37 }
 0x9e9   : > { %v7155_v49 = vpop.f32.mrb[84].mxu1 }
 0x9ea   : > { %v9319_v47 = vadd.f32 %v14796_v56, %v7155_v49  ;;  %v7157_v62 = vpop.f32.mrb[85].mxu1 }
 0x9eb   : > { %v7158_v51 = vpop.f32.mrb[86].mxu1 }
 0x9ec   : > { %v14856_v24 = vadd.f32 %v9319_v47, %v17568_v41  ;;  %v9320_v19 = vadd.f32 %v14796_v56, %v7158_v51  ;;  %v7160_v10 = vpop.f32.mrb[87].mxu1  ;;  %v17584_v41 = vld [vmem:[#allocation105_spill] sm:$0xff] }
 0x9ee   : > { %v14860_v35 = vadd.f32 %v9320_v19, %v17569_v48  ;;  %9222 = vmatmul.mubr.bf16.vlgmr.msra.gmra.mrb[192].mxu1 %v14709_v32  ;;  %v17574_v32 = vld [vmem:[#allocation114_spill] sm:$0xff] }
 0x9ef   : > { %9225 = vmatprep.mubr.bf16.mxu1 %v5626_v21  ;;  %v17586_v21 = vld [vmem:[#allocation48_spill] sm:$0xff] }
 0x9f1   : > { %v7163_v15 = vpop.f32.mrb[88].mxu1 }
 0x9f2   : > { %v9321_v44 = vadd.f32 %v14796_v56, %v7163_v15  ;;  %v7165_v11 = vpop.f32.mrb[89].mxu1 }
 0x9f3   : > { %v7166_v57 = vpop.f32.mrb[90].mxu1 }
 0x9f4   : > { %v14868_v31 = vadd.f32 %v9321_v44, %v17571_v28  ;;  %v9322_v7 = vadd.f32 %v14796_v56, %v7166_v57  ;;  %v7168_v9 = vpop.f32.mrb[91].mxu1  ;;  %v17588_v28 = vld [vmem:[#allocation75_spill] sm:$0xff] }
 0x9f6   : > { %17572 = vst [vmem:[#allocation78_spill] sm:$0xff] %v14868_v31  ;;  %v14873_v36 = vadd.f32 %v9322_v7, %v17574_v32  ;;  %9226 = vmatmul.mubr.bf16.gmra.mrb[196].mxu1 %v5628_v23  ;;  %v17589_v32 = vld [vmem:[#allocation69_spill] sm:$0xff] }
 0x9f8   : > { %17575 = vst [vmem:[#allocation82_spill] sm:$0xff] %v14873_v36 }
 0x9f9   : > { %v7171_v2 = vpop.f32.mrb[92].mxu1 }
 0x9fa   : > { %v9323_v53 = vadd.f32 %v14796_v56, %v7171_v2  ;;  %v7173_v12 = vpop.f32.mrb[93].mxu1 }
 0x9fb   : > { %v7174_v0 = vpop.f32.mrb[94].mxu1 }
 0x9fc   : > { %v14877_v18 = vadd.f32 %v9323_v53, %v17576_v61  ;;  %v9324_v3 = vadd.f32 %v14796_v56, %v7174_v0  ;;  %v7176_v55 = vpop.f32.mrb[95].mxu1 }
 0x9fe   : > { %v14881_v52 = vadd.f32 %v9324_v3, %v17577_v54  ;;  %v17590_v3 = vld [vmem:[#allocation13_spill] sm:$0xff] }
 0xa01   : > { %v7179_v17 = vpop.f32.mrb[96].mxu1 }
 0xa02   : > { %v9325_v26 = vadd.f32 %v14796_v56, %v7179_v17  ;;  %v7181_v27 = vpop.f32.mrb[97].mxu1 }
 0xa03   : > { %v7182_v34 = vpop.f32.mrb[98].mxu1 }
 0xa04   : > { %v14885_v30 = vadd.f32 %v9325_v26, %v17578_v39  ;;  %v9326_v13 = vadd.f32 %v14796_v56, %v7182_v34  ;;  %v7184_v50 = vpop.f32.mrb[99].mxu1  ;;  %v17592_v26 = vld [vmem:[#allocation99_spill] sm:$0xff] }
 0xa06   : > { %17579 = vst [vmem:[#allocation80_spill] sm:$0xff] %v14885_v30  ;;  %v14889_v25 = vadd.f32 %v9326_v13, %v17580_v38  ;;  %v17594_v38 = vld [vmem:[#allocation102_spill] sm:$0xff] }
 0xa08   : > { %17581 = vst [vmem:[#allocation84_spill] sm:$0xff] %v14889_v25 }
 0xa09   : > { %v7187_v16 = vpop.f32.mrb[100].mxu1 }
 0xa0a   : > { %v9327_v29 = vadd.f32 %v14796_v56, %v7187_v16  ;;  %v7189_v5 = vpop.f32.mrb[101].mxu1 }
 0xa0b   : > { %v7190_v20 = vpop.f32.mrb[102].mxu1 }
 0xa0c   : > { %v14893_v58 = vadd.f32 %v9327_v29, %v17582_v22  ;;  %v9328_v14 = vadd.f32 %v14796_v56, %v7190_v20  ;;  %v7192_v43 = vpop.f32.mrb[103].mxu1  ;;  %v17595_v20 = vld [vmem:[#allocation11_spill] sm:$0xff] }
 0xa0e   : > { %v14897_v49 = vadd.f32 %v9328_v14, %v17583_v40 }
 0xa11   : > { %v7195_v47 = vpop.f32.mrb[104].mxu1 }
 0xa12   : > { %v9329_v62 = vadd.f32 %v14796_v56, %v7195_v47  ;;  %v7197_v6 = vpop.f32.mrb[105].mxu1 }
 0xa13   : > { %v7198_v51 = vpop.f32.mrb[106].mxu1 }
 0xa14   : > { %v14901_v19 = vadd.f32 %v9329_v62, %v17584_v41  ;;  %v9330_v10 = vadd.f32 %v14796_v56, %v7198_v51  ;;  %v7200_v48 = vpop.f32.mrb[107].mxu1  ;;  %v17596_v62 = vld [vmem:[#allocation19_spill] sm:$0xff] }
 0xa15   : > { %v17598_v48 = vld [vmem:[#allocation24_spill] sm:$0xff] }
 0xa16   : > { %17585 = vst [vmem:[#allocation7_spill] sm:$0xff] %v14901_v19  ;;  %v14905_v15 = vadd.f32 %v9330_v10, %v17586_v21  ;;  %v7794_v10 = vmul.f32 %v14804_v8, %v14804_v8 }
 0xa18   : > { %17587 = vst [vmem:[#allocation49_spill] sm:$0xff] %v14905_v15 }
 0xa19   : > { %v7203_v60 = vpop.f32.mrb[108].mxu1 }
 0xa1a   : > { %v9331_v44 = vadd.f32 %v14796_v56, %v7203_v60  ;;  %v7205_v11 = vpop.f32.mrb[109].mxu1  ;;  %v7793_v60 = vmul.f32 %v14800_v59, %v14800_v59 }
 0xa1b   : > { %v7206_v57 = vpop.f32.mrb[110].mxu1  ;;  %v7797_v11 = vmul.f32 %v14824_v42, %v14824_v42 }
 0xa1c   : > { %v14909_v7 = vadd.f32 %v9331_v44, %v17588_v28  ;;  %v9332_v9 = vadd.f32 %v14796_v56, %v7206_v57  ;;  %v7208_v23 = vpop.f32.mrb[111].mxu1  ;;  %v7723_v44 = vadd.f32 %v14804_v8, %v14800_v59  ;;  %v7857_v28 = vadd.f32 %v7794_v10, %v7793_v60  ;;  %v15190_v8 = vld [vmem:[%s10469_s6 + $0x68] sm:$0xff]  }
 0xa1d   : > { %v15210_v59 = vld [vmem:[%s10469_s6 + $0x88] sm:$0xff]  }
 0xa1e   : > { %v14913_v2 = vadd.f32 %v9332_v9, %v17589_v32  ;;  %v7726_v9 = vadd.f32 %v7723_v44, %v14824_v42  ;;  %v15200_v42 = vld [vmem:[%s10469_s6 + $0x78] sm:$0xff]  }
 0xa21   : > { %v7211_v53 = vpop.f32.mrb[112].mxu1 }
 0xa22   : > { %v9333_v12 = vadd.f32 %v14796_v56, %v7211_v53  ;;  %v7213_v0 = vpop.f32.mrb[113].mxu1 }
 0xa23   : > { %v7214_v61 = vpop.f32.mrb[114].mxu1  ;;  %v7798_v0 = vmul.f32 %v14828_v63, %v14828_v63 }
 0xa24   : > { %v14917_v55 = vadd.f32 %v9333_v12, %v17590_v3  ;;  %v9334_v54 = vadd.f32 %v14796_v56, %v7214_v61  ;;  %v7216_v17 = vpop.f32.mrb[115].mxu1  ;;  %v7860_v12 = vadd.f32 %v7857_v28, %v7797_v11  ;;  %v17600_v61 = vld [vmem:[#allocation67_spill] sm:$0xff]  ;;  %v17606_v11 = vld [vmem:[#allocation53_spill] sm:$0xff] }
 0xa26   : > { %17591 = vst [vmem:[#allocation65_spill] sm:$0xff] %v14917_v55  ;;  %v14921_v27 = vadd.f32 %v9334_v54, %v17592_v26  ;;  %v7727_v26 = vadd.f32 %v7726_v9, %v14828_v63  ;;  %v7806_v9 = vmul.f32 %v14873_v36, %v14873_v36  ;;  %v15245_v63 = vld [vmem:[%s10469_s6 + $0xc0] sm:$0xff]  }
 0xa28   : > { %17593 = vst [vmem:[#allocation4_spill] sm:$0xff] %v14921_v27 }
 0xa29   : > { %v7219_v34 = vpop.f32.mrb[116].mxu1 }
 0xa2a   : > { %v9335_v39 = vadd.f32 %v14796_v56, %v7219_v34  ;;  %v7221_v13 = vpop.f32.mrb[117].mxu1  ;;  %v7801_v34 = vmul.f32 %v14845_v46, %v14845_v46 }
 0xa2b   : > { %v7222_v50 = vpop.f32.mrb[118].mxu1 }
 0xa2c   : > { %v14925_v16 = vadd.f32 %v9335_v39, %v17594_v38  ;;  %v9336_v29 = vadd.f32 %v14796_v56, %v7222_v50  ;;  %v7224_v5 = vpop.f32.mrb[119].mxu1  ;;  %v17602_v39 = vld [vmem:[#allocation96_spill] sm:$0xff]  ;;  %v7861_v50 = vadd.f32 %v7860_v12, %v7798_v0  ;;  %v7730_v38 = vadd.f32 %v7727_v26, %v14845_v46  ;;  %v17608_v26 = vld [vmem:[#allocation51_spill] sm:$0xff] }
 0xa2e   : > { %v14929_v22 = vadd.f32 %v9336_v29, %v17595_v20  ;;  %v7864_v5 = vadd.f32 %v7861_v50, %v7801_v34  ;;  %v7802_v20 = vmul.f32 %v14849_v37, %v14849_v37 }
 0xa30   : > { %v7865_v60 = vadd.f32 %v7864_v5, %v7802_v20  ;;  %v17610_v5 = vld [vmem:[#allocation22_spill] sm:$0xff] }
 0xa31   : > { %v7227_v14 = vpop.f32.mrb[120].mxu1 }
 0xa32   : > { %v9337_v43 = vadd.f32 %v14796_v56, %v7227_v14  ;;  %v7229_v40 = vpop.f32.mrb[121].mxu1 }
 0xa33   : > { %v7230_v47 = vpop.f32.mrb[122].mxu1 }
 0xa34   : > { %v14933_v6 = vadd.f32 %v9337_v43, %v17596_v62  ;;  %v9338_v51 = vadd.f32 %v14796_v56, %v7230_v47  ;;  %v7232_v41 = vpop.f32.mrb[123].mxu1  ;;  %v7731_v47 = vadd.f32 %v7730_v38, %v14849_v37  ;;  %v7805_v62 = vmul.f32 %v14868_v31, %v14868_v31  ;;  %v15220_v37 = vld [vmem:[%s10469_s6 + $0x98] sm:$0xff]  }
 0xa36   : > { %17597 = vst [vmem:[#allocation5_spill] sm:$0xff] %v14933_v6  ;;  %v14939_v21 = vadd.f32 %v9338_v51, %v17598_v48  ;;  %v17604_v51 = vld [vmem:[#allocation93_spill] sm:$0xff]  ;;  %v7734_v44 = vadd.f32 %v7731_v47, %v14868_v31  ;;  %v7868_v28 = vadd.f32 %v7865_v60, %v7805_v62  ;;  %v15171_v31 = vld [vmem:[%s10469_s6 + $0x50] sm:$0xff]  }
 0xa38   : > { %17599 = vst [vmem:[#allocation17_spill] sm:$0xff] %v14939_v21 }
 0xa39   : > { %v7235_v57 = vpop.f32.mrb[124].mxu1 }
 0xa3a   : > { %v9339_v23 = vadd.f32 %v14796_v56, %v7235_v57  ;;  %v7237_v32 = vpop.f32.mrb[125].mxu1 }
 0xa3b   : > { %v7238_v53 = vpop.f32.mrb[126].mxu1  ;;  %v7735_v32 = vadd.f32 %v7734_v44, %v14873_v36  ;;  %v7814_v44 = vmul.f32 %v14905_v15, %v14905_v15  ;;  %v15168_v36 = vld [vmem:[%s10469_s6 + $0x48] sm:$0xff]  }
 0xa3c   : > { %v14952_v3 = vadd.f32 %v9339_v23, %v17600_v61  ;;  %v9340_v54 = vadd.f32 %v14796_v56, %v7238_v53  ;;  %v7240_v17 = vpop.f32.mrb[127].mxu1  ;;  %v7809_v53 = vmul.f32 %v14885_v30, %v14885_v30 }
 0xa3d   : > { %v7738_v17 = vadd.f32 %v7735_v32, %v14885_v30  ;;  %v15183_v30 = vld [vmem:[%s10469_s6 + $0x60] sm:$0xff]  }
 0xa3e   : > { %17601 = vst [vmem:[#allocation27_spill] sm:$0xff] %v14952_v3  ;;  %v14959_v13 = vadd.f32 %v9340_v54, %v17602_v39  ;;  %v7869_v54 = vadd.f32 %v7868_v28, %v7806_v9  ;;  %v15291_v3 = vld [vmem:[%s10469_s6 + $0x100] sm:$0xff]  }
 0xa3f   : > { %17659 = vst [vmem:[#allocation98_spill] sm:$0xff] %v15291_v3  ;;  %v15325_v3 = vld [vmem:[%s10469_s6 + $0x110] sm:$0x1] }
 0xa40   : > { %17603 = vst [vmem:[#allocation8_spill] sm:$0xff] %v14959_v13  ;;  %v7872_v38 = vadd.f32 %v7869_v54, %v7809_v53  ;;  %v7817_v53 = vmul.f32 %v14917_v55, %v14917_v55  ;;  %v15303_v13 = vld [vmem:[%s10469_s6 + $0x108] sm:$0xff]  }
 0xa41   : > { %v7243_v29 = vpop.f32.mrb[128].mxu1 }
 0xa42   : > { %v9341_v14 = vadd.f32 %v14796_v56, %v7243_v29  ;;  %v7245_v43 = vpop.f32.mrb[129].mxu1  ;;  %v7810_v29 = vmul.f32 %v14889_v25, %v14889_v25 }
 0xa43   : > { %v7246_v40 = vpop.f32.mrb[130].mxu1  ;;  %v7813_v43 = vmul.f32 %v14901_v19, %v14901_v19 }
 0xa44   : > { %v14969_v41 = vadd.f32 %v9341_v14, %v17604_v51  ;;  %v9342_v10 = vadd.f32 %v14796_v56, %v7246_v40  ;;  %v7248_v48 = vpop.f32.mrb[131].mxu1  ;;  %v7739_v14 = vadd.f32 %v7738_v17, %v14889_v25  ;;  %v7873_v47 = vadd.f32 %v7872_v38, %v7810_v29 }
 0xa46   : > { %17605 = vst [vmem:[#allocation59_spill] sm:$0xff] %v14969_v41  ;;  %v14974_v57 = vadd.f32 %v9342_v10, %v17606_v11  ;;  %v7742_v62 = vadd.f32 %v7739_v14, %v14901_v19  ;;  %v7876_v60 = vadd.f32 %v7873_v47, %v7813_v43  ;;  %v17612_v11 = vld [vmem:[#allocation9_spill] sm:$0xff]  ;;  %v7821_v14 = vmul.f32 %v14933_v6, %v14933_v6  ;;  %v17616_v43 = vld [vmem:[#allocation90_spill] sm:$0xff] }
 0xa47   : > { %v15180_v19 = vld [vmem:[%s10469_s6 + $0x58] sm:$0xff]  }
 0xa48   : > { %17607 = vst [vmem:[#allocation61_spill] sm:$0xff] %v14974_v57  ;;  %v7743_v32 = vadd.f32 %v7742_v62, %v14905_v15  ;;  %v15193_v15 = vld [vmem:[%s10469_s6 + $0x70] sm:$0xff]  }
 0xa49   : > { %v7251_v23 = vpop.f32.mrb[132].mxu1 }
 0xa4a   : > { %v9343_v12 = vadd.f32 %v14796_v56, %v7251_v23  ;;  %v7253_v0 = vpop.f32.mrb[133].mxu1  ;;  %v7746_v54 = vadd.f32 %v7743_v32, %v14917_v55  ;;  %v7825_v32 = vmul.f32 %v14969_v41, %v14969_v41 }
 0xa4b   : > { %v7254_v61 = vpop.f32.mrb[134].mxu1 }
 0xa4c   : > { %v14984_v34 = vadd.f32 %v9343_v12, %v17608_v26  ;;  %v9344_v39 = vadd.f32 %v14796_v56, %v7254_v61  ;;  %v7256_v50 = vpop.f32.mrb[135].mxu1  ;;  %v17614_v12 = vld [vmem:[#allocation26_spill] sm:$0xff]  ;;  %v7877_v61 = vadd.f32 %v7876_v60, %v7814_v44 }
 0xa4e   : > { %17609 = vst [vmem:[#allocation66_spill] sm:$0xff] %v14984_v34  ;;  %v14990_v20 = vadd.f32 %v9344_v39, %v17610_v5  ;;  %v7880_v26 = vadd.f32 %v7877_v61, %v7817_v53  ;;  %v7818_v39 = vmul.f32 %v14921_v27, %v14921_v27  ;;  %v7747_v5 = vadd.f32 %v7746_v54, %v14921_v27 }
 0xa50   : > { %17611 = vst [vmem:[#allocation25_spill] sm:$0xff] %v14990_v20  ;;  %v15277_v20 = vld [vmem:[%s10469_s6 + $0xf0] sm:$0xff]  }
 0xa51   : > { %v7259_v40 = vpop.f32.mrb[136].mxu1  ;;  %17657 = vst [vmem:[#allocation101_spill] sm:$0xff] %v15277_v20 }
 0xa52   : > { %v9345_v51 = vadd.f32 %v14796_v56, %v7259_v40  ;;  %v7261_v10 = vpop.f32.mrb[137].mxu1 }
 0xa53   : > { %v7262_v48 = vpop.f32.mrb[138].mxu1  ;;  %v7750_v10 = vadd.f32 %v7747_v5, %v14933_v6  ;;  %v7826_v5 = vmul.f32 %v14974_v57, %v14974_v57 }
 0xa54   : > { %v15000_v28 = vadd.f32 %v9345_v51, %v17612_v11  ;;  %v9346_v9 = vadd.f32 %v14796_v56, %v7262_v48  ;;  %v7264_v23 = vpop.f32.mrb[139].mxu1  ;;  %v7881_v51 = vadd.f32 %v7880_v26, %v7818_v39  ;;  %v17618_v48 = vld [vmem:[#allocation55_spill] sm:$0xff]  ;;  %v7822_v11 = vmul.f32 %v14939_v21, %v14939_v21  ;;  %v17620_v26 = vld [vmem:[#allocation57_spill] sm:$0xff] }
 0xa55   : > { %v7751_v23 = vadd.f32 %v7750_v10, %v14939_v21  ;;  %v17644_v21 = vld [vmem:[#allocation109_spill] sm:$0xff] }
 0xa56   : > { %17613 = vst [vmem:[#allocation37_spill] sm:$0xff] %v15000_v28  ;;  %v15007_v0 = vadd.f32 %v9346_v9, %v17614_v12  ;;  %v7884_v44 = vadd.f32 %v7881_v51, %v7821_v14  ;;  %v17622_v14 = vld [vmem:[#allocation20_spill] sm:$0xff] }
 0xa58   : > { %17615 = vst [vmem:[#allocation39_spill] sm:$0xff] %v15007_v0  ;;  %v7885_v54 = vadd.f32 %v7884_v44, %v7822_v11 }
 0xa59   : > { %v7267_v17 = vpop.f32.mrb[140].mxu1 }
 0xa5a   : > { %v9347_v50 = vadd.f32 %v14796_v56, %v7267_v17  ;;  %v7269_v38 = vpop.f32.mrb[141].mxu1  ;;  %v7754_v17 = vadd.f32 %v7751_v23, %v14969_v41 }
 0xa5b   : > { %v7270_v29 = vpop.f32.mrb[142].mxu1 }
 0xa5c   : > { %v15017_v40 = vadd.f32 %v9347_v50, %v17616_v43  ;;  %v9348_v47 = vadd.f32 %v14796_v56, %v7270_v29  ;;  %v7272_v62 = vpop.f32.mrb[143].mxu1  ;;  %v7888_v29 = vadd.f32 %v7885_v54, %v7825_v32  ;;  %v7830_v32 = vmul.f32 %v15007_v0, %v15007_v0 }
 0xa5d   : > { %v7829_v62 = vmul.f32 %v15000_v28, %v15000_v28 }
 0xa5e   : > { %17617 = vst [vmem:[#allocation41_spill] sm:$0xff] %v15017_v40  ;;  %v15022_v60 = vadd.f32 %v9348_v47, %v17618_v48  ;;  %v7755_v47 = vadd.f32 %v7754_v17, %v14974_v57  ;;  %v7889_v10 = vadd.f32 %v7888_v29, %v7826_v5 }
 0xa60   : > { %17619 = vst [vmem:[#allocation43_spill] sm:$0xff] %v15022_v60  ;;  %v7758_v48 = vadd.f32 %v7755_v47, %v15000_v28  ;;  %v7892_v23 = vadd.f32 %v7889_v10, %v7829_v62 }
 0xa61   : > { %v7275_v9 = vpop.f32.mrb[144].mxu1 }
 0xa62   : > { %v9349_v53 = vadd.f32 %v14796_v56, %v7275_v9  ;;  %v7277_v12 = vpop.f32.mrb[145].mxu1  ;;  %v7759_v17 = vadd.f32 %v7758_v48, %v15007_v0  ;;  %v7893_v29 = vadd.f32 %v7892_v23, %v7830_v32  ;;  %v17636_v0 = vld [vmem:[#allocation32_spill] sm:$0xff] }
 0xa63   : > { %v7278_v61 = vpop.f32.mrb[146].mxu1 }
 0xa64   : > { %v15032_v39 = vadd.f32 %v9349_v53, %v17620_v26  ;;  %v9350_v50 = vadd.f32 %v14796_v56, %v7278_v61  ;;  %v7280_v38 = vpop.f32.mrb[147].mxu1  ;;  %v17624_v53 = vld [vmem:[#allocation12_spill] sm:$0xff] }
 0xa66   : > { %17621 = vst [vmem:[#allocation68_spill] sm:$0xff] %v15032_v39  ;;  %v15038_v43 = vadd.f32 %v9350_v50, %v17622_v14  ;;  %v7833_v26 = vmul.f32 %v15032_v39, %v15032_v39  ;;  %v17626_v50 = vld [vmem:[#allocation15_spill] sm:$0xff]  ;;  %v7762_v5 = vadd.f32 %v7759_v17, %v15032_v39  ;;  %v17630_v17 = vld [vmem:[#allocation34_spill] sm:$0xff] }
 0xa68   : > { %17623 = vst [vmem:[#allocation45_spill] sm:$0xff] %v15038_v43  ;;  %v7896_v47 = vadd.f32 %v7893_v29, %v7833_v26  ;;  %v7834_v62 = vmul.f32 %v15038_v43, %v15038_v43  ;;  %v7763_v48 = vadd.f32 %v7762_v5, %v15038_v43  ;;  %v15284_v43 = vld [vmem:[%s10469_s6 + $0xf8] sm:$0xff]  }
 0xa69   : > { %v7283_v51 = vpop.f32.mrb[148].mxu1  ;;  %17658 = vst [vmem:[#allocation94_spill] sm:$0xff] %v15284_v43 }
 0xa6a   : > { %v9351_v44 = vadd.f32 %v14796_v56, %v7283_v51  ;;  %v7285_v11 = vpop.f32.mrb[149].mxu1  ;;  %v7897_v23 = vadd.f32 %v7896_v47, %v7834_v62  ;;  %v17632_v62 = vld [vmem:[#allocation21_spill] sm:$0xff] }
 0xa6b   : > { %v7286_v9 = vpop.f32.mrb[150].mxu1  ;;  %v17628_v11 = vld [vmem:[#allocation35_spill] sm:$0xff] }
 0xa6c   : > { %v15048_v12 = vadd.f32 %v9351_v44, %v17624_v53  ;;  %v9352_v61 = vadd.f32 %v14796_v56, %v7286_v9  ;;  %v7288_v54 = vpop.f32.mrb[151].mxu1 }
 0xa6e   : > { %17625 = vst [vmem:[#allocation63_spill] sm:$0xff] %v15048_v12  ;;  %v15055_v38 = vadd.f32 %v9352_v61, %v17626_v50  ;;  %v15267_v12 = vld [vmem:[%s10469_s6 + $0xe0] sm:$0xff]  }
 0xa6f   : > { %17655 = vst [vmem:[#allocation3_spill] sm:$0xff] %v15267_v12 }
 0xa70   : > { %17627 = vst [vmem:[#allocation10_spill] sm:$0xff] %v15055_v38 }
 0xa71   : > { %v7291_v14 = vpop.f32.mrb[152].mxu1 }
 0xa72   : > { %v9353_v51 = vadd.f32 %v14796_v56, %v7291_v14  ;;  %v7293_v10 = vpop.f32.mrb[153].mxu1 }
 0xa73   : > { %v7294_v44 = vpop.f32.mrb[154].mxu1 }
 0xa74   : > { %v15063_v9 = vadd.f32 %v9353_v51, %v17628_v11  ;;  %v9354_v53 = vadd.f32 %v14796_v56, %v7294_v44  ;;  %v7296_v61 = vpop.f32.mrb[155].mxu1 }
 0xa76   : > { %17629 = vst [vmem:[#allocation23_spill] sm:$0xff] %v15063_v9  ;;  %v7766_v32 = vadd.f32 %v7763_v48, %v15063_v9  ;;  %v7837_v54 = vmul.f32 %v15063_v9, %v15063_v9  ;;  %v15070_v26 = vadd.f32 %v9354_v53, %v17630_v17  ;;  %v17634_v53 = vld [vmem:[#allocation16_spill] sm:$0xff]  ;;  %v15264_v9 = vld [vmem:[%s10469_s6 + $0xd8] sm:$0xff]  }
 0xa77   : > { %17654 = vst [vmem:[#allocation104_spill] sm:$0xff] %v15264_v9 }
 0xa78   : > { %17631 = vst [vmem:[#allocation18_spill] sm:$0xff] %v15070_v26  ;;  %v7900_v50 = vadd.f32 %v7897_v23, %v7837_v54  ;;  %v7767_v29 = vadd.f32 %v7766_v32, %v15070_v26  ;;  %v7838_v5 = vmul.f32 %v15070_v26, %v15070_v26 }
 0xa79   : > { %v7299_v14 = vpop.f32.mrb[156].mxu1 }
 0xa7a   : > { %v7901_v51 = vadd.f32 %v7900_v50, %v7838_v5  ;;  %v9355_v10 = vadd.f32 %v14796_v56, %v7299_v14  ;;  %v7301_v44 = vpop.f32.mrb[157].mxu1 }
 0xa7b   : > { %v7302_v47 = vpop.f32.mrb[158].mxu1 }
 0xa7c   : > { %v15077_v48 = vadd.f32 %v9355_v10, %v17632_v62  ;;  %v9356_v11 = vadd.f32 %v14796_v56, %v7302_v47  ;;  %v7304_v61 = vpop.f32.mrb[159].mxu1  ;;  %v17638_v47 = vld [vmem:[#allocation112_spill] sm:$0xff] }
 0xa7e   : > { %17633 = vst [vmem:[#allocation52_spill] sm:$0xff] %v15077_v48  ;;  %v15081_v17 = vadd.f32 %v9356_v11, %v17634_v53 }
 0xa80   : > { %17635 = vst [vmem:[#allocation70_spill] sm:$0xff] %v15081_v17 }
 0xa81   : > { %v7307_v23 = vpop.f32.mrb[160].mxu1 }
 0xa82   : > { %v9357_v32 = vadd.f32 %v14796_v56, %v7307_v23  ;;  %v7309_v54 = vpop.f32.mrb[161].mxu1 }
 0xa83   : > { %v7310_v39 = vpop.f32.mrb[162].mxu1 }
 0xa84   : > { %v15085_v50 = vadd.f32 %v9357_v32, %v17636_v0  ;;  %v9358_v5 = vadd.f32 %v14796_v56, %v7310_v39  ;;  %v7312_v14 = vpop.f32.mrb[163].mxu1 }
 0xa85   : > { %v17640_v14 = vld [vmem:[#allocation29_spill] sm:$0xff] }
 0xa86   : > { %17637 = vst [vmem:[#allocation72_spill] sm:$0xff] %v15085_v50  ;;  %v7770_v10 = vadd.f32 %v7767_v29, %v15085_v50  ;;  %v7841_v44 = vmul.f32 %v15085_v50, %v15085_v50  ;;  %v15092_v62 = vadd.f32 %v9358_v5, %v17638_v47  ;;  %v17642_v5 = vld [vmem:[#allocation31_spill] sm:$0xff] }
 0xa88   : > { %17639 = vst [vmem:[#allocation47_spill] sm:$0xff] %v15092_v62  ;;  %v7904_v11 = vadd.f32 %v7901_v51, %v7841_v44  ;;  %v7771_v61 = vadd.f32 %v7770_v10, %v15092_v62  ;;  %v7842_v53 = vmul.f32 %v15092_v62, %v15092_v62 }
 0xa89   : > { %v7315_v23 = vpop.f32.mrb[164].mxu1 }
 0xa8a   : > { %v7905_v0 = vadd.f32 %v7904_v11, %v7842_v53  ;;  %v9359_v32 = vadd.f32 %v14796_v56, %v7315_v23  ;;  %v7317_v39 = vpop.f32.mrb[165].mxu1 }
 0xa8b   : > { %v7318_v54 = vpop.f32.mrb[166].mxu1 }
 0xa8c   : > { %v15099_v29 = vadd.f32 %v9359_v32, %v17640_v14  ;;  %v9360_v28 = vadd.f32 %v14796_v56, %v7318_v54  ;;  %v7320_v57 = vpop.f32.mrb[167].mxu1 }
 0xa8d   : > { %v17646_v57 = vld [vmem:[#allocation110_spill] sm:$0xff] }
 0xa8e   : > { %17641 = vst [vmem:[#allocation50_spill] sm:$0xff] %v15099_v29  ;;  %v15103_v47 = vadd.f32 %v9360_v28, %v17642_v5  ;;  %v15242_v29 = vld [vmem:[%s10469_s6 + $0xb8] sm:$0xff]  }
 0xa90   : > { %17643 = vst [vmem:[#allocation76_spill] sm:$0xff] %v15103_v47  ;;  %v15223_v47 = vld [vmem:[%s10469_s6 + $0xa0] sm:$0xff]  }
 0xa91   : > { %v7323_v51 = vpop.f32.mrb[168].mxu1 }
 0xa92   : > { %v9361_v10 = vadd.f32 %v14796_v56, %v7323_v51  ;;  %v7325_v44 = vpop.f32.mrb[169].mxu1 }
 0xa93   : > { %v7326_v41 = vpop.f32.mrb[170].mxu1  ;;  %v17648_v44 = vld [vmem:[#allocation33_spill] sm:$0xff] }
 0xa94   : > { %v15107_v11 = vadd.f32 %v9361_v10, %v17644_v21  ;;  %v9362_v53 = vadd.f32 %v14796_v56, %v7326_v41  ;;  %v7328_v23 = vpop.f32.mrb[171].mxu1 }
 0xa96   : > { %17645 = vst [vmem:[#allocation79_spill] sm:$0xff] %v15107_v11  ;;  %v7774_v32 = vadd.f32 %v7771_v61, %v15107_v11  ;;  %v7845_v39 = vmul.f32 %v15107_v11, %v15107_v11  ;;  %v15114_v54 = vadd.f32 %v9362_v53, %v17646_v57  ;;  %v15233_v11 = vld [vmem:[%s10469_s6 + $0xb0] sm:$0xff]  }
 0xa98   : > { %17647 = vst [vmem:[#allocation28_spill] sm:$0xff] %v15114_v54  ;;  %v7908_v28 = vadd.f32 %v7905_v0, %v7845_v39  ;;  %v7846_v14 = vmul.f32 %v15114_v54, %v15114_v54  ;;  %v15119_v5 = vadd.f32 %v7774_v32, %v15114_v54  ;;  %v17650_v32 = vld [vmem:[#allocation113_spill] sm:$0xff]  ;;  %v15213_v54 = vld [vmem:[%s10469_s6 + $0x90] sm:$0xff]  }
 0xa99   : > { %v7331_v21 = vpop.f32.mrb[172].mxu1 }
 0xa9a   : > { %v9363_v51 = vadd.f32 %v14796_v56, %v7331_v21  ;;  %v7333_v41 = vpop.f32.mrb[173].mxu1  ;;  %v15122_v61 = vadd.f32 %v7908_v28, %v7846_v14 }
 0xa9b   : > { %v7334_v10 = vpop.f32.mrb[174].mxu1 }
 0xa9c   : > { %v15125_v53 = vadd.f32 %v9363_v51, %v17648_v44  ;;  %v9364_v0 = vadd.f32 %v14796_v56, %v7334_v10  ;;  %v7336_v23 = vpop.f32.mrb[175].mxu1  ;;  %v15140_v10 = vld [vmem:[%s10469_s6 + $0x10] sm:$0xff]  }
 0xa9d   : > { %v15146_v23 = vld [vmem:[%s10469_s6 + $0x20] sm:$0xff]   ;;  %v17662_v43 = vunpack.c.h.bf16 %v15140_v10 }
 0xa9e   : > { %17649 = vst [vmem:[#allocation106_spill] sm:$0xff] %v15125_v53  ;;  %v15129_v39 = vadd.f32 %v9364_v0, %v17650_v32  ;;  %v15143_v0 = vld [vmem:[%s10469_s6 + $0x18] sm:$0xff]   ;;  %v15149_v32 = vld [vmem:[%s10469_s6 + $0x28] sm:$0xff]  }
 0xa9f   : > { %v15252_v53 = vld [vmem:[%s10469_s6 + $0xc8] sm:$0xff]   ;;  %v8257_v20 = vrot.slane %v17662_v43, 1  ;;  %v17663_v12 = vunpack.c.l.bf16 %v15143_v0 }
 0xaa0   : > { %17651 = vst [vmem:[#allocation103_spill] sm:$0xff] %v15129_v39  ;;  %v15203_v39 = vld [vmem:[%s10469_s6 + $0x80] sm:$0xff]   ;;  %17652 = vst [vmem:[#allocation107_spill] sm:$0xff] %v15252_v53 }
 0xaa1   : > { %v15131_v57 = vpop.f32.mrb[176].mxu1 }
 0xaa2   : > { %v7341_v21 = vpop.f32.mrb[177].mxu1  ;;  %v9365_v26 = vadd.f32 %v14796_v56, %v15131_v57  ;;  %v8259_v57 = vrot.slane %v17663_v12, 1  ;;  %v17667_v12 = vunpack.c.l.bf16 %v15146_v23 }
 0xaa3   : > { %v15133_v28 = vpop.f32.mrb[178].mxu1  ;;  %v15152_v21 = vld [vmem:[%s10469_s6 + $0x30] sm:$0xff]  }
 0xaa4   : > { %v7344_v14 = vpop.f32.mrb[179].mxu1  ;;  %v9366_v34 = vadd.f32 %v14796_v56, %v15133_v28  ;;  %v17668_v28 = vunpack.c.h.bf16 %v15146_v23  ;;  %v17675_v23 = vunpack.c.h.bf16 %v15149_v32 }
 0xaa5   : > { %v15158_v14 = vld [vmem:[%s10469_s6 + $0x38] sm:$0xff]  }
 0xaa9   : > { %v15135_v41 = vpop.f32.mrb[180].mxu1 }
 0xaaa   : > { %v7349_v6 = vpop.f32.mrb[181].mxu1  ;;  %v9367_v53 = vadd.f32 %v14796_v56, %v15135_v41 }
 0xaab   : > { %v15137_v51 = vpop.f32.mrb[182].mxu1 }
 0xaac   : > { %v7352_v44 = vpop.f32.mrb[183].mxu1  ;;  %v9368_v60 = vadd.f32 %v14796_v56, %v15137_v51 }
 0xaad   : > { %v15161_v44 = vld [vmem:[%s10469_s6 + $0x40] sm:$0xff]  }
 0xab1   : > { %v15154_v27 = vpop.f32.mrb[184].mxu1 }
 0xab2   : > { %v7357_v55 = vpop.f32.mrb[185].mxu1 }
 0xab3   : > { %v15173_v6 = vpop.f32.mrb[186].mxu1  ;;  %v15255_v55 = vld [vmem:[%s10469_s6 + $0xd0] sm:$0xff]  }
 0xab4   : > { %v7360_v46 = vpop.f32.mrb[187].mxu1  ;;  %17653 = vst [vmem:[#allocation100_spill] sm:$0xff] %v15255_v55 }
 0xab5   : > { %v15230_v46 = vld [vmem:[%s10469_s6 + $0xa8] sm:$0xff]  }
 0xab9   : > { %v15235_v62 = vpop.f32.mrb[188].mxu1 }
 0xaba   : > { %v7365_v17 = vpop.f32.mrb[189].mxu1 }
 0xabb   : > { %v15257_v25 = vpop.f32.mrb[190].mxu1  ;;  %v15274_v17 = vld [vmem:[%s10469_s6 + $0xe8] sm:$0xff]   ;;  %s8828_s6 = sshll.u32 %s18051_s19, 9 }
 0xabc   : > { %v7368_v50 = vpop.f32.mrb[191].mxu1  ;;  %17656 = vst [vmem:[#allocation97_spill] sm:$0xff] %v15274_v17  ;;  %v17660_v17 = vunpack.c.l.bf16 %v15140_v10  ;;  %s16120_s24 = scalar_lea.vmem %s16346_s5, %s8828_s6 }
 0xabe   : > { %v8256_v41 = vrot.slane %v17660_v17, 1 }
 0xac1   : > { %v9223_v48 = vpop.f32.mrb[192].mxu1 }
 0xac2   : > { %v15313_v40 = vadd.f32 %v9367_v53, %v9223_v48  ;;  %v7628_v38 = vpop.f32.mrb[193].mxu1  ;;  %v17665_v48 = vunpack.c.h.bf16 %v15143_v0 }
 0xac3   : > { %v15321_v9 = vadd.f32 %v9365_v26, %v7628_v38  ;;  %v9224_v50 = vpop.f32.mrb[194].mxu1  ;;  %v8265_v38 = vrot.slane %v17668_v28, 1  ;;  %v8269_v28 = vrot.slane %v17675_v23, 1 }
 0xac4   : > { %17661 = vst [vmem:[#allocation56_spill] sm:$0xff] %v15313_v40  ;;  %v8261_v53 = vrot.slane %v17665_v48, 1  ;;  %v15329_v51 = vadd.f32 %v9368_v60, %v9224_v50  ;;  %v7631_v10 = vpop.f32.mrb[195].mxu1  ;;  %v8263_v40 = vrot.slane %v17667_v12, 1  ;;  %v17670_v60 = vunpack.c.l.bf16 %v15149_v32 }
 0xac5   : > { %17664 = vst [vmem:[#allocation64_spill] sm:$0xff] %v15321_v9  ;;  %v7778_v26 = vadd.f32 %v15119_v5, %v15321_v9  ;;  %v7849_v17 = vmul.f32 %v15321_v9, %v15321_v9  ;;  %v15340_v55 = vadd.f32 %v9366_v34, %v7631_v10  ;;  %v15346_v48 = vsel %vm17671_vm9, %v8256_v41, %v8257_v20  ;;  %vm17722_vm9 = vmmov %vm17528_vm0 }
 0xac6   : > { %17666 = vst [vmem:[#allocation40_spill] sm:$0xff] %v15329_v51  ;;  %v8267_v0 = vrot.slane %v17670_v60, 1  ;;  %17672 = vst [vmem:[#allocation111_spill] sm:$0xff] %v15346_v48  ;;  %v15349_v12 = vsel %vm17673_vm10, %v8257_v20, %v8259_v57  ;;  %v15358_v10 = vsel %vm17676_vm11, %v8259_v57, %v8261_v53  ;;  %v9371_v41 = vadd.f32 %v14796_v56, %v15235_v62 }
 0xac7   : > { %17669 = vst [vmem:[#allocation30_spill] sm:$0xff] %v15340_v55  ;;  %17674 = vst [vmem:[#allocation58_spill] sm:$0xff] %v15349_v12  ;;  %v7912_v5 = vadd.f32 %v15122_v61, %v7849_v17  ;;  %v7779_v43 = vadd.f32 %v7778_v26, %v15340_v55  ;;  %v7850_v34 = vmul.f32 %v15340_v55, %v15340_v55  ;;  %v17682_v32 = vunpack.c.l.bf16 %v15152_v21 }
 0xac8   : > { %17677 = vst [vmem:[#allocation74_spill] sm:$0xff] %v15358_v10  ;;  %v15363_v60 = vsel %vm17678_vm12, %v8261_v53, %v8263_v40  ;;  %v15366_v20 = vsel %vm17680_vm13, %v8263_v40, %v8265_v38  ;;  %v9369_v17 = vadd.f32 %v14796_v56, %v15154_v27  ;;  %v15373_v57 = vsel %vm17683_vm14, %v8265_v38, %v8267_v0  ;;  %vm17725_vm10 = vmmov %vm17528_vm0 }
 0xac9   : > { %17679 = vst [vmem:[#allocation46_spill] sm:$0xff] %v15363_v60  ;;  %17681 = vst [vmem:[#allocation54_spill] sm:$0xff] %v15366_v20  ;;  %v8271_v61 = vrot.slane %v17682_v32, 1  ;;  %v7913_v26 = vadd.f32 %v7912_v5, %v7850_v34  ;;  %v9227_v23 = vpop.f32.mrb[196].mxu1  ;;  %v17685_v50 = vunpack.c.h.bf16 %v15152_v21  ;;  %v9372_v53 = vadd.f32 %v14796_v56, %v15257_v25 }
 0xaca   : > { %17684 = vst [vmem:[#allocation60_spill] sm:$0xff] %v15373_v57  ;;  %v15379_v60 = vadd.f32 %v9371_v41, %v9227_v23  ;;  %v7644_v40 = vpop.f32.mrb[197].mxu1  ;;  %v17687_v20 = vunpack.c.l.bf16 %v15158_v14  ;;  %v17688_v10 = vunpack.c.h.bf16 %v15158_v14  ;;  %v9370_v5 = vadd.f32 %v14796_v56, %v15173_v6  ;;  %vm17727_vm11 = vmmov %vm17528_vm0 }
 0xacb   : > { %v8273_v62 = vrot.slane %v17685_v50, 1  ;;  %v15387_v38 = vadd.f32 %v9369_v17, %v7644_v40  ;;  %v9228_v34 = vpop.f32.mrb[198].mxu1  ;;  %v15390_v21 = vsel %vm17690_vm15, %v8267_v0, %v8269_v28  ;;  %v17692_v25 = vunpack.c.l.bf16 %v15161_v44  ;;  %vm17731_vm12 = vmmov %vm17528_vm0 }
 0xacc   : > { %17686 = vst [vmem:[#allocation77_spill] sm:$0xff] %v15379_v60  ;;  %v8275_v32 = vrot.slane %v17687_v20, 1  ;;  %v8277_v27 = vrot.slane %v17688_v10, 1  ;;  %17691 = vst [vmem:[#allocation62_spill] sm:$0xff] %v15390_v21  ;;  %v15394_v41 = vadd.f32 %v9372_v53, %v9228_v34  ;;  %v7647_v23 = vpop.f32.mrb[199].mxu1  ;;  %v15397_v20 = vsel %vm17694_vm3, %v8269_v28, %v8271_v61 }
 0xacd   : > { %17689 = vst [vmem:[#allocation38_spill] sm:$0xff] %v15387_v38  ;;  %v8279_v50 = vrot.slane %v17692_v25, 1  ;;  %17695 = vst [vmem:[#allocation81_spill] sm:$0xff] %v15397_v20  ;;  %v17696_v14 = vunpack.c.h.bf16 %v15161_v44  ;;  %v17697_v56 = vunpack.c.l.bf16 %v15168_v36  ;;  %v7782_v17 = vadd.f32 %v7779_v43, %v15387_v38 }
 0xace   : > { %17693 = vst [vmem:[#allocation87_spill] sm:$0xff] %v15394_v41  ;;  %v7853_v0 = vmul.f32 %v15387_v38, %v15387_v38  ;;  %v15406_v40 = vadd.f32 %v9370_v5, %v7647_v23  ;;  %v15409_v53 = vsel %vm17528_vm0, %v8271_v61, %v8273_v62  ;;  %v15412_v34 = vsel %vm17700_vm5, %v8273_v62, %v8275_v32  ;;  %vm17733_vm13 = vmmov %vm17528_vm0 }
 0xacf   : > { %v8281_v10 = vrot.slane %v17696_v14, 1  ;;  %v8283_v6 = vrot.slane %v17697_v56, 1  ;;  %17699 = vst [vmem:[#allocation85_spill] sm:$0xff] %v15409_v53  ;;  %17701 = vst [vmem:[#allocation42_spill] sm:$0xff] %v15412_v34  ;;  %v15415_v28 = vsel %vm17702_vm4, %v8275_v32, %v8277_v27  ;;  %v17704_v44 = vunpack.c.h.bf16 %v15168_v36 }
 0xad0   : > { %17698 = vst [vmem:[#allocation83_spill] sm:$0xff] %v15406_v40  ;;  %17703 = vst [vmem:[#allocation73_spill] sm:$0xff] %v15415_v28  ;;  %v17705_v14 = vunpack.c.l.bf16 %v15171_v31  ;;  %v7916_v56 = vadd.f32 %v7913_v26, %v7853_v0  ;;  %v7783_v20 = vadd.f32 %v7782_v17, %v15406_v40  ;;  %v7854_v5 = vmul.f32 %v15406_v40, %v15406_v40 }
 0xad1   : > { %v8285_v25 = vrot.slane %v17704_v44, 1  ;;  %v17706_v61 = vunpack.c.h.bf16 %v15171_v31  ;;  %v15427_v62 = vsel %vm17707_vm1, %v8277_v27, %v8279_v50  ;;  %v15430_v32 = vsel %vm17709_vm2, %v8279_v50, %v8281_v10  ;;  %vm17735_vm14 = vmmov %vm17528_vm0 }
 0xad2   : > { %v8287_v43 = vrot.slane %v17705_v14, 1  ;;  %17708 = vst [vmem:[#allocation114_spill] sm:$0xff] %v15427_v62  ;;  %17710 = vst [vmem:[#allocation6_spill] sm:$0xff] %v15430_v32  ;;  %v17711_v36 = vunpack.c.l.bf16 %v15180_v19  ;;  %v17712_v14 = vunpack.c.h.bf16 %v15180_v19  ;;  %v7786_v0 = vrot.slane %v7783_v20, 4 }
 0xad3   : > { %v8289_v23 = vrot.slane %v17706_v61, 1  ;;  %v7917_v17 = vadd.f32 %v7916_v56, %v7854_v5  ;;  %v17713_v28 = vunpack.c.l.bf16 %v15183_v30  ;;  %v17714_v31 = vunpack.c.h.bf16 %v15183_v30  ;;  %vm17740_vm15 = vmmov %vm17528_vm0 }
 0xad4   : > { %v8291_v44 = vrot.slane %v17711_v36, 1  ;;  %v8293_v26 = vrot.slane %v17712_v14, 1  ;;  %v15441_v27 = vsel %vm17715_vm6, %v8281_v10, %v8283_v6  ;;  %v15444_v50 = vsel %vm17717_vm7, %v8283_v6, %v8285_v25  ;;  %vm17743_vm3 = vmmov %vm17528_vm0 }
 0xad5   : > { %v8295_v34 = vrot.slane %v17713_v28, 1  ;;  %v8297_v61 = vrot.slane %v17714_v31, 1  ;;  %17716 = vst [vmem:[#allocation14_spill] sm:$0xff] %v15441_v27  ;;  %17718 = vst [vmem:[#allocation71_spill] sm:$0xff] %v15444_v50  ;;  %v15447_v32 = vsel %vm17719_vm8, %v8285_v25, %v8287_v43  ;;  %v17721_v19 = vunpack.c.l.bf16 %v15190_v8  ;;  %v17836_v27 = vld [vmem:[#allocation3_spill] sm:$0xff] }
 0xad6   : > { %17720 = vst [vmem:[#allocation108_spill] sm:$0xff] %v15447_v32  ;;  %v7787_v14 = vadd.f32 %v7786_v0, %v7783_v20  ;;  %v7920_v56 = vrot.slane %v7917_v17, 4  ;;  %v15452_v5 = vsel %vm17722_vm9, %v8287_v43, %v8289_v23  ;;  %v17724_v30 = vunpack.c.h.bf16 %v15190_v8  ;;  %vm17754_vm5 = vmmov %vm17528_vm0 }
 0xad7   : > { %v8299_v36 = vrot.slane %v17721_v19, 1  ;;  %17723 = vst [vmem:[#allocation36_spill] sm:$0xff] %v15452_v5  ;;  %v15457_v10 = vsel %vm17725_vm10, %v8289_v23, %v8291_v44  ;;  %v15460_v6 = vsel %vm17727_vm11, %v8291_v44, %v8293_v26  ;;  %v17729_v25 = vunpack.c.l.bf16 %v15193_v15  ;;  %vm17756_vm4 = vmmov %vm17528_vm0 }
 0xad8   : > { %v8301_v28 = vrot.slane %v17724_v30, 1  ;;  %17726 = vst [vmem:[#allocation44_spill] sm:$0xff] %v15457_v10  ;;  %17728 = vst [vmem:[#allocation105_spill] sm:$0xff] %v15460_v6  ;;  %v17730_v32 = vunpack.c.h.bf16 %v15193_v15  ;;  %v7788_v20 = vrot.slane %v7787_v14, 2  ;;  %v7921_v0 = vadd.f32 %v7920_v56, %v7917_v17 }
 0xad9   : > { %v8303_v31 = vrot.slane %v17729_v25, 1  ;;  %v15467_v43 = vsel %vm17731_vm12, %v8293_v26, %v8295_v34  ;;  %v15470_v8 = vsel %vm17733_vm13, %v8295_v34, %v8297_v61  ;;  %v15473_v23 = vsel %vm17735_vm14, %v8297_v61, %v8299_v36  ;;  %vm17758_vm1 = vmmov %vm17528_vm0 }
 0xada   : > { %v8305_v19 = vrot.slane %v17730_v32, 1  ;;  %17732 = vst [vmem:[#allocation48_spill] sm:$0xff] %v15467_v43  ;;  %17734 = vst [vmem:[#allocation75_spill] sm:$0xff] %v15470_v8  ;;  %v17737_v44 = vunpack.c.l.bf16 %v15200_v42  ;;  %v17738_v6 = vunpack.c.h.bf16 %v15200_v42  ;;  %v17739_v15 = vunpack.c.l.bf16 %v15203_v39 }
 0xadb   : > { %17736 = vst [vmem:[#allocation69_spill] sm:$0xff] %v15473_v23  ;;  %v7789_v10 = vadd.f32 %v7788_v20, %v7787_v14  ;;  %v7922_v17 = vrot.slane %v7921_v0, 2  ;;  %v15482_v26 = vsel %vm17740_vm15, %v8299_v36, %v8301_v28  ;;  %v17742_v34 = vunpack.c.h.bf16 %v15203_v39  ;;  %vm17760_vm2 = vmmov %vm17528_vm0 }
 0xadc   : > { %v8307_v30 = vrot.slane %v17737_v44, 1  ;;  %v8309_v25 = vrot.slane %v17738_v6, 1  ;;  %v8311_v32 = vrot.slane %v17739_v15, 1  ;;  %17741 = vst [vmem:[#allocation13_spill] sm:$0xff] %v15482_v26  ;;  %v15487_v61 = vsel %vm17743_vm3, %v8301_v28, %v8303_v31  ;;  %vm17762_vm6 = vmmov %vm17528_vm0 }
 0xadd   : > { %v8313_v56 = vrot.slane %v17742_v34, 1  ;;  %17744 = vst [vmem:[#allocation99_spill] sm:$0xff] %v15487_v61  ;;  %v15490_v23 = vsel %vm17528_vm0, %v8303_v31, %v8305_v19  ;;  %v17746_v42 = vunpack.c.l.bf16 %v15210_v59  ;;  %v17747_v44 = vunpack.c.h.bf16 %v15210_v59  ;;  %vm17764_vm7 = vmmov %vm17528_vm0 }
 0xade   : > { %17745 = vst [vmem:[#allocation102_spill] sm:$0xff] %v15490_v23  ;;  %v7790_v14 = vrot.slane %v7789_v10, 1  ;;  %v7923_v20 = vadd.f32 %v7922_v17, %v7921_v0  ;;  %v17748_v36 = vunpack.c.l.bf16 %v15213_v54  ;;  %v17749_v39 = vunpack.c.h.bf16 %v15213_v54  ;;  %vm17766_vm8 = vmmov %vm17528_vm0 }
 0xadf   : > { %v8315_v6 = vrot.slane %v17746_v42, 1  ;;  %v8317_v15 = vrot.slane %v17747_v44, 1  ;;  %v17750_v28 = vunpack.c.l.bf16 %v15220_v37  ;;  %v17751_v31 = vunpack.c.h.bf16 %v15220_v37  ;;  %vm17768_vm9 = vmmov %vm17528_vm0 }
 0xae0   : > { %v8319_v26 = vrot.slane %v17748_v36, 1  ;;  %v8321_v34 = vrot.slane %v17749_v39, 1  ;;  %v17752_v8 = vunpack.c.l.bf16 %v15223_v47  ;;  %v17753_v59 = vunpack.c.h.bf16 %v15223_v47  ;;  %vm17770_vm10 = vmmov %vm17528_vm0 }
 0xae1   : > { %v8323_v61 = vrot.slane %v17750_v28, 1  ;;  %v8325_v23 = vrot.slane %v17751_v31, 1  ;;  %v7791_v43 = vadd.f32 %v7790_v14, %v7789_v10  ;;  %v7924_v0 = vrot.slane %v7923_v20, 1  ;;  %vm17772_vm11 = vmmov %vm17528_vm0 }
 0xae2   : > { %v8327_v42 = vrot.slane %v17752_v8, 1  ;;  %v8329_v44 = vrot.slane %v17753_v59, 1  ;;  %v15509_v17 = vsel %vm17754_vm5, %v8305_v19, %v8307_v30  ;;  %v15512_v54 = vsel %vm17756_vm4, %v8307_v30, %v8309_v25  ;;  %vm17774_vm12 = vmmov %vm17528_vm0 }
 0xae3   : > { %17755 = vst [vmem:[#allocation11_spill] sm:$0xff] %v15509_v17  ;;  %17757 = vst [vmem:[#allocation19_spill] sm:$0xff] %v15512_v54  ;;  %v15515_v36 = vsel %vm17758_vm1, %v8309_v25, %v8311_v32  ;;  %v15518_v37 = vsel %vm17760_vm2, %v8311_v32, %v8313_v56  ;;  %v15521_v39 = vsel %vm17762_vm6, %v8313_v56, %v8315_v6  ;;  %v15526_v10 = vmul.f32 0.00390625, %v7791_v43 }
 0xae4   : > { %17759 = vst [vmem:[#allocation24_spill] sm:$0xff] %v15515_v36  ;;  %17761 = vst [vmem:[#allocation67_spill] sm:$0xff] %v15518_v37  ;;  %v15524_v47 = vsel %vm17764_vm7, %v8315_v6, %v8317_v15  ;;  %v7925_v8 = vadd.f32 %v7924_v0, %v7923_v20  ;;  %v15529_v19 = vsel %vm17766_vm8, %v8317_v15, %v8319_v26  ;;  %v17779_v20 = vunpack.c.h.bf16 %v15230_v46  ;;  %v17828_v37 = vld [vmem:[#allocation106_spill] sm:$0xff] }
 0xae5   : > { %17763 = vst [vmem:[#allocation96_spill] sm:$0xff] %v15521_v39  ;;  %17765 = vst [vmem:[#allocation93_spill] sm:$0xff] %v15524_v47  ;;  %v15532_v30 = vsel %vm17768_vm9, %v8319_v26, %v8321_v34  ;;  %v15535_v25 = vsel %vm17770_vm10, %v8321_v34, %v8323_v61  ;;  %v15538_v32 = vsel %vm17772_vm11, %v8323_v61, %v8325_v23  ;;  %v17778_v26 = vunpack.c.l.bf16 %v15230_v46  ;;  %v17825_v47 = vld [vmem:[#allocation76_spill] sm:$0xff]  ;;  %v17826_v39 = vld [vmem:[#allocation79_spill] sm:$0xff] }
 0xae6   : > { %17767 = vst [vmem:[#allocation53_spill] sm:$0xff] %v15529_v19  ;;  %17769 = vst [vmem:[#allocation51_spill] sm:$0xff] %v15532_v30  ;;  %v15541_v56 = vsel %vm17774_vm12, %v8325_v23, %v8327_v42  ;;  %v15546_v43 = vmul.f32 0.00390625, %v7925_v8  ;;  %v15550_v15 = vmul.f32 %v15526_v10, %v15526_v10  ;;  %v8333_v34 = vrot.slane %v17779_v20, 1  ;;  %v17810_v8 = vld [vmem:[#allocation41_spill] sm:$0xff]  ;;  %v17822_v30 = vld [vmem:[#allocation72_spill] sm:$0xff] }
 0xae7   : > { %17771 = vst [vmem:[#allocation22_spill] sm:$0xff] %v15535_v25  ;;  %17773 = vst [vmem:[#allocation9_spill] sm:$0xff] %v15538_v32  ;;  %v8331_v14 = vrot.slane %v17778_v26, 1  ;;  %v17780_v28 = vunpack.c.l.bf16 %v15233_v11  ;;  %v17782_v26 = vunpack.c.l.bf16 %v15242_v29  ;;  %v17787_v23 = vunpack.c.h.bf16 %v15245_v63  ;;  %v17813_v32 = vld [vmem:[#allocation104_spill] sm:$0xff]  ;;  %v17824_v19 = vld [vmem:[#allocation50_spill] sm:$0xff] }
 0xae8   : > { %17775 = vst [vmem:[#allocation26_spill] sm:$0xff] %v15541_v56  ;;  %vm17776_vm13 = vmmov %vm17528_vm0  ;;  %v7928_v0 = vsub.f32 %v15546_v43, %v15550_v15  ;;  %v17784_v43 = vunpack.c.l.bf16 %v15245_v63  ;;  %v17835_v50 = vunpack.c.h.bf16 %v17813_v32  ;;  %v17837_v48 = vunpack.c.l.bf16 %v17836_v27 }
 0xae9   : > { %v15544_v6 = vsel %vm17776_vm13, %v8327_v42, %v8329_v44  ;;  %v8335_v31 = vrot.slane %v17780_v28, 1  ;;  %v17781_v42 = vunpack.c.h.bf16 %v15233_v11  ;;  %v8339_v20 = vrot.slane %v17782_v26, 1  ;;  %vm17785_vm14 = vmmov %vm17528_vm0 }
 0xaea   : > { %17777 = vst [vmem:[#allocation90_spill] sm:$0xff] %v15544_v6  ;;  %v17783_v11 = vunpack.c.h.bf16 %v15242_v29  ;;  %v8343_v15 = vrot.slane %v17784_v43, 1  ;;  %v15585_v26 = vsel %vm17785_vm14, %v8329_v44, %v8331_v14  ;;  %v8345_v61 = vrot.slane %v17787_v23, 1  ;;  %vm17788_vm15 = vmmov %vm17528_vm0  ;;  %v17799_v44 = vld [vmem:[#allocation27_spill] sm:$0xff] }
 0xaeb   : > { %v8337_v59 = vrot.slane %v17781_v42, 1  ;;  %17786 = vst [vmem:[#allocation55_spill] sm:$0xff] %v15585_v26  ;;  %vm17790_vm3 = vmmov %vm17528_vm0  ;;  %v17818_v6 = vld [vmem:[#allocation23_spill] sm:$0xff]  ;;  %v7993_v57 = vmax.f32 %v7928_v0, 0.0  ;;  %v8357_v12 = vrot.slane %v17835_v50, 1  ;;  %v8359_v38 = vrot.slane %v17837_v48, 1 }
 0xaec   : > { %v8341_v42 = vrot.slane %v17783_v11, 1  ;;  %v15594_v11 = vsel %vm17788_vm15, %v8331_v14, %v8333_v34  ;;  %v15597_v43 = vsel %vm17790_vm3, %v8333_v34, %v8335_v31  ;;  %vm17793_vm5 = vmmov %vm17528_vm0  ;;  %v17805_v14 = vld [vmem:[#allocation66_spill] sm:$0xff]  ;;  %v17840_v53 = vunpack.c.h.bf16 %v17836_v27  ;;  %v17841_v0 = vld [vmem:[#allocation97_spill] sm:$0xff] }
 0xaed   : > { %17789 = vst [vmem:[#allocation57_spill] sm:$0xff] %v15594_v11  ;;  %17791 = vst [vmem:[#allocation20_spill] sm:$0xff] %v15597_v43  ;;  %v15604_v63 = vsel %vm17528_vm0, %v8335_v31, %v8337_v59  ;;  %v15607_v23 = vsel %vm17793_vm5, %v8337_v59, %v8339_v20  ;;  %v17800_v31 = vld [vmem:[#allocation8_spill] sm:$0xff]  ;;  %v17814_v43 = vunpack.c.l.bf16 %v17813_v32  ;;  %v7994_v62 = vadd.f32 1e-05, %v7993_v57  ;;  %v17847_v48 = vld [vmem:[#allocation94_spill] sm:$0xff] }
 0xaee   : > { %17792 = vst [vmem:[#allocation12_spill] sm:$0xff] %v15604_v63  ;;  %17794 = vst [vmem:[#allocation15_spill] sm:$0xff] %v15607_v23  ;;  %v17803_v23 = vld [vmem:[#allocation107_spill] sm:$0xff]  ;;  %v17808_v11 = vld [vmem:[#allocation100_spill] sm:$0xff]  ;;  %v8361_v54 = vrot.slane %v17840_v53, 1  ;;  %v17842_v41 = vunpack.c.l.bf16 %v17841_v0  ;;  %v17848_v57 = vunpack.c.l.bf16 %v17847_v48 }
 0xaef   : > { %vm17795_vm4 = vmmov %vm17528_vm0  ;;  %v17804_v29 = vunpack.c.l.bf16 %v17803_v23  ;;  %v17809_v28 = vunpack.c.l.bf16 %v17808_v11  ;;  %v8355_v25 = vrot.slane %v17814_v43, 1  ;;  %v17821_v43 = vld [vmem:[#allocation70_spill] sm:$0xff]  ;;  %10337 = vrsqrt.f32 %v7994_v62 }
 0xaf0   : > { %v15614_v34 = vsel %vm17795_vm4, %v8339_v20, %v8341_v42  ;;  %vm17797_vm1 = vmmov %vm17528_vm0  ;;  %v17806_v20 = vld [vmem:[#allocation25_spill] sm:$0xff]  ;;  %v8371_v5 = vrot.slane %v17848_v57, 1  ;;  %v17850_v53 = vld [vmem:[#allocation98_spill] sm:$0xff]  ;;  %v17857_v62 = vunpack.c.l.bf16 %v15325_v3 }
 0xaf1   : > { %17796 = vst [vmem:[#allocation35_spill] sm:$0xff] %v15614_v34  ;;  %v15617_v46 = vsel %vm17797_vm1, %v8341_v42, %v8343_v15  ;;  %vm17801_vm2 = vmmov %vm17528_vm0  ;;  %v8347_v63 = vrot.slane %v17804_v29, 1  ;;  %v17807_v42 = vunpack.c.h.bf16 %v17803_v23  ;;  %v8351_v26 = vrot.slane %v17809_v28, 1  ;;  %v17815_v34 = vld [vmem:[#allocation45_spill] sm:$0xff]  ;;  %v17816_v23 = vld [vmem:[#allocation63_spill] sm:$0xff] }
 0xaf2   : > { %17798 = vst [vmem:[#allocation34_spill] sm:$0xff] %v15617_v46  ;;  %v15624_v59 = vsel %vm17801_vm2, %v8343_v15, %v8345_v61  ;;  %v17811_v15 = vld [vmem:[#allocation43_spill] sm:$0xff]  ;;  %v17812_v29 = vunpack.c.h.bf16 %v17808_v11  ;;  %v17817_v28 = vld [vmem:[#allocation10_spill] sm:$0xff]  ;;  %v17820_v11 = vld [vmem:[#allocation52_spill] sm:$0xff]  ;;  %v8383_v57 = vrot.slane %v17857_v62, 1 }
 0xaf3   : > { %17802 = vst [vmem:[#allocation21_spill] sm:$0xff] %v15624_v59  ;;  %v8349_v46 = vrot.slane %v17807_v42, 1  ;;  %v17819_v59 = vld [vmem:[#allocation18_spill] sm:$0xff]  ;;  %v17823_v42 = vld [vmem:[#allocation47_spill] sm:$0xff]  ;;  %vm17831_vm6 = vmmov %vm17528_vm0 }
 0xaf4   : > { %v8353_v56 = vrot.slane %v17812_v29, 1  ;;  %v17827_v29 = vld [vmem:[#allocation28_spill] sm:$0xff]  ;;  %v15691_v17 = vsel %vm17831_vm6, %v8345_v61, %v8347_v63  ;;  %vm17833_vm7 = vmmov %vm17528_vm0  ;;  %v8363_v61 = vrot.slane %v17842_v41, 1  ;;  %v17852_v41 = vunpack.c.h.bf16 %v17850_v53 }
 0xaf5   : > { %17832 = vst [vmem:[#allocation16_spill] sm:$0xff] %v15691_v17  ;;  %v15694_v21 = vsel %vm17833_vm7, %v8347_v63, %v8349_v46  ;;  %vm17838_vm8 = vmmov %vm17528_vm0  ;;  %v17843_v17 = vunpack.c.h.bf16 %v17841_v0 }
 0xaf6   : > { %17834 = vst [vmem:[#allocation32_spill] sm:$0xff] %v15694_v21  ;;  %v15701_v40 = vsel %vm17838_vm8, %v8349_v46, %v8351_v26  ;;  %v17844_v21 = vld [vmem:[#allocation101_spill] sm:$0xff]  ;;  %v17849_v46 = vunpack.c.h.bf16 %v17847_v48  ;;  %v8377_v0 = vrot.slane %v17852_v41, 1  ;;  %vm17853_vm9 = vmmov %vm17528_vm0 }
 0xaf7   : > { %17839 = vst [vmem:[#allocation112_spill] sm:$0xff] %v15701_v40  ;;  %v8365_v63 = vrot.slane %v17843_v17, 1  ;;  %v17845_v60 = vunpack.c.l.bf16 %v17844_v21  ;;  %v17846_v50 = vunpack.c.h.bf16 %v17844_v21  ;;  %v17851_v40 = vunpack.c.l.bf16 %v17850_v53  ;;  %vm17858_vm10 = vmmov %vm17528_vm0 }
 0xaf8   : > { %v8373_v27 = vrot.slane %v17849_v46, 1  ;;  %v15722_v17 = vsel %vm17853_vm9, %v8351_v26, %v8353_v56  ;;  %v15731_v48 = vsel %vm17858_vm10, %v8353_v56, %v8355_v25  ;;  %vm17860_vm11 = vmmov %vm17528_vm0 }
 0xaf9   : > { %v8367_v32 = vrot.slane %v17845_v60, 1  ;;  %v8369_v51 = vrot.slane %v17846_v50, 1  ;;  %v8375_v55 = vrot.slane %v17851_v40, 1  ;;  %17854 = vst [vmem:[#allocation29_spill] sm:$0xff] %v15722_v17  ;;  %v17855_v60 = vunpack.c.l.bf16 %v15303_v13  ;;  %17859 = vst [vmem:[#allocation31_spill] sm:$0xff] %v15731_v48  ;;  %v17906_v48 = vld [vmem:[#allocation39_spill] sm:$0xff] }
 0xafa   : > { %v17856_v50 = vunpack.c.h.bf16 %v15303_v13  ;;  %v15734_v40 = vsel %vm17860_vm11, %v8355_v25, %v8357_v12  ;;  %vm17862_vm12 = vmmov %vm17528_vm0  ;;  %v17907_v17 = vld [vmem:[#allocation68_spill] sm:$0xff] }
 0xafb   : > { %v8379_v21 = vrot.slane %v17855_v60, 1  ;;  %17861 = vst [vmem:[#allocation109_spill] sm:$0xff] %v15734_v40  ;;  %v15737_v46 = vsel %vm17862_vm12, %v8357_v12, %v8359_v38  ;;  %vm17864_vm13 = vmmov %vm17528_vm0  ;;  %v15752_v56 = vsel %vm17528_vm0, %v8367_v32, %v8369_v51  ;;  %v17905_v40 = vld [vmem:[#allocation37_spill] sm:$0xff] }
 0xafc   : > { %v8381_v9 = vrot.slane %v17856_v50, 1  ;;  %17863 = vst [vmem:[#allocation110_spill] sm:$0xff] %v15737_v46  ;;  %v15740_v26 = vsel %vm17864_vm13, %v8359_v38, %v8361_v54  ;;  %vm17866_vm14 = vmmov %vm17528_vm0  ;;  %v15809_v46 = vpop.eup %10337 }
 0xafd   : > { %17865 = vst [vmem:[#allocation33_spill] sm:$0xff] %v15740_v26  ;;  %v15743_v53 = vsel %vm17866_vm14, %v8361_v54, %v8363_v61  ;;  %vm17868_vm15 = vmmov %vm17528_vm0 }
 0xafe   : > { %17867 = vst [vmem:[#allocation113_spill] sm:$0xff] %v15743_v53  ;;  %v15746_v13 = vsel %vm17868_vm15, %v8363_v61, %v8365_v63  ;;  %vm17870_vm3 = vmmov %vm17528_vm0  ;;  %v17881_v61 = vld [vmem:[#allocation91_spill] sm:$0xff] }
 0xaff   : > { %17869 = vst [vmem:[#allocation27_spill] sm:$0xff] %v15746_v13  ;;  %v15749_v3 = vsel %vm17870_vm3, %v8365_v63, %v8367_v32  ;;  %17872 = vst [vmem:[#allocation107_spill] sm:$0xff] %v15752_v56  ;;  %v7929_v41 = vsub.f32 %v17881_v61, %v15526_v10  ;;  %v17891_v61 = vld [vmem:[#allocation86_spill] sm:$0xff] }
 0xb00   : > { %17871 = vst [vmem:[#allocation8_spill] sm:$0xff] %v15749_v3  ;;  %vm17873_vm5 = vmmov %vm17528_vm0 }
 0xb01   : > { %v15755_v25 = vsel %vm17873_vm5, %v8369_v51, %v8371_v5  ;;  %vm17875_vm4 = vmmov %vm17528_vm0  ;;  %v15820_v36 = vmul.f32 %v15809_v46, %v7929_v41 }
 0xb02   : > { %17874 = vst [vmem:[#allocation66_spill] sm:$0xff] %v15755_v25  ;;  %v15758_v12 = vsel %vm17875_vm4, %v8371_v5, %v8373_v27  ;;  %vm17877_vm1 = vmmov %vm17528_vm0  ;;  %v17888_v5 = vld [vmem:[#allocation95_spill] sm:$0xff] }
 0xb03   : > { %17876 = vst [vmem:[#allocation25_spill] sm:$0xff] %v15758_v12  ;;  %v15761_v38 = vsel %vm17877_vm1, %v8373_v27, %v8375_v55  ;;  %vm17879_vm2 = vmmov %vm17528_vm0  ;;  %v7930_v60 = vsub.f32 %v17888_v5, %v15526_v10  ;;  %v17889_v27 = vld [vmem:[#allocation88_spill] sm:$0xff] }
 0xb04   : > { %17878 = vst [vmem:[#allocation100_spill] sm:$0xff] %v15761_v38  ;;  %v15764_v54 = vsel %vm17879_vm2, %v8375_v55, %v8377_v0  ;;  %vm17882_vm6 = vmmov %vm17528_vm0  ;;  %v7933_v50 = vsub.f32 %v17889_v27, %v15526_v10  ;;  %v17890_v55 = vld [vmem:[#allocation92_spill] sm:$0xff] }
 0xb05   : > { %17880 = vst [vmem:[#allocation41_spill] sm:$0xff] %v15764_v54  ;;  %v15769_v63 = vsel %vm17882_vm6, %v8377_v0, %v8379_v21  ;;  %vm17884_vm7 = vmmov %vm17528_vm0  ;;  %v7934_v62 = vsub.f32 %v17890_v55, %v15526_v10  ;;  %v7937_v54 = vsub.f32 %v17891_v61, %v15526_v10  ;;  %v17892_v0 = vld [vmem:[#allocation89_spill] sm:$0xff]  ;;  %v17895_v5 = vld [vmem:[#allocation80_spill] sm:$0xff] }
 0xb06   : > { %17883 = vst [vmem:[#allocation43_spill] sm:$0xff] %v15769_v63  ;;  %v15772_v32 = vsel %vm17884_vm7, %v8379_v21, %v8381_v9  ;;  %vm17886_vm8 = vmmov %vm17528_vm0  ;;  %v7938_v63 = vsub.f32 %v17892_v0, %v15526_v10  ;;  %v17893_v21 = vld [vmem:[#allocation78_spill] sm:$0xff]  ;;  %v17896_v27 = vld [vmem:[#allocation84_spill] sm:$0xff] }
 0xb07   : > { %17885 = vst [vmem:[#allocation104_spill] sm:$0xff] %v15772_v32  ;;  %v15775_v51 = vsel %vm17886_vm8, %v8381_v9, %v8383_v57  ;;  %v7941_v32 = vsub.f32 %v17893_v21, %v15526_v10  ;;  %v17894_v9 = vld [vmem:[#allocation82_spill] sm:$0xff]  ;;  %v7946_v38 = vsub.f32 %v17896_v27, %v15526_v10  ;;  %v17897_v55 = vld [vmem:[#allocation7_spill] sm:$0xff]  ;;  %v17898_v61 = vld [vmem:[#allocation49_spill] sm:$0xff]  ;;  %v15841_v41 = vmul.f32 %v15809_v46, %v7934_v62 }
 0xb08   : > { %17887 = vst [vmem:[#allocation45_spill] sm:$0xff] %v15775_v51  ;;  %v7942_v57 = vsub.f32 %v17894_v9, %v15526_v10  ;;  %v7945_v51 = vsub.f32 %v17895_v5, %v15526_v10  ;;  %v7949_v12 = vsub.f32 %v17897_v55, %v15526_v10  ;;  %v7950_v25 = vsub.f32 %v17898_v61, %v15526_v10  ;;  %v17899_v0 = vld [vmem:[#allocation65_spill] sm:$0xff]  ;;  %v17900_v21 = vld [vmem:[#allocation4_spill] sm:$0xff]  ;;  %v17903_v27 = vld [vmem:[#allocation59_spill] sm:$0xff] }
 0xb09   : > { %v7953_v56 = vsub.f32 %v17899_v0, %v15526_v10  ;;  %v7954_v3 = vsub.f32 %v17900_v21, %v15526_v10  ;;  %v17901_v9 = vld [vmem:[#allocation5_spill] sm:$0xff]  ;;  %v7961_v26 = vsub.f32 %v17903_v27, %v15526_v10  ;;  %v7965_v0 = vsub.f32 %v17905_v40, %v15526_v10 }
 0xb0a   : > { %v7957_v13 = vsub.f32 %v17901_v9, %v15526_v10  ;;  %v17902_v5 = vld [vmem:[#allocation17_spill] sm:$0xff]  ;;  %v7966_v21 = vsub.f32 %v17906_v48, %v15526_v10  ;;  %v7969_v9 = vsub.f32 %v17907_v17, %v15526_v10  ;;  %v17908_v27 = vsub.f32 %v14810_v1, %v15526_v10 }
 0xb0b   : > { %v7958_v53 = vsub.f32 %v17902_v5, %v15526_v10  ;;  %v17904_v55 = vld [vmem:[#allocation61_spill] sm:$0xff]  ;;  %v15823_v5 = vmul.f32 %v15809_v46, %v7930_v60  ;;  %v17909_v40 = vsub.f32 %v14816_v45, %v15526_v10  ;;  %v15838_v17 = vmul.f32 %v15809_v46, %v7933_v50 }
 0xb0c   : > { %v7962_v61 = vsub.f32 %v17904_v55, %v15526_v10  ;;  %v15829_v55 = vmul.f32 %v15809_v46, %v17908_v27  ;;  %v17910_v60 = vsub.f32 %v14835_v33, %v15526_v10  ;;  %v17911_v27 = vsub.f32 %v14839_v4, %v15526_v10 }
 0xb0d   : > { %v15835_v48 = vmul.f32 %v15809_v46, %v17909_v40  ;;  %v15856_v40 = vmul.f32 %v15809_v46, %v7937_v54  ;;  %v15859_v50 = vmul.f32 %v15809_v46, %v7938_v63  ;;  %v17912_v62 = vsub.f32 %v14856_v24, %v15526_v10 }
 0xb0e   : > { %v15847_v1 = vmul.f32 %v15809_v46, %v17910_v60  ;;  %v15853_v45 = vmul.f32 %v15809_v46, %v17911_v27  ;;  %v17913_v60 = vsub.f32 %v14860_v35, %v15526_v10  ;;  %v15874_v27 = vmul.f32 %v15809_v46, %v7941_v32 }
 0xb0f   : > { %v15865_v33 = vmul.f32 %v15809_v46, %v17912_v62  ;;  %v15877_v54 = vmul.f32 %v15809_v46, %v7942_v57  ;;  %v17914_v63 = vsub.f32 %v14877_v18, %v15526_v10  ;;  %v17915_v62 = vsub.f32 %v14881_v52, %v15526_v10 }
 0xb10   : > { %v15871_v4 = vmul.f32 %v15809_v46, %v17913_v60  ;;  %v15892_v60 = vmul.f32 %v15809_v46, %v7945_v51  ;;  %v15895_v32 = vmul.f32 %v15809_v46, %v7946_v38  ;;  %v17916_v57 = vsub.f32 %v14893_v58, %v15526_v10 }
 0xb11   : > { %v15883_v24 = vmul.f32 %v15809_v46, %v17914_v63  ;;  %v15889_v35 = vmul.f32 %v15809_v46, %v17915_v62  ;;  %v17917_v63 = vsub.f32 %v14897_v49, %v15526_v10  ;;  %v15910_v62 = vmul.f32 %v15809_v46, %v7949_v12 }
 0xb12   : > { %v15901_v18 = vmul.f32 %v15809_v46, %v17916_v57  ;;  %v15913_v51 = vmul.f32 %v15809_v46, %v7950_v25  ;;  %v17918_v38 = vsub.f32 %v14909_v7, %v15526_v10  ;;  %v17919_v57 = vsub.f32 %v14913_v2, %v15526_v10 }
 0xb13   : > { %v15907_v52 = vmul.f32 %v15809_v46, %v17917_v63  ;;  %v15928_v63 = vmul.f32 %v15809_v46, %v7953_v56  ;;  %v15931_v12 = vmul.f32 %v15809_v46, %v7954_v3  ;;  %v17920_v25 = vsub.f32 %v14925_v16, %v15526_v10 }
 0xb14   : > { %v15919_v58 = vmul.f32 %v15809_v46, %v17918_v38  ;;  %v15925_v49 = vmul.f32 %v15809_v46, %v17919_v57  ;;  %v17921_v38 = vsub.f32 %v14929_v22, %v15526_v10  ;;  %v15946_v57 = vmul.f32 %v15809_v46, %v7957_v13 }
 0xb15   : > { %v15937_v7 = vmul.f32 %v15809_v46, %v17920_v25  ;;  %v15949_v56 = vmul.f32 %v15809_v46, %v7958_v53  ;;  %v17922_v3 = vsub.f32 %v17799_v44, %v15526_v10  ;;  %v17923_v25 = vsub.f32 %v17800_v31, %v15526_v10 }
 0xb16   : > { %v15943_v2 = vmul.f32 %v15809_v46, %v17921_v38  ;;  %v15964_v38 = vmul.f32 %v15809_v46, %v7961_v26  ;;  %v15967_v13 = vmul.f32 %v15809_v46, %v7962_v61  ;;  %v17924_v53 = vsub.f32 %v17805_v14, %v15526_v10 }
 0xb17   : > { %v15955_v16 = vmul.f32 %v15809_v46, %v17922_v3  ;;  %v15961_v22 = vmul.f32 %v15809_v46, %v17923_v25  ;;  %v17925_v3 = vsub.f32 %v17806_v20, %v15526_v10  ;;  %v15982_v25 = vmul.f32 %v15809_v46, %v7965_v0 }
 0xb18   : > { %v15973_v44 = vmul.f32 %v15809_v46, %v17924_v53  ;;  %v15985_v26 = vmul.f32 %v15809_v46, %v7966_v21  ;;  %v17926_v61 = vsub.f32 %v17810_v8, %v15526_v10  ;;  %v17927_v53 = vsub.f32 %v17811_v15, %v15526_v10 }
 0xb19   : > { %v15979_v31 = vmul.f32 %v15809_v46, %v17925_v3  ;;  %v16000_v3 = vmul.f32 %v15809_v46, %v7969_v9  ;;  %v17928_v0 = vsub.f32 %v17815_v34, %v15526_v10  ;;  %v17929_v8 = vsub.f32 %v17816_v23, %v15526_v10 }
 0xb1a   : > { %v15991_v14 = vmul.f32 %v15809_v46, %v17926_v61  ;;  %v15997_v20 = vmul.f32 %v15809_v46, %v17927_v53  ;;  %v17930_v15 = vsub.f32 %v17817_v28, %v15526_v10  ;;  %v17931_v9 = vsub.f32 %v17818_v6, %v15526_v10 }
 0xb1b   : > { %v16006_v21 = vmul.f32 %v15809_v46, %v17928_v0  ;;  %v16012_v61 = vmul.f32 %v15809_v46, %v17929_v8  ;;  %v17932_v0 = vsub.f32 %v17819_v59, %v15526_v10  ;;  %v17933_v8 = vsub.f32 %v17820_v11, %v15526_v10 }
 0xb1c   : > { %v16018_v53 = vmul.f32 %v15809_v46, %v17930_v15  ;;  %v16024_v34 = vmul.f32 %v15809_v46, %v17931_v9  ;;  %v17934_v15 = vsub.f32 %v17821_v43, %v15526_v10  ;;  %v17935_v9 = vsub.f32 %v17822_v30, %v15526_v10 }
 0xb1d   : > { %v16030_v23 = vmul.f32 %v15809_v46, %v17932_v0  ;;  %v16036_v28 = vmul.f32 %v15809_v46, %v17933_v8  ;;  %v17936_v0 = vsub.f32 %v17823_v42, %v15526_v10  ;;  %v17937_v8 = vsub.f32 %v17824_v19, %v15526_v10 }
 0xb1e   : > { %v16042_v6 = vmul.f32 %v15809_v46, %v17934_v15  ;;  %v16049_v59 = vmul.f32 %v15809_v46, %v17935_v9  ;;  %v17939_v15 = vsub.f32 %v17825_v47, %v15526_v10  ;;  %v17941_v9 = vsub.f32 %v17826_v39, %v15526_v10 }
 0xb1f   : > { %v16055_v11 = vmul.f32 %v15809_v46, %v17936_v0  ;;  %v16061_v43 = vmul.f32 %v15809_v46, %v17937_v8  ;;  %v17943_v0 = vsub.f32 %v17827_v29, %v15526_v10  ;;  %v17945_v8 = vsub.f32 %v17828_v37, %v15526_v10 }
 0xb20   : > { %v16067_v30 = vmul.f32 %v15809_v46, %v17939_v15  ;;  %v16073_v42 = vmul.f32 %v15809_v46, %v17941_v9  ;;  %v17947_v15 = vld [vmem:[#allocation103_spill] sm:$0xff]  ;;  %v17950_v9 = vld [vmem:[#allocation64_spill] sm:$0xff] }
 0xb21   : > { %17938 = vst [vmem:[#allocation63_spill] sm:$0xff] %v16061_v43  ;;  %v16079_v19 = vmul.f32 %v15809_v46, %v17943_v0  ;;  %v16085_v47 = vmul.f32 %v15809_v46, %v17945_v8  ;;  %v17953_v0 = vld [vmem:[#allocation30_spill] sm:$0xff]  ;;  %v17956_v8 = vld [vmem:[#allocation56_spill] sm:$0xff] }
 0xb22   : > { %17940 = vst [vmem:[#allocation10_spill] sm:$0xff] %v16067_v30  ;;  %17942 = vst [vmem:[#allocation23_spill] sm:$0xff] %v16073_v42  ;;  %v17948_v30 = vsub.f32 %v17947_v15, %v15526_v10  ;;  %v17951_v42 = vsub.f32 %v17950_v9, %v15526_v10  ;;  %v17977_v43 = vld [vmem:[#allocation54_spill] sm:$0xff] }
 0xb23   : > { %17944 = vst [vmem:[#allocation18_spill] sm:$0xff] %v16079_v19  ;;  %17946 = vst [vmem:[#allocation52_spill] sm:$0xff] %v16085_v47  ;;  %v17954_v19 = vsub.f32 %v17953_v0, %v15526_v10  ;;  %v17957_v47 = vsub.f32 %v17956_v8, %v15526_v10  ;;  %v17965_v8 = vld [vmem:[#allocation83_spill] sm:$0xff] }
 0xb24   : > { %v16091_v39 = vmul.f32 %v15809_v46, %v17948_v30  ;;  %v16097_v29 = vmul.f32 %v15809_v46, %v17951_v42  ;;  %v17959_v30 = vld [vmem:[#allocation40_spill] sm:$0xff]  ;;  %v17962_v42 = vld [vmem:[#allocation38_spill] sm:$0xff] }
 0xb25   : > { %v16103_v37 = vmul.f32 %v15809_v46, %v17954_v19  ;;  %v16109_v15 = vmul.f32 %v15809_v46, %v17957_v47  ;;  %v17963_v19 = vsub.f32 %v17962_v42, %v15526_v10  ;;  %v17966_v47 = vsub.f32 %v17965_v8, %v15526_v10  ;;  %v17973_v8 = vld [vmem:[#allocation111_spill] sm:$0xff] }
 0xb26   : > { %17949 = vst [vmem:[#allocation70_spill] sm:$0xff] %v16091_v39  ;;  %17952 = vst [vmem:[#allocation72_spill] sm:$0xff] %v16097_v29  ;;  %v17960_v39 = vsub.f32 %v17959_v30, %v15526_v10 }
 0xb27   : > { %17955 = vst [vmem:[#allocation47_spill] sm:$0xff] %v16103_v37  ;;  %17958 = vst [vmem:[#allocation50_spill] sm:$0xff] %v16109_v15  ;;  %v16126_v0 = vmul.f32 %v15809_v46, %v17963_v19  ;;  %v16132_v30 = vmul.f32 %v15809_v46, %v17966_v47  ;;  %v17971_v37 = vld [vmem:[#allocation87_spill] sm:$0xff]  ;;  %v17974_v47 = vld [vmem:[#allocation58_spill] sm:$0xff] }
 0xb28   : > { %v16115_v9 = vmul.f32 %v15809_v46, %v17960_v39  ;;  %v17968_v39 = vld [vmem:[#allocation77_spill] sm:$0xff]  ;;  %v17972_v42 = vsub.f32 %v17971_v37, %v15526_v10  ;;  %v17978_v37 = vld [vmem:[#allocation60_spill] sm:$0xff] }
 0xb29   : > { %17964 = vst [vmem:[#allocation79_spill] sm:$0xff] %v16126_v0  ;;  %17967 = vst [vmem:[#allocation28_spill] sm:$0xff] %v16132_v30  ;;  %v8449_v0 = vadd.f32 %v17973_v8, %v15820_v36  ;;  %v8450_v30 = vadd.f32 %v17974_v47, %v15823_v5  ;;  %v17980_v8 = vld [vmem:[#allocation81_spill] sm:$0xff] }
 0xb2a   : > { %17961 = vst [vmem:[#allocation76_spill] sm:$0xff] %v16115_v9  ;;  %v17969_v9 = vsub.f32 %v17968_v39, %v15526_v10  ;;  %v16144_v19 = vmul.f32 %v15809_v46, %v17972_v42  ;;  %v17975_v39 = vld [vmem:[#allocation74_spill] sm:$0xff]  ;;  %v8453_v10 = vadd.f32 %v17977_v43, %v15838_v17  ;;  %v8456_v5 = vadd.f32 %v17980_v8, %v15853_v45  ;;  %v17983_v17 = vld [vmem:[#allocation73_spill] sm:$0xff]  ;;  %v17996_v8 = vld [vmem:[#allocation99_spill] sm:$0xff] }
 0xb2b   : > { %v8451_v29 = vadd.f32 %v17975_v39, %v15829_v55  ;;  %v17979_v42 = vld [vmem:[#allocation62_spill] sm:$0xff]  ;;  %v17981_v55 = vld [vmem:[#allocation85_spill] sm:$0xff]  ;;  %v8459_v43 = vadd.f32 %v17983_v17, %v15865_v33  ;;  %8513 = vst [vmem:[%s16120_s24] sm:$0xff] %v8449_v0  ;;  %8514 = vst [vmem:[%s16120_s24 + $0x8] sm:$0xff] %v8450_v30 }
 0xb2c   : > { %v16138_v15 = vmul.f32 %v15809_v46, %v17969_v9  ;;  %v17976_v9 = vld [vmem:[#allocation46_spill] sm:$0xff]  ;;  %v8454_v46 = vadd.f32 %v17978_v37, %v15841_v41  ;;  %v8455_v36 = vadd.f32 %v17979_v42, %v15847_v1  ;;  %v8457_v47 = vadd.f32 %v17981_v55, %v15856_v40  ;;  %v17987_v37 = vld [vmem:[#allocation71_spill] sm:$0xff]  ;;  %v17988_v42 = vld [vmem:[#allocation108_spill] sm:$0xff]  ;;  %8517 = vst [vmem:[%s16120_s24 + $0x20] sm:$0xff] %v8453_v10 }
 0xb2d   : > { %v17984_v41 = vld [vmem:[#allocation114_spill] sm:$0xff]  ;;  %8515 = vst [vmem:[%s16120_s24 + $0x10] sm:$0xff] %v8451_v29  ;;  %v8463_v33 = vadd.f32 %v17987_v37, %v15883_v24  ;;  %8520 = vst [vmem:[%s16120_s24 + $0x38] sm:$0xff] %v8456_v5  ;;  %v17989_v29 = vld [vmem:[#allocation36_spill] sm:$0xff] }
 0xb2e   : > { %17970 = vst [vmem:[#allocation106_spill] sm:$0xff] %v16138_v15  ;;  %v8452_v15 = vadd.f32 %v17976_v9, %v15835_v48  ;;  %v17982_v48 = vld [vmem:[#allocation42_spill] sm:$0xff]  ;;  %v8460_v9 = vadd.f32 %v17984_v41, %v15871_v4  ;;  %v8464_v4 = vadd.f32 %v17988_v42, %v15889_v35  ;;  %8518 = vst [vmem:[%s16120_s24 + $0x28] sm:$0xff] %v8454_v46  ;;  %v17991_v0 = vld [vmem:[#allocation105_spill] sm:$0xff] }
 0xb2f   : > { %v8458_v39 = vadd.f32 %v17982_v48, %v15859_v50  ;;  %v17985_v1 = vld [vmem:[#allocation6_spill] sm:$0xff]  ;;  %8519 = vst [vmem:[%s16120_s24 + $0x30] sm:$0xff] %v8455_v36  ;;  %v8467_v24 = vadd.f32 %v17991_v0, %v15901_v18  ;;  %v17992_v30 = vld [vmem:[#allocation48_spill] sm:$0xff]  ;;  %8521 = vst [vmem:[%s16120_s24 + $0x40] sm:$0xff] %v8457_v47 }
 0xb30   : > { %8516 = vst [vmem:[%s16120_s24 + $0x18] sm:$0xff] %v8452_v15  ;;  %v8461_v45 = vadd.f32 %v17985_v1, %v15874_v27  ;;  %v17986_v40 = vld [vmem:[#allocation14_spill] sm:$0xff]  ;;  %v8465_v27 = vadd.f32 %v17989_v29, %v15892_v60  ;;  %v17990_v15 = vld [vmem:[#allocation44_spill] sm:$0xff]  ;;  %v8468_v35 = vadd.f32 %v17992_v30, %v15907_v52  ;;  %8523 = vst [vmem:[%s16120_s24 + $0x50] sm:$0xff] %v8459_v43 }
 0xb31   : > { %v8462_v50 = vadd.f32 %v17986_v40, %v15877_v54  ;;  %v8466_v54 = vadd.f32 %v17990_v15, %v15895_v32  ;;  %8522 = vst [vmem:[%s16120_s24 + $0x48] sm:$0xff] %v8458_v39  ;;  %8524 = vst [vmem:[%s16120_s24 + $0x58] sm:$0xff] %v8460_v9  ;;  %v17993_v10 = vld [vmem:[#allocation75_spill] sm:$0xff]  ;;  %v17994_v46 = vld [vmem:[#allocation69_spill] sm:$0xff]  ;;  %v8472_v52 = vadd.f32 %v17996_v8, %v15925_v49 }
 0xb32   : > { %v8469_v60 = vadd.f32 %v17993_v10, %v15910_v62  ;;  %v8470_v32 = vadd.f32 %v17994_v46, %v15913_v51  ;;  %v17995_v36 = vld [vmem:[#allocation13_spill] sm:$0xff]  ;;  %8525 = vst [vmem:[%s16120_s24 + $0x60] sm:$0xff] %v8461_v45  ;;  %8527 = vst [vmem:[%s16120_s24 + $0x70] sm:$0xff] %v8463_v33  ;;  %v17997_v5 = vld [vmem:[#allocation102_spill] sm:$0xff] }
 0xb33   : > { %v8471_v18 = vadd.f32 %v17995_v36, %v15919_v58  ;;  %8526 = vst [vmem:[%s16120_s24 + $0x68] sm:$0xff] %v8462_v50  ;;  %8528 = vst [vmem:[%s16120_s24 + $0x78] sm:$0xff] %v8464_v4  ;;  %v8473_v62 = vadd.f32 %v17997_v5, %v15928_v63  ;;  %v17998_v55 = vld [vmem:[#allocation11_spill] sm:$0xff]  ;;  %v18000_v48 = vld [vmem:[#allocation24_spill] sm:$0xff] }
 0xb34   : > { %v8474_v51 = vadd.f32 %v17998_v55, %v15931_v12  ;;  %v17999_v47 = vld [vmem:[#allocation19_spill] sm:$0xff]  ;;  %v8476_v49 = vadd.f32 %v18000_v48, %v15943_v2  ;;  %8529 = vst [vmem:[%s16120_s24 + $0x80] sm:$0xff] %v8465_v27  ;;  %8530 = vst [vmem:[%s16120_s24 + $0x88] sm:$0xff] %v8466_v54  ;;  %v18002_v17 = vld [vmem:[#allocation96_spill] sm:$0xff] }
 0xb35   : > { %v8475_v58 = vadd.f32 %v17999_v47, %v15937_v7  ;;  %8531 = vst [vmem:[%s16120_s24 + $0x90] sm:$0xff] %v8467_v24  ;;  %8532 = vst [vmem:[%s16120_s24 + $0x98] sm:$0xff] %v8468_v35  ;;  %v18001_v39 = vld [vmem:[#allocation67_spill] sm:$0xff]  ;;  %v8478_v12 = vadd.f32 %v18002_v17, %v15949_v56  ;;  %v18003_v43 = vld [vmem:[#allocation93_spill] sm:$0xff] }
 0xb36   : > { %v8477_v63 = vadd.f32 %v18001_v39, %v15946_v57  ;;  %v8479_v7 = vadd.f32 %v18003_v43, %v15955_v16  ;;  %v18004_v41 = vld [vmem:[#allocation53_spill] sm:$0xff]  ;;  %8533 = vst [vmem:[%s16120_s24 + $0xa0] sm:$0xff] %v8469_v60  ;;  %8534 = vst [vmem:[%s16120_s24 + $0xa8] sm:$0xff] %v8470_v32  ;;  %v18005_v9 = vld [vmem:[#allocation51_spill] sm:$0xff] }
 0xb37   : > { %v8480_v2 = vadd.f32 %v18004_v41, %v15961_v22  ;;  %8535 = vst [vmem:[%s16120_s24 + $0xb0] sm:$0xff] %v8471_v18  ;;  %8536 = vst [vmem:[%s16120_s24 + $0xb8] sm:$0xff] %v8472_v52  ;;  %v8481_v57 = vadd.f32 %v18005_v9, %v15964_v38  ;;  %v18006_v1 = vld [vmem:[#allocation22_spill] sm:$0xff]  ;;  %v18007_v45 = vld [vmem:[#allocation9_spill] sm:$0xff] }
 0xb38   : > { %v8482_v56 = vadd.f32 %v18006_v1, %v15967_v13  ;;  %v8483_v16 = vadd.f32 %v18007_v45, %v15973_v44  ;;  %v18008_v40 = vld [vmem:[#allocation26_spill] sm:$0xff]  ;;  %8537 = vst [vmem:[%s16120_s24 + $0xc0] sm:$0xff] %v8473_v62  ;;  %8538 = vst [vmem:[%s16120_s24 + $0xc8] sm:$0xff] %v8474_v51  ;;  %v18010_v37 = vld [vmem:[#allocation55_spill] sm:$0xff] }
 0xb39   : > { %v8484_v22 = vadd.f32 %v18008_v40, %v15979_v31  ;;  %8539 = vst [vmem:[%s16120_s24 + $0xd0] sm:$0xff] %v8475_v58  ;;  %8540 = vst [vmem:[%s16120_s24 + $0xd8] sm:$0xff] %v8476_v49  ;;  %v18009_v50 = vld [vmem:[#allocation90_spill] sm:$0xff]  ;;  %v8486_v13 = vadd.f32 %v18010_v37, %v15985_v26  ;;  %v18011_v33 = vld [vmem:[#allocation57_spill] sm:$0xff] }
 0xb3a   : > { %v8485_v38 = vadd.f32 %v18009_v50, %v15982_v25  ;;  %v8487_v44 = vadd.f32 %v18011_v33, %v15991_v14  ;;  %v18012_v42 = vld [vmem:[#allocation20_spill] sm:$0xff]  ;;  %8541 = vst [vmem:[%s16120_s24 + $0xe0] sm:$0xff] %v8477_v63  ;;  %8542 = vst [vmem:[%s16120_s24 + $0xe8] sm:$0xff] %v8478_v12  ;;  %v18014_v29 = vld [vmem:[#allocation15_spill] sm:$0xff] }
 0xb3b   : > { %v8488_v31 = vadd.f32 %v18012_v42, %v15997_v20  ;;  %8543 = vst [vmem:[%s16120_s24 + $0xf0] sm:$0xff] %v8479_v7  ;;  %8544 = vst [vmem:[%s16120_s24 + $0xf8] sm:$0xff] %v8480_v2  ;;  %v18013_v4 = vld [vmem:[#allocation12_spill] sm:$0xff]  ;;  %v8490_v26 = vadd.f32 %v18014_v29, %v16006_v21  ;;  %v18015_v27 = vld [vmem:[#allocation35_spill] sm:$0xff] }
 0xb3c   : > { %v8489_v25 = vadd.f32 %v18013_v4, %v16000_v3  ;;  %v8491_v14 = vadd.f32 %v18015_v27, %v16012_v61  ;;  %v18016_v15 = vld [vmem:[#allocation34_spill] sm:$0xff]  ;;  %8545 = vst [vmem:[%s16120_s24 + $0x100] sm:$0xff] %v8481_v57  ;;  %8546 = vst [vmem:[%s16120_s24 + $0x108] sm:$0xff] %v8482_v56  ;;  %v18017_v54 = vld [vmem:[#allocation21_spill] sm:$0xff] }
 0xb3d   : > { %v8492_v20 = vadd.f32 %v18016_v15, %v16018_v53  ;;  %8547 = vst [vmem:[%s16120_s24 + $0x110] sm:$0xff] %v8483_v16  ;;  %8548 = vst [vmem:[%s16120_s24 + $0x118] sm:$0xff] %v8484_v22  ;;  %v8493_v3 = vadd.f32 %v18017_v54, %v16024_v34  ;;  %v18018_v0 = vld [vmem:[#allocation16_spill] sm:$0xff]  ;;  %v18021_v35 = vld [vmem:[#allocation29_spill] sm:$0xff] }
 0xb3e   : > { %v8494_v21 = vadd.f32 %v18018_v0, %v16030_v23  ;;  %v18019_v24 = vld [vmem:[#allocation32_spill] sm:$0xff]  ;;  %8549 = vst [vmem:[%s16120_s24 + $0x120] sm:$0xff] %v8485_v38  ;;  %8550 = vst [vmem:[%s16120_s24 + $0x128] sm:$0xff] %v8486_v13  ;;  %v8497_v34 = vadd.f32 %v18021_v35, %v16049_v59  ;;  %v18022_v10 = vld [vmem:[#allocation31_spill] sm:$0xff] }
 0xb3f   : > { %v8495_v61 = vadd.f32 %v18019_v24, %v16036_v28  ;;  %v18020_v30 = vld [vmem:[#allocation112_spill] sm:$0xff]  ;;  %8551 = vst [vmem:[%s16120_s24 + $0x130] sm:$0xff] %v8487_v44  ;;  %8552 = vst [vmem:[%s16120_s24 + $0x138] sm:$0xff] %v8488_v31  ;;  %v8498_v23 = vadd.f32 %v18022_v10, %v16055_v11  ;;  %v18023_v60 = vld [vmem:[#allocation63_spill] sm:$0xff] }
 0xb40   : > { %v8496_v53 = vadd.f32 %v18020_v30, %v16042_v6  ;;  %v18024_v46 = vld [vmem:[#allocation109_spill] sm:$0xff]  ;;  %v18025_v32 = vld [vmem:[#allocation10_spill] sm:$0xff]  ;;  %8553 = vst [vmem:[%s16120_s24 + $0x140] sm:$0xff] %v8489_v25  ;;  %8554 = vst [vmem:[%s16120_s24 + $0x148] sm:$0xff] %v8490_v26 }
 0xb41   : > { %v8499_v28 = vadd.f32 %v18024_v46, %v18023_v60  ;;  %v18026_v36 = vld [vmem:[#allocation110_spill] sm:$0xff]  ;;  %8555 = vst [vmem:[%s16120_s24 + $0x150] sm:$0xff] %v8491_v14  ;;  %8556 = vst [vmem:[%s16120_s24 + $0x158] sm:$0xff] %v8492_v20  ;;  %v18027_v18 = vld [vmem:[#allocation23_spill] sm:$0xff] }
 0xb42   : > { %v8500_v6 = vadd.f32 %v18026_v36, %v18025_v32  ;;  %v18028_v8 = vld [vmem:[#allocation33_spill] sm:$0xff]  ;;  %v18029_v52 = vld [vmem:[#allocation18_spill] sm:$0xff]  ;;  %v18031_v62 = vld [vmem:[#allocation52_spill] sm:$0xff]  ;;  %8557 = vst [vmem:[%s16120_s24 + $0x160] sm:$0xff] %v8493_v3 }
 0xb43   : > { %v8501_v59 = vadd.f32 %v18028_v8, %v18027_v18  ;;  %v18030_v5 = vld [vmem:[#allocation113_spill] sm:$0xff]  ;;  %v18032_v55 = vld [vmem:[#allocation27_spill] sm:$0xff]  ;;  %v18033_v47 = vld [vmem:[#allocation70_spill] sm:$0xff]  ;;  %8558 = vst [vmem:[%s16120_s24 + $0x168] sm:$0xff] %v8494_v21 }
 0xb44   : > { %v8502_v11 = vadd.f32 %v18030_v5, %v18029_v52  ;;  %v8503_v51 = vadd.f32 %v18032_v55, %v18031_v62  ;;  %v18034_v58 = vld [vmem:[#allocation8_spill] sm:$0xff]  ;;  %8559 = vst [vmem:[%s16120_s24 + $0x170] sm:$0xff] %v8495_v61  ;;  %8560 = vst [vmem:[%s16120_s24 + $0x178] sm:$0xff] %v8496_v53  ;;  %v18036_v39 = vld [vmem:[#allocation107_spill] sm:$0xff] }
 0xb45   : > { %v8504_v48 = vadd.f32 %v18034_v58, %v18033_v47  ;;  %v18035_v49 = vld [vmem:[#allocation72_spill] sm:$0xff]  ;;  %v18037_v17 = vld [vmem:[#allocation47_spill] sm:$0xff]  ;;  %v18038_v12 = vld [vmem:[#allocation66_spill] sm:$0xff]  ;;  %8561 = vst [vmem:[%s16120_s24 + $0x180] sm:$0xff] %v8497_v34 }
 0xb46   : > { %v8505_v63 = vadd.f32 %v18036_v39, %v18035_v49  ;;  %v8506_v43 = vadd.f32 %v18038_v12, %v18037_v17  ;;  %v18039_v7 = vld [vmem:[#allocation50_spill] sm:$0xff]  ;;  %v18040_v41 = vld [vmem:[#allocation25_spill] sm:$0xff]  ;;  %v18041_v9 = vld [vmem:[#allocation76_spill] sm:$0xff]  ;;  %8562 = vst [vmem:[%s16120_s24 + $0x188] sm:$0xff] %v8498_v23 }
 0xb47   : > { %v8507_v2 = vadd.f32 %v18040_v41, %v18039_v7  ;;  %v18042_v57 = vld [vmem:[#allocation100_spill] sm:$0xff]  ;;  %8563 = vst [vmem:[%s16120_s24 + $0x190] sm:$0xff] %v8499_v28  ;;  %8564 = vst [vmem:[%s16120_s24 + $0x198] sm:$0xff] %v8500_v6  ;;  %v18043_v56 = vld [vmem:[#allocation79_spill] sm:$0xff] }
 0xb48   : > { %v8508_v1 = vadd.f32 %v18042_v57, %v18041_v9  ;;  %v18044_v45 = vld [vmem:[#allocation41_spill] sm:$0xff]  ;;  %v18045_v40 = vld [vmem:[#allocation28_spill] sm:$0xff]  ;;  %v18046_v22 = vld [vmem:[#allocation43_spill] sm:$0xff]  ;;  %8565 = vst [vmem:[%s16120_s24 + $0x1a0] sm:$0xff] %v8501_v59 }
 0xb49   : > { %v8509_v16 = vadd.f32 %v18044_v45, %v18043_v56  ;;  %v8510_v50 = vadd.f32 %v18046_v22, %v18045_v40  ;;  %v18047_v38 = vld [vmem:[#allocation106_spill] sm:$0xff]  ;;  %v18048_v37 = vld [vmem:[#allocation104_spill] sm:$0xff]  ;;  %v18049_v33 = vld [vmem:[#allocation45_spill] sm:$0xff]  ;;  %8566 = vst [vmem:[%s16120_s24 + $0x1a8] sm:$0xff] %v8502_v11 }
 0xb4a   : > { %v8511_v13 = vadd.f32 %v18048_v37, %v18047_v38  ;;  %v8512_v44 = vadd.f32 %v18049_v33, %v16144_v19  ;;  %8567 = vst [vmem:[%s16120_s24 + $0x1b0] sm:$0xff] %v8503_v51  ;;  %8568 = vst [vmem:[%s16120_s24 + $0x1b8] sm:$0xff] %v8504_v48 }
 0xb4b   : > { %8569 = vst [vmem:[%s16120_s24 + $0x1c0] sm:$0xff] %v8505_v63  ;;  %8570 = vst [vmem:[%s16120_s24 + $0x1c8] sm:$0xff] %v8506_v43 }
 0xb4c   : > { %8571 = vst [vmem:[%s16120_s24 + $0x1d0] sm:$0xff] %v8507_v2  ;;  %8572 = vst [vmem:[%s16120_s24 + $0x1d8] sm:$0xff] %v8508_v1 }
 0xb4d   : > { %8573 = vst [vmem:[%s16120_s24 + $0x1e0] sm:$0xff] %v8509_v16  ;;  %8574 = vst [vmem:[%s16120_s24 + $0x1e8] sm:$0xff] %v8510_v50 }
 0xb4e   : > { %8575 = vst [vmem:[%s16120_s24 + $0x1f0] sm:$0xff] %v8511_v13  ;;  %8576 = vst [vmem:[%s16120_s24 + $0x1f8] sm:$0xff] %v8512_v44 }
 0xb4f PF: > { %s15_s18 = sadd.s32 1, %s10405_s18  }
 0xb50   : > { %p12_p4 = scmp.ge.s32.totalorder %s15_s18, 4  }
 0xb52   :  { %14 = sbr.rel (!%p12_p4) target bundleno = 1 (0x1), region = 70 }

</bundles_post_ra>
